<compile_context>
chip_gen: v5e
topology: v5e:2x2
jax: 0.10.0
libtpu: 0.0.40
codegen_flags: <defaults>
</compile_context>

<pallas_src>
import functools

import numpy as np
import jax
import jax.numpy as jnp
from jax.experimental import pallas as pl
from jax.experimental.pallas import tpu as pltpu


def _lrelu(x, ns=0.2):
    return jnp.where(x >= 0.0, x, ns * x)


# ---------------------------------------------------------------------------
# Fused kernel
# ---------------------------------------------------------------------------
def _netd_fused_kernel(
    xq_ref,    # (15, 14N, 192) bf16  conv1 input, rows (col parity, col group, n)
    act6_ref,  # (6N, A) f32          action tiled over the 6 conv2 output cols
    act4_ref,  # (4N, A) f32          action tiled over the 4 conv3 output cols
    actn_ref,  # (N, A)  f32          action
    w1q_ref,   # (2, 192, 32) bf16    conv1 weight, K = (row-in-quad, col, cin)
    b1_ref,    # (1, 32) f32
    w2p_ref,   # (4, 128, 64) bf16    conv2 image weight, K = (kernel col, cin)
    a2w_ref,   # (A, 64) f32          conv2 action weight summed over taps
    b2_ref,    # (1, 64) f32
    w3p_ref,   # (3, 192, 32) bf16    conv3 image weight, K = (kernel col, cin)
    a3w_ref,   # (A, 32) f32
    b3_ref,    # (1, 32) f32
    w1f_ref,   # (512, 18) bf16       FC1 weight, rows ordered (oh, ow, c)
    w1a_ref,   # (A, 18) f32
    bf1_ref,   # (1, 18) f32
    w2f_ref,   # (18, 1) f32
    bf2_ref,   # (1, 1) f32
    out_ref,   # (N, 1) f32
    a1_s,      # VMEM (14, 6N, 128) bf16   conv1 act, rows (ow2, n), lanes (j, c)
    a2_s,      # VMEM (6, 4N, 192) bf16    conv2 act, rows (ow3, n), lanes (j3, c)
    fc_s,      # VMEM (N, 512) bf16        FC1 input slab, lanes ((oh*4+ow)*32 + c)
):
    f32 = jnp.float32
    bf16 = jnp.bfloat16
    n = out_ref.shape[0]

    # Hoisted bias + folded-action terms (computed once, reused every row).
    b1 = b1_ref[...]
    add2 = jnp.dot(act6_ref[...], a2w_ref[...], preferred_element_type=f32) + b2_ref[...]
    add3 = jnp.dot(act4_ref[...], a3w_ref[...], preferred_element_type=f32) + b3_ref[...]

    # ---- conv1: 8x8 / stride 4, 6 -> 32 ch, 60x60 -> 14x14, LeakyReLU(0.2) -------
    # Two K=192 taps (input row quads h and h+1) per output row, M = 14N.
    for h in range(14):
        c1 = jnp.dot(xq_ref[h], w1q_ref[0], preferred_element_type=f32)
        c1 = c1 + jnp.dot(xq_ref[h + 1], w1q_ref[1], preferred_element_type=f32)
        c1 = _lrelu(c1 + b1)                                   # (14N, 32), rows (r, q, n)
        # Repack into conv2's K-major layout: lane block j holds conv1 col 2*ow2+j.
        for j in range(4):
            src = (j % 2) * 7 * n + (j // 2) * n
            a1_s[h, :, j * 32:(j + 1) * 32] = c1[src:src + 6 * n, :].astype(bf16)

    # ---- conv2: 4x4 / stride 2, (32 + action) -> 64 ch, 14x14 -> 6x6 -------------
    # Four K=128 taps (kernel rows) per output row, M = 6N.
    for oh2 in range(6):
        acc = jnp.dot(a1_s[2 * oh2], w2p_ref[0], preferred_element_type=f32)
        for i in range(1, 4):
            acc = acc + jnp.dot(a1_s[2 * oh2 + i], w2p_ref[i],
                                preferred_element_type=f32)
        c2 = _lrelu(acc + add2)                                # (6N, 64), rows (ow2, n)
        # Repack into conv3's K-major layout: lane block j3 holds conv2 col ow3+j3.
        for j3 in range(3):
            a2_s[oh2, :, j3 * 64:(j3 + 1) * 64] = c2[j3 * n:(j3 + 4) * n, :].astype(bf16)

    # ---- conv3: 3x3 / stride 1, (64 + action) -> 32 ch, 6x6 -> 4x4 ---------------
    # Three K=192 taps per output row, M = 4N; scattered straight into the FC slab.
    for oh3 in range(4):
        acc = jnp.dot(a2_s[oh3], w3p_ref[0], preferred_element_type=f32)
        for i in range(1, 3):
            acc = acc + jnp.dot(a2_s[oh3 + i], w3p_ref[i],
                                preferred_element_type=f32)
        c3 = _lrelu(acc + add3)                                # (4N, 32), rows (ow3, n)
        for w in range(4):
            col = (oh3 * 4 + w) * 32
            fc_s[:, col:col + 32] = c3[w * n:(w + 1) * n, :].astype(bf16)

    # ---- FC1 (512 + action -> 18) + LeakyReLU + FC2 (18 -> 1), single store ------
    h1 = jnp.dot(fc_s[...], w1f_ref[...], preferred_element_type=f32)
    h1 = h1 + jnp.dot(actn_ref[...], w1a_ref[...], preferred_element_type=f32)
    h1 = _lrelu(h1 + bf1_ref[...])
    out_ref[...] = jnp.dot(h1, w2f_ref[...], preferred_element_type=f32) + bf2_ref[...]


def _netd_pallas_call(inputs, n_batch):
    def full_spec(a):
        nd = a.ndim
        return pl.BlockSpec(a.shape, lambda i, nd=nd: (0,) * nd)

    return pl.pallas_call(
        _netd_fused_kernel,
        out_shape=jax.ShapeDtypeStruct((n_batch, 1), jnp.float32),
        grid=(1,),
        in_specs=[full_spec(a) for a in inputs],
        out_specs=pl.BlockSpec((n_batch, 1), lambda i: (0, 0)),
        scratch_shapes=[
            pltpu.VMEM((14, 6 * n_batch, 128), jnp.bfloat16),
            pltpu.VMEM((6, 4 * n_batch, 192), jnp.bfloat16),
            pltpu.VMEM((n_batch, 512), jnp.bfloat16),
        ],
        compiler_params=pltpu.CompilerParams(
            dimension_semantics=("arbitrary",)),
    )(*inputs)


# ---------------------------------------------------------------------------
# Parameter setup (deterministic synthetic init; spectral norm applied here)
# ---------------------------------------------------------------------------
def _spectral_normalize(w, key, power_iterations=1, eps=1e-12):
    # SpectralNorm power iteration is parameter preprocessing, done once in plain JAX.
    cout = w.shape[-1]
    w_mat = w.reshape(-1, cout).T
    u = jax.random.normal(key, (cout,), dtype=w.dtype)
    u = u / (jnp.linalg.norm(u) + eps)
    v = None
    for _ in range(power_iterations):
        v = w_mat.T @ u
        v = v / (jnp.linalg.norm(v) + eps)
        u = w_mat @ v
        u = u / (jnp.linalg.norm(u) + eps)
    sigma = u @ (w_mat @ v)
    return w / sigma


def init_raw_params(key, action_dim, pov_channels, lookahead=1):
    # cnn_type == 'atari'
    sizes = [8, 4, 3]
    filters = [32, 64, 32]
    end_size = 4
    a_ch = action_dim * lookahead
    in_ch = pov_channels * (1 + lookahead)

    keys = jax.random.split(key, 16)
    ki = 0
    convs = []
    for i in range(3):
        k, cout = sizes[i], filters[i]
        fan_in = in_ch * k * k
        w = jax.random.normal(keys[ki], (k, k, in_ch, cout), jnp.float32)
        w = w / jnp.sqrt(fan_in); ki += 1
        b = 0.01 * jax.random.normal(keys[ki], (1, cout), jnp.float32); ki += 1
        w = _spectral_normalize(w, keys[ki], power_iterations=1)  # USE_LOOKAHEAD=False
        ki += 1
        convs.append((w, b))
        in_ch = filters[i] + a_ch if i != 2 else filters[i]

    fc1_in = filters[-1] * end_size ** 2 + a_ch
    # FC1 parameterized directly in (h, w, c, out) order (fixed permutation of the
    # torch flatten ordering -> equivalent module, no runtime transpose needed).
    u1 = jax.random.normal(keys[ki], (end_size, end_size, filters[-1], 18),
                           jnp.float32) / jnp.sqrt(fc1_in); ki += 1
    w1a = jax.random.normal(keys[ki], (a_ch, 18), jnp.float32) / jnp.sqrt(fc1_in); ki += 1
    bf1 = 0.01 * jax.random.normal(keys[ki], (1, 18), jnp.float32); ki += 1
    w2f = jax.random.normal(keys[ki], (18, 1), jnp.float32) / jnp.sqrt(18.0); ki += 1
    bf2 = 0.01 * jax.random.normal(keys[ki], (1, 1), jnp.float32); ki += 1

    (w1, b1), (w2, b2), (w3, b3) = convs
    return dict(w1=w1, b1=b1, w2=w2, b2=b2, w3=w3, b3=b3,
                u1=u1, w1a=w1a, bf1=bf1, w2f=w2f, bf2=bf2)


def pack_params(raw):
    """Reorder weights into the kernel's K-major packed layouts (init-time, numpy)."""
    f32 = np.float32
    bf = jnp.bfloat16
    w1 = np.asarray(raw["w1"], f32)   # (8, 8, cin, 32)
    w2 = np.asarray(raw["w2"], f32)   # (4, 4, 32 + A, 64)
    w3 = np.asarray(raw["w3"], f32)   # (3, 3, 64 + A, 32)
    u1 = np.asarray(raw["u1"], f32)   # (4, 4, 32, 18)
    c1, c2, c3 = 32, 64, 32
    cin = w1.shape[2]

    return {
        # conv1: 2 row-quad taps; K packs (row-in-quad, kernel col, cin).
        "w1q": jnp.asarray(w1.reshape(2, 4 * 8 * cin, c1), dtype=bf),
        "b1": jnp.asarray(raw["b1"]),
        # conv2/conv3: image channels only, K packs (kernel col, cin);
        # spatially-constant action channels pre-summed over taps.
        "w2p": jnp.asarray(w2[:, :, :c1, :].reshape(4, 4 * c1, c2), dtype=bf),
        "a2w": jnp.asarray(w2[:, :, c1:, :].sum(axis=(0, 1))),
        "b2": jnp.asarray(raw["b2"]),
        "w3p": jnp.asarray(w3[:, :, :c2, :].reshape(3, 3 * c2, c3), dtype=bf),
        "a3w": jnp.asarray(w3[:, :, c2:, :].sum(axis=(0, 1))),
        "b3": jnp.asarray(raw["b3"]),
        "w1f": jnp.asarray(u1.reshape(4 * 4 * c3, 18), dtype=bf),
        "w1a": jnp.asarray(raw["w1a"]),
        "bf1": jnp.asarray(raw["bf1"]),
        "w2f": jnp.asarray(raw["w2f"]),
        "bf2": jnp.asarray(raw["bf2"]),
    }


# ---------------------------------------------------------------------------
# netD.forward
# ---------------------------------------------------------------------------
def netD_forward(params, state_pov, action_vec, *, er, pov_hw):
    H, W = pov_hw
    assert H == 60 and W == 60, "kernel is specialized to the 60x60 atari-CNN input"
    # TODO(synk): generalize the static layout constants to other input sizes.
    x = state_pov.reshape(er, -1, H, W)          # torch-style .view -> NCHW
    x = jnp.transpose(x, (0, 2, 3, 1))           # NHWC
    n, _, _, cin = x.shape

    # conv1 input, column-phase + kernel-tap packed (pure layout, ~1.9x duplication,
    # every packed element maps to a valid input pixel — no padding):
    #   xq[m, r*7n + q*n + b, ki*8*cin + kj*cin + c] = x[b, 4m+ki, 8q+4r+kj, c]
    parts = []
    for r in range(2):
        xr = x[:, :, 4 * r:4 * r + 56, :].reshape(n, 15, 4, 7, 8, cin)
        parts.append(jnp.transpose(xr, (1, 3, 0, 2, 4, 5)))   # (15, 7, n, 4, 8, cin)
    xq = jnp.stack(parts, axis=1).reshape(15, 14 * n, 32 * cin)
    xq = xq.astype(jnp.bfloat16)

    act6 = jnp.tile(action_vec, (6, 1))          # rows (ow2, n)
    act4 = jnp.tile(action_vec, (4, 1))          # rows (ow3, n)

    inputs = (
        xq, act6, act4, action_vec,
        params["w1q"], params["b1"],
        params["w2p"], params["a2w"], params["b2"],
        params["w3p"], params["a3w"], params["b3"],
        params["w1f"], params["w1a"], params["bf1"],
        params["w2f"], params["bf2"],
    )
    out = _netd_pallas_call(inputs, n)
    return out[:, 0]                             # (er,)


# ---------------------------------------------------------------------------
# Pure-JAX reference (mirrors the kernel's bf16 quantization points exactly)
# ---------------------------------------------------------------------------
def reference_forward(raw, state_pov, action_vec, *, er):
    hi = jax.lax.Precision.HIGHEST
    q = lambda v: v.astype(jnp.bfloat16).astype(jnp.float32)
    lre = lambda v: jnp.where(v >= 0.0, v, 0.2 * v)

    def conv(h, w, s):
        return jax.lax.conv_general_dilated(
            h, w, (s, s), "VALID",
            dimension_numbers=("NHWC", "HWIO", "NHWC"), precision=hi)

    a = action_vec
    x = state_pov.reshape(er, -1, 60, 60).transpose(0, 2, 3, 1)

    h = q(lre(conv(q(x), q(raw["w1"]), 4) + raw["b1"]))
    for wkey, bkey, s, nimg in (("w2", "b2", 2, 32), ("w3", "b3", 1, 64)):
        w = raw[wkey]
        wmix = jnp.concatenate([q(w[:, :, :nimg, :]), w[:, :, nimg:, :]], axis=2)
        at = jnp.broadcast_to(a[:, None, None, :], h.shape[:3] + (a.shape[-1],))
        h = q(lre(conv(jnp.concatenate([h, at], axis=-1), wmix, s) + raw[bkey]))
    flat = h.reshape(er, -1)
    h1 = lre(jnp.dot(flat, q(raw["u1"].reshape(-1, 18)), precision=hi)
             + jnp.dot(a, raw["w1a"], precision=hi) + raw["bf1"])
    return (jnp.dot(h1, raw["w2f"], precision=hi) + raw["bf2"])[:, 0]


if __name__ == "__main__":
    key = jax.random.PRNGKey(0)
    kp, kx, ka = jax.random.split(key, 3)

    er = 2                     # args.er (batch size)
    action_dim = 4
    lookahead = 1
    C = 3                      # state_shape['pov'][-1]
    H = W = 60                 # smallest atari-CNN input that yields the 4x4 end map

    raw = init_raw_params(kp, action_dim, C, lookahead)
    packed = pack_params(raw)

    state_pov = jax.random.normal(
        kx, (er, C * (1 + lookahead), H, W), dtype=jnp.float32)
    action_vec = jax.random.normal(
        ka, (er, action_dim * lookahead), dtype=jnp.float32)

    fwd = jax.jit(functools.partial(netD_forward, er=er, pov_hw=(H, W)))
    out = jax.block_until_ready(fwd(packed, state_pov, action_vec))
    assert out.shape == (er,) and out.dtype == jnp.float32

    ref = jax.block_until_ready(
        jax.jit(functools.partial(reference_forward, er=er))(raw, state_pov, action_vec))
    assert np.allclose(np.asarray(out), np.asarray(ref), atol=2e-3, rtol=2e-3), (out, ref)

    print("KERNEL_OK")
</pallas_src>

<mosaic_0001>
module attributes {stable_mosaic.version = 11 : i64} {
  func.func @_netd_fused_kernel(%arg0: i32, %arg1: memref<15x28x192xbf16, #tpu.memory_space<vmem>>, %arg2: memref<12x4xf32, #tpu.memory_space<vmem>>, %arg3: memref<8x4xf32, #tpu.memory_space<vmem>>, %arg4: memref<2x4xf32, #tpu.memory_space<vmem>>, %arg5: memref<2x192x32xbf16, #tpu.memory_space<vmem>>, %arg6: memref<1x32xf32, #tpu.memory_space<vmem>>, %arg7: memref<4x128x64xbf16, #tpu.memory_space<vmem>>, %arg8: memref<4x64xf32, #tpu.memory_space<vmem>>, %arg9: memref<1x64xf32, #tpu.memory_space<vmem>>, %arg10: memref<3x192x32xbf16, #tpu.memory_space<vmem>>, %arg11: memref<4x32xf32, #tpu.memory_space<vmem>>, %arg12: memref<1x32xf32, #tpu.memory_space<vmem>>, %arg13: memref<512x18xbf16, #tpu.memory_space<vmem>>, %arg14: memref<4x18xf32, #tpu.memory_space<vmem>>, %arg15: memref<1x18xf32, #tpu.memory_space<vmem>>, %arg16: memref<18x1xf32, #tpu.memory_space<vmem>>, %arg17: memref<1x1xf32, #tpu.memory_space<vmem>>, %arg18: memref<2x1xf32, #tpu.memory_space<vmem>>, %arg19: memref<14x12x128xbf16, #tpu.memory_space<vmem>>, %arg20: memref<6x8x192xbf16, #tpu.memory_space<vmem>>, %arg21: memref<2x512xbf16, #tpu.memory_space<vmem>>) attributes {dimension_semantics = [#tpu.dimension_semantics<arbitrary>], iteration_bounds = array<i64: 1>, scalar_prefetch = 0 : i64, scratch_operands = 3 : i64, tpu.core_type = #tpu.core_type<tc>, window_params = [{pipeline_mode = #tpu.pipeline_mode<synchronous>, transform_indices = @transform_0, window_bounds = array<i64: 15, 28, 192>}, {pipeline_mode = #tpu.pipeline_mode<synchronous>, transform_indices = @transform_1, window_bounds = array<i64: 12, 4>}, {pipeline_mode = #tpu.pipeline_mode<synchronous>, transform_indices = @transform_2, window_bounds = array<i64: 8, 4>}, {pipeline_mode = #tpu.pipeline_mode<synchronous>, transform_indices = @transform_3, window_bounds = array<i64: 2, 4>}, {pipeline_mode = #tpu.pipeline_mode<synchronous>, transform_indices = @transform_4, window_bounds = array<i64: 2, 192, 32>}, {pipeline_mode = #tpu.pipeline_mode<synchronous>, transform_indices = @transform_5, window_bounds = array<i64: 1, 32>}, {pipeline_mode = #tpu.pipeline_mode<synchronous>, transform_indices = @transform_6, window_bounds = array<i64: 4, 128, 64>}, {pipeline_mode = #tpu.pipeline_mode<synchronous>, transform_indices = @transform_7, window_bounds = array<i64: 4, 64>}, {pipeline_mode = #tpu.pipeline_mode<synchronous>, transform_indices = @transform_8, window_bounds = array<i64: 1, 64>}, {pipeline_mode = #tpu.pipeline_mode<synchronous>, transform_indices = @transform_9, window_bounds = array<i64: 3, 192, 32>}, {pipeline_mode = #tpu.pipeline_mode<synchronous>, transform_indices = @transform_10, window_bounds = array<i64: 4, 32>}, {pipeline_mode = #tpu.pipeline_mode<synchronous>, transform_indices = @transform_11, window_bounds = array<i64: 1, 32>}, {pipeline_mode = #tpu.pipeline_mode<synchronous>, transform_indices = @transform_12, window_bounds = array<i64: 512, 18>}, {pipeline_mode = #tpu.pipeline_mode<synchronous>, transform_indices = @transform_13, window_bounds = array<i64: 4, 18>}, {pipeline_mode = #tpu.pipeline_mode<synchronous>, transform_indices = @transform_14, window_bounds = array<i64: 1, 18>}, {pipeline_mode = #tpu.pipeline_mode<synchronous>, transform_indices = @transform_15, window_bounds = array<i64: 18, 1>}, {pipeline_mode = #tpu.pipeline_mode<synchronous>, transform_indices = @transform_16, window_bounds = array<i64: 1, 1>}, {pipeline_mode = #tpu.pipeline_mode<synchronous>, transform_indices = @transform_17, window_bounds = array<i64: 2, 1>}]} {
    %c0 = arith.constant 0 : index
    %c0_0 = arith.constant 0 : index
    %0 = vector.load %arg6[%c0, %c0_0] : memref<1x32xf32, #tpu.memory_space<vmem>>, vector<1x32xf32>
    %c0_1 = arith.constant 0 : index
    %c0_2 = arith.constant 0 : index
    %1 = vector.load %arg2[%c0_1, %c0_2] : memref<12x4xf32, #tpu.memory_space<vmem>>, vector<12x4xf32>
    %c0_3 = arith.constant 0 : index
    %c0_4 = arith.constant 0 : index
    %2 = vector.load %arg8[%c0_3, %c0_4] : memref<4x64xf32, #tpu.memory_space<vmem>>, vector<4x64xf32>
    %cst = arith.constant dense<0.000000e+00> : vector<12x64xf32>
    %3 = tpu.matmul %1, %2, %cst {dimension_numbers = #tpu.dot_dimension_numbers<[1], [0], [0], [1], [0, 0, 1, 1], [], []>} : vector<12x4xf32>, vector<4x64xf32>, vector<12x64xf32> -> vector<12x64xf32>
    %c0_5 = arith.constant 0 : index
    %c0_6 = arith.constant 0 : index
    %4 = vector.load %arg9[%c0_5, %c0_6] : memref<1x64xf32, #tpu.memory_space<vmem>>, vector<1x64xf32>
    %5 = vector.broadcast %4 : vector<1x64xf32> to vector<12x64xf32>
    %6 = arith.addf %3, %5 : vector<12x64xf32>
    %c0_7 = arith.constant 0 : index
    %c0_8 = arith.constant 0 : index
    %7 = vector.load %arg3[%c0_7, %c0_8] : memref<8x4xf32, #tpu.memory_space<vmem>>, vector<8x4xf32>
    %c0_9 = arith.constant 0 : index
    %c0_10 = arith.constant 0 : index
    %8 = vector.load %arg11[%c0_9, %c0_10] : memref<4x32xf32, #tpu.memory_space<vmem>>, vector<4x32xf32>
    %cst_11 = arith.constant dense<0.000000e+00> : vector<8x32xf32>
    %9 = tpu.matmul %7, %8, %cst_11 {dimension_numbers = #tpu.dot_dimension_numbers<[1], [0], [0], [1], [0, 0, 1, 1], [], []>} : vector<8x4xf32>, vector<4x32xf32>, vector<8x32xf32> -> vector<8x32xf32>
    %c0_12 = arith.constant 0 : index
    %c0_13 = arith.constant 0 : index
    %10 = vector.load %arg12[%c0_12, %c0_13] : memref<1x32xf32, #tpu.memory_space<vmem>>, vector<1x32xf32>
    %11 = vector.broadcast %10 : vector<1x32xf32> to vector<8x32xf32>
    %12 = arith.addf %9, %11 : vector<8x32xf32>
    %c0_14 = arith.constant 0 : index
    %c0_15 = arith.constant 0 : index
    %c0_16 = arith.constant 0 : index
    %13 = vector.load %arg1[%c0_14, %c0_15, %c0_16] : memref<15x28x192xbf16, #tpu.memory_space<vmem>>, vector<1x28x192xbf16>
    %14 = vector.shape_cast %13 : vector<1x28x192xbf16> to vector<28x192xbf16>
    %c0_17 = arith.constant 0 : index
    %c0_18 = arith.constant 0 : index
    %c0_19 = arith.constant 0 : index
    %15 = vector.load %arg5[%c0_17, %c0_18, %c0_19] : memref<2x192x32xbf16, #tpu.memory_space<vmem>>, vector<1x192x32xbf16>
    %16 = vector.shape_cast %15 : vector<1x192x32xbf16> to vector<192x32xbf16>
    %cst_20 = arith.constant dense<0.000000e+00> : vector<28x32xf32>
    %17 = tpu.matmul %14, %16, %cst_20 {dimension_numbers = #tpu.dot_dimension_numbers<[1], [0], [0], [1], [0, 0, 1, 1], [], []>} : vector<28x192xbf16>, vector<192x32xbf16>, vector<28x32xf32> -> vector<28x32xf32>
    %c1 = arith.constant 1 : index
    %c0_21 = arith.constant 0 : index
    %c0_22 = arith.constant 0 : index
    %18 = vector.load %arg1[%c1, %c0_21, %c0_22] : memref<15x28x192xbf16, #tpu.memory_space<vmem>>, vector<1x28x192xbf16>
    %19 = vector.shape_cast %18 : vector<1x28x192xbf16> to vector<28x192xbf16>
    %c1_23 = arith.constant 1 : index
    %c0_24 = arith.constant 0 : index
    %c0_25 = arith.constant 0 : index
    %20 = vector.load %arg5[%c1_23, %c0_24, %c0_25] : memref<2x192x32xbf16, #tpu.memory_space<vmem>>, vector<1x192x32xbf16>
    %21 = vector.shape_cast %20 : vector<1x192x32xbf16> to vector<192x32xbf16>
    %cst_26 = arith.constant dense<0.000000e+00> : vector<28x32xf32>
    %22 = tpu.matmul %19, %21, %cst_26 {dimension_numbers = #tpu.dot_dimension_numbers<[1], [0], [0], [1], [0, 0, 1, 1], [], []>} : vector<28x192xbf16>, vector<192x32xbf16>, vector<28x32xf32> -> vector<28x32xf32>
    %23 = arith.addf %17, %22 : vector<28x32xf32>
    %24 = vector.broadcast %0 : vector<1x32xf32> to vector<28x32xf32>
    %25 = arith.addf %23, %24 : vector<28x32xf32>
    %cst_27 = arith.constant 0.000000e+00 : f32
    %26 = vector.broadcast %cst_27 : f32 to vector<28x32xf32>
    %27 = arith.cmpf oge, %25, %26 : vector<28x32xf32>
    %cst_28 = arith.constant 2.000000e-01 : f32
    %28 = vector.broadcast %cst_28 : f32 to vector<28x32xf32>
    %29 = arith.mulf %28, %25 : vector<28x32xf32>
    %30 = arith.select %27, %25, %29 : vector<28x32xi1>, vector<28x32xf32>
    %31 = vector.extract_strided_slice %30 {offsets = [0, 0], sizes = [12, 32], strides = [1, 1]} : vector<28x32xf32> to vector<12x32xf32>
    %32 = arith.truncf %31 : vector<12x32xf32> to vector<12x32xbf16>
    %c0_29 = arith.constant 0 : index
    %c0_30 = arith.constant 0 : index
    %c0_31 = arith.constant 0 : index
    %33 = vector.load %arg19[%c0_29, %c0_30, %c0_31] : memref<14x12x128xbf16, #tpu.memory_space<vmem>>, vector<1x12x32xbf16>
    %34 = vector.shape_cast %33 : vector<1x12x32xbf16> to vector<12x32xbf16>
    %35 = vector.shape_cast %32 : vector<12x32xbf16> to vector<1x12x32xbf16>
    tpu.vector_store %arg19[%c0_29, %c0_30, %c0_31], %35 {strides = array<i32>} : memref<14x12x128xbf16, #tpu.memory_space<vmem>>, vector<1x12x32xbf16>,
    %36 = vector.extract_strided_slice %30 {offsets = [14, 0], sizes = [12, 32], strides = [1, 1]} : vector<28x32xf32> to vector<12x32xf32>
    %37 = arith.truncf %36 : vector<12x32xf32> to vector<12x32xbf16>
    %c0_32 = arith.constant 0 : index
    %c0_33 = arith.constant 0 : index
    %c32 = arith.constant 32 : index
    %38 = vector.load %arg19[%c0_32, %c0_33, %c32] : memref<14x12x128xbf16, #tpu.memory_space<vmem>>, vector<1x12x32xbf16>
    %39 = vector.shape_cast %38 : vector<1x12x32xbf16> to vector<12x32xbf16>
    %40 = vector.shape_cast %37 : vector<12x32xbf16> to vector<1x12x32xbf16>
    tpu.vector_store %arg19[%c0_32, %c0_33, %c32], %40 {strides = array<i32>} : memref<14x12x128xbf16, #tpu.memory_space<vmem>>, vector<1x12x32xbf16>,
    %41 = vector.extract_strided_slice %30 {offsets = [2, 0], sizes = [12, 32], strides = [1, 1]} : vector<28x32xf32> to vector<12x32xf32>
    %42 = arith.truncf %41 : vector<12x32xf32> to vector<12x32xbf16>
    %c0_34 = arith.constant 0 : index
    %c0_35 = arith.constant 0 : index
    %c64 = arith.constant 64 : index
    %43 = vector.load %arg19[%c0_34, %c0_35, %c64] : memref<14x12x128xbf16, #tpu.memory_space<vmem>>, vector<1x12x32xbf16>
    %44 = vector.shape_cast %43 : vector<1x12x32xbf16> to vector<12x32xbf16>
    %45 = vector.shape_cast %42 : vector<12x32xbf16> to vector<1x12x32xbf16>
    tpu.vector_store %arg19[%c0_34, %c0_35, %c64], %45 {strides = array<i32>} : memref<14x12x128xbf16, #tpu.memory_space<vmem>>, vector<1x12x32xbf16>,
    %46 = vector.extract_strided_slice %30 {offsets = [16, 0], sizes = [12, 32], strides = [1, 1]} : vector<28x32xf32> to vector<12x32xf32>
    %47 = arith.truncf %46 : vector<12x32xf32> to vector<12x32xbf16>
    %c0_36 = arith.constant 0 : index
    %c0_37 = arith.constant 0 : index
    %c96 = arith.constant 96 : index
    %48 = vector.load %arg19[%c0_36, %c0_37, %c96] : memref<14x12x128xbf16, #tpu.memory_space<vmem>>, vector<1x12x32xbf16>
    %49 = vector.shape_cast %48 : vector<1x12x32xbf16> to vector<12x32xbf16>
    %50 = vector.shape_cast %47 : vector<12x32xbf16> to vector<1x12x32xbf16>
    tpu.vector_store %arg19[%c0_36, %c0_37, %c96], %50 {strides = array<i32>} : memref<14x12x128xbf16, #tpu.memory_space<vmem>>, vector<1x12x32xbf16>,
    %c1_38 = arith.constant 1 : index
    %c0_39 = arith.constant 0 : index
    %c0_40 = arith.constant 0 : index
    %51 = vector.load %arg1[%c1_38, %c0_39, %c0_40] : memref<15x28x192xbf16, #tpu.memory_space<vmem>>, vector<1x28x192xbf16>
    %52 = vector.shape_cast %51 : vector<1x28x192xbf16> to vector<28x192xbf16>
    %c0_41 = arith.constant 0 : index
    %c0_42 = arith.constant 0 : index
    %c0_43 = arith.constant 0 : index
    %53 = vector.load %arg5[%c0_41, %c0_42, %c0_43] : memref<2x192x32xbf16, #tpu.memory_space<vmem>>, vector<1x192x32xbf16>
    %54 = vector.shape_cast %53 : vector<1x192x32xbf16> to vector<192x32xbf16>
    %cst_44 = arith.constant dense<0.000000e+00> : vector<28x32xf32>
    %55 = tpu.matmul %52, %54, %cst_44 {dimension_numbers = #tpu.dot_dimension_numbers<[1], [0], [0], [1], [0, 0, 1, 1], [], []>} : vector<28x192xbf16>, vector<192x32xbf16>, vector<28x32xf32> -> vector<28x32xf32>
    %c2 = arith.constant 2 : index
    %c0_45 = arith.constant 0 : index
    %c0_46 = arith.constant 0 : index
    %56 = vector.load %arg1[%c2, %c0_45, %c0_46] : memref<15x28x192xbf16, #tpu.memory_space<vmem>>, vector<1x28x192xbf16>
    %57 = vector.shape_cast %56 : vector<1x28x192xbf16> to vector<28x192xbf16>
    %c1_47 = arith.constant 1 : index
    %c0_48 = arith.constant 0 : index
    %c0_49 = arith.constant 0 : index
    %58 = vector.load %arg5[%c1_47, %c0_48, %c0_49] : memref<2x192x32xbf16, #tpu.memory_space<vmem>>, vector<1x192x32xbf16>
    %59 = vector.shape_cast %58 : vector<1x192x32xbf16> to vector<192x32xbf16>
    %cst_50 = arith.constant dense<0.000000e+00> : vector<28x32xf32>
    %60 = tpu.matmul %57, %59, %cst_50 {dimension_numbers = #tpu.dot_dimension_numbers<[1], [0], [0], [1], [0, 0, 1, 1], [], []>} : vector<28x192xbf16>, vector<192x32xbf16>, vector<28x32xf32> -> vector<28x32xf32>
    %61 = arith.addf %55, %60 : vector<28x32xf32>
    %62 = vector.broadcast %0 : vector<1x32xf32> to vector<28x32xf32>
    %63 = arith.addf %61, %62 : vector<28x32xf32>
    %cst_51 = arith.constant 0.000000e+00 : f32
    %64 = vector.broadcast %cst_51 : f32 to vector<28x32xf32>
    %65 = arith.cmpf oge, %63, %64 : vector<28x32xf32>
    %cst_52 = arith.constant 2.000000e-01 : f32
    %66 = vector.broadcast %cst_52 : f32 to vector<28x32xf32>
    %67 = arith.mulf %66, %63 : vector<28x32xf32>
    %68 = arith.select %65, %63, %67 : vector<28x32xi1>, vector<28x32xf32>
    %69 = vector.extract_strided_slice %68 {offsets = [0, 0], sizes = [12, 32], strides = [1, 1]} : vector<28x32xf32> to vector<12x32xf32>
    %70 = arith.truncf %69 : vector<12x32xf32> to vector<12x32xbf16>
    %c1_53 = arith.constant 1 : index
    %c0_54 = arith.constant 0 : index
    %c0_55 = arith.constant 0 : index
    %71 = vector.load %arg19[%c1_53, %c0_54, %c0_55] : memref<14x12x128xbf16, #tpu.memory_space<vmem>>, vector<1x12x32xbf16>
    %72 = vector.shape_cast %71 : vector<1x12x32xbf16> to vector<12x32xbf16>
    %73 = vector.shape_cast %70 : vector<12x32xbf16> to vector<1x12x32xbf16>
    tpu.vector_store %arg19[%c1_53, %c0_54, %c0_55], %73 {strides = array<i32>} : memref<14x12x128xbf16, #tpu.memory_space<vmem>>, vector<1x12x32xbf16>,
    %74 = vector.extract_strided_slice %68 {offsets = [14, 0], sizes = [12, 32], strides = [1, 1]} : vector<28x32xf32> to vector<12x32xf32>
    %75 = arith.truncf %74 : vector<12x32xf32> to vector<12x32xbf16>
    %c1_56 = arith.constant 1 : index
    %c0_57 = arith.constant 0 : index
    %c32_58 = arith.constant 32 : index
    %76 = vector.load %arg19[%c1_56, %c0_57, %c32_58] : memref<14x12x128xbf16, #tpu.memory_space<vmem>>, vector<1x12x32xbf16>
    %77 = vector.shape_cast %76 : vector<1x12x32xbf16> to vector<12x32xbf16>
    %78 = vector.shape_cast %75 : vector<12x32xbf16> to vector<1x12x32xbf16>
    tpu.vector_store %arg19[%c1_56, %c0_57, %c32_58], %78 {strides = array<i32>} : memref<14x12x128xbf16, #tpu.memory_space<vmem>>, vector<1x12x32xbf16>,
    %79 = vector.extract_strided_slice %68 {offsets = [2, 0], sizes = [12, 32], strides = [1, 1]} : vector<28x32xf32> to vector<12x32xf32>
    %80 = arith.truncf %79 : vector<12x32xf32> to vector<12x32xbf16>
    %c1_59 = arith.constant 1 : index
    %c0_60 = arith.constant 0 : index
    %c64_61 = arith.constant 64 : index
    %81 = vector.load %arg19[%c1_59, %c0_60, %c64_61] : memref<14x12x128xbf16, #tpu.memory_space<vmem>>, vector<1x12x32xbf16>
    %82 = vector.shape_cast %81 : vector<1x12x32xbf16> to vector<12x32xbf16>
    %83 = vector.shape_cast %80 : vector<12x32xbf16> to vector<1x12x32xbf16>
    tpu.vector_store %arg19[%c1_59, %c0_60, %c64_61], %83 {strides = array<i32>} : memref<14x12x128xbf16, #tpu.memory_space<vmem>>, vector<1x12x32xbf16>,
    %84 = vector.extract_strided_slice %68 {offsets = [16, 0], sizes = [12, 32], strides = [1, 1]} : vector<28x32xf32> to vector<12x32xf32>
    %85 = arith.truncf %84 : vector<12x32xf32> to vector<12x32xbf16>
    %c1_62 = arith.constant 1 : index
    %c0_63 = arith.constant 0 : index
    %c96_64 = arith.constant 96 : index
    %86 = vector.load %arg19[%c1_62, %c0_63, %c96_64] : memref<14x12x128xbf16, #tpu.memory_space<vmem>>, vector<1x12x32xbf16>
    %87 = vector.shape_cast %86 : vector<1x12x32xbf16> to vector<12x32xbf16>
    %88 = vector.shape_cast %85 : vector<12x32xbf16> to vector<1x12x32xbf16>
    tpu.vector_store %arg19[%c1_62, %c0_63, %c96_64], %88 {strides = array<i32>} : memref<14x12x128xbf16, #tpu.memory_space<vmem>>, vector<1x12x32xbf16>,
    %c2_65 = arith.constant 2 : index
    %c0_66 = arith.constant 0 : index
    %c0_67 = arith.constant 0 : index
    %89 = vector.load %arg1[%c2_65, %c0_66, %c0_67] : memref<15x28x192xbf16, #tpu.memory_space<vmem>>, vector<1x28x192xbf16>
    %90 = vector.shape_cast %89 : vector<1x28x192xbf16> to vector<28x192xbf16>
    %c0_68 = arith.constant 0 : index
    %c0_69 = arith.constant 0 : index
    %c0_70 = arith.constant 0 : index
    %91 = vector.load %arg5[%c0_68, %c0_69, %c0_70] : memref<2x192x32xbf16, #tpu.memory_space<vmem>>, vector<1x192x32xbf16>
    %92 = vector.shape_cast %91 : vector<1x192x32xbf16> to vector<192x32xbf16>
    %cst_71 = arith.constant dense<0.000000e+00> : vector<28x32xf32>
    %93 = tpu.matmul %90, %92, %cst_71 {dimension_numbers = #tpu.dot_dimension_numbers<[1], [0], [0], [1], [0, 0, 1, 1], [], []>} : vector<28x192xbf16>, vector<192x32xbf16>, vector<28x32xf32> -> vector<28x32xf32>
    %c3 = arith.constant 3 : index
    %c0_72 = arith.constant 0 : index
    %c0_73 = arith.constant 0 : index
    %94 = vector.load %arg1[%c3, %c0_72, %c0_73] : memref<15x28x192xbf16, #tpu.memory_space<vmem>>, vector<1x28x192xbf16>
    %95 = vector.shape_cast %94 : vector<1x28x192xbf16> to vector<28x192xbf16>
    %c1_74 = arith.constant 1 : index
    %c0_75 = arith.constant 0 : index
    %c0_76 = arith.constant 0 : index
    %96 = vector.load %arg5[%c1_74, %c0_75, %c0_76] : memref<2x192x32xbf16, #tpu.memory_space<vmem>>, vector<1x192x32xbf16>
    %97 = vector.shape_cast %96 : vector<1x192x32xbf16> to vector<192x32xbf16>
    %cst_77 = arith.constant dense<0.000000e+00> : vector<28x32xf32>
    %98 = tpu.matmul %95, %97, %cst_77 {dimension_numbers = #tpu.dot_dimension_numbers<[1], [0], [0], [1], [0, 0, 1, 1], [], []>} : vector<28x192xbf16>, vector<192x32xbf16>, vector<28x32xf32> -> vector<28x32xf32>
    %99 = arith.addf %93, %98 : vector<28x32xf32>
    %100 = vector.broadcast %0 : vector<1x32xf32> to vector<28x32xf32>
    %101 = arith.addf %99, %100 : vector<28x32xf32>
    %cst_78 = arith.constant 0.000000e+00 : f32
    %102 = vector.broadcast %cst_78 : f32 to vector<28x32xf32>
    %103 = arith.cmpf oge, %101, %102 : vector<28x32xf32>
    %cst_79 = arith.constant 2.000000e-01 : f32
    %104 = vector.broadcast %cst_79 : f32 to vector<28x32xf32>
    %105 = arith.mulf %104, %101 : vector<28x32xf32>
    %106 = arith.select %103, %101, %105 : vector<28x32xi1>, vector<28x32xf32>
    %107 = vector.extract_strided_slice %106 {offsets = [0, 0], sizes = [12, 32], strides = [1, 1]} : vector<28x32xf32> to vector<12x32xf32>
    %108 = arith.truncf %107 : vector<12x32xf32> to vector<12x32xbf16>
    %c2_80 = arith.constant 2 : index
    %c0_81 = arith.constant 0 : index
    %c0_82 = arith.constant 0 : index
    %109 = vector.load %arg19[%c2_80, %c0_81, %c0_82] : memref<14x12x128xbf16, #tpu.memory_space<vmem>>, vector<1x12x32xbf16>
    %110 = vector.shape_cast %109 : vector<1x12x32xbf16> to vector<12x32xbf16>
    %111 = vector.shape_cast %108 : vector<12x32xbf16> to vector<1x12x32xbf16>
    tpu.vector_store %arg19[%c2_80, %c0_81, %c0_82], %111 {strides = array<i32>} : memref<14x12x128xbf16, #tpu.memory_space<vmem>>, vector<1x12x32xbf16>,
    %112 = vector.extract_strided_slice %106 {offsets = [14, 0], sizes = [12, 32], strides = [1, 1]} : vector<28x32xf32> to vector<12x32xf32>
    %113 = arith.truncf %112 : vector<12x32xf32> to vector<12x32xbf16>
    %c2_83 = arith.constant 2 : index
    %c0_84 = arith.constant 0 : index
    %c32_85 = arith.constant 32 : index
    %114 = vector.load %arg19[%c2_83, %c0_84, %c32_85] : memref<14x12x128xbf16, #tpu.memory_space<vmem>>, vector<1x12x32xbf16>
    %115 = vector.shape_cast %114 : vector<1x12x32xbf16> to vector<12x32xbf16>
    %116 = vector.shape_cast %113 : vector<12x32xbf16> to vector<1x12x32xbf16>
    tpu.vector_store %arg19[%c2_83, %c0_84, %c32_85], %116 {strides = array<i32>} : memref<14x12x128xbf16, #tpu.memory_space<vmem>>, vector<1x12x32xbf16>,
    %117 = vector.extract_strided_slice %106 {offsets = [2, 0], sizes = [12, 32], strides = [1, 1]} : vector<28x32xf32> to vector<12x32xf32>
    %118 = arith.truncf %117 : vector<12x32xf32> to vector<12x32xbf16>
    %c2_86 = arith.constant 2 : index
    %c0_87 = arith.constant 0 : index
    %c64_88 = arith.constant 64 : index
    %119 = vector.load %arg19[%c2_86, %c0_87, %c64_88] : memref<14x12x128xbf16, #tpu.memory_space<vmem>>, vector<1x12x32xbf16>
    %120 = vector.shape_cast %119 : vector<1x12x32xbf16> to vector<12x32xbf16>
    %121 = vector.shape_cast %118 : vector<12x32xbf16> to vector<1x12x32xbf16>
    tpu.vector_store %arg19[%c2_86, %c0_87, %c64_88], %121 {strides = array<i32>} : memref<14x12x128xbf16, #tpu.memory_space<vmem>>, vector<1x12x32xbf16>,
    %122 = vector.extract_strided_slice %106 {offsets = [16, 0], sizes = [12, 32], strides = [1, 1]} : vector<28x32xf32> to vector<12x32xf32>
    %123 = arith.truncf %122 : vector<12x32xf32> to vector<12x32xbf16>
    %c2_89 = arith.constant 2 : index
    %c0_90 = arith.constant 0 : index
    %c96_91 = arith.constant 96 : index
    %124 = vector.load %arg19[%c2_89, %c0_90, %c96_91] : memref<14x12x128xbf16, #tpu.memory_space<vmem>>, vector<1x12x32xbf16>
    %125 = vector.shape_cast %124 : vector<1x12x32xbf16> to vector<12x32xbf16>
    %126 = vector.shape_cast %123 : vector<12x32xbf16> to vector<1x12x32xbf16>
    tpu.vector_store %arg19[%c2_89, %c0_90, %c96_91], %126 {strides = array<i32>} : memref<14x12x128xbf16, #tpu.memory_space<vmem>>, vector<1x12x32xbf16>,
    %c3_92 = arith.constant 3 : index
    %c0_93 = arith.constant 0 : index
    %c0_94 = arith.constant 0 : index
    %127 = vector.load %arg1[%c3_92, %c0_93, %c0_94] : memref<15x28x192xbf16, #tpu.memory_space<vmem>>, vector<1x28x192xbf16>
    %128 = vector.shape_cast %127 : vector<1x28x192xbf16> to vector<28x192xbf16>
    %c0_95 = arith.constant 0 : index
    %c0_96 = arith.constant 0 : index
    %c0_97 = arith.constant 0 : index
    %129 = vector.load %arg5[%c0_95, %c0_96, %c0_97] : memref<2x192x32xbf16, #tpu.memory_space<vmem>>, vector<1x192x32xbf16>
    %130 = vector.shape_cast %129 : vector<1x192x32xbf16> to vector<192x32xbf16>
    %cst_98 = arith.constant dense<0.000000e+00> : vector<28x32xf32>
    %131 = tpu.matmul %128, %130, %cst_98 {dimension_numbers = #tpu.dot_dimension_numbers<[1], [0], [0], [1], [0, 0, 1, 1], [], []>} : vector<28x192xbf16>, vector<192x32xbf16>, vector<28x32xf32> -> vector<28x32xf32>
    %c4 = arith.constant 4 : index
    %c0_99 = arith.constant 0 : index
    %c0_100 = arith.constant 0 : index
    %132 = vector.load %arg1[%c4, %c0_99, %c0_100] : memref<15x28x192xbf16, #tpu.memory_space<vmem>>, vector<1x28x192xbf16>
    %133 = vector.shape_cast %132 : vector<1x28x192xbf16> to vector<28x192xbf16>
    %c1_101 = arith.constant 1 : index
    %c0_102 = arith.constant 0 : index
    %c0_103 = arith.constant 0 : index
    %134 = vector.load %arg5[%c1_101, %c0_102, %c0_103] : memref<2x192x32xbf16, #tpu.memory_space<vmem>>, vector<1x192x32xbf16>
    %135 = vector.shape_cast %134 : vector<1x192x32xbf16> to vector<192x32xbf16>
    %cst_104 = arith.constant dense<0.000000e+00> : vector<28x32xf32>
    %136 = tpu.matmul %133, %135, %cst_104 {dimension_numbers = #tpu.dot_dimension_numbers<[1], [0], [0], [1], [0, 0, 1, 1], [], []>} : vector<28x192xbf16>, vector<192x32xbf16>, vector<28x32xf32> -> vector<28x32xf32>
    %137 = arith.addf %131, %136 : vector<28x32xf32>
    %138 = vector.broadcast %0 : vector<1x32xf32> to vector<28x32xf32>
    %139 = arith.addf %137, %138 : vector<28x32xf32>
    %cst_105 = arith.constant 0.000000e+00 : f32
    %140 = vector.broadcast %cst_105 : f32 to vector<28x32xf32>
    %141 = arith.cmpf oge, %139, %140 : vector<28x32xf32>
    %cst_106 = arith.constant 2.000000e-01 : f32
    %142 = vector.broadcast %cst_106 : f32 to vector<28x32xf32>
    %143 = arith.mulf %142, %139 : vector<28x32xf32>
    %144 = arith.select %141, %139, %143 : vector<28x32xi1>, vector<28x32xf32>
    %145 = vector.extract_strided_slice %144 {offsets = [0, 0], sizes = [12, 32], strides = [1, 1]} : vector<28x32xf32> to vector<12x32xf32>
    %146 = arith.truncf %145 : vector<12x32xf32> to vector<12x32xbf16>
    %c3_107 = arith.constant 3 : index
    %c0_108 = arith.constant 0 : index
    %c0_109 = arith.constant 0 : index
    %147 = vector.load %arg19[%c3_107, %c0_108, %c0_109] : memref<14x12x128xbf16, #tpu.memory_space<vmem>>, vector<1x12x32xbf16>
    %148 = vector.shape_cast %147 : vector<1x12x32xbf16> to vector<12x32xbf16>
    %149 = vector.shape_cast %146 : vector<12x32xbf16> to vector<1x12x32xbf16>
    tpu.vector_store %arg19[%c3_107, %c0_108, %c0_109], %149 {strides = array<i32>} : memref<14x12x128xbf16, #tpu.memory_space<vmem>>, vector<1x12x32xbf16>,
    %150 = vector.extract_strided_slice %144 {offsets = [14, 0], sizes = [12, 32], strides = [1, 1]} : vector<28x32xf32> to vector<12x32xf32>
    %151 = arith.truncf %150 : vector<12x32xf32> to vector<12x32xbf16>
    %c3_110 = arith.constant 3 : index
    %c0_111 = arith.constant 0 : index
    %c32_112 = arith.constant 32 : index
    %152 = vector.load %arg19[%c3_110, %c0_111, %c32_112] : memref<14x12x128xbf16, #tpu.memory_space<vmem>>, vector<1x12x32xbf16>
    %153 = vector.shape_cast %152 : vector<1x12x32xbf16> to vector<12x32xbf16>
    %154 = vector.shape_cast %151 : vector<12x32xbf16> to vector<1x12x32xbf16>
    tpu.vector_store %arg19[%c3_110, %c0_111, %c32_112], %154 {strides = array<i32>} : memref<14x12x128xbf16, #tpu.memory_space<vmem>>, vector<1x12x32xbf16>,
    %155 = vector.extract_strided_slice %144 {offsets = [2, 0], sizes = [12, 32], strides = [1, 1]} : vector<28x32xf32> to vector<12x32xf32>
    %156 = arith.truncf %155 : vector<12x32xf32> to vector<12x32xbf16>
    %c3_113 = arith.constant 3 : index
    %c0_114 = arith.constant 0 : index
    %c64_115 = arith.constant 64 : index
    %157 = vector.load %arg19[%c3_113, %c0_114, %c64_115] : memref<14x12x128xbf16, #tpu.memory_space<vmem>>, vector<1x12x32xbf16>
    %158 = vector.shape_cast %157 : vector<1x12x32xbf16> to vector<12x32xbf16>
    %159 = vector.shape_cast %156 : vector<12x32xbf16> to vector<1x12x32xbf16>
    tpu.vector_store %arg19[%c3_113, %c0_114, %c64_115], %159 {strides = array<i32>} : memref<14x12x128xbf16, #tpu.memory_space<vmem>>, vector<1x12x32xbf16>,
    %160 = vector.extract_strided_slice %144 {offsets = [16, 0], sizes = [12, 32], strides = [1, 1]} : vector<28x32xf32> to vector<12x32xf32>
    %161 = arith.truncf %160 : vector<12x32xf32> to vector<12x32xbf16>
    %c3_116 = arith.constant 3 : index
    %c0_117 = arith.constant 0 : index
    %c96_118 = arith.constant 96 : index
    %162 = vector.load %arg19[%c3_116, %c0_117, %c96_118] : memref<14x12x128xbf16, #tpu.memory_space<vmem>>, vector<1x12x32xbf16>
    %163 = vector.shape_cast %162 : vector<1x12x32xbf16> to vector<12x32xbf16>
    %164 = vector.shape_cast %161 : vector<12x32xbf16> to vector<1x12x32xbf16>
    tpu.vector_store %arg19[%c3_116, %c0_117, %c96_118], %164 {strides = array<i32>} : memref<14x12x128xbf16, #tpu.memory_space<vmem>>, vector<1x12x32xbf16>,
    %c4_119 = arith.constant 4 : index
    %c0_120 = arith.constant 0 : index
    %c0_121 = arith.constant 0 : index
    %165 = vector.load %arg1[%c4_119, %c0_120, %c0_121] : memref<15x28x192xbf16, #tpu.memory_space<vmem>>, vector<1x28x192xbf16>
    %166 = vector.shape_cast %165 : vector<1x28x192xbf16> to vector<28x192xbf16>
    %c0_122 = arith.constant 0 : index
    %c0_123 = arith.constant 0 : index
    %c0_124 = arith.constant 0 : index
    %167 = vector.load %arg5[%c0_122, %c0_123, %c0_124] : memref<2x192x32xbf16, #tpu.memory_space<vmem>>, vector<1x192x32xbf16>
    %168 = vector.shape_cast %167 : vector<1x192x32xbf16> to vector<192x32xbf16>
    %cst_125 = arith.constant dense<0.000000e+00> : vector<28x32xf32>
    %169 = tpu.matmul %166, %168, %cst_125 {dimension_numbers = #tpu.dot_dimension_numbers<[1], [0], [0], [1], [0, 0, 1, 1], [], []>} : vector<28x192xbf16>, vector<192x32xbf16>, vector<28x32xf32> -> vector<28x32xf32>
    %c5 = arith.constant 5 : index
    %c0_126 = arith.constant 0 : index
    %c0_127 = arith.constant 0 : index
    %170 = vector.load %arg1[%c5, %c0_126, %c0_127] : memref<15x28x192xbf16, #tpu.memory_space<vmem>>, vector<1x28x192xbf16>
    %171 = vector.shape_cast %170 : vector<1x28x192xbf16> to vector<28x192xbf16>
    %c1_128 = arith.constant 1 : index
    %c0_129 = arith.constant 0 : index
    %c0_130 = arith.constant 0 : index
    %172 = vector.load %arg5[%c1_128, %c0_129, %c0_130] : memref<2x192x32xbf16, #tpu.memory_space<vmem>>, vector<1x192x32xbf16>
    %173 = vector.shape_cast %172 : vector<1x192x32xbf16> to vector<192x32xbf16>
    %cst_131 = arith.constant dense<0.000000e+00> : vector<28x32xf32>
    %174 = tpu.matmul %171, %173, %cst_131 {dimension_numbers = #tpu.dot_dimension_numbers<[1], [0], [0], [1], [0, 0, 1, 1], [], []>} : vector<28x192xbf16>, vector<192x32xbf16>, vector<28x32xf32> -> vector<28x32xf32>
    %175 = arith.addf %169, %174 : vector<28x32xf32>
    %176 = vector.broadcast %0 : vector<1x32xf32> to vector<28x32xf32>
    %177 = arith.addf %175, %176 : vector<28x32xf32>
    %cst_132 = arith.constant 0.000000e+00 : f32
    %178 = vector.broadcast %cst_132 : f32 to vector<28x32xf32>
    %179 = arith.cmpf oge, %177, %178 : vector<28x32xf32>
    %cst_133 = arith.constant 2.000000e-01 : f32
    %180 = vector.broadcast %cst_133 : f32 to vector<28x32xf32>
    %181 = arith.mulf %180, %177 : vector<28x32xf32>
    %182 = arith.select %179, %177, %181 : vector<28x32xi1>, vector<28x32xf32>
    %183 = vector.extract_strided_slice %182 {offsets = [0, 0], sizes = [12, 32], strides = [1, 1]} : vector<28x32xf32> to vector<12x32xf32>
    %184 = arith.truncf %183 : vector<12x32xf32> to vector<12x32xbf16>
    %c4_134 = arith.constant 4 : index
    %c0_135 = arith.constant 0 : index
    %c0_136 = arith.constant 0 : index
    %185 = vector.load %arg19[%c4_134, %c0_135, %c0_136] : memref<14x12x128xbf16, #tpu.memory_space<vmem>>, vector<1x12x32xbf16>
    %186 = vector.shape_cast %185 : vector<1x12x32xbf16> to vector<12x32xbf16>
    %187 = vector.shape_cast %184 : vector<12x32xbf16> to vector<1x12x32xbf16>
    tpu.vector_store %arg19[%c4_134, %c0_135, %c0_136], %187 {strides = array<i32>} : memref<14x12x128xbf16, #tpu.memory_space<vmem>>, vector<1x12x32xbf16>,
    %188 = vector.extract_strided_slice %182 {offsets = [14, 0], sizes = [12, 32], strides = [1, 1]} : vector<28x32xf32> to vector<12x32xf32>
    %189 = arith.truncf %188 : vector<12x32xf32> to vector<12x32xbf16>
    %c4_137 = arith.constant 4 : index
    %c0_138 = arith.constant 0 : index
    %c32_139 = arith.constant 32 : index
    %190 = vector.load %arg19[%c4_137, %c0_138, %c32_139] : memref<14x12x128xbf16, #tpu.memory_space<vmem>>, vector<1x12x32xbf16>
    %191 = vector.shape_cast %190 : vector<1x12x32xbf16> to vector<12x32xbf16>
    %192 = vector.shape_cast %189 : vector<12x32xbf16> to vector<1x12x32xbf16>
    tpu.vector_store %arg19[%c4_137, %c0_138, %c32_139], %192 {strides = array<i32>} : memref<14x12x128xbf16, #tpu.memory_space<vmem>>, vector<1x12x32xbf16>,
    %193 = vector.extract_strided_slice %182 {offsets = [2, 0], sizes = [12, 32], strides = [1, 1]} : vector<28x32xf32> to vector<12x32xf32>
    %194 = arith.truncf %193 : vector<12x32xf32> to vector<12x32xbf16>
    %c4_140 = arith.constant 4 : index
    %c0_141 = arith.constant 0 : index
    %c64_142 = arith.constant 64 : index
    %195 = vector.load %arg19[%c4_140, %c0_141, %c64_142] : memref<14x12x128xbf16, #tpu.memory_space<vmem>>, vector<1x12x32xbf16>
    %196 = vector.shape_cast %195 : vector<1x12x32xbf16> to vector<12x32xbf16>
    %197 = vector.shape_cast %194 : vector<12x32xbf16> to vector<1x12x32xbf16>
    tpu.vector_store %arg19[%c4_140, %c0_141, %c64_142], %197 {strides = array<i32>} : memref<14x12x128xbf16, #tpu.memory_space<vmem>>, vector<1x12x32xbf16>,
    %198 = vector.extract_strided_slice %182 {offsets = [16, 0], sizes = [12, 32], strides = [1, 1]} : vector<28x32xf32> to vector<12x32xf32>
    %199 = arith.truncf %198 : vector<12x32xf32> to vector<12x32xbf16>
    %c4_143 = arith.constant 4 : index
    %c0_144 = arith.constant 0 : index
    %c96_145 = arith.constant 96 : index
    %200 = vector.load %arg19[%c4_143, %c0_144, %c96_145] : memref<14x12x128xbf16, #tpu.memory_space<vmem>>, vector<1x12x32xbf16>
    %201 = vector.shape_cast %200 : vector<1x12x32xbf16> to vector<12x32xbf16>
    %202 = vector.shape_cast %199 : vector<12x32xbf16> to vector<1x12x32xbf16>
    tpu.vector_store %arg19[%c4_143, %c0_144, %c96_145], %202 {strides = array<i32>} : memref<14x12x128xbf16, #tpu.memory_space<vmem>>, vector<1x12x32xbf16>,
    %c5_146 = arith.constant 5 : index
    %c0_147 = arith.constant 0 : index
    %c0_148 = arith.constant 0 : index
    %203 = vector.load %arg1[%c5_146, %c0_147, %c0_148] : memref<15x28x192xbf16, #tpu.memory_space<vmem>>, vector<1x28x192xbf16>
    %204 = vector.shape_cast %203 : vector<1x28x192xbf16> to vector<28x192xbf16>
    %c0_149 = arith.constant 0 : index
    %c0_150 = arith.constant 0 : index
    %c0_151 = arith.constant 0 : index
    %205 = vector.load %arg5[%c0_149, %c0_150, %c0_151] : memref<2x192x32xbf16, #tpu.memory_space<vmem>>, vector<1x192x32xbf16>
    %206 = vector.shape_cast %205 : vector<1x192x32xbf16> to vector<192x32xbf16>
    %cst_152 = arith.constant dense<0.000000e+00> : vector<28x32xf32>
    %207 = tpu.matmul %204, %206, %cst_152 {dimension_numbers = #tpu.dot_dimension_numbers<[1], [0], [0], [1], [0, 0, 1, 1], [], []>} : vector<28x192xbf16>, vector<192x32xbf16>, vector<28x32xf32> -> vector<28x32xf32>
    %c6 = arith.constant 6 : index
    %c0_153 = arith.constant 0 : index
    %c0_154 = arith.constant 0 : index
    %208 = vector.load %arg1[%c6, %c0_153, %c0_154] : memref<15x28x192xbf16, #tpu.memory_space<vmem>>, vector<1x28x192xbf16>
    %209 = vector.shape_cast %208 : vector<1x28x192xbf16> to vector<28x192xbf16>
    %c1_155 = arith.constant 1 : index
    %c0_156 = arith.constant 0 : index
    %c0_157 = arith.constant 0 : index
    %210 = vector.load %arg5[%c1_155, %c0_156, %c0_157] : memref<2x192x32xbf16, #tpu.memory_space<vmem>>, vector<1x192x32xbf16>
    %211 = vector.shape_cast %210 : vector<1x192x32xbf16> to vector<192x32xbf16>
    %cst_158 = arith.constant dense<0.000000e+00> : vector<28x32xf32>
    %212 = tpu.matmul %209, %211, %cst_158 {dimension_numbers = #tpu.dot_dimension_numbers<[1], [0], [0], [1], [0, 0, 1, 1], [], []>} : vector<28x192xbf16>, vector<192x32xbf16>, vector<28x32xf32> -> vector<28x32xf32>
    %213 = arith.addf %207, %212 : vector<28x32xf32>
    %214 = vector.broadcast %0 : vector<1x32xf32> to vector<28x32xf32>
    %215 = arith.addf %213, %214 : vector<28x32xf32>
    %cst_159 = arith.constant 0.000000e+00 : f32
    %216 = vector.broadcast %cst_159 : f32 to vector<28x32xf32>
    %217 = arith.cmpf oge, %215, %216 : vector<28x32xf32>
    %cst_160 = arith.constant 2.000000e-01 : f32
    %218 = vector.broadcast %cst_160 : f32 to vector<28x32xf32>
    %219 = arith.mulf %218, %215 : vector<28x32xf32>
    %220 = arith.select %217, %215, %219 : vector<28x32xi1>, vector<28x32xf32>
    %221 = vector.extract_strided_slice %220 {offsets = [0, 0], sizes = [12, 32], strides = [1, 1]} : vector<28x32xf32> to vector<12x32xf32>
    %222 = arith.truncf %221 : vector<12x32xf32> to vector<12x32xbf16>
    %c5_161 = arith.constant 5 : index
    %c0_162 = arith.constant 0 : index
    %c0_163 = arith.constant 0 : index
    %223 = vector.load %arg19[%c5_161, %c0_162, %c0_163] : memref<14x12x128xbf16, #tpu.memory_space<vmem>>, vector<1x12x32xbf16>
    %224 = vector.shape_cast %223 : vector<1x12x32xbf16> to vector<12x32xbf16>
    %225 = vector.shape_cast %222 : vector<12x32xbf16> to vector<1x12x32xbf16>
    tpu.vector_store %arg19[%c5_161, %c0_162, %c0_163], %225 {strides = array<i32>} : memref<14x12x128xbf16, #tpu.memory_space<vmem>>, vector<1x12x32xbf16>,
    %226 = vector.extract_strided_slice %220 {offsets = [14, 0], sizes = [12, 32], strides = [1, 1]} : vector<28x32xf32> to vector<12x32xf32>
    %227 = arith.truncf %226 : vector<12x32xf32> to vector<12x32xbf16>
    %c5_164 = arith.constant 5 : index
    %c0_165 = arith.constant 0 : index
    %c32_166 = arith.constant 32 : index
    %228 = vector.load %arg19[%c5_164, %c0_165, %c32_166] : memref<14x12x128xbf16, #tpu.memory_space<vmem>>, vector<1x12x32xbf16>
    %229 = vector.shape_cast %228 : vector<1x12x32xbf16> to vector<12x32xbf16>
    %230 = vector.shape_cast %227 : vector<12x32xbf16> to vector<1x12x32xbf16>
    tpu.vector_store %arg19[%c5_164, %c0_165, %c32_166], %230 {strides = array<i32>} : memref<14x12x128xbf16, #tpu.memory_space<vmem>>, vector<1x12x32xbf16>,
    %231 = vector.extract_strided_slice %220 {offsets = [2, 0], sizes = [12, 32], strides = [1, 1]} : vector<28x32xf32> to vector<12x32xf32>
    %232 = arith.truncf %231 : vector<12x32xf32> to vector<12x32xbf16>
    %c5_167 = arith.constant 5 : index
    %c0_168 = arith.constant 0 : index
    %c64_169 = arith.constant 64 : index
    %233 = vector.load %arg19[%c5_167, %c0_168, %c64_169] : memref<14x12x128xbf16, #tpu.memory_space<vmem>>, vector<1x12x32xbf16>
    %234 = vector.shape_cast %233 : vector<1x12x32xbf16> to vector<12x32xbf16>
    %235 = vector.shape_cast %232 : vector<12x32xbf16> to vector<1x12x32xbf16>
    tpu.vector_store %arg19[%c5_167, %c0_168, %c64_169], %235 {strides = array<i32>} : memref<14x12x128xbf16, #tpu.memory_space<vmem>>, vector<1x12x32xbf16>,
    %236 = vector.extract_strided_slice %220 {offsets = [16, 0], sizes = [12, 32], strides = [1, 1]} : vector<28x32xf32> to vector<12x32xf32>
    %237 = arith.truncf %236 : vector<12x32xf32> to vector<12x32xbf16>
    %c5_170 = arith.constant 5 : index
    %c0_171 = arith.constant 0 : index
    %c96_172 = arith.constant 96 : index
    %238 = vector.load %arg19[%c5_170, %c0_171, %c96_172] : memref<14x12x128xbf16, #tpu.memory_space<vmem>>, vector<1x12x32xbf16>
    %239 = vector.shape_cast %238 : vector<1x12x32xbf16> to vector<12x32xbf16>
    %240 = vector.shape_cast %237 : vector<12x32xbf16> to vector<1x12x32xbf16>
    tpu.vector_store %arg19[%c5_170, %c0_171, %c96_172], %240 {strides = array<i32>} : memref<14x12x128xbf16, #tpu.memory_space<vmem>>, vector<1x12x32xbf16>,
    %c6_173 = arith.constant 6 : index
    %c0_174 = arith.constant 0 : index
    %c0_175 = arith.constant 0 : index
    %241 = vector.load %arg1[%c6_173, %c0_174, %c0_175] : memref<15x28x192xbf16, #tpu.memory_space<vmem>>, vector<1x28x192xbf16>
    %242 = vector.shape_cast %241 : vector<1x28x192xbf16> to vector<28x192xbf16>
    %c0_176 = arith.constant 0 : index
    %c0_177 = arith.constant 0 : index
    %c0_178 = arith.constant 0 : index
    %243 = vector.load %arg5[%c0_176, %c0_177, %c0_178] : memref<2x192x32xbf16, #tpu.memory_space<vmem>>, vector<1x192x32xbf16>
    %244 = vector.shape_cast %243 : vector<1x192x32xbf16> to vector<192x32xbf16>
    %cst_179 = arith.constant dense<0.000000e+00> : vector<28x32xf32>
    %245 = tpu.matmul %242, %244, %cst_179 {dimension_numbers = #tpu.dot_dimension_numbers<[1], [0], [0], [1], [0, 0, 1, 1], [], []>} : vector<28x192xbf16>, vector<192x32xbf16>, vector<28x32xf32> -> vector<28x32xf32>
    %c7 = arith.constant 7 : index
    %c0_180 = arith.constant 0 : index
    %c0_181 = arith.constant 0 : index
    %246 = vector.load %arg1[%c7, %c0_180, %c0_181] : memref<15x28x192xbf16, #tpu.memory_space<vmem>>, vector<1x28x192xbf16>
    %247 = vector.shape_cast %246 : vector<1x28x192xbf16> to vector<28x192xbf16>
    %c1_182 = arith.constant 1 : index
    %c0_183 = arith.constant 0 : index
    %c0_184 = arith.constant 0 : index
    %248 = vector.load %arg5[%c1_182, %c0_183, %c0_184] : memref<2x192x32xbf16, #tpu.memory_space<vmem>>, vector<1x192x32xbf16>
    %249 = vector.shape_cast %248 : vector<1x192x32xbf16> to vector<192x32xbf16>
    %cst_185 = arith.constant dense<0.000000e+00> : vector<28x32xf32>
    %250 = tpu.matmul %247, %249, %cst_185 {dimension_numbers = #tpu.dot_dimension_numbers<[1], [0], [0], [1], [0, 0, 1, 1], [], []>} : vector<28x192xbf16>, vector<192x32xbf16>, vector<28x32xf32> -> vector<28x32xf32>
    %251 = arith.addf %245, %250 : vector<28x32xf32>
    %252 = vector.broadcast %0 : vector<1x32xf32> to vector<28x32xf32>
    %253 = arith.addf %251, %252 : vector<28x32xf32>
    %cst_186 = arith.constant 0.000000e+00 : f32
    %254 = vector.broadcast %cst_186 : f32 to vector<28x32xf32>
    %255 = arith.cmpf oge, %253, %254 : vector<28x32xf32>
    %cst_187 = arith.constant 2.000000e-01 : f32
    %256 = vector.broadcast %cst_187 : f32 to vector<28x32xf32>
    %257 = arith.mulf %256, %253 : vector<28x32xf32>
    %258 = arith.select %255, %253, %257 : vector<28x32xi1>, vector<28x32xf32>
    %259 = vector.extract_strided_slice %258 {offsets = [0, 0], sizes = [12, 32], strides = [1, 1]} : vector<28x32xf32> to vector<12x32xf32>
    %260 = arith.truncf %259 : vector<12x32xf32> to vector<12x32xbf16>
    %c6_188 = arith.constant 6 : index
    %c0_189 = arith.constant 0 : index
    %c0_190 = arith.constant 0 : index
    %261 = vector.load %arg19[%c6_188, %c0_189, %c0_190] : memref<14x12x128xbf16, #tpu.memory_space<vmem>>, vector<1x12x32xbf16>
    %262 = vector.shape_cast %261 : vector<1x12x32xbf16> to vector<12x32xbf16>
    %263 = vector.shape_cast %260 : vector<12x32xbf16> to vector<1x12x32xbf16>
    tpu.vector_store %arg19[%c6_188, %c0_189, %c0_190], %263 {strides = array<i32>} : memref<14x12x128xbf16, #tpu.memory_space<vmem>>, vector<1x12x32xbf16>,
    %264 = vector.extract_strided_slice %258 {offsets = [14, 0], sizes = [12, 32], strides = [1, 1]} : vector<28x32xf32> to vector<12x32xf32>
    %265 = arith.truncf %264 : vector<12x32xf32> to vector<12x32xbf16>
    %c6_191 = arith.constant 6 : index
    %c0_192 = arith.constant 0 : index
    %c32_193 = arith.constant 32 : index
    %266 = vector.load %arg19[%c6_191, %c0_192, %c32_193] : memref<14x12x128xbf16, #tpu.memory_space<vmem>>, vector<1x12x32xbf16>
    %267 = vector.shape_cast %266 : vector<1x12x32xbf16> to vector<12x32xbf16>
    %268 = vector.shape_cast %265 : vector<12x32xbf16> to vector<1x12x32xbf16>
    tpu.vector_store %arg19[%c6_191, %c0_192, %c32_193], %268 {strides = array<i32>} : memref<14x12x128xbf16, #tpu.memory_space<vmem>>, vector<1x12x32xbf16>,
    %269 = vector.extract_strided_slice %258 {offsets = [2, 0], sizes = [12, 32], strides = [1, 1]} : vector<28x32xf32> to vector<12x32xf32>
    %270 = arith.truncf %269 : vector<12x32xf32> to vector<12x32xbf16>
    %c6_194 = arith.constant 6 : index
    %c0_195 = arith.constant 0 : index
    %c64_196 = arith.constant 64 : index
    %271 = vector.load %arg19[%c6_194, %c0_195, %c64_196] : memref<14x12x128xbf16, #tpu.memory_space<vmem>>, vector<1x12x32xbf16>
    %272 = vector.shape_cast %271 : vector<1x12x32xbf16> to vector<12x32xbf16>
    %273 = vector.shape_cast %270 : vector<12x32xbf16> to vector<1x12x32xbf16>
    tpu.vector_store %arg19[%c6_194, %c0_195, %c64_196], %273 {strides = array<i32>} : memref<14x12x128xbf16, #tpu.memory_space<vmem>>, vector<1x12x32xbf16>,
    %274 = vector.extract_strided_slice %258 {offsets = [16, 0], sizes = [12, 32], strides = [1, 1]} : vector<28x32xf32> to vector<12x32xf32>
    %275 = arith.truncf %274 : vector<12x32xf32> to vector<12x32xbf16>
    %c6_197 = arith.constant 6 : index
    %c0_198 = arith.constant 0 : index
    %c96_199 = arith.constant 96 : index
    %276 = vector.load %arg19[%c6_197, %c0_198, %c96_199] : memref<14x12x128xbf16, #tpu.memory_space<vmem>>, vector<1x12x32xbf16>
    %277 = vector.shape_cast %276 : vector<1x12x32xbf16> to vector<12x32xbf16>
    %278 = vector.shape_cast %275 : vector<12x32xbf16> to vector<1x12x32xbf16>
    tpu.vector_store %arg19[%c6_197, %c0_198, %c96_199], %278 {strides = array<i32>} : memref<14x12x128xbf16, #tpu.memory_space<vmem>>, vector<1x12x32xbf16>,
    %c7_200 = arith.constant 7 : index
    %c0_201 = arith.constant 0 : index
    %c0_202 = arith.constant 0 : index
    %279 = vector.load %arg1[%c7_200, %c0_201, %c0_202] : memref<15x28x192xbf16, #tpu.memory_space<vmem>>, vector<1x28x192xbf16>
    %280 = vector.shape_cast %279 : vector<1x28x192xbf16> to vector<28x192xbf16>
    %c0_203 = arith.constant 0 : index
    %c0_204 = arith.constant 0 : index
    %c0_205 = arith.constant 0 : index
    %281 = vector.load %arg5[%c0_203, %c0_204, %c0_205] : memref<2x192x32xbf16, #tpu.memory_space<vmem>>, vector<1x192x32xbf16>
    %282 = vector.shape_cast %281 : vector<1x192x32xbf16> to vector<192x32xbf16>
    %cst_206 = arith.constant dense<0.000000e+00> : vector<28x32xf32>
    %283 = tpu.matmul %280, %282, %cst_206 {dimension_numbers = #tpu.dot_dimension_numbers<[1], [0], [0], [1], [0, 0, 1, 1], [], []>} : vector<28x192xbf16>, vector<192x32xbf16>, vector<28x32xf32> -> vector<28x32xf32>
    %c8 = arith.constant 8 : index
    %c0_207 = arith.constant 0 : index
    %c0_208 = arith.constant 0 : index
    %284 = vector.load %arg1[%c8, %c0_207, %c0_208] : memref<15x28x192xbf16, #tpu.memory_space<vmem>>, vector<1x28x192xbf16>
    %285 = vector.shape_cast %284 : vector<1x28x192xbf16> to vector<28x192xbf16>
    %c1_209 = arith.constant 1 : index
    %c0_210 = arith.constant 0 : index
    %c0_211 = arith.constant 0 : index
    %286 = vector.load %arg5[%c1_209, %c0_210, %c0_211] : memref<2x192x32xbf16, #tpu.memory_space<vmem>>, vector<1x192x32xbf16>
    %287 = vector.shape_cast %286 : vector<1x192x32xbf16> to vector<192x32xbf16>
    %cst_212 = arith.constant dense<0.000000e+00> : vector<28x32xf32>
    %288 = tpu.matmul %285, %287, %cst_212 {dimension_numbers = #tpu.dot_dimension_numbers<[1], [0], [0], [1], [0, 0, 1, 1], [], []>} : vector<28x192xbf16>, vector<192x32xbf16>, vector<28x32xf32> -> vector<28x32xf32>
    %289 = arith.addf %283, %288 : vector<28x32xf32>
    %290 = vector.broadcast %0 : vector<1x32xf32> to vector<28x32xf32>
    %291 = arith.addf %289, %290 : vector<28x32xf32>
    %cst_213 = arith.constant 0.000000e+00 : f32
    %292 = vector.broadcast %cst_213 : f32 to vector<28x32xf32>
    %293 = arith.cmpf oge, %291, %292 : vector<28x32xf32>
    %cst_214 = arith.constant 2.000000e-01 : f32
    %294 = vector.broadcast %cst_214 : f32 to vector<28x32xf32>
    %295 = arith.mulf %294, %291 : vector<28x32xf32>
    %296 = arith.select %293, %291, %295 : vector<28x32xi1>, vector<28x32xf32>
    %297 = vector.extract_strided_slice %296 {offsets = [0, 0], sizes = [12, 32], strides = [1, 1]} : vector<28x32xf32> to vector<12x32xf32>
    %298 = arith.truncf %297 : vector<12x32xf32> to vector<12x32xbf16>
    %c7_215 = arith.constant 7 : index
    %c0_216 = arith.constant 0 : index
    %c0_217 = arith.constant 0 : index
    %299 = vector.load %arg19[%c7_215, %c0_216, %c0_217] : memref<14x12x128xbf16, #tpu.memory_space<vmem>>, vector<1x12x32xbf16>
    %300 = vector.shape_cast %299 : vector<1x12x32xbf16> to vector<12x32xbf16>
    %301 = vector.shape_cast %298 : vector<12x32xbf16> to vector<1x12x32xbf16>
    tpu.vector_store %arg19[%c7_215, %c0_216, %c0_217], %301 {strides = array<i32>} : memref<14x12x128xbf16, #tpu.memory_space<vmem>>, vector<1x12x32xbf16>,
    %302 = vector.extract_strided_slice %296 {offsets = [14, 0], sizes = [12, 32], strides = [1, 1]} : vector<28x32xf32> to vector<12x32xf32>
    %303 = arith.truncf %302 : vector<12x32xf32> to vector<12x32xbf16>
    %c7_218 = arith.constant 7 : index
    %c0_219 = arith.constant 0 : index
    %c32_220 = arith.constant 32 : index
    %304 = vector.load %arg19[%c7_218, %c0_219, %c32_220] : memref<14x12x128xbf16, #tpu.memory_space<vmem>>, vector<1x12x32xbf16>
    %305 = vector.shape_cast %304 : vector<1x12x32xbf16> to vector<12x32xbf16>
    %306 = vector.shape_cast %303 : vector<12x32xbf16> to vector<1x12x32xbf16>
    tpu.vector_store %arg19[%c7_218, %c0_219, %c32_220], %306 {strides = array<i32>} : memref<14x12x128xbf16, #tpu.memory_space<vmem>>, vector<1x12x32xbf16>,
    %307 = vector.extract_strided_slice %296 {offsets = [2, 0], sizes = [12, 32], strides = [1, 1]} : vector<28x32xf32> to vector<12x32xf32>
    %308 = arith.truncf %307 : vector<12x32xf32> to vector<12x32xbf16>
    %c7_221 = arith.constant 7 : index
    %c0_222 = arith.constant 0 : index
    %c64_223 = arith.constant 64 : index
    %309 = vector.load %arg19[%c7_221, %c0_222, %c64_223] : memref<14x12x128xbf16, #tpu.memory_space<vmem>>, vector<1x12x32xbf16>
    %310 = vector.shape_cast %309 : vector<1x12x32xbf16> to vector<12x32xbf16>
    %311 = vector.shape_cast %308 : vector<12x32xbf16> to vector<1x12x32xbf16>
    tpu.vector_store %arg19[%c7_221, %c0_222, %c64_223], %311 {strides = array<i32>} : memref<14x12x128xbf16, #tpu.memory_space<vmem>>, vector<1x12x32xbf16>,
    %312 = vector.extract_strided_slice %296 {offsets = [16, 0], sizes = [12, 32], strides = [1, 1]} : vector<28x32xf32> to vector<12x32xf32>
    %313 = arith.truncf %312 : vector<12x32xf32> to vector<12x32xbf16>
    %c7_224 = arith.constant 7 : index
    %c0_225 = arith.constant 0 : index
    %c96_226 = arith.constant 96 : index
    %314 = vector.load %arg19[%c7_224, %c0_225, %c96_226] : memref<14x12x128xbf16, #tpu.memory_space<vmem>>, vector<1x12x32xbf16>
    %315 = vector.shape_cast %314 : vector<1x12x32xbf16> to vector<12x32xbf16>
    %316 = vector.shape_cast %313 : vector<12x32xbf16> to vector<1x12x32xbf16>
    tpu.vector_store %arg19[%c7_224, %c0_225, %c96_226], %316 {strides = array<i32>} : memref<14x12x128xbf16, #tpu.memory_space<vmem>>, vector<1x12x32xbf16>,
    %c8_227 = arith.constant 8 : index
    %c0_228 = arith.constant 0 : index
    %c0_229 = arith.constant 0 : index
    %317 = vector.load %arg1[%c8_227, %c0_228, %c0_229] : memref<15x28x192xbf16, #tpu.memory_space<vmem>>, vector<1x28x192xbf16>
    %318 = vector.shape_cast %317 : vector<1x28x192xbf16> to vector<28x192xbf16>
    %c0_230 = arith.constant 0 : index
    %c0_231 = arith.constant 0 : index
    %c0_232 = arith.constant 0 : index
    %319 = vector.load %arg5[%c0_230, %c0_231, %c0_232] : memref<2x192x32xbf16, #tpu.memory_space<vmem>>, vector<1x192x32xbf16>
    %320 = vector.shape_cast %319 : vector<1x192x32xbf16> to vector<192x32xbf16>
    %cst_233 = arith.constant dense<0.000000e+00> : vector<28x32xf32>
    %321 = tpu.matmul %318, %320, %cst_233 {dimension_numbers = #tpu.dot_dimension_numbers<[1], [0], [0], [1], [0, 0, 1, 1], [], []>} : vector<28x192xbf16>, vector<192x32xbf16>, vector<28x32xf32> -> vector<28x32xf32>
    %c9 = arith.constant 9 : index
    %c0_234 = arith.constant 0 : index
    %c0_235 = arith.constant 0 : index
    %322 = vector.load %arg1[%c9, %c0_234, %c0_235] : memref<15x28x192xbf16, #tpu.memory_space<vmem>>, vector<1x28x192xbf16>
    %323 = vector.shape_cast %322 : vector<1x28x192xbf16> to vector<28x192xbf16>
    %c1_236 = arith.constant 1 : index
    %c0_237 = arith.constant 0 : index
    %c0_238 = arith.constant 0 : index
    %324 = vector.load %arg5[%c1_236, %c0_237, %c0_238] : memref<2x192x32xbf16, #tpu.memory_space<vmem>>, vector<1x192x32xbf16>
    %325 = vector.shape_cast %324 : vector<1x192x32xbf16> to vector<192x32xbf16>
    %cst_239 = arith.constant dense<0.000000e+00> : vector<28x32xf32>
    %326 = tpu.matmul %323, %325, %cst_239 {dimension_numbers = #tpu.dot_dimension_numbers<[1], [0], [0], [1], [0, 0, 1, 1], [], []>} : vector<28x192xbf16>, vector<192x32xbf16>, vector<28x32xf32> -> vector<28x32xf32>
    %327 = arith.addf %321, %326 : vector<28x32xf32>
    %328 = vector.broadcast %0 : vector<1x32xf32> to vector<28x32xf32>
    %329 = arith.addf %327, %328 : vector<28x32xf32>
    %cst_240 = arith.constant 0.000000e+00 : f32
    %330 = vector.broadcast %cst_240 : f32 to vector<28x32xf32>
    %331 = arith.cmpf oge, %329, %330 : vector<28x32xf32>
    %cst_241 = arith.constant 2.000000e-01 : f32
    %332 = vector.broadcast %cst_241 : f32 to vector<28x32xf32>
    %333 = arith.mulf %332, %329 : vector<28x32xf32>
    %334 = arith.select %331, %329, %333 : vector<28x32xi1>, vector<28x32xf32>
    %335 = vector.extract_strided_slice %334 {offsets = [0, 0], sizes = [12, 32], strides = [1, 1]} : vector<28x32xf32> to vector<12x32xf32>
    %336 = arith.truncf %335 : vector<12x32xf32> to vector<12x32xbf16>
    %c8_242 = arith.constant 8 : index
    %c0_243 = arith.constant 0 : index
    %c0_244 = arith.constant 0 : index
    %337 = vector.load %arg19[%c8_242, %c0_243, %c0_244] : memref<14x12x128xbf16, #tpu.memory_space<vmem>>, vector<1x12x32xbf16>
    %338 = vector.shape_cast %337 : vector<1x12x32xbf16> to vector<12x32xbf16>
    %339 = vector.shape_cast %336 : vector<12x32xbf16> to vector<1x12x32xbf16>
    tpu.vector_store %arg19[%c8_242, %c0_243, %c0_244], %339 {strides = array<i32>} : memref<14x12x128xbf16, #tpu.memory_space<vmem>>, vector<1x12x32xbf16>,
    %340 = vector.extract_strided_slice %334 {offsets = [14, 0], sizes = [12, 32], strides = [1, 1]} : vector<28x32xf32> to vector<12x32xf32>
    %341 = arith.truncf %340 : vector<12x32xf32> to vector<12x32xbf16>
    %c8_245 = arith.constant 8 : index
    %c0_246 = arith.constant 0 : index
    %c32_247 = arith.constant 32 : index
    %342 = vector.load %arg19[%c8_245, %c0_246, %c32_247] : memref<14x12x128xbf16, #tpu.memory_space<vmem>>, vector<1x12x32xbf16>
    %343 = vector.shape_cast %342 : vector<1x12x32xbf16> to vector<12x32xbf16>
    %344 = vector.shape_cast %341 : vector<12x32xbf16> to vector<1x12x32xbf16>
    tpu.vector_store %arg19[%c8_245, %c0_246, %c32_247], %344 {strides = array<i32>} : memref<14x12x128xbf16, #tpu.memory_space<vmem>>, vector<1x12x32xbf16>,
    %345 = vector.extract_strided_slice %334 {offsets = [2, 0], sizes = [12, 32], strides = [1, 1]} : vector<28x32xf32> to vector<12x32xf32>
    %346 = arith.truncf %345 : vector<12x32xf32> to vector<12x32xbf16>
    %c8_248 = arith.constant 8 : index
    %c0_249 = arith.constant 0 : index
    %c64_250 = arith.constant 64 : index
    %347 = vector.load %arg19[%c8_248, %c0_249, %c64_250] : memref<14x12x128xbf16, #tpu.memory_space<vmem>>, vector<1x12x32xbf16>
    %348 = vector.shape_cast %347 : vector<1x12x32xbf16> to vector<12x32xbf16>
    %349 = vector.shape_cast %346 : vector<12x32xbf16> to vector<1x12x32xbf16>
    tpu.vector_store %arg19[%c8_248, %c0_249, %c64_250], %349 {strides = array<i32>} : memref<14x12x128xbf16, #tpu.memory_space<vmem>>, vector<1x12x32xbf16>,
    %350 = vector.extract_strided_slice %334 {offsets = [16, 0], sizes = [12, 32], strides = [1, 1]} : vector<28x32xf32> to vector<12x32xf32>
    %351 = arith.truncf %350 : vector<12x32xf32> to vector<12x32xbf16>
    %c8_251 = arith.constant 8 : index
    %c0_252 = arith.constant 0 : index
    %c96_253 = arith.constant 96 : index
    %352 = vector.load %arg19[%c8_251, %c0_252, %c96_253] : memref<14x12x128xbf16, #tpu.memory_space<vmem>>, vector<1x12x32xbf16>
    %353 = vector.shape_cast %352 : vector<1x12x32xbf16> to vector<12x32xbf16>
    %354 = vector.shape_cast %351 : vector<12x32xbf16> to vector<1x12x32xbf16>
    tpu.vector_store %arg19[%c8_251, %c0_252, %c96_253], %354 {strides = array<i32>} : memref<14x12x128xbf16, #tpu.memory_space<vmem>>, vector<1x12x32xbf16>,
    %c9_254 = arith.constant 9 : index
    %c0_255 = arith.constant 0 : index
    %c0_256 = arith.constant 0 : index
    %355 = vector.load %arg1[%c9_254, %c0_255, %c0_256] : memref<15x28x192xbf16, #tpu.memory_space<vmem>>, vector<1x28x192xbf16>
    %356 = vector.shape_cast %355 : vector<1x28x192xbf16> to vector<28x192xbf16>
    %c0_257 = arith.constant 0 : index
    %c0_258 = arith.constant 0 : index
    %c0_259 = arith.constant 0 : index
    %357 = vector.load %arg5[%c0_257, %c0_258, %c0_259] : memref<2x192x32xbf16, #tpu.memory_space<vmem>>, vector<1x192x32xbf16>
    %358 = vector.shape_cast %357 : vector<1x192x32xbf16> to vector<192x32xbf16>
    %cst_260 = arith.constant dense<0.000000e+00> : vector<28x32xf32>
    %359 = tpu.matmul %356, %358, %cst_260 {dimension_numbers = #tpu.dot_dimension_numbers<[1], [0], [0], [1], [0, 0, 1, 1], [], []>} : vector<28x192xbf16>, vector<192x32xbf16>, vector<28x32xf32> -> vector<28x32xf32>
    %c10 = arith.constant 10 : index
    %c0_261 = arith.constant 0 : index
    %c0_262 = arith.constant 0 : index
    %360 = vector.load %arg1[%c10, %c0_261, %c0_262] : memref<15x28x192xbf16, #tpu.memory_space<vmem>>, vector<1x28x192xbf16>
    %361 = vector.shape_cast %360 : vector<1x28x192xbf16> to vector<28x192xbf16>
    %c1_263 = arith.constant 1 : index
    %c0_264 = arith.constant 0 : index
    %c0_265 = arith.constant 0 : index
    %362 = vector.load %arg5[%c1_263, %c0_264, %c0_265] : memref<2x192x32xbf16, #tpu.memory_space<vmem>>, vector<1x192x32xbf16>
    %363 = vector.shape_cast %362 : vector<1x192x32xbf16> to vector<192x32xbf16>
    %cst_266 = arith.constant dense<0.000000e+00> : vector<28x32xf32>
    %364 = tpu.matmul %361, %363, %cst_266 {dimension_numbers = #tpu.dot_dimension_numbers<[1], [0], [0], [1], [0, 0, 1, 1], [], []>} : vector<28x192xbf16>, vector<192x32xbf16>, vector<28x32xf32> -> vector<28x32xf32>
    %365 = arith.addf %359, %364 : vector<28x32xf32>
    %366 = vector.broadcast %0 : vector<1x32xf32> to vector<28x32xf32>
    %367 = arith.addf %365, %366 : vector<28x32xf32>
    %cst_267 = arith.constant 0.000000e+00 : f32
    %368 = vector.broadcast %cst_267 : f32 to vector<28x32xf32>
    %369 = arith.cmpf oge, %367, %368 : vector<28x32xf32>
    %cst_268 = arith.constant 2.000000e-01 : f32
    %370 = vector.broadcast %cst_268 : f32 to vector<28x32xf32>
    %371 = arith.mulf %370, %367 : vector<28x32xf32>
    %372 = arith.select %369, %367, %371 : vector<28x32xi1>, vector<28x32xf32>
    %373 = vector.extract_strided_slice %372 {offsets = [0, 0], sizes = [12, 32], strides = [1, 1]} : vector<28x32xf32> to vector<12x32xf32>
    %374 = arith.truncf %373 : vector<12x32xf32> to vector<12x32xbf16>
    %c9_269 = arith.constant 9 : index
    %c0_270 = arith.constant 0 : index
    %c0_271 = arith.constant 0 : index
    %375 = vector.load %arg19[%c9_269, %c0_270, %c0_271] : memref<14x12x128xbf16, #tpu.memory_space<vmem>>, vector<1x12x32xbf16>
    %376 = vector.shape_cast %375 : vector<1x12x32xbf16> to vector<12x32xbf16>
    %377 = vector.shape_cast %374 : vector<12x32xbf16> to vector<1x12x32xbf16>
    tpu.vector_store %arg19[%c9_269, %c0_270, %c0_271], %377 {strides = array<i32>} : memref<14x12x128xbf16, #tpu.memory_space<vmem>>, vector<1x12x32xbf16>,
    %378 = vector.extract_strided_slice %372 {offsets = [14, 0], sizes = [12, 32], strides = [1, 1]} : vector<28x32xf32> to vector<12x32xf32>
    %379 = arith.truncf %378 : vector<12x32xf32> to vector<12x32xbf16>
    %c9_272 = arith.constant 9 : index
    %c0_273 = arith.constant 0 : index
    %c32_274 = arith.constant 32 : index
    %380 = vector.load %arg19[%c9_272, %c0_273, %c32_274] : memref<14x12x128xbf16, #tpu.memory_space<vmem>>, vector<1x12x32xbf16>
    %381 = vector.shape_cast %380 : vector<1x12x32xbf16> to vector<12x32xbf16>
    %382 = vector.shape_cast %379 : vector<12x32xbf16> to vector<1x12x32xbf16>
    tpu.vector_store %arg19[%c9_272, %c0_273, %c32_274], %382 {strides = array<i32>} : memref<14x12x128xbf16, #tpu.memory_space<vmem>>, vector<1x12x32xbf16>,
    %383 = vector.extract_strided_slice %372 {offsets = [2, 0], sizes = [12, 32], strides = [1, 1]} : vector<28x32xf32> to vector<12x32xf32>
    %384 = arith.truncf %383 : vector<12x32xf32> to vector<12x32xbf16>
    %c9_275 = arith.constant 9 : index
    %c0_276 = arith.constant 0 : index
    %c64_277 = arith.constant 64 : index
    %385 = vector.load %arg19[%c9_275, %c0_276, %c64_277] : memref<14x12x128xbf16, #tpu.memory_space<vmem>>, vector<1x12x32xbf16>
    %386 = vector.shape_cast %385 : vector<1x12x32xbf16> to vector<12x32xbf16>
    %387 = vector.shape_cast %384 : vector<12x32xbf16> to vector<1x12x32xbf16>
    tpu.vector_store %arg19[%c9_275, %c0_276, %c64_277], %387 {strides = array<i32>} : memref<14x12x128xbf16, #tpu.memory_space<vmem>>, vector<1x12x32xbf16>,
    %388 = vector.extract_strided_slice %372 {offsets = [16, 0], sizes = [12, 32], strides = [1, 1]} : vector<28x32xf32> to vector<12x32xf32>
    %389 = arith.truncf %388 : vector<12x32xf32> to vector<12x32xbf16>
    %c9_278 = arith.constant 9 : index
    %c0_279 = arith.constant 0 : index
    %c96_280 = arith.constant 96 : index
    %390 = vector.load %arg19[%c9_278, %c0_279, %c96_280] : memref<14x12x128xbf16, #tpu.memory_space<vmem>>, vector<1x12x32xbf16>
    %391 = vector.shape_cast %390 : vector<1x12x32xbf16> to vector<12x32xbf16>
    %392 = vector.shape_cast %389 : vector<12x32xbf16> to vector<1x12x32xbf16>
    tpu.vector_store %arg19[%c9_278, %c0_279, %c96_280], %392 {strides = array<i32>} : memref<14x12x128xbf16, #tpu.memory_space<vmem>>, vector<1x12x32xbf16>,
    %c10_281 = arith.constant 10 : index
    %c0_282 = arith.constant 0 : index
    %c0_283 = arith.constant 0 : index
    %393 = vector.load %arg1[%c10_281, %c0_282, %c0_283] : memref<15x28x192xbf16, #tpu.memory_space<vmem>>, vector<1x28x192xbf16>
    %394 = vector.shape_cast %393 : vector<1x28x192xbf16> to vector<28x192xbf16>
    %c0_284 = arith.constant 0 : index
    %c0_285 = arith.constant 0 : index
    %c0_286 = arith.constant 0 : index
    %395 = vector.load %arg5[%c0_284, %c0_285, %c0_286] : memref<2x192x32xbf16, #tpu.memory_space<vmem>>, vector<1x192x32xbf16>
    %396 = vector.shape_cast %395 : vector<1x192x32xbf16> to vector<192x32xbf16>
    %cst_287 = arith.constant dense<0.000000e+00> : vector<28x32xf32>
    %397 = tpu.matmul %394, %396, %cst_287 {dimension_numbers = #tpu.dot_dimension_numbers<[1], [0], [0], [1], [0, 0, 1, 1], [], []>} : vector<28x192xbf16>, vector<192x32xbf16>, vector<28x32xf32> -> vector<28x32xf32>
    %c11 = arith.constant 11 : index
    %c0_288 = arith.constant 0 : index
    %c0_289 = arith.constant 0 : index
    %398 = vector.load %arg1[%c11, %c0_288, %c0_289] : memref<15x28x192xbf16, #tpu.memory_space<vmem>>, vector<1x28x192xbf16>
    %399 = vector.shape_cast %398 : vector<1x28x192xbf16> to vector<28x192xbf16>
    %c1_290 = arith.constant 1 : index
    %c0_291 = arith.constant 0 : index
    %c0_292 = arith.constant 0 : index
    %400 = vector.load %arg5[%c1_290, %c0_291, %c0_292] : memref<2x192x32xbf16, #tpu.memory_space<vmem>>, vector<1x192x32xbf16>
    %401 = vector.shape_cast %400 : vector<1x192x32xbf16> to vector<192x32xbf16>
    %cst_293 = arith.constant dense<0.000000e+00> : vector<28x32xf32>
    %402 = tpu.matmul %399, %401, %cst_293 {dimension_numbers = #tpu.dot_dimension_numbers<[1], [0], [0], [1], [0, 0, 1, 1], [], []>} : vector<28x192xbf16>, vector<192x32xbf16>, vector<28x32xf32> -> vector<28x32xf32>
    %403 = arith.addf %397, %402 : vector<28x32xf32>
    %404 = vector.broadcast %0 : vector<1x32xf32> to vector<28x32xf32>
    %405 = arith.addf %403, %404 : vector<28x32xf32>
    %cst_294 = arith.constant 0.000000e+00 : f32
    %406 = vector.broadcast %cst_294 : f32 to vector<28x32xf32>
    %407 = arith.cmpf oge, %405, %406 : vector<28x32xf32>
    %cst_295 = arith.constant 2.000000e-01 : f32
    %408 = vector.broadcast %cst_295 : f32 to vector<28x32xf32>
    %409 = arith.mulf %408, %405 : vector<28x32xf32>
    %410 = arith.select %407, %405, %409 : vector<28x32xi1>, vector<28x32xf32>
    %411 = vector.extract_strided_slice %410 {offsets = [0, 0], sizes = [12, 32], strides = [1, 1]} : vector<28x32xf32> to vector<12x32xf32>
    %412 = arith.truncf %411 : vector<12x32xf32> to vector<12x32xbf16>
    %c10_296 = arith.constant 10 : index
    %c0_297 = arith.constant 0 : index
    %c0_298 = arith.constant 0 : index
    %413 = vector.load %arg19[%c10_296, %c0_297, %c0_298] : memref<14x12x128xbf16, #tpu.memory_space<vmem>>, vector<1x12x32xbf16>
    %414 = vector.shape_cast %413 : vector<1x12x32xbf16> to vector<12x32xbf16>
    %415 = vector.shape_cast %412 : vector<12x32xbf16> to vector<1x12x32xbf16>
    tpu.vector_store %arg19[%c10_296, %c0_297, %c0_298], %415 {strides = array<i32>} : memref<14x12x128xbf16, #tpu.memory_space<vmem>>, vector<1x12x32xbf16>,
    %416 = vector.extract_strided_slice %410 {offsets = [14, 0], sizes = [12, 32], strides = [1, 1]} : vector<28x32xf32> to vector<12x32xf32>
    %417 = arith.truncf %416 : vector<12x32xf32> to vector<12x32xbf16>
    %c10_299 = arith.constant 10 : index
    %c0_300 = arith.constant 0 : index
    %c32_301 = arith.constant 32 : index
    %418 = vector.load %arg19[%c10_299, %c0_300, %c32_301] : memref<14x12x128xbf16, #tpu.memory_space<vmem>>, vector<1x12x32xbf16>
    %419 = vector.shape_cast %418 : vector<1x12x32xbf16> to vector<12x32xbf16>
    %420 = vector.shape_cast %417 : vector<12x32xbf16> to vector<1x12x32xbf16>
    tpu.vector_store %arg19[%c10_299, %c0_300, %c32_301], %420 {strides = array<i32>} : memref<14x12x128xbf16, #tpu.memory_space<vmem>>, vector<1x12x32xbf16>,
    %421 = vector.extract_strided_slice %410 {offsets = [2, 0], sizes = [12, 32], strides = [1, 1]} : vector<28x32xf32> to vector<12x32xf32>
    %422 = arith.truncf %421 : vector<12x32xf32> to vector<12x32xbf16>
    %c10_302 = arith.constant 10 : index
    %c0_303 = arith.constant 0 : index
    %c64_304 = arith.constant 64 : index
    %423 = vector.load %arg19[%c10_302, %c0_303, %c64_304] : memref<14x12x128xbf16, #tpu.memory_space<vmem>>, vector<1x12x32xbf16>
    %424 = vector.shape_cast %423 : vector<1x12x32xbf16> to vector<12x32xbf16>
    %425 = vector.shape_cast %422 : vector<12x32xbf16> to vector<1x12x32xbf16>
    tpu.vector_store %arg19[%c10_302, %c0_303, %c64_304], %425 {strides = array<i32>} : memref<14x12x128xbf16, #tpu.memory_space<vmem>>, vector<1x12x32xbf16>,
    %426 = vector.extract_strided_slice %410 {offsets = [16, 0], sizes = [12, 32], strides = [1, 1]} : vector<28x32xf32> to vector<12x32xf32>
    %427 = arith.truncf %426 : vector<12x32xf32> to vector<12x32xbf16>
    %c10_305 = arith.constant 10 : index
    %c0_306 = arith.constant 0 : index
    %c96_307 = arith.constant 96 : index
    %428 = vector.load %arg19[%c10_305, %c0_306, %c96_307] : memref<14x12x128xbf16, #tpu.memory_space<vmem>>, vector<1x12x32xbf16>
    %429 = vector.shape_cast %428 : vector<1x12x32xbf16> to vector<12x32xbf16>
    %430 = vector.shape_cast %427 : vector<12x32xbf16> to vector<1x12x32xbf16>
    tpu.vector_store %arg19[%c10_305, %c0_306, %c96_307], %430 {strides = array<i32>} : memref<14x12x128xbf16, #tpu.memory_space<vmem>>, vector<1x12x32xbf16>,
    %c11_308 = arith.constant 11 : index
    %c0_309 = arith.constant 0 : index
    %c0_310 = arith.constant 0 : index
    %431 = vector.load %arg1[%c11_308, %c0_309, %c0_310] : memref<15x28x192xbf16, #tpu.memory_space<vmem>>, vector<1x28x192xbf16>
    %432 = vector.shape_cast %431 : vector<1x28x192xbf16> to vector<28x192xbf16>
    %c0_311 = arith.constant 0 : index
    %c0_312 = arith.constant 0 : index
    %c0_313 = arith.constant 0 : index
    %433 = vector.load %arg5[%c0_311, %c0_312, %c0_313] : memref<2x192x32xbf16, #tpu.memory_space<vmem>>, vector<1x192x32xbf16>
    %434 = vector.shape_cast %433 : vector<1x192x32xbf16> to vector<192x32xbf16>
    %cst_314 = arith.constant dense<0.000000e+00> : vector<28x32xf32>
    %435 = tpu.matmul %432, %434, %cst_314 {dimension_numbers = #tpu.dot_dimension_numbers<[1], [0], [0], [1], [0, 0, 1, 1], [], []>} : vector<28x192xbf16>, vector<192x32xbf16>, vector<28x32xf32> -> vector<28x32xf32>
    %c12 = arith.constant 12 : index
    %c0_315 = arith.constant 0 : index
    %c0_316 = arith.constant 0 : index
    %436 = vector.load %arg1[%c12, %c0_315, %c0_316] : memref<15x28x192xbf16, #tpu.memory_space<vmem>>, vector<1x28x192xbf16>
    %437 = vector.shape_cast %436 : vector<1x28x192xbf16> to vector<28x192xbf16>
    %c1_317 = arith.constant 1 : index
    %c0_318 = arith.constant 0 : index
    %c0_319 = arith.constant 0 : index
    %438 = vector.load %arg5[%c1_317, %c0_318, %c0_319] : memref<2x192x32xbf16, #tpu.memory_space<vmem>>, vector<1x192x32xbf16>
    %439 = vector.shape_cast %438 : vector<1x192x32xbf16> to vector<192x32xbf16>
    %cst_320 = arith.constant dense<0.000000e+00> : vector<28x32xf32>
    %440 = tpu.matmul %437, %439, %cst_320 {dimension_numbers = #tpu.dot_dimension_numbers<[1], [0], [0], [1], [0, 0, 1, 1], [], []>} : vector<28x192xbf16>, vector<192x32xbf16>, vector<28x32xf32> -> vector<28x32xf32>
    %441 = arith.addf %435, %440 : vector<28x32xf32>
    %442 = vector.broadcast %0 : vector<1x32xf32> to vector<28x32xf32>
    %443 = arith.addf %441, %442 : vector<28x32xf32>
    %cst_321 = arith.constant 0.000000e+00 : f32
    %444 = vector.broadcast %cst_321 : f32 to vector<28x32xf32>
    %445 = arith.cmpf oge, %443, %444 : vector<28x32xf32>
    %cst_322 = arith.constant 2.000000e-01 : f32
    %446 = vector.broadcast %cst_322 : f32 to vector<28x32xf32>
    %447 = arith.mulf %446, %443 : vector<28x32xf32>
    %448 = arith.select %445, %443, %447 : vector<28x32xi1>, vector<28x32xf32>
    %449 = vector.extract_strided_slice %448 {offsets = [0, 0], sizes = [12, 32], strides = [1, 1]} : vector<28x32xf32> to vector<12x32xf32>
    %450 = arith.truncf %449 : vector<12x32xf32> to vector<12x32xbf16>
    %c11_323 = arith.constant 11 : index
    %c0_324 = arith.constant 0 : index
    %c0_325 = arith.constant 0 : index
    %451 = vector.load %arg19[%c11_323, %c0_324, %c0_325] : memref<14x12x128xbf16, #tpu.memory_space<vmem>>, vector<1x12x32xbf16>
    %452 = vector.shape_cast %451 : vector<1x12x32xbf16> to vector<12x32xbf16>
    %453 = vector.shape_cast %450 : vector<12x32xbf16> to vector<1x12x32xbf16>
    tpu.vector_store %arg19[%c11_323, %c0_324, %c0_325], %453 {strides = array<i32>} : memref<14x12x128xbf16, #tpu.memory_space<vmem>>, vector<1x12x32xbf16>,
    %454 = vector.extract_strided_slice %448 {offsets = [14, 0], sizes = [12, 32], strides = [1, 1]} : vector<28x32xf32> to vector<12x32xf32>
    %455 = arith.truncf %454 : vector<12x32xf32> to vector<12x32xbf16>
    %c11_326 = arith.constant 11 : index
    %c0_327 = arith.constant 0 : index
    %c32_328 = arith.constant 32 : index
    %456 = vector.load %arg19[%c11_326, %c0_327, %c32_328] : memref<14x12x128xbf16, #tpu.memory_space<vmem>>, vector<1x12x32xbf16>
    %457 = vector.shape_cast %456 : vector<1x12x32xbf16> to vector<12x32xbf16>
    %458 = vector.shape_cast %455 : vector<12x32xbf16> to vector<1x12x32xbf16>
    tpu.vector_store %arg19[%c11_326, %c0_327, %c32_328], %458 {strides = array<i32>} : memref<14x12x128xbf16, #tpu.memory_space<vmem>>, vector<1x12x32xbf16>,
    %459 = vector.extract_strided_slice %448 {offsets = [2, 0], sizes = [12, 32], strides = [1, 1]} : vector<28x32xf32> to vector<12x32xf32>
    %460 = arith.truncf %459 : vector<12x32xf32> to vector<12x32xbf16>
    %c11_329 = arith.constant 11 : index
    %c0_330 = arith.constant 0 : index
    %c64_331 = arith.constant 64 : index
    %461 = vector.load %arg19[%c11_329, %c0_330, %c64_331] : memref<14x12x128xbf16, #tpu.memory_space<vmem>>, vector<1x12x32xbf16>
    %462 = vector.shape_cast %461 : vector<1x12x32xbf16> to vector<12x32xbf16>
    %463 = vector.shape_cast %460 : vector<12x32xbf16> to vector<1x12x32xbf16>
    tpu.vector_store %arg19[%c11_329, %c0_330, %c64_331], %463 {strides = array<i32>} : memref<14x12x128xbf16, #tpu.memory_space<vmem>>, vector<1x12x32xbf16>,
    %464 = vector.extract_strided_slice %448 {offsets = [16, 0], sizes = [12, 32], strides = [1, 1]} : vector<28x32xf32> to vector<12x32xf32>
    %465 = arith.truncf %464 : vector<12x32xf32> to vector<12x32xbf16>
    %c11_332 = arith.constant 11 : index
    %c0_333 = arith.constant 0 : index
    %c96_334 = arith.constant 96 : index
    %466 = vector.load %arg19[%c11_332, %c0_333, %c96_334] : memref<14x12x128xbf16, #tpu.memory_space<vmem>>, vector<1x12x32xbf16>
    %467 = vector.shape_cast %466 : vector<1x12x32xbf16> to vector<12x32xbf16>
    %468 = vector.shape_cast %465 : vector<12x32xbf16> to vector<1x12x32xbf16>
    tpu.vector_store %arg19[%c11_332, %c0_333, %c96_334], %468 {strides = array<i32>} : memref<14x12x128xbf16, #tpu.memory_space<vmem>>, vector<1x12x32xbf16>,
    %c12_335 = arith.constant 12 : index
    %c0_336 = arith.constant 0 : index
    %c0_337 = arith.constant 0 : index
    %469 = vector.load %arg1[%c12_335, %c0_336, %c0_337] : memref<15x28x192xbf16, #tpu.memory_space<vmem>>, vector<1x28x192xbf16>
    %470 = vector.shape_cast %469 : vector<1x28x192xbf16> to vector<28x192xbf16>
    %c0_338 = arith.constant 0 : index
    %c0_339 = arith.constant 0 : index
    %c0_340 = arith.constant 0 : index
    %471 = vector.load %arg5[%c0_338, %c0_339, %c0_340] : memref<2x192x32xbf16, #tpu.memory_space<vmem>>, vector<1x192x32xbf16>
    %472 = vector.shape_cast %471 : vector<1x192x32xbf16> to vector<192x32xbf16>
    %cst_341 = arith.constant dense<0.000000e+00> : vector<28x32xf32>
    %473 = tpu.matmul %470, %472, %cst_341 {dimension_numbers = #tpu.dot_dimension_numbers<[1], [0], [0], [1], [0, 0, 1, 1], [], []>} : vector<28x192xbf16>, vector<192x32xbf16>, vector<28x32xf32> -> vector<28x32xf32>
    %c13 = arith.constant 13 : index
    %c0_342 = arith.constant 0 : index
    %c0_343 = arith.constant 0 : index
    %474 = vector.load %arg1[%c13, %c0_342, %c0_343] : memref<15x28x192xbf16, #tpu.memory_space<vmem>>, vector<1x28x192xbf16>
    %475 = vector.shape_cast %474 : vector<1x28x192xbf16> to vector<28x192xbf16>
    %c1_344 = arith.constant 1 : index
    %c0_345 = arith.constant 0 : index
    %c0_346 = arith.constant 0 : index
    %476 = vector.load %arg5[%c1_344, %c0_345, %c0_346] : memref<2x192x32xbf16, #tpu.memory_space<vmem>>, vector<1x192x32xbf16>
    %477 = vector.shape_cast %476 : vector<1x192x32xbf16> to vector<192x32xbf16>
    %cst_347 = arith.constant dense<0.000000e+00> : vector<28x32xf32>
    %478 = tpu.matmul %475, %477, %cst_347 {dimension_numbers = #tpu.dot_dimension_numbers<[1], [0], [0], [1], [0, 0, 1, 1], [], []>} : vector<28x192xbf16>, vector<192x32xbf16>, vector<28x32xf32> -> vector<28x32xf32>
    %479 = arith.addf %473, %478 : vector<28x32xf32>
    %480 = vector.broadcast %0 : vector<1x32xf32> to vector<28x32xf32>
    %481 = arith.addf %479, %480 : vector<28x32xf32>
    %cst_348 = arith.constant 0.000000e+00 : f32
    %482 = vector.broadcast %cst_348 : f32 to vector<28x32xf32>
    %483 = arith.cmpf oge, %481, %482 : vector<28x32xf32>
    %cst_349 = arith.constant 2.000000e-01 : f32
    %484 = vector.broadcast %cst_349 : f32 to vector<28x32xf32>
    %485 = arith.mulf %484, %481 : vector<28x32xf32>
    %486 = arith.select %483, %481, %485 : vector<28x32xi1>, vector<28x32xf32>
    %487 = vector.extract_strided_slice %486 {offsets = [0, 0], sizes = [12, 32], strides = [1, 1]} : vector<28x32xf32> to vector<12x32xf32>
    %488 = arith.truncf %487 : vector<12x32xf32> to vector<12x32xbf16>
    %c12_350 = arith.constant 12 : index
    %c0_351 = arith.constant 0 : index
    %c0_352 = arith.constant 0 : index
    %489 = vector.load %arg19[%c12_350, %c0_351, %c0_352] : memref<14x12x128xbf16, #tpu.memory_space<vmem>>, vector<1x12x32xbf16>
    %490 = vector.shape_cast %489 : vector<1x12x32xbf16> to vector<12x32xbf16>
    %491 = vector.shape_cast %488 : vector<12x32xbf16> to vector<1x12x32xbf16>
    tpu.vector_store %arg19[%c12_350, %c0_351, %c0_352], %491 {strides = array<i32>} : memref<14x12x128xbf16, #tpu.memory_space<vmem>>, vector<1x12x32xbf16>,
    %492 = vector.extract_strided_slice %486 {offsets = [14, 0], sizes = [12, 32], strides = [1, 1]} : vector<28x32xf32> to vector<12x32xf32>
    %493 = arith.truncf %492 : vector<12x32xf32> to vector<12x32xbf16>
    %c12_353 = arith.constant 12 : index
    %c0_354 = arith.constant 0 : index
    %c32_355 = arith.constant 32 : index
    %494 = vector.load %arg19[%c12_353, %c0_354, %c32_355] : memref<14x12x128xbf16, #tpu.memory_space<vmem>>, vector<1x12x32xbf16>
    %495 = vector.shape_cast %494 : vector<1x12x32xbf16> to vector<12x32xbf16>
    %496 = vector.shape_cast %493 : vector<12x32xbf16> to vector<1x12x32xbf16>
    tpu.vector_store %arg19[%c12_353, %c0_354, %c32_355], %496 {strides = array<i32>} : memref<14x12x128xbf16, #tpu.memory_space<vmem>>, vector<1x12x32xbf16>,
    %497 = vector.extract_strided_slice %486 {offsets = [2, 0], sizes = [12, 32], strides = [1, 1]} : vector<28x32xf32> to vector<12x32xf32>
    %498 = arith.truncf %497 : vector<12x32xf32> to vector<12x32xbf16>
    %c12_356 = arith.constant 12 : index
    %c0_357 = arith.constant 0 : index
    %c64_358 = arith.constant 64 : index
    %499 = vector.load %arg19[%c12_356, %c0_357, %c64_358] : memref<14x12x128xbf16, #tpu.memory_space<vmem>>, vector<1x12x32xbf16>
    %500 = vector.shape_cast %499 : vector<1x12x32xbf16> to vector<12x32xbf16>
    %501 = vector.shape_cast %498 : vector<12x32xbf16> to vector<1x12x32xbf16>
    tpu.vector_store %arg19[%c12_356, %c0_357, %c64_358], %501 {strides = array<i32>} : memref<14x12x128xbf16, #tpu.memory_space<vmem>>, vector<1x12x32xbf16>,
    %502 = vector.extract_strided_slice %486 {offsets = [16, 0], sizes = [12, 32], strides = [1, 1]} : vector<28x32xf32> to vector<12x32xf32>
    %503 = arith.truncf %502 : vector<12x32xf32> to vector<12x32xbf16>
    %c12_359 = arith.constant 12 : index
    %c0_360 = arith.constant 0 : index
    %c96_361 = arith.constant 96 : index
    %504 = vector.load %arg19[%c12_359, %c0_360, %c96_361] : memref<14x12x128xbf16, #tpu.memory_space<vmem>>, vector<1x12x32xbf16>
    %505 = vector.shape_cast %504 : vector<1x12x32xbf16> to vector<12x32xbf16>
    %506 = vector.shape_cast %503 : vector<12x32xbf16> to vector<1x12x32xbf16>
    tpu.vector_store %arg19[%c12_359, %c0_360, %c96_361], %506 {strides = array<i32>} : memref<14x12x128xbf16, #tpu.memory_space<vmem>>, vector<1x12x32xbf16>,
    %c13_362 = arith.constant 13 : index
    %c0_363 = arith.constant 0 : index
    %c0_364 = arith.constant 0 : index
    %507 = vector.load %arg1[%c13_362, %c0_363, %c0_364] : memref<15x28x192xbf16, #tpu.memory_space<vmem>>, vector<1x28x192xbf16>
    %508 = vector.shape_cast %507 : vector<1x28x192xbf16> to vector<28x192xbf16>
    %c0_365 = arith.constant 0 : index
    %c0_366 = arith.constant 0 : index
    %c0_367 = arith.constant 0 : index
    %509 = vector.load %arg5[%c0_365, %c0_366, %c0_367] : memref<2x192x32xbf16, #tpu.memory_space<vmem>>, vector<1x192x32xbf16>
    %510 = vector.shape_cast %509 : vector<1x192x32xbf16> to vector<192x32xbf16>
    %cst_368 = arith.constant dense<0.000000e+00> : vector<28x32xf32>
    %511 = tpu.matmul %508, %510, %cst_368 {dimension_numbers = #tpu.dot_dimension_numbers<[1], [0], [0], [1], [0, 0, 1, 1], [], []>} : vector<28x192xbf16>, vector<192x32xbf16>, vector<28x32xf32> -> vector<28x32xf32>
    %c14 = arith.constant 14 : index
    %c0_369 = arith.constant 0 : index
    %c0_370 = arith.constant 0 : index
    %512 = vector.load %arg1[%c14, %c0_369, %c0_370] : memref<15x28x192xbf16, #tpu.memory_space<vmem>>, vector<1x28x192xbf16>
    %513 = vector.shape_cast %512 : vector<1x28x192xbf16> to vector<28x192xbf16>
    %c1_371 = arith.constant 1 : index
    %c0_372 = arith.constant 0 : index
    %c0_373 = arith.constant 0 : index
    %514 = vector.load %arg5[%c1_371, %c0_372, %c0_373] : memref<2x192x32xbf16, #tpu.memory_space<vmem>>, vector<1x192x32xbf16>
    %515 = vector.shape_cast %514 : vector<1x192x32xbf16> to vector<192x32xbf16>
    %cst_374 = arith.constant dense<0.000000e+00> : vector<28x32xf32>
    %516 = tpu.matmul %513, %515, %cst_374 {dimension_numbers = #tpu.dot_dimension_numbers<[1], [0], [0], [1], [0, 0, 1, 1], [], []>} : vector<28x192xbf16>, vector<192x32xbf16>, vector<28x32xf32> -> vector<28x32xf32>
    %517 = arith.addf %511, %516 : vector<28x32xf32>
    %518 = vector.broadcast %0 : vector<1x32xf32> to vector<28x32xf32>
    %519 = arith.addf %517, %518 : vector<28x32xf32>
    %cst_375 = arith.constant 0.000000e+00 : f32
    %520 = vector.broadcast %cst_375 : f32 to vector<28x32xf32>
    %521 = arith.cmpf oge, %519, %520 : vector<28x32xf32>
    %cst_376 = arith.constant 2.000000e-01 : f32
    %522 = vector.broadcast %cst_376 : f32 to vector<28x32xf32>
    %523 = arith.mulf %522, %519 : vector<28x32xf32>
    %524 = arith.select %521, %519, %523 : vector<28x32xi1>, vector<28x32xf32>
    %525 = vector.extract_strided_slice %524 {offsets = [0, 0], sizes = [12, 32], strides = [1, 1]} : vector<28x32xf32> to vector<12x32xf32>
    %526 = arith.truncf %525 : vector<12x32xf32> to vector<12x32xbf16>
    %c13_377 = arith.constant 13 : index
    %c0_378 = arith.constant 0 : index
    %c0_379 = arith.constant 0 : index
    %527 = vector.load %arg19[%c13_377, %c0_378, %c0_379] : memref<14x12x128xbf16, #tpu.memory_space<vmem>>, vector<1x12x32xbf16>
    %528 = vector.shape_cast %527 : vector<1x12x32xbf16> to vector<12x32xbf16>
    %529 = vector.shape_cast %526 : vector<12x32xbf16> to vector<1x12x32xbf16>
    tpu.vector_store %arg19[%c13_377, %c0_378, %c0_379], %529 {strides = array<i32>} : memref<14x12x128xbf16, #tpu.memory_space<vmem>>, vector<1x12x32xbf16>,
    %530 = vector.extract_strided_slice %524 {offsets = [14, 0], sizes = [12, 32], strides = [1, 1]} : vector<28x32xf32> to vector<12x32xf32>
    %531 = arith.truncf %530 : vector<12x32xf32> to vector<12x32xbf16>
    %c13_380 = arith.constant 13 : index
    %c0_381 = arith.constant 0 : index
    %c32_382 = arith.constant 32 : index
    %532 = vector.load %arg19[%c13_380, %c0_381, %c32_382] : memref<14x12x128xbf16, #tpu.memory_space<vmem>>, vector<1x12x32xbf16>
    %533 = vector.shape_cast %532 : vector<1x12x32xbf16> to vector<12x32xbf16>
    %534 = vector.shape_cast %531 : vector<12x32xbf16> to vector<1x12x32xbf16>
    tpu.vector_store %arg19[%c13_380, %c0_381, %c32_382], %534 {strides = array<i32>} : memref<14x12x128xbf16, #tpu.memory_space<vmem>>, vector<1x12x32xbf16>,
    %535 = vector.extract_strided_slice %524 {offsets = [2, 0], sizes = [12, 32], strides = [1, 1]} : vector<28x32xf32> to vector<12x32xf32>
    %536 = arith.truncf %535 : vector<12x32xf32> to vector<12x32xbf16>
    %c13_383 = arith.constant 13 : index
    %c0_384 = arith.constant 0 : index
    %c64_385 = arith.constant 64 : index
    %537 = vector.load %arg19[%c13_383, %c0_384, %c64_385] : memref<14x12x128xbf16, #tpu.memory_space<vmem>>, vector<1x12x32xbf16>
    %538 = vector.shape_cast %537 : vector<1x12x32xbf16> to vector<12x32xbf16>
    %539 = vector.shape_cast %536 : vector<12x32xbf16> to vector<1x12x32xbf16>
    tpu.vector_store %arg19[%c13_383, %c0_384, %c64_385], %539 {strides = array<i32>} : memref<14x12x128xbf16, #tpu.memory_space<vmem>>, vector<1x12x32xbf16>,
    %540 = vector.extract_strided_slice %524 {offsets = [16, 0], sizes = [12, 32], strides = [1, 1]} : vector<28x32xf32> to vector<12x32xf32>
    %541 = arith.truncf %540 : vector<12x32xf32> to vector<12x32xbf16>
    %c13_386 = arith.constant 13 : index
    %c0_387 = arith.constant 0 : index
    %c96_388 = arith.constant 96 : index
    %542 = vector.load %arg19[%c13_386, %c0_387, %c96_388] : memref<14x12x128xbf16, #tpu.memory_space<vmem>>, vector<1x12x32xbf16>
    %543 = vector.shape_cast %542 : vector<1x12x32xbf16> to vector<12x32xbf16>
    %544 = vector.shape_cast %541 : vector<12x32xbf16> to vector<1x12x32xbf16>
    tpu.vector_store %arg19[%c13_386, %c0_387, %c96_388], %544 {strides = array<i32>} : memref<14x12x128xbf16, #tpu.memory_space<vmem>>, vector<1x12x32xbf16>,
    %c0_389 = arith.constant 0 : index
    %c0_390 = arith.constant 0 : index
    %c0_391 = arith.constant 0 : index
    %545 = vector.load %arg19[%c0_389, %c0_390, %c0_391] : memref<14x12x128xbf16, #tpu.memory_space<vmem>>, vector<1x12x128xbf16>
    %546 = vector.shape_cast %545 : vector<1x12x128xbf16> to vector<12x128xbf16>
    %c0_392 = arith.constant 0 : index
    %c0_393 = arith.constant 0 : index
    %c0_394 = arith.constant 0 : index
    %547 = vector.load %arg7[%c0_392, %c0_393, %c0_394] : memref<4x128x64xbf16, #tpu.memory_space<vmem>>, vector<1x128x64xbf16>
    %548 = vector.shape_cast %547 : vector<1x128x64xbf16> to vector<128x64xbf16>
    %cst_395 = arith.constant dense<0.000000e+00> : vector<12x64xf32>
    %549 = tpu.matmul %546, %548, %cst_395 {dimension_numbers = #tpu.dot_dimension_numbers<[1], [0], [0], [1], [0, 0, 1, 1], [], []>} : vector<12x128xbf16>, vector<128x64xbf16>, vector<12x64xf32> -> vector<12x64xf32>
    %c1_396 = arith.constant 1 : index
    %c0_397 = arith.constant 0 : index
    %c0_398 = arith.constant 0 : index
    %550 = vector.load %arg19[%c1_396, %c0_397, %c0_398] : memref<14x12x128xbf16, #tpu.memory_space<vmem>>, vector<1x12x128xbf16>
    %551 = vector.shape_cast %550 : vector<1x12x128xbf16> to vector<12x128xbf16>
    %c1_399 = arith.constant 1 : index
    %c0_400 = arith.constant 0 : index
    %c0_401 = arith.constant 0 : index
    %552 = vector.load %arg7[%c1_399, %c0_400, %c0_401] : memref<4x128x64xbf16, #tpu.memory_space<vmem>>, vector<1x128x64xbf16>
    %553 = vector.shape_cast %552 : vector<1x128x64xbf16> to vector<128x64xbf16>
    %cst_402 = arith.constant dense<0.000000e+00> : vector<12x64xf32>
    %554 = tpu.matmul %551, %553, %cst_402 {dimension_numbers = #tpu.dot_dimension_numbers<[1], [0], [0], [1], [0, 0, 1, 1], [], []>} : vector<12x128xbf16>, vector<128x64xbf16>, vector<12x64xf32> -> vector<12x64xf32>
    %555 = arith.addf %549, %554 : vector<12x64xf32>
    %c2_403 = arith.constant 2 : index
    %c0_404 = arith.constant 0 : index
    %c0_405 = arith.constant 0 : index
    %556 = vector.load %arg19[%c2_403, %c0_404, %c0_405] : memref<14x12x128xbf16, #tpu.memory_space<vmem>>, vector<1x12x128xbf16>
    %557 = vector.shape_cast %556 : vector<1x12x128xbf16> to vector<12x128xbf16>
    %c2_406 = arith.constant 2 : index
    %c0_407 = arith.constant 0 : index
    %c0_408 = arith.constant 0 : index
    %558 = vector.load %arg7[%c2_406, %c0_407, %c0_408] : memref<4x128x64xbf16, #tpu.memory_space<vmem>>, vector<1x128x64xbf16>
    %559 = vector.shape_cast %558 : vector<1x128x64xbf16> to vector<128x64xbf16>
    %cst_409 = arith.constant dense<0.000000e+00> : vector<12x64xf32>
    %560 = tpu.matmul %557, %559, %cst_409 {dimension_numbers = #tpu.dot_dimension_numbers<[1], [0], [0], [1], [0, 0, 1, 1], [], []>} : vector<12x128xbf16>, vector<128x64xbf16>, vector<12x64xf32> -> vector<12x64xf32>
    %561 = arith.addf %555, %560 : vector<12x64xf32>
    %c3_410 = arith.constant 3 : index
    %c0_411 = arith.constant 0 : index
    %c0_412 = arith.constant 0 : index
    %562 = vector.load %arg19[%c3_410, %c0_411, %c0_412] : memref<14x12x128xbf16, #tpu.memory_space<vmem>>, vector<1x12x128xbf16>
    %563 = vector.shape_cast %562 : vector<1x12x128xbf16> to vector<12x128xbf16>
    %c3_413 = arith.constant 3 : index
    %c0_414 = arith.constant 0 : index
    %c0_415 = arith.constant 0 : index
    %564 = vector.load %arg7[%c3_413, %c0_414, %c0_415] : memref<4x128x64xbf16, #tpu.memory_space<vmem>>, vector<1x128x64xbf16>
    %565 = vector.shape_cast %564 : vector<1x128x64xbf16> to vector<128x64xbf16>
    %cst_416 = arith.constant dense<0.000000e+00> : vector<12x64xf32>
    %566 = tpu.matmul %563, %565, %cst_416 {dimension_numbers = #tpu.dot_dimension_numbers<[1], [0], [0], [1], [0, 0, 1, 1], [], []>} : vector<12x128xbf16>, vector<128x64xbf16>, vector<12x64xf32> -> vector<12x64xf32>
    %567 = arith.addf %561, %566 : vector<12x64xf32>
    %568 = arith.addf %567, %6 : vector<12x64xf32>
    %cst_417 = arith.constant 0.000000e+00 : f32
    %569 = vector.broadcast %cst_417 : f32 to vector<12x64xf32>
    %570 = arith.cmpf oge, %568, %569 : vector<12x64xf32>
    %cst_418 = arith.constant 2.000000e-01 : f32
    %571 = vector.broadcast %cst_418 : f32 to vector<12x64xf32>
    %572 = arith.mulf %571, %568 : vector<12x64xf32>
    %573 = arith.select %570, %568, %572 : vector<12x64xi1>, vector<12x64xf32>
    %574 = vector.extract_strided_slice %573 {offsets = [0, 0], sizes = [8, 64], strides = [1, 1]} : vector<12x64xf32> to vector<8x64xf32>
    %575 = arith.truncf %574 : vector<8x64xf32> to vector<8x64xbf16>
    %c0_419 = arith.constant 0 : index
    %c0_420 = arith.constant 0 : index
    %c0_421 = arith.constant 0 : index
    %576 = vector.load %arg20[%c0_419, %c0_420, %c0_421] : memref<6x8x192xbf16, #tpu.memory_space<vmem>>, vector<1x8x64xbf16>
    %577 = vector.shape_cast %576 : vector<1x8x64xbf16> to vector<8x64xbf16>
    %578 = vector.shape_cast %575 : vector<8x64xbf16> to vector<1x8x64xbf16>
    tpu.vector_store %arg20[%c0_419, %c0_420, %c0_421], %578 {strides = array<i32>} : memref<6x8x192xbf16, #tpu.memory_space<vmem>>, vector<1x8x64xbf16>,
    %579 = vector.extract_strided_slice %573 {offsets = [2, 0], sizes = [8, 64], strides = [1, 1]} : vector<12x64xf32> to vector<8x64xf32>
    %580 = arith.truncf %579 : vector<8x64xf32> to vector<8x64xbf16>
    %c0_422 = arith.constant 0 : index
    %c0_423 = arith.constant 0 : index
    %c64_424 = arith.constant 64 : index
    %581 = vector.load %arg20[%c0_422, %c0_423, %c64_424] : memref<6x8x192xbf16, #tpu.memory_space<vmem>>, vector<1x8x64xbf16>
    %582 = vector.shape_cast %581 : vector<1x8x64xbf16> to vector<8x64xbf16>
    %583 = vector.shape_cast %580 : vector<8x64xbf16> to vector<1x8x64xbf16>
    tpu.vector_store %arg20[%c0_422, %c0_423, %c64_424], %583 {strides = array<i32>} : memref<6x8x192xbf16, #tpu.memory_space<vmem>>, vector<1x8x64xbf16>,
    %584 = vector.extract_strided_slice %573 {offsets = [4, 0], sizes = [8, 64], strides = [1, 1]} : vector<12x64xf32> to vector<8x64xf32>
    %585 = arith.truncf %584 : vector<8x64xf32> to vector<8x64xbf16>
    %c0_425 = arith.constant 0 : index
    %c0_426 = arith.constant 0 : index
    %c128 = arith.constant 128 : index
    %586 = vector.load %arg20[%c0_425, %c0_426, %c128] : memref<6x8x192xbf16, #tpu.memory_space<vmem>>, vector<1x8x64xbf16>
    %587 = vector.shape_cast %586 : vector<1x8x64xbf16> to vector<8x64xbf16>
    %588 = vector.shape_cast %585 : vector<8x64xbf16> to vector<1x8x64xbf16>
    tpu.vector_store %arg20[%c0_425, %c0_426, %c128], %588 {strides = array<i32>} : memref<6x8x192xbf16, #tpu.memory_space<vmem>>, vector<1x8x64xbf16>,
    %c2_427 = arith.constant 2 : index
    %c0_428 = arith.constant 0 : index
    %c0_429 = arith.constant 0 : index
    %589 = vector.load %arg19[%c2_427, %c0_428, %c0_429] : memref<14x12x128xbf16, #tpu.memory_space<vmem>>, vector<1x12x128xbf16>
    %590 = vector.shape_cast %589 : vector<1x12x128xbf16> to vector<12x128xbf16>
    %c0_430 = arith.constant 0 : index
    %c0_431 = arith.constant 0 : index
    %c0_432 = arith.constant 0 : index
    %591 = vector.load %arg7[%c0_430, %c0_431, %c0_432] : memref<4x128x64xbf16, #tpu.memory_space<vmem>>, vector<1x128x64xbf16>
    %592 = vector.shape_cast %591 : vector<1x128x64xbf16> to vector<128x64xbf16>
    %cst_433 = arith.constant dense<0.000000e+00> : vector<12x64xf32>
    %593 = tpu.matmul %590, %592, %cst_433 {dimension_numbers = #tpu.dot_dimension_numbers<[1], [0], [0], [1], [0, 0, 1, 1], [], []>} : vector<12x128xbf16>, vector<128x64xbf16>, vector<12x64xf32> -> vector<12x64xf32>
    %c3_434 = arith.constant 3 : index
    %c0_435 = arith.constant 0 : index
    %c0_436 = arith.constant 0 : index
    %594 = vector.load %arg19[%c3_434, %c0_435, %c0_436] : memref<14x12x128xbf16, #tpu.memory_space<vmem>>, vector<1x12x128xbf16>
    %595 = vector.shape_cast %594 : vector<1x12x128xbf16> to vector<12x128xbf16>
    %c1_437 = arith.constant 1 : index
    %c0_438 = arith.constant 0 : index
    %c0_439 = arith.constant 0 : index
    %596 = vector.load %arg7[%c1_437, %c0_438, %c0_439] : memref<4x128x64xbf16, #tpu.memory_space<vmem>>, vector<1x128x64xbf16>
    %597 = vector.shape_cast %596 : vector<1x128x64xbf16> to vector<128x64xbf16>
    %cst_440 = arith.constant dense<0.000000e+00> : vector<12x64xf32>
    %598 = tpu.matmul %595, %597, %cst_440 {dimension_numbers = #tpu.dot_dimension_numbers<[1], [0], [0], [1], [0, 0, 1, 1], [], []>} : vector<12x128xbf16>, vector<128x64xbf16>, vector<12x64xf32> -> vector<12x64xf32>
    %599 = arith.addf %593, %598 : vector<12x64xf32>
    %c4_441 = arith.constant 4 : index
    %c0_442 = arith.constant 0 : index
    %c0_443 = arith.constant 0 : index
    %600 = vector.load %arg19[%c4_441, %c0_442, %c0_443] : memref<14x12x128xbf16, #tpu.memory_space<vmem>>, vector<1x12x128xbf16>
    %601 = vector.shape_cast %600 : vector<1x12x128xbf16> to vector<12x128xbf16>
    %c2_444 = arith.constant 2 : index
    %c0_445 = arith.constant 0 : index
    %c0_446 = arith.constant 0 : index
    %602 = vector.load %arg7[%c2_444, %c0_445, %c0_446] : memref<4x128x64xbf16, #tpu.memory_space<vmem>>, vector<1x128x64xbf16>
    %603 = vector.shape_cast %602 : vector<1x128x64xbf16> to vector<128x64xbf16>
    %cst_447 = arith.constant dense<0.000000e+00> : vector<12x64xf32>
    %604 = tpu.matmul %601, %603, %cst_447 {dimension_numbers = #tpu.dot_dimension_numbers<[1], [0], [0], [1], [0, 0, 1, 1], [], []>} : vector<12x128xbf16>, vector<128x64xbf16>, vector<12x64xf32> -> vector<12x64xf32>
    %605 = arith.addf %599, %604 : vector<12x64xf32>
    %c5_448 = arith.constant 5 : index
    %c0_449 = arith.constant 0 : index
    %c0_450 = arith.constant 0 : index
    %606 = vector.load %arg19[%c5_448, %c0_449, %c0_450] : memref<14x12x128xbf16, #tpu.memory_space<vmem>>, vector<1x12x128xbf16>
    %607 = vector.shape_cast %606 : vector<1x12x128xbf16> to vector<12x128xbf16>
    %c3_451 = arith.constant 3 : index
    %c0_452 = arith.constant 0 : index
    %c0_453 = arith.constant 0 : index
    %608 = vector.load %arg7[%c3_451, %c0_452, %c0_453] : memref<4x128x64xbf16, #tpu.memory_space<vmem>>, vector<1x128x64xbf16>
    %609 = vector.shape_cast %608 : vector<1x128x64xbf16> to vector<128x64xbf16>
    %cst_454 = arith.constant dense<0.000000e+00> : vector<12x64xf32>
    %610 = tpu.matmul %607, %609, %cst_454 {dimension_numbers = #tpu.dot_dimension_numbers<[1], [0], [0], [1], [0, 0, 1, 1], [], []>} : vector<12x128xbf16>, vector<128x64xbf16>, vector<12x64xf32> -> vector<12x64xf32>
    %611 = arith.addf %605, %610 : vector<12x64xf32>
    %612 = arith.addf %611, %6 : vector<12x64xf32>
    %cst_455 = arith.constant 0.000000e+00 : f32
    %613 = vector.broadcast %cst_455 : f32 to vector<12x64xf32>
    %614 = arith.cmpf oge, %612, %613 : vector<12x64xf32>
    %cst_456 = arith.constant 2.000000e-01 : f32
    %615 = vector.broadcast %cst_456 : f32 to vector<12x64xf32>
    %616 = arith.mulf %615, %612 : vector<12x64xf32>
    %617 = arith.select %614, %612, %616 : vector<12x64xi1>, vector<12x64xf32>
    %618 = vector.extract_strided_slice %617 {offsets = [0, 0], sizes = [8, 64], strides = [1, 1]} : vector<12x64xf32> to vector<8x64xf32>
    %619 = arith.truncf %618 : vector<8x64xf32> to vector<8x64xbf16>
    %c1_457 = arith.constant 1 : index
    %c0_458 = arith.constant 0 : index
    %c0_459 = arith.constant 0 : index
    %620 = vector.load %arg20[%c1_457, %c0_458, %c0_459] : memref<6x8x192xbf16, #tpu.memory_space<vmem>>, vector<1x8x64xbf16>
    %621 = vector.shape_cast %620 : vector<1x8x64xbf16> to vector<8x64xbf16>
    %622 = vector.shape_cast %619 : vector<8x64xbf16> to vector<1x8x64xbf16>
    tpu.vector_store %arg20[%c1_457, %c0_458, %c0_459], %622 {strides = array<i32>} : memref<6x8x192xbf16, #tpu.memory_space<vmem>>, vector<1x8x64xbf16>,
    %623 = vector.extract_strided_slice %617 {offsets = [2, 0], sizes = [8, 64], strides = [1, 1]} : vector<12x64xf32> to vector<8x64xf32>
    %624 = arith.truncf %623 : vector<8x64xf32> to vector<8x64xbf16>
    %c1_460 = arith.constant 1 : index
    %c0_461 = arith.constant 0 : index
    %c64_462 = arith.constant 64 : index
    %625 = vector.load %arg20[%c1_460, %c0_461, %c64_462] : memref<6x8x192xbf16, #tpu.memory_space<vmem>>, vector<1x8x64xbf16>
    %626 = vector.shape_cast %625 : vector<1x8x64xbf16> to vector<8x64xbf16>
    %627 = vector.shape_cast %624 : vector<8x64xbf16> to vector<1x8x64xbf16>
    tpu.vector_store %arg20[%c1_460, %c0_461, %c64_462], %627 {strides = array<i32>} : memref<6x8x192xbf16, #tpu.memory_space<vmem>>, vector<1x8x64xbf16>,
    %628 = vector.extract_strided_slice %617 {offsets = [4, 0], sizes = [8, 64], strides = [1, 1]} : vector<12x64xf32> to vector<8x64xf32>
    %629 = arith.truncf %628 : vector<8x64xf32> to vector<8x64xbf16>
    %c1_463 = arith.constant 1 : index
    %c0_464 = arith.constant 0 : index
    %c128_465 = arith.constant 128 : index
    %630 = vector.load %arg20[%c1_463, %c0_464, %c128_465] : memref<6x8x192xbf16, #tpu.memory_space<vmem>>, vector<1x8x64xbf16>
    %631 = vector.shape_cast %630 : vector<1x8x64xbf16> to vector<8x64xbf16>
    %632 = vector.shape_cast %629 : vector<8x64xbf16> to vector<1x8x64xbf16>
    tpu.vector_store %arg20[%c1_463, %c0_464, %c128_465], %632 {strides = array<i32>} : memref<6x8x192xbf16, #tpu.memory_space<vmem>>, vector<1x8x64xbf16>,
    %c4_466 = arith.constant 4 : index
    %c0_467 = arith.constant 0 : index
    %c0_468 = arith.constant 0 : index
    %633 = vector.load %arg19[%c4_466, %c0_467, %c0_468] : memref<14x12x128xbf16, #tpu.memory_space<vmem>>, vector<1x12x128xbf16>
    %634 = vector.shape_cast %633 : vector<1x12x128xbf16> to vector<12x128xbf16>
    %c0_469 = arith.constant 0 : index
    %c0_470 = arith.constant 0 : index
    %c0_471 = arith.constant 0 : index
    %635 = vector.load %arg7[%c0_469, %c0_470, %c0_471] : memref<4x128x64xbf16, #tpu.memory_space<vmem>>, vector<1x128x64xbf16>
    %636 = vector.shape_cast %635 : vector<1x128x64xbf16> to vector<128x64xbf16>
    %cst_472 = arith.constant dense<0.000000e+00> : vector<12x64xf32>
    %637 = tpu.matmul %634, %636, %cst_472 {dimension_numbers = #tpu.dot_dimension_numbers<[1], [0], [0], [1], [0, 0, 1, 1], [], []>} : vector<12x128xbf16>, vector<128x64xbf16>, vector<12x64xf32> -> vector<12x64xf32>
    %c5_473 = arith.constant 5 : index
    %c0_474 = arith.constant 0 : index
    %c0_475 = arith.constant 0 : index
    %638 = vector.load %arg19[%c5_473, %c0_474, %c0_475] : memref<14x12x128xbf16, #tpu.memory_space<vmem>>, vector<1x12x128xbf16>
    %639 = vector.shape_cast %638 : vector<1x12x128xbf16> to vector<12x128xbf16>
    %c1_476 = arith.constant 1 : index
    %c0_477 = arith.constant 0 : index
    %c0_478 = arith.constant 0 : index
    %640 = vector.load %arg7[%c1_476, %c0_477, %c0_478] : memref<4x128x64xbf16, #tpu.memory_space<vmem>>, vector<1x128x64xbf16>
    %641 = vector.shape_cast %640 : vector<1x128x64xbf16> to vector<128x64xbf16>
    %cst_479 = arith.constant dense<0.000000e+00> : vector<12x64xf32>
    %642 = tpu.matmul %639, %641, %cst_479 {dimension_numbers = #tpu.dot_dimension_numbers<[1], [0], [0], [1], [0, 0, 1, 1], [], []>} : vector<12x128xbf16>, vector<128x64xbf16>, vector<12x64xf32> -> vector<12x64xf32>
    %643 = arith.addf %637, %642 : vector<12x64xf32>
    %c6_480 = arith.constant 6 : index
    %c0_481 = arith.constant 0 : index
    %c0_482 = arith.constant 0 : index
    %644 = vector.load %arg19[%c6_480, %c0_481, %c0_482] : memref<14x12x128xbf16, #tpu.memory_space<vmem>>, vector<1x12x128xbf16>
    %645 = vector.shape_cast %644 : vector<1x12x128xbf16> to vector<12x128xbf16>
    %c2_483 = arith.constant 2 : index
    %c0_484 = arith.constant 0 : index
    %c0_485 = arith.constant 0 : index
    %646 = vector.load %arg7[%c2_483, %c0_484, %c0_485] : memref<4x128x64xbf16, #tpu.memory_space<vmem>>, vector<1x128x64xbf16>
    %647 = vector.shape_cast %646 : vector<1x128x64xbf16> to vector<128x64xbf16>
    %cst_486 = arith.constant dense<0.000000e+00> : vector<12x64xf32>
    %648 = tpu.matmul %645, %647, %cst_486 {dimension_numbers = #tpu.dot_dimension_numbers<[1], [0], [0], [1], [0, 0, 1, 1], [], []>} : vector<12x128xbf16>, vector<128x64xbf16>, vector<12x64xf32> -> vector<12x64xf32>
    %649 = arith.addf %643, %648 : vector<12x64xf32>
    %c7_487 = arith.constant 7 : index
    %c0_488 = arith.constant 0 : index
    %c0_489 = arith.constant 0 : index
    %650 = vector.load %arg19[%c7_487, %c0_488, %c0_489] : memref<14x12x128xbf16, #tpu.memory_space<vmem>>, vector<1x12x128xbf16>
    %651 = vector.shape_cast %650 : vector<1x12x128xbf16> to vector<12x128xbf16>
    %c3_490 = arith.constant 3 : index
    %c0_491 = arith.constant 0 : index
    %c0_492 = arith.constant 0 : index
    %652 = vector.load %arg7[%c3_490, %c0_491, %c0_492] : memref<4x128x64xbf16, #tpu.memory_space<vmem>>, vector<1x128x64xbf16>
    %653 = vector.shape_cast %652 : vector<1x128x64xbf16> to vector<128x64xbf16>
    %cst_493 = arith.constant dense<0.000000e+00> : vector<12x64xf32>
    %654 = tpu.matmul %651, %653, %cst_493 {dimension_numbers = #tpu.dot_dimension_numbers<[1], [0], [0], [1], [0, 0, 1, 1], [], []>} : vector<12x128xbf16>, vector<128x64xbf16>, vector<12x64xf32> -> vector<12x64xf32>
    %655 = arith.addf %649, %654 : vector<12x64xf32>
    %656 = arith.addf %655, %6 : vector<12x64xf32>
    %cst_494 = arith.constant 0.000000e+00 : f32
    %657 = vector.broadcast %cst_494 : f32 to vector<12x64xf32>
    %658 = arith.cmpf oge, %656, %657 : vector<12x64xf32>
    %cst_495 = arith.constant 2.000000e-01 : f32
    %659 = vector.broadcast %cst_495 : f32 to vector<12x64xf32>
    %660 = arith.mulf %659, %656 : vector<12x64xf32>
    %661 = arith.select %658, %656, %660 : vector<12x64xi1>, vector<12x64xf32>
    %662 = vector.extract_strided_slice %661 {offsets = [0, 0], sizes = [8, 64], strides = [1, 1]} : vector<12x64xf32> to vector<8x64xf32>
    %663 = arith.truncf %662 : vector<8x64xf32> to vector<8x64xbf16>
    %c2_496 = arith.constant 2 : index
    %c0_497 = arith.constant 0 : index
    %c0_498 = arith.constant 0 : index
    %664 = vector.load %arg20[%c2_496, %c0_497, %c0_498] : memref<6x8x192xbf16, #tpu.memory_space<vmem>>, vector<1x8x64xbf16>
    %665 = vector.shape_cast %664 : vector<1x8x64xbf16> to vector<8x64xbf16>
    %666 = vector.shape_cast %663 : vector<8x64xbf16> to vector<1x8x64xbf16>
    tpu.vector_store %arg20[%c2_496, %c0_497, %c0_498], %666 {strides = array<i32>} : memref<6x8x192xbf16, #tpu.memory_space<vmem>>, vector<1x8x64xbf16>,
    %667 = vector.extract_strided_slice %661 {offsets = [2, 0], sizes = [8, 64], strides = [1, 1]} : vector<12x64xf32> to vector<8x64xf32>
    %668 = arith.truncf %667 : vector<8x64xf32> to vector<8x64xbf16>
    %c2_499 = arith.constant 2 : index
    %c0_500 = arith.constant 0 : index
    %c64_501 = arith.constant 64 : index
    %669 = vector.load %arg20[%c2_499, %c0_500, %c64_501] : memref<6x8x192xbf16, #tpu.memory_space<vmem>>, vector<1x8x64xbf16>
    %670 = vector.shape_cast %669 : vector<1x8x64xbf16> to vector<8x64xbf16>
    %671 = vector.shape_cast %668 : vector<8x64xbf16> to vector<1x8x64xbf16>
    tpu.vector_store %arg20[%c2_499, %c0_500, %c64_501], %671 {strides = array<i32>} : memref<6x8x192xbf16, #tpu.memory_space<vmem>>, vector<1x8x64xbf16>,
    %672 = vector.extract_strided_slice %661 {offsets = [4, 0], sizes = [8, 64], strides = [1, 1]} : vector<12x64xf32> to vector<8x64xf32>
    %673 = arith.truncf %672 : vector<8x64xf32> to vector<8x64xbf16>
    %c2_502 = arith.constant 2 : index
    %c0_503 = arith.constant 0 : index
    %c128_504 = arith.constant 128 : index
    %674 = vector.load %arg20[%c2_502, %c0_503, %c128_504] : memref<6x8x192xbf16, #tpu.memory_space<vmem>>, vector<1x8x64xbf16>
    %675 = vector.shape_cast %674 : vector<1x8x64xbf16> to vector<8x64xbf16>
    %676 = vector.shape_cast %673 : vector<8x64xbf16> to vector<1x8x64xbf16>
    tpu.vector_store %arg20[%c2_502, %c0_503, %c128_504], %676 {strides = array<i32>} : memref<6x8x192xbf16, #tpu.memory_space<vmem>>, vector<1x8x64xbf16>,
    %c6_505 = arith.constant 6 : index
    %c0_506 = arith.constant 0 : index
    %c0_507 = arith.constant 0 : index
    %677 = vector.load %arg19[%c6_505, %c0_506, %c0_507] : memref<14x12x128xbf16, #tpu.memory_space<vmem>>, vector<1x12x128xbf16>
    %678 = vector.shape_cast %677 : vector<1x12x128xbf16> to vector<12x128xbf16>
    %c0_508 = arith.constant 0 : index
    %c0_509 = arith.constant 0 : index
    %c0_510 = arith.constant 0 : index
    %679 = vector.load %arg7[%c0_508, %c0_509, %c0_510] : memref<4x128x64xbf16, #tpu.memory_space<vmem>>, vector<1x128x64xbf16>
    %680 = vector.shape_cast %679 : vector<1x128x64xbf16> to vector<128x64xbf16>
    %cst_511 = arith.constant dense<0.000000e+00> : vector<12x64xf32>
    %681 = tpu.matmul %678, %680, %cst_511 {dimension_numbers = #tpu.dot_dimension_numbers<[1], [0], [0], [1], [0, 0, 1, 1], [], []>} : vector<12x128xbf16>, vector<128x64xbf16>, vector<12x64xf32> -> vector<12x64xf32>
    %c7_512 = arith.constant 7 : index
    %c0_513 = arith.constant 0 : index
    %c0_514 = arith.constant 0 : index
    %682 = vector.load %arg19[%c7_512, %c0_513, %c0_514] : memref<14x12x128xbf16, #tpu.memory_space<vmem>>, vector<1x12x128xbf16>
    %683 = vector.shape_cast %682 : vector<1x12x128xbf16> to vector<12x128xbf16>
    %c1_515 = arith.constant 1 : index
    %c0_516 = arith.constant 0 : index
    %c0_517 = arith.constant 0 : index
    %684 = vector.load %arg7[%c1_515, %c0_516, %c0_517] : memref<4x128x64xbf16, #tpu.memory_space<vmem>>, vector<1x128x64xbf16>
    %685 = vector.shape_cast %684 : vector<1x128x64xbf16> to vector<128x64xbf16>
    %cst_518 = arith.constant dense<0.000000e+00> : vector<12x64xf32>
    %686 = tpu.matmul %683, %685, %cst_518 {dimension_numbers = #tpu.dot_dimension_numbers<[1], [0], [0], [1], [0, 0, 1, 1], [], []>} : vector<12x128xbf16>, vector<128x64xbf16>, vector<12x64xf32> -> vector<12x64xf32>
    %687 = arith.addf %681, %686 : vector<12x64xf32>
    %c8_519 = arith.constant 8 : index
    %c0_520 = arith.constant 0 : index
    %c0_521 = arith.constant 0 : index
    %688 = vector.load %arg19[%c8_519, %c0_520, %c0_521] : memref<14x12x128xbf16, #tpu.memory_space<vmem>>, vector<1x12x128xbf16>
    %689 = vector.shape_cast %688 : vector<1x12x128xbf16> to vector<12x128xbf16>
    %c2_522 = arith.constant 2 : index
    %c0_523 = arith.constant 0 : index
    %c0_524 = arith.constant 0 : index
    %690 = vector.load %arg7[%c2_522, %c0_523, %c0_524] : memref<4x128x64xbf16, #tpu.memory_space<vmem>>, vector<1x128x64xbf16>
    %691 = vector.shape_cast %690 : vector<1x128x64xbf16> to vector<128x64xbf16>
    %cst_525 = arith.constant dense<0.000000e+00> : vector<12x64xf32>
    %692 = tpu.matmul %689, %691, %cst_525 {dimension_numbers = #tpu.dot_dimension_numbers<[1], [0], [0], [1], [0, 0, 1, 1], [], []>} : vector<12x128xbf16>, vector<128x64xbf16>, vector<12x64xf32> -> vector<12x64xf32>
    %693 = arith.addf %687, %692 : vector<12x64xf32>
    %c9_526 = arith.constant 9 : index
    %c0_527 = arith.constant 0 : index
    %c0_528 = arith.constant 0 : index
    %694 = vector.load %arg19[%c9_526, %c0_527, %c0_528] : memref<14x12x128xbf16, #tpu.memory_space<vmem>>, vector<1x12x128xbf16>
    %695 = vector.shape_cast %694 : vector<1x12x128xbf16> to vector<12x128xbf16>
    %c3_529 = arith.constant 3 : index
    %c0_530 = arith.constant 0 : index
    %c0_531 = arith.constant 0 : index
    %696 = vector.load %arg7[%c3_529, %c0_530, %c0_531] : memref<4x128x64xbf16, #tpu.memory_space<vmem>>, vector<1x128x64xbf16>
    %697 = vector.shape_cast %696 : vector<1x128x64xbf16> to vector<128x64xbf16>
    %cst_532 = arith.constant dense<0.000000e+00> : vector<12x64xf32>
    %698 = tpu.matmul %695, %697, %cst_532 {dimension_numbers = #tpu.dot_dimension_numbers<[1], [0], [0], [1], [0, 0, 1, 1], [], []>} : vector<12x128xbf16>, vector<128x64xbf16>, vector<12x64xf32> -> vector<12x64xf32>
    %699 = arith.addf %693, %698 : vector<12x64xf32>
    %700 = arith.addf %699, %6 : vector<12x64xf32>
    %cst_533 = arith.constant 0.000000e+00 : f32
    %701 = vector.broadcast %cst_533 : f32 to vector<12x64xf32>
    %702 = arith.cmpf oge, %700, %701 : vector<12x64xf32>
    %cst_534 = arith.constant 2.000000e-01 : f32
    %703 = vector.broadcast %cst_534 : f32 to vector<12x64xf32>
    %704 = arith.mulf %703, %700 : vector<12x64xf32>
    %705 = arith.select %702, %700, %704 : vector<12x64xi1>, vector<12x64xf32>
    %706 = vector.extract_strided_slice %705 {offsets = [0, 0], sizes = [8, 64], strides = [1, 1]} : vector<12x64xf32> to vector<8x64xf32>
    %707 = arith.truncf %706 : vector<8x64xf32> to vector<8x64xbf16>
    %c3_535 = arith.constant 3 : index
    %c0_536 = arith.constant 0 : index
    %c0_537 = arith.constant 0 : index
    %708 = vector.load %arg20[%c3_535, %c0_536, %c0_537] : memref<6x8x192xbf16, #tpu.memory_space<vmem>>, vector<1x8x64xbf16>
    %709 = vector.shape_cast %708 : vector<1x8x64xbf16> to vector<8x64xbf16>
    %710 = vector.shape_cast %707 : vector<8x64xbf16> to vector<1x8x64xbf16>
    tpu.vector_store %arg20[%c3_535, %c0_536, %c0_537], %710 {strides = array<i32>} : memref<6x8x192xbf16, #tpu.memory_space<vmem>>, vector<1x8x64xbf16>,
    %711 = vector.extract_strided_slice %705 {offsets = [2, 0], sizes = [8, 64], strides = [1, 1]} : vector<12x64xf32> to vector<8x64xf32>
    %712 = arith.truncf %711 : vector<8x64xf32> to vector<8x64xbf16>
    %c3_538 = arith.constant 3 : index
    %c0_539 = arith.constant 0 : index
    %c64_540 = arith.constant 64 : index
    %713 = vector.load %arg20[%c3_538, %c0_539, %c64_540] : memref<6x8x192xbf16, #tpu.memory_space<vmem>>, vector<1x8x64xbf16>
    %714 = vector.shape_cast %713 : vector<1x8x64xbf16> to vector<8x64xbf16>
    %715 = vector.shape_cast %712 : vector<8x64xbf16> to vector<1x8x64xbf16>
    tpu.vector_store %arg20[%c3_538, %c0_539, %c64_540], %715 {strides = array<i32>} : memref<6x8x192xbf16, #tpu.memory_space<vmem>>, vector<1x8x64xbf16>,
    %716 = vector.extract_strided_slice %705 {offsets = [4, 0], sizes = [8, 64], strides = [1, 1]} : vector<12x64xf32> to vector<8x64xf32>
    %717 = arith.truncf %716 : vector<8x64xf32> to vector<8x64xbf16>
    %c3_541 = arith.constant 3 : index
    %c0_542 = arith.constant 0 : index
    %c128_543 = arith.constant 128 : index
    %718 = vector.load %arg20[%c3_541, %c0_542, %c128_543] : memref<6x8x192xbf16, #tpu.memory_space<vmem>>, vector<1x8x64xbf16>
    %719 = vector.shape_cast %718 : vector<1x8x64xbf16> to vector<8x64xbf16>
    %720 = vector.shape_cast %717 : vector<8x64xbf16> to vector<1x8x64xbf16>
    tpu.vector_store %arg20[%c3_541, %c0_542, %c128_543], %720 {strides = array<i32>} : memref<6x8x192xbf16, #tpu.memory_space<vmem>>, vector<1x8x64xbf16>,
    %c8_544 = arith.constant 8 : index
    %c0_545 = arith.constant 0 : index
    %c0_546 = arith.constant 0 : index
    %721 = vector.load %arg19[%c8_544, %c0_545, %c0_546] : memref<14x12x128xbf16, #tpu.memory_space<vmem>>, vector<1x12x128xbf16>
    %722 = vector.shape_cast %721 : vector<1x12x128xbf16> to vector<12x128xbf16>
    %c0_547 = arith.constant 0 : index
    %c0_548 = arith.constant 0 : index
    %c0_549 = arith.constant 0 : index
    %723 = vector.load %arg7[%c0_547, %c0_548, %c0_549] : memref<4x128x64xbf16, #tpu.memory_space<vmem>>, vector<1x128x64xbf16>
    %724 = vector.shape_cast %723 : vector<1x128x64xbf16> to vector<128x64xbf16>
    %cst_550 = arith.constant dense<0.000000e+00> : vector<12x64xf32>
    %725 = tpu.matmul %722, %724, %cst_550 {dimension_numbers = #tpu.dot_dimension_numbers<[1], [0], [0], [1], [0, 0, 1, 1], [], []>} : vector<12x128xbf16>, vector<128x64xbf16>, vector<12x64xf32> -> vector<12x64xf32>
    %c9_551 = arith.constant 9 : index
    %c0_552 = arith.constant 0 : index
    %c0_553 = arith.constant 0 : index
    %726 = vector.load %arg19[%c9_551, %c0_552, %c0_553] : memref<14x12x128xbf16, #tpu.memory_space<vmem>>, vector<1x12x128xbf16>
    %727 = vector.shape_cast %726 : vector<1x12x128xbf16> to vector<12x128xbf16>
    %c1_554 = arith.constant 1 : index
    %c0_555 = arith.constant 0 : index
    %c0_556 = arith.constant 0 : index
    %728 = vector.load %arg7[%c1_554, %c0_555, %c0_556] : memref<4x128x64xbf16, #tpu.memory_space<vmem>>, vector<1x128x64xbf16>
    %729 = vector.shape_cast %728 : vector<1x128x64xbf16> to vector<128x64xbf16>
    %cst_557 = arith.constant dense<0.000000e+00> : vector<12x64xf32>
    %730 = tpu.matmul %727, %729, %cst_557 {dimension_numbers = #tpu.dot_dimension_numbers<[1], [0], [0], [1], [0, 0, 1, 1], [], []>} : vector<12x128xbf16>, vector<128x64xbf16>, vector<12x64xf32> -> vector<12x64xf32>
    %731 = arith.addf %725, %730 : vector<12x64xf32>
    %c10_558 = arith.constant 10 : index
    %c0_559 = arith.constant 0 : index
    %c0_560 = arith.constant 0 : index
    %732 = vector.load %arg19[%c10_558, %c0_559, %c0_560] : memref<14x12x128xbf16, #tpu.memory_space<vmem>>, vector<1x12x128xbf16>
    %733 = vector.shape_cast %732 : vector<1x12x128xbf16> to vector<12x128xbf16>
    %c2_561 = arith.constant 2 : index
    %c0_562 = arith.constant 0 : index
    %c0_563 = arith.constant 0 : index
    %734 = vector.load %arg7[%c2_561, %c0_562, %c0_563] : memref<4x128x64xbf16, #tpu.memory_space<vmem>>, vector<1x128x64xbf16>
    %735 = vector.shape_cast %734 : vector<1x128x64xbf16> to vector<128x64xbf16>
    %cst_564 = arith.constant dense<0.000000e+00> : vector<12x64xf32>
    %736 = tpu.matmul %733, %735, %cst_564 {dimension_numbers = #tpu.dot_dimension_numbers<[1], [0], [0], [1], [0, 0, 1, 1], [], []>} : vector<12x128xbf16>, vector<128x64xbf16>, vector<12x64xf32> -> vector<12x64xf32>
    %737 = arith.addf %731, %736 : vector<12x64xf32>
    %c11_565 = arith.constant 11 : index
    %c0_566 = arith.constant 0 : index
    %c0_567 = arith.constant 0 : index
    %738 = vector.load %arg19[%c11_565, %c0_566, %c0_567] : memref<14x12x128xbf16, #tpu.memory_space<vmem>>, vector<1x12x128xbf16>
    %739 = vector.shape_cast %738 : vector<1x12x128xbf16> to vector<12x128xbf16>
    %c3_568 = arith.constant 3 : index
    %c0_569 = arith.constant 0 : index
    %c0_570 = arith.constant 0 : index
    %740 = vector.load %arg7[%c3_568, %c0_569, %c0_570] : memref<4x128x64xbf16, #tpu.memory_space<vmem>>, vector<1x128x64xbf16>
    %741 = vector.shape_cast %740 : vector<1x128x64xbf16> to vector<128x64xbf16>
    %cst_571 = arith.constant dense<0.000000e+00> : vector<12x64xf32>
    %742 = tpu.matmul %739, %741, %cst_571 {dimension_numbers = #tpu.dot_dimension_numbers<[1], [0], [0], [1], [0, 0, 1, 1], [], []>} : vector<12x128xbf16>, vector<128x64xbf16>, vector<12x64xf32> -> vector<12x64xf32>
    %743 = arith.addf %737, %742 : vector<12x64xf32>
    %744 = arith.addf %743, %6 : vector<12x64xf32>
    %cst_572 = arith.constant 0.000000e+00 : f32
    %745 = vector.broadcast %cst_572 : f32 to vector<12x64xf32>
    %746 = arith.cmpf oge, %744, %745 : vector<12x64xf32>
    %cst_573 = arith.constant 2.000000e-01 : f32
    %747 = vector.broadcast %cst_573 : f32 to vector<12x64xf32>
    %748 = arith.mulf %747, %744 : vector<12x64xf32>
    %749 = arith.select %746, %744, %748 : vector<12x64xi1>, vector<12x64xf32>
    %750 = vector.extract_strided_slice %749 {offsets = [0, 0], sizes = [8, 64], strides = [1, 1]} : vector<12x64xf32> to vector<8x64xf32>
    %751 = arith.truncf %750 : vector<8x64xf32> to vector<8x64xbf16>
    %c4_574 = arith.constant 4 : index
    %c0_575 = arith.constant 0 : index
    %c0_576 = arith.constant 0 : index
    %752 = vector.load %arg20[%c4_574, %c0_575, %c0_576] : memref<6x8x192xbf16, #tpu.memory_space<vmem>>, vector<1x8x64xbf16>
    %753 = vector.shape_cast %752 : vector<1x8x64xbf16> to vector<8x64xbf16>
    %754 = vector.shape_cast %751 : vector<8x64xbf16> to vector<1x8x64xbf16>
    tpu.vector_store %arg20[%c4_574, %c0_575, %c0_576], %754 {strides = array<i32>} : memref<6x8x192xbf16, #tpu.memory_space<vmem>>, vector<1x8x64xbf16>,
    %755 = vector.extract_strided_slice %749 {offsets = [2, 0], sizes = [8, 64], strides = [1, 1]} : vector<12x64xf32> to vector<8x64xf32>
    %756 = arith.truncf %755 : vector<8x64xf32> to vector<8x64xbf16>
    %c4_577 = arith.constant 4 : index
    %c0_578 = arith.constant 0 : index
    %c64_579 = arith.constant 64 : index
    %757 = vector.load %arg20[%c4_577, %c0_578, %c64_579] : memref<6x8x192xbf16, #tpu.memory_space<vmem>>, vector<1x8x64xbf16>
    %758 = vector.shape_cast %757 : vector<1x8x64xbf16> to vector<8x64xbf16>
    %759 = vector.shape_cast %756 : vector<8x64xbf16> to vector<1x8x64xbf16>
    tpu.vector_store %arg20[%c4_577, %c0_578, %c64_579], %759 {strides = array<i32>} : memref<6x8x192xbf16, #tpu.memory_space<vmem>>, vector<1x8x64xbf16>,
    %760 = vector.extract_strided_slice %749 {offsets = [4, 0], sizes = [8, 64], strides = [1, 1]} : vector<12x64xf32> to vector<8x64xf32>
    %761 = arith.truncf %760 : vector<8x64xf32> to vector<8x64xbf16>
    %c4_580 = arith.constant 4 : index
    %c0_581 = arith.constant 0 : index
    %c128_582 = arith.constant 128 : index
    %762 = vector.load %arg20[%c4_580, %c0_581, %c128_582] : memref<6x8x192xbf16, #tpu.memory_space<vmem>>, vector<1x8x64xbf16>
    %763 = vector.shape_cast %762 : vector<1x8x64xbf16> to vector<8x64xbf16>
    %764 = vector.shape_cast %761 : vector<8x64xbf16> to vector<1x8x64xbf16>
    tpu.vector_store %arg20[%c4_580, %c0_581, %c128_582], %764 {strides = array<i32>} : memref<6x8x192xbf16, #tpu.memory_space<vmem>>, vector<1x8x64xbf16>,
    %c10_583 = arith.constant 10 : index
    %c0_584 = arith.constant 0 : index
    %c0_585 = arith.constant 0 : index
    %765 = vector.load %arg19[%c10_583, %c0_584, %c0_585] : memref<14x12x128xbf16, #tpu.memory_space<vmem>>, vector<1x12x128xbf16>
    %766 = vector.shape_cast %765 : vector<1x12x128xbf16> to vector<12x128xbf16>
    %c0_586 = arith.constant 0 : index
    %c0_587 = arith.constant 0 : index
    %c0_588 = arith.constant 0 : index
    %767 = vector.load %arg7[%c0_586, %c0_587, %c0_588] : memref<4x128x64xbf16, #tpu.memory_space<vmem>>, vector<1x128x64xbf16>
    %768 = vector.shape_cast %767 : vector<1x128x64xbf16> to vector<128x64xbf16>
    %cst_589 = arith.constant dense<0.000000e+00> : vector<12x64xf32>
    %769 = tpu.matmul %766, %768, %cst_589 {dimension_numbers = #tpu.dot_dimension_numbers<[1], [0], [0], [1], [0, 0, 1, 1], [], []>} : vector<12x128xbf16>, vector<128x64xbf16>, vector<12x64xf32> -> vector<12x64xf32>
    %c11_590 = arith.constant 11 : index
    %c0_591 = arith.constant 0 : index
    %c0_592 = arith.constant 0 : index
    %770 = vector.load %arg19[%c11_590, %c0_591, %c0_592] : memref<14x12x128xbf16, #tpu.memory_space<vmem>>, vector<1x12x128xbf16>
    %771 = vector.shape_cast %770 : vector<1x12x128xbf16> to vector<12x128xbf16>
    %c1_593 = arith.constant 1 : index
    %c0_594 = arith.constant 0 : index
    %c0_595 = arith.constant 0 : index
    %772 = vector.load %arg7[%c1_593, %c0_594, %c0_595] : memref<4x128x64xbf16, #tpu.memory_space<vmem>>, vector<1x128x64xbf16>
    %773 = vector.shape_cast %772 : vector<1x128x64xbf16> to vector<128x64xbf16>
    %cst_596 = arith.constant dense<0.000000e+00> : vector<12x64xf32>
    %774 = tpu.matmul %771, %773, %cst_596 {dimension_numbers = #tpu.dot_dimension_numbers<[1], [0], [0], [1], [0, 0, 1, 1], [], []>} : vector<12x128xbf16>, vector<128x64xbf16>, vector<12x64xf32> -> vector<12x64xf32>
    %775 = arith.addf %769, %774 : vector<12x64xf32>
    %c12_597 = arith.constant 12 : index
    %c0_598 = arith.constant 0 : index
    %c0_599 = arith.constant 0 : index
    %776 = vector.load %arg19[%c12_597, %c0_598, %c0_599] : memref<14x12x128xbf16, #tpu.memory_space<vmem>>, vector<1x12x128xbf16>
    %777 = vector.shape_cast %776 : vector<1x12x128xbf16> to vector<12x128xbf16>
    %c2_600 = arith.constant 2 : index
    %c0_601 = arith.constant 0 : index
    %c0_602 = arith.constant 0 : index
    %778 = vector.load %arg7[%c2_600, %c0_601, %c0_602] : memref<4x128x64xbf16, #tpu.memory_space<vmem>>, vector<1x128x64xbf16>
    %779 = vector.shape_cast %778 : vector<1x128x64xbf16> to vector<128x64xbf16>
    %cst_603 = arith.constant dense<0.000000e+00> : vector<12x64xf32>
    %780 = tpu.matmul %777, %779, %cst_603 {dimension_numbers = #tpu.dot_dimension_numbers<[1], [0], [0], [1], [0, 0, 1, 1], [], []>} : vector<12x128xbf16>, vector<128x64xbf16>, vector<12x64xf32> -> vector<12x64xf32>
    %781 = arith.addf %775, %780 : vector<12x64xf32>
    %c13_604 = arith.constant 13 : index
    %c0_605 = arith.constant 0 : index
    %c0_606 = arith.constant 0 : index
    %782 = vector.load %arg19[%c13_604, %c0_605, %c0_606] : memref<14x12x128xbf16, #tpu.memory_space<vmem>>, vector<1x12x128xbf16>
    %783 = vector.shape_cast %782 : vector<1x12x128xbf16> to vector<12x128xbf16>
    %c3_607 = arith.constant 3 : index
    %c0_608 = arith.constant 0 : index
    %c0_609 = arith.constant 0 : index
    %784 = vector.load %arg7[%c3_607, %c0_608, %c0_609] : memref<4x128x64xbf16, #tpu.memory_space<vmem>>, vector<1x128x64xbf16>
    %785 = vector.shape_cast %784 : vector<1x128x64xbf16> to vector<128x64xbf16>
    %cst_610 = arith.constant dense<0.000000e+00> : vector<12x64xf32>
    %786 = tpu.matmul %783, %785, %cst_610 {dimension_numbers = #tpu.dot_dimension_numbers<[1], [0], [0], [1], [0, 0, 1, 1], [], []>} : vector<12x128xbf16>, vector<128x64xbf16>, vector<12x64xf32> -> vector<12x64xf32>
    %787 = arith.addf %781, %786 : vector<12x64xf32>
    %788 = arith.addf %787, %6 : vector<12x64xf32>
    %cst_611 = arith.constant 0.000000e+00 : f32
    %789 = vector.broadcast %cst_611 : f32 to vector<12x64xf32>
    %790 = arith.cmpf oge, %788, %789 : vector<12x64xf32>
    %cst_612 = arith.constant 2.000000e-01 : f32
    %791 = vector.broadcast %cst_612 : f32 to vector<12x64xf32>
    %792 = arith.mulf %791, %788 : vector<12x64xf32>
    %793 = arith.select %790, %788, %792 : vector<12x64xi1>, vector<12x64xf32>
    %794 = vector.extract_strided_slice %793 {offsets = [0, 0], sizes = [8, 64], strides = [1, 1]} : vector<12x64xf32> to vector<8x64xf32>
    %795 = arith.truncf %794 : vector<8x64xf32> to vector<8x64xbf16>
    %c5_613 = arith.constant 5 : index
    %c0_614 = arith.constant 0 : index
    %c0_615 = arith.constant 0 : index
    %796 = vector.load %arg20[%c5_613, %c0_614, %c0_615] : memref<6x8x192xbf16, #tpu.memory_space<vmem>>, vector<1x8x64xbf16>
    %797 = vector.shape_cast %796 : vector<1x8x64xbf16> to vector<8x64xbf16>
    %798 = vector.shape_cast %795 : vector<8x64xbf16> to vector<1x8x64xbf16>
    tpu.vector_store %arg20[%c5_613, %c0_614, %c0_615], %798 {strides = array<i32>} : memref<6x8x192xbf16, #tpu.memory_space<vmem>>, vector<1x8x64xbf16>,
    %799 = vector.extract_strided_slice %793 {offsets = [2, 0], sizes = [8, 64], strides = [1, 1]} : vector<12x64xf32> to vector<8x64xf32>
    %800 = arith.truncf %799 : vector<8x64xf32> to vector<8x64xbf16>
    %c5_616 = arith.constant 5 : index
    %c0_617 = arith.constant 0 : index
    %c64_618 = arith.constant 64 : index
    %801 = vector.load %arg20[%c5_616, %c0_617, %c64_618] : memref<6x8x192xbf16, #tpu.memory_space<vmem>>, vector<1x8x64xbf16>
    %802 = vector.shape_cast %801 : vector<1x8x64xbf16> to vector<8x64xbf16>
    %803 = vector.shape_cast %800 : vector<8x64xbf16> to vector<1x8x64xbf16>
    tpu.vector_store %arg20[%c5_616, %c0_617, %c64_618], %803 {strides = array<i32>} : memref<6x8x192xbf16, #tpu.memory_space<vmem>>, vector<1x8x64xbf16>,
    %804 = vector.extract_strided_slice %793 {offsets = [4, 0], sizes = [8, 64], strides = [1, 1]} : vector<12x64xf32> to vector<8x64xf32>
    %805 = arith.truncf %804 : vector<8x64xf32> to vector<8x64xbf16>
    %c5_619 = arith.constant 5 : index
    %c0_620 = arith.constant 0 : index
    %c128_621 = arith.constant 128 : index
    %806 = vector.load %arg20[%c5_619, %c0_620, %c128_621] : memref<6x8x192xbf16, #tpu.memory_space<vmem>>, vector<1x8x64xbf16>
    %807 = vector.shape_cast %806 : vector<1x8x64xbf16> to vector<8x64xbf16>
    %808 = vector.shape_cast %805 : vector<8x64xbf16> to vector<1x8x64xbf16>
    tpu.vector_store %arg20[%c5_619, %c0_620, %c128_621], %808 {strides = array<i32>} : memref<6x8x192xbf16, #tpu.memory_space<vmem>>, vector<1x8x64xbf16>,
    %c0_622 = arith.constant 0 : index
    %c0_623 = arith.constant 0 : index
    %c0_624 = arith.constant 0 : index
    %809 = vector.load %arg20[%c0_622, %c0_623, %c0_624] : memref<6x8x192xbf16, #tpu.memory_space<vmem>>, vector<1x8x192xbf16>
    %810 = vector.shape_cast %809 : vector<1x8x192xbf16> to vector<8x192xbf16>
    %c0_625 = arith.constant 0 : index
    %c0_626 = arith.constant 0 : index
    %c0_627 = arith.constant 0 : index
    %811 = vector.load %arg10[%c0_625, %c0_626, %c0_627] : memref<3x192x32xbf16, #tpu.memory_space<vmem>>, vector<1x192x32xbf16>
    %812 = vector.shape_cast %811 : vector<1x192x32xbf16> to vector<192x32xbf16>
    %cst_628 = arith.constant dense<0.000000e+00> : vector<8x32xf32>
    %813 = tpu.matmul %810, %812, %cst_628 {dimension_numbers = #tpu.dot_dimension_numbers<[1], [0], [0], [1], [0, 0, 1, 1], [], []>} : vector<8x192xbf16>, vector<192x32xbf16>, vector<8x32xf32> -> vector<8x32xf32>
    %c1_629 = arith.constant 1 : index
    %c0_630 = arith.constant 0 : index
    %c0_631 = arith.constant 0 : index
    %814 = vector.load %arg20[%c1_629, %c0_630, %c0_631] : memref<6x8x192xbf16, #tpu.memory_space<vmem>>, vector<1x8x192xbf16>
    %815 = vector.shape_cast %814 : vector<1x8x192xbf16> to vector<8x192xbf16>
    %c1_632 = arith.constant 1 : index
    %c0_633 = arith.constant 0 : index
    %c0_634 = arith.constant 0 : index
    %816 = vector.load %arg10[%c1_632, %c0_633, %c0_634] : memref<3x192x32xbf16, #tpu.memory_space<vmem>>, vector<1x192x32xbf16>
    %817 = vector.shape_cast %816 : vector<1x192x32xbf16> to vector<192x32xbf16>
    %cst_635 = arith.constant dense<0.000000e+00> : vector<8x32xf32>
    %818 = tpu.matmul %815, %817, %cst_635 {dimension_numbers = #tpu.dot_dimension_numbers<[1], [0], [0], [1], [0, 0, 1, 1], [], []>} : vector<8x192xbf16>, vector<192x32xbf16>, vector<8x32xf32> -> vector<8x32xf32>
    %819 = arith.addf %813, %818 : vector<8x32xf32>
    %c2_636 = arith.constant 2 : index
    %c0_637 = arith.constant 0 : index
    %c0_638 = arith.constant 0 : index
    %820 = vector.load %arg20[%c2_636, %c0_637, %c0_638] : memref<6x8x192xbf16, #tpu.memory_space<vmem>>, vector<1x8x192xbf16>
    %821 = vector.shape_cast %820 : vector<1x8x192xbf16> to vector<8x192xbf16>
    %c2_639 = arith.constant 2 : index
    %c0_640 = arith.constant 0 : index
    %c0_641 = arith.constant 0 : index
    %822 = vector.load %arg10[%c2_639, %c0_640, %c0_641] : memref<3x192x32xbf16, #tpu.memory_space<vmem>>, vector<1x192x32xbf16>
    %823 = vector.shape_cast %822 : vector<1x192x32xbf16> to vector<192x32xbf16>
    %cst_642 = arith.constant dense<0.000000e+00> : vector<8x32xf32>
    %824 = tpu.matmul %821, %823, %cst_642 {dimension_numbers = #tpu.dot_dimension_numbers<[1], [0], [0], [1], [0, 0, 1, 1], [], []>} : vector<8x192xbf16>, vector<192x32xbf16>, vector<8x32xf32> -> vector<8x32xf32>
    %825 = arith.addf %819, %824 : vector<8x32xf32>
    %826 = arith.addf %825, %12 : vector<8x32xf32>
    %cst_643 = arith.constant 0.000000e+00 : f32
    %827 = vector.broadcast %cst_643 : f32 to vector<8x32xf32>
    %828 = arith.cmpf oge, %826, %827 : vector<8x32xf32>
    %cst_644 = arith.constant 2.000000e-01 : f32
    %829 = vector.broadcast %cst_644 : f32 to vector<8x32xf32>
    %830 = arith.mulf %829, %826 : vector<8x32xf32>
    %831 = arith.select %828, %826, %830 : vector<8x32xi1>, vector<8x32xf32>
    %832 = vector.extract_strided_slice %831 {offsets = [0, 0], sizes = [2, 32], strides = [1, 1]} : vector<8x32xf32> to vector<2x32xf32>
    %833 = arith.truncf %832 : vector<2x32xf32> to vector<2x32xbf16>
    %c0_645 = arith.constant 0 : index
    %c0_646 = arith.constant 0 : index
    %834 = vector.load %arg21[%c0_645, %c0_646] : memref<2x512xbf16, #tpu.memory_space<vmem>>, vector<2x32xbf16>
    tpu.vector_store %arg21[%c0_645, %c0_646], %833 {strides = array<i32>} : memref<2x512xbf16, #tpu.memory_space<vmem>>, vector<2x32xbf16>,
    %835 = vector.extract_strided_slice %831 {offsets = [2, 0], sizes = [2, 32], strides = [1, 1]} : vector<8x32xf32> to vector<2x32xf32>
    %836 = arith.truncf %835 : vector<2x32xf32> to vector<2x32xbf16>
    %c0_647 = arith.constant 0 : index
    %c32_648 = arith.constant 32 : index
    %837 = vector.load %arg21[%c0_647, %c32_648] : memref<2x512xbf16, #tpu.memory_space<vmem>>, vector<2x32xbf16>
    tpu.vector_store %arg21[%c0_647, %c32_648], %836 {strides = array<i32>} : memref<2x512xbf16, #tpu.memory_space<vmem>>, vector<2x32xbf16>,
    %838 = vector.extract_strided_slice %831 {offsets = [4, 0], sizes = [2, 32], strides = [1, 1]} : vector<8x32xf32> to vector<2x32xf32>
    %839 = arith.truncf %838 : vector<2x32xf32> to vector<2x32xbf16>
    %c0_649 = arith.constant 0 : index
    %c64_650 = arith.constant 64 : index
    %840 = vector.load %arg21[%c0_649, %c64_650] : memref<2x512xbf16, #tpu.memory_space<vmem>>, vector<2x32xbf16>
    tpu.vector_store %arg21[%c0_649, %c64_650], %839 {strides = array<i32>} : memref<2x512xbf16, #tpu.memory_space<vmem>>, vector<2x32xbf16>,
    %841 = vector.extract_strided_slice %831 {offsets = [6, 0], sizes = [2, 32], strides = [1, 1]} : vector<8x32xf32> to vector<2x32xf32>
    %842 = arith.truncf %841 : vector<2x32xf32> to vector<2x32xbf16>
    %c0_651 = arith.constant 0 : index
    %c96_652 = arith.constant 96 : index
    %843 = vector.load %arg21[%c0_651, %c96_652] : memref<2x512xbf16, #tpu.memory_space<vmem>>, vector<2x32xbf16>
    tpu.vector_store %arg21[%c0_651, %c96_652], %842 {strides = array<i32>} : memref<2x512xbf16, #tpu.memory_space<vmem>>, vector<2x32xbf16>,
    %c1_653 = arith.constant 1 : index
    %c0_654 = arith.constant 0 : index
    %c0_655 = arith.constant 0 : index
    %844 = vector.load %arg20[%c1_653, %c0_654, %c0_655] : memref<6x8x192xbf16, #tpu.memory_space<vmem>>, vector<1x8x192xbf16>
    %845 = vector.shape_cast %844 : vector<1x8x192xbf16> to vector<8x192xbf16>
    %c0_656 = arith.constant 0 : index
    %c0_657 = arith.constant 0 : index
    %c0_658 = arith.constant 0 : index
    %846 = vector.load %arg10[%c0_656, %c0_657, %c0_658] : memref<3x192x32xbf16, #tpu.memory_space<vmem>>, vector<1x192x32xbf16>
    %847 = vector.shape_cast %846 : vector<1x192x32xbf16> to vector<192x32xbf16>
    %cst_659 = arith.constant dense<0.000000e+00> : vector<8x32xf32>
    %848 = tpu.matmul %845, %847, %cst_659 {dimension_numbers = #tpu.dot_dimension_numbers<[1], [0], [0], [1], [0, 0, 1, 1], [], []>} : vector<8x192xbf16>, vector<192x32xbf16>, vector<8x32xf32> -> vector<8x32xf32>
    %c2_660 = arith.constant 2 : index
    %c0_661 = arith.constant 0 : index
    %c0_662 = arith.constant 0 : index
    %849 = vector.load %arg20[%c2_660, %c0_661, %c0_662] : memref<6x8x192xbf16, #tpu.memory_space<vmem>>, vector<1x8x192xbf16>
    %850 = vector.shape_cast %849 : vector<1x8x192xbf16> to vector<8x192xbf16>
    %c1_663 = arith.constant 1 : index
    %c0_664 = arith.constant 0 : index
    %c0_665 = arith.constant 0 : index
    %851 = vector.load %arg10[%c1_663, %c0_664, %c0_665] : memref<3x192x32xbf16, #tpu.memory_space<vmem>>, vector<1x192x32xbf16>
    %852 = vector.shape_cast %851 : vector<1x192x32xbf16> to vector<192x32xbf16>
    %cst_666 = arith.constant dense<0.000000e+00> : vector<8x32xf32>
    %853 = tpu.matmul %850, %852, %cst_666 {dimension_numbers = #tpu.dot_dimension_numbers<[1], [0], [0], [1], [0, 0, 1, 1], [], []>} : vector<8x192xbf16>, vector<192x32xbf16>, vector<8x32xf32> -> vector<8x32xf32>
    %854 = arith.addf %848, %853 : vector<8x32xf32>
    %c3_667 = arith.constant 3 : index
    %c0_668 = arith.constant 0 : index
    %c0_669 = arith.constant 0 : index
    %855 = vector.load %arg20[%c3_667, %c0_668, %c0_669] : memref<6x8x192xbf16, #tpu.memory_space<vmem>>, vector<1x8x192xbf16>
    %856 = vector.shape_cast %855 : vector<1x8x192xbf16> to vector<8x192xbf16>
    %c2_670 = arith.constant 2 : index
    %c0_671 = arith.constant 0 : index
    %c0_672 = arith.constant 0 : index
    %857 = vector.load %arg10[%c2_670, %c0_671, %c0_672] : memref<3x192x32xbf16, #tpu.memory_space<vmem>>, vector<1x192x32xbf16>
    %858 = vector.shape_cast %857 : vector<1x192x32xbf16> to vector<192x32xbf16>
    %cst_673 = arith.constant dense<0.000000e+00> : vector<8x32xf32>
    %859 = tpu.matmul %856, %858, %cst_673 {dimension_numbers = #tpu.dot_dimension_numbers<[1], [0], [0], [1], [0, 0, 1, 1], [], []>} : vector<8x192xbf16>, vector<192x32xbf16>, vector<8x32xf32> -> vector<8x32xf32>
    %860 = arith.addf %854, %859 : vector<8x32xf32>
    %861 = arith.addf %860, %12 : vector<8x32xf32>
    %cst_674 = arith.constant 0.000000e+00 : f32
    %862 = vector.broadcast %cst_674 : f32 to vector<8x32xf32>
    %863 = arith.cmpf oge, %861, %862 : vector<8x32xf32>
    %cst_675 = arith.constant 2.000000e-01 : f32
    %864 = vector.broadcast %cst_675 : f32 to vector<8x32xf32>
    %865 = arith.mulf %864, %861 : vector<8x32xf32>
    %866 = arith.select %863, %861, %865 : vector<8x32xi1>, vector<8x32xf32>
    %867 = vector.extract_strided_slice %866 {offsets = [0, 0], sizes = [2, 32], strides = [1, 1]} : vector<8x32xf32> to vector<2x32xf32>
    %868 = arith.truncf %867 : vector<2x32xf32> to vector<2x32xbf16>
    %c0_676 = arith.constant 0 : index
    %c128_677 = arith.constant 128 : index
    %869 = vector.load %arg21[%c0_676, %c128_677] : memref<2x512xbf16, #tpu.memory_space<vmem>>, vector<2x32xbf16>
    tpu.vector_store %arg21[%c0_676, %c128_677], %868 {strides = array<i32>} : memref<2x512xbf16, #tpu.memory_space<vmem>>, vector<2x32xbf16>,
    %870 = vector.extract_strided_slice %866 {offsets = [2, 0], sizes = [2, 32], strides = [1, 1]} : vector<8x32xf32> to vector<2x32xf32>
    %871 = arith.truncf %870 : vector<2x32xf32> to vector<2x32xbf16>
    %c0_678 = arith.constant 0 : index
    %c160 = arith.constant 160 : index
    %872 = vector.load %arg21[%c0_678, %c160] : memref<2x512xbf16, #tpu.memory_space<vmem>>, vector<2x32xbf16>
    tpu.vector_store %arg21[%c0_678, %c160], %871 {strides = array<i32>} : memref<2x512xbf16, #tpu.memory_space<vmem>>, vector<2x32xbf16>,
    %873 = vector.extract_strided_slice %866 {offsets = [4, 0], sizes = [2, 32], strides = [1, 1]} : vector<8x32xf32> to vector<2x32xf32>
    %874 = arith.truncf %873 : vector<2x32xf32> to vector<2x32xbf16>
    %c0_679 = arith.constant 0 : index
    %c192 = arith.constant 192 : index
    %875 = vector.load %arg21[%c0_679, %c192] : memref<2x512xbf16, #tpu.memory_space<vmem>>, vector<2x32xbf16>
    tpu.vector_store %arg21[%c0_679, %c192], %874 {strides = array<i32>} : memref<2x512xbf16, #tpu.memory_space<vmem>>, vector<2x32xbf16>,
    %876 = vector.extract_strided_slice %866 {offsets = [6, 0], sizes = [2, 32], strides = [1, 1]} : vector<8x32xf32> to vector<2x32xf32>
    %877 = arith.truncf %876 : vector<2x32xf32> to vector<2x32xbf16>
    %c0_680 = arith.constant 0 : index
    %c224 = arith.constant 224 : index
    %878 = vector.load %arg21[%c0_680, %c224] : memref<2x512xbf16, #tpu.memory_space<vmem>>, vector<2x32xbf16>
    tpu.vector_store %arg21[%c0_680, %c224], %877 {strides = array<i32>} : memref<2x512xbf16, #tpu.memory_space<vmem>>, vector<2x32xbf16>,
    %c2_681 = arith.constant 2 : index
    %c0_682 = arith.constant 0 : index
    %c0_683 = arith.constant 0 : index
    %879 = vector.load %arg20[%c2_681, %c0_682, %c0_683] : memref<6x8x192xbf16, #tpu.memory_space<vmem>>, vector<1x8x192xbf16>
    %880 = vector.shape_cast %879 : vector<1x8x192xbf16> to vector<8x192xbf16>
    %c0_684 = arith.constant 0 : index
    %c0_685 = arith.constant 0 : index
    %c0_686 = arith.constant 0 : index
    %881 = vector.load %arg10[%c0_684, %c0_685, %c0_686] : memref<3x192x32xbf16, #tpu.memory_space<vmem>>, vector<1x192x32xbf16>
    %882 = vector.shape_cast %881 : vector<1x192x32xbf16> to vector<192x32xbf16>
    %cst_687 = arith.constant dense<0.000000e+00> : vector<8x32xf32>
    %883 = tpu.matmul %880, %882, %cst_687 {dimension_numbers = #tpu.dot_dimension_numbers<[1], [0], [0], [1], [0, 0, 1, 1], [], []>} : vector<8x192xbf16>, vector<192x32xbf16>, vector<8x32xf32> -> vector<8x32xf32>
    %c3_688 = arith.constant 3 : index
    %c0_689 = arith.constant 0 : index
    %c0_690 = arith.constant 0 : index
    %884 = vector.load %arg20[%c3_688, %c0_689, %c0_690] : memref<6x8x192xbf16, #tpu.memory_space<vmem>>, vector<1x8x192xbf16>
    %885 = vector.shape_cast %884 : vector<1x8x192xbf16> to vector<8x192xbf16>
    %c1_691 = arith.constant 1 : index
    %c0_692 = arith.constant 0 : index
    %c0_693 = arith.constant 0 : index
    %886 = vector.load %arg10[%c1_691, %c0_692, %c0_693] : memref<3x192x32xbf16, #tpu.memory_space<vmem>>, vector<1x192x32xbf16>
    %887 = vector.shape_cast %886 : vector<1x192x32xbf16> to vector<192x32xbf16>
    %cst_694 = arith.constant dense<0.000000e+00> : vector<8x32xf32>
    %888 = tpu.matmul %885, %887, %cst_694 {dimension_numbers = #tpu.dot_dimension_numbers<[1], [0], [0], [1], [0, 0, 1, 1], [], []>} : vector<8x192xbf16>, vector<192x32xbf16>, vector<8x32xf32> -> vector<8x32xf32>
    %889 = arith.addf %883, %888 : vector<8x32xf32>
    %c4_695 = arith.constant 4 : index
    %c0_696 = arith.constant 0 : index
    %c0_697 = arith.constant 0 : index
    %890 = vector.load %arg20[%c4_695, %c0_696, %c0_697] : memref<6x8x192xbf16, #tpu.memory_space<vmem>>, vector<1x8x192xbf16>
    %891 = vector.shape_cast %890 : vector<1x8x192xbf16> to vector<8x192xbf16>
    %c2_698 = arith.constant 2 : index
    %c0_699 = arith.constant 0 : index
    %c0_700 = arith.constant 0 : index
    %892 = vector.load %arg10[%c2_698, %c0_699, %c0_700] : memref<3x192x32xbf16, #tpu.memory_space<vmem>>, vector<1x192x32xbf16>
    %893 = vector.shape_cast %892 : vector<1x192x32xbf16> to vector<192x32xbf16>
    %cst_701 = arith.constant dense<0.000000e+00> : vector<8x32xf32>
    %894 = tpu.matmul %891, %893, %cst_701 {dimension_numbers = #tpu.dot_dimension_numbers<[1], [0], [0], [1], [0, 0, 1, 1], [], []>} : vector<8x192xbf16>, vector<192x32xbf16>, vector<8x32xf32> -> vector<8x32xf32>
    %895 = arith.addf %889, %894 : vector<8x32xf32>
    %896 = arith.addf %895, %12 : vector<8x32xf32>
    %cst_702 = arith.constant 0.000000e+00 : f32
    %897 = vector.broadcast %cst_702 : f32 to vector<8x32xf32>
    %898 = arith.cmpf oge, %896, %897 : vector<8x32xf32>
    %cst_703 = arith.constant 2.000000e-01 : f32
    %899 = vector.broadcast %cst_703 : f32 to vector<8x32xf32>
    %900 = arith.mulf %899, %896 : vector<8x32xf32>
    %901 = arith.select %898, %896, %900 : vector<8x32xi1>, vector<8x32xf32>
    %902 = vector.extract_strided_slice %901 {offsets = [0, 0], sizes = [2, 32], strides = [1, 1]} : vector<8x32xf32> to vector<2x32xf32>
    %903 = arith.truncf %902 : vector<2x32xf32> to vector<2x32xbf16>
    %c0_704 = arith.constant 0 : index
    %c256 = arith.constant 256 : index
    %904 = vector.load %arg21[%c0_704, %c256] : memref<2x512xbf16, #tpu.memory_space<vmem>>, vector<2x32xbf16>
    tpu.vector_store %arg21[%c0_704, %c256], %903 {strides = array<i32>} : memref<2x512xbf16, #tpu.memory_space<vmem>>, vector<2x32xbf16>,
    %905 = vector.extract_strided_slice %901 {offsets = [2, 0], sizes = [2, 32], strides = [1, 1]} : vector<8x32xf32> to vector<2x32xf32>
    %906 = arith.truncf %905 : vector<2x32xf32> to vector<2x32xbf16>
    %c0_705 = arith.constant 0 : index
    %c288 = arith.constant 288 : index
    %907 = vector.load %arg21[%c0_705, %c288] : memref<2x512xbf16, #tpu.memory_space<vmem>>, vector<2x32xbf16>
    tpu.vector_store %arg21[%c0_705, %c288], %906 {strides = array<i32>} : memref<2x512xbf16, #tpu.memory_space<vmem>>, vector<2x32xbf16>,
    %908 = vector.extract_strided_slice %901 {offsets = [4, 0], sizes = [2, 32], strides = [1, 1]} : vector<8x32xf32> to vector<2x32xf32>
    %909 = arith.truncf %908 : vector<2x32xf32> to vector<2x32xbf16>
    %c0_706 = arith.constant 0 : index
    %c320 = arith.constant 320 : index
    %910 = vector.load %arg21[%c0_706, %c320] : memref<2x512xbf16, #tpu.memory_space<vmem>>, vector<2x32xbf16>
    tpu.vector_store %arg21[%c0_706, %c320], %909 {strides = array<i32>} : memref<2x512xbf16, #tpu.memory_space<vmem>>, vector<2x32xbf16>,
    %911 = vector.extract_strided_slice %901 {offsets = [6, 0], sizes = [2, 32], strides = [1, 1]} : vector<8x32xf32> to vector<2x32xf32>
    %912 = arith.truncf %911 : vector<2x32xf32> to vector<2x32xbf16>
    %c0_707 = arith.constant 0 : index
    %c352 = arith.constant 352 : index
    %913 = vector.load %arg21[%c0_707, %c352] : memref<2x512xbf16, #tpu.memory_space<vmem>>, vector<2x32xbf16>
    tpu.vector_store %arg21[%c0_707, %c352], %912 {strides = array<i32>} : memref<2x512xbf16, #tpu.memory_space<vmem>>, vector<2x32xbf16>,
    %c3_708 = arith.constant 3 : index
    %c0_709 = arith.constant 0 : index
    %c0_710 = arith.constant 0 : index
    %914 = vector.load %arg20[%c3_708, %c0_709, %c0_710] : memref<6x8x192xbf16, #tpu.memory_space<vmem>>, vector<1x8x192xbf16>
    %915 = vector.shape_cast %914 : vector<1x8x192xbf16> to vector<8x192xbf16>
    %c0_711 = arith.constant 0 : index
    %c0_712 = arith.constant 0 : index
    %c0_713 = arith.constant 0 : index
    %916 = vector.load %arg10[%c0_711, %c0_712, %c0_713] : memref<3x192x32xbf16, #tpu.memory_space<vmem>>, vector<1x192x32xbf16>
    %917 = vector.shape_cast %916 : vector<1x192x32xbf16> to vector<192x32xbf16>
    %cst_714 = arith.constant dense<0.000000e+00> : vector<8x32xf32>
    %918 = tpu.matmul %915, %917, %cst_714 {dimension_numbers = #tpu.dot_dimension_numbers<[1], [0], [0], [1], [0, 0, 1, 1], [], []>} : vector<8x192xbf16>, vector<192x32xbf16>, vector<8x32xf32> -> vector<8x32xf32>
    %c4_715 = arith.constant 4 : index
    %c0_716 = arith.constant 0 : index
    %c0_717 = arith.constant 0 : index
    %919 = vector.load %arg20[%c4_715, %c0_716, %c0_717] : memref<6x8x192xbf16, #tpu.memory_space<vmem>>, vector<1x8x192xbf16>
    %920 = vector.shape_cast %919 : vector<1x8x192xbf16> to vector<8x192xbf16>
    %c1_718 = arith.constant 1 : index
    %c0_719 = arith.constant 0 : index
    %c0_720 = arith.constant 0 : index
    %921 = vector.load %arg10[%c1_718, %c0_719, %c0_720] : memref<3x192x32xbf16, #tpu.memory_space<vmem>>, vector<1x192x32xbf16>
    %922 = vector.shape_cast %921 : vector<1x192x32xbf16> to vector<192x32xbf16>
    %cst_721 = arith.constant dense<0.000000e+00> : vector<8x32xf32>
    %923 = tpu.matmul %920, %922, %cst_721 {dimension_numbers = #tpu.dot_dimension_numbers<[1], [0], [0], [1], [0, 0, 1, 1], [], []>} : vector<8x192xbf16>, vector<192x32xbf16>, vector<8x32xf32> -> vector<8x32xf32>
    %924 = arith.addf %918, %923 : vector<8x32xf32>
    %c5_722 = arith.constant 5 : index
    %c0_723 = arith.constant 0 : index
    %c0_724 = arith.constant 0 : index
    %925 = vector.load %arg20[%c5_722, %c0_723, %c0_724] : memref<6x8x192xbf16, #tpu.memory_space<vmem>>, vector<1x8x192xbf16>
    %926 = vector.shape_cast %925 : vector<1x8x192xbf16> to vector<8x192xbf16>
    %c2_725 = arith.constant 2 : index
    %c0_726 = arith.constant 0 : index
    %c0_727 = arith.constant 0 : index
    %927 = vector.load %arg10[%c2_725, %c0_726, %c0_727] : memref<3x192x32xbf16, #tpu.memory_space<vmem>>, vector<1x192x32xbf16>
    %928 = vector.shape_cast %927 : vector<1x192x32xbf16> to vector<192x32xbf16>
    %cst_728 = arith.constant dense<0.000000e+00> : vector<8x32xf32>
    %929 = tpu.matmul %926, %928, %cst_728 {dimension_numbers = #tpu.dot_dimension_numbers<[1], [0], [0], [1], [0, 0, 1, 1], [], []>} : vector<8x192xbf16>, vector<192x32xbf16>, vector<8x32xf32> -> vector<8x32xf32>
    %930 = arith.addf %924, %929 : vector<8x32xf32>
    %931 = arith.addf %930, %12 : vector<8x32xf32>
    %cst_729 = arith.constant 0.000000e+00 : f32
    %932 = vector.broadcast %cst_729 : f32 to vector<8x32xf32>
    %933 = arith.cmpf oge, %931, %932 : vector<8x32xf32>
    %cst_730 = arith.constant 2.000000e-01 : f32
    %934 = vector.broadcast %cst_730 : f32 to vector<8x32xf32>
    %935 = arith.mulf %934, %931 : vector<8x32xf32>
    %936 = arith.select %933, %931, %935 : vector<8x32xi1>, vector<8x32xf32>
    %937 = vector.extract_strided_slice %936 {offsets = [0, 0], sizes = [2, 32], strides = [1, 1]} : vector<8x32xf32> to vector<2x32xf32>
    %938 = arith.truncf %937 : vector<2x32xf32> to vector<2x32xbf16>
    %c0_731 = arith.constant 0 : index
    %c384 = arith.constant 384 : index
    %939 = vector.load %arg21[%c0_731, %c384] : memref<2x512xbf16, #tpu.memory_space<vmem>>, vector<2x32xbf16>
    tpu.vector_store %arg21[%c0_731, %c384], %938 {strides = array<i32>} : memref<2x512xbf16, #tpu.memory_space<vmem>>, vector<2x32xbf16>,
    %940 = vector.extract_strided_slice %936 {offsets = [2, 0], sizes = [2, 32], strides = [1, 1]} : vector<8x32xf32> to vector<2x32xf32>
    %941 = arith.truncf %940 : vector<2x32xf32> to vector<2x32xbf16>
    %c0_732 = arith.constant 0 : index
    %c416 = arith.constant 416 : index
    %942 = vector.load %arg21[%c0_732, %c416] : memref<2x512xbf16, #tpu.memory_space<vmem>>, vector<2x32xbf16>
    tpu.vector_store %arg21[%c0_732, %c416], %941 {strides = array<i32>} : memref<2x512xbf16, #tpu.memory_space<vmem>>, vector<2x32xbf16>,
    %943 = vector.extract_strided_slice %936 {offsets = [4, 0], sizes = [2, 32], strides = [1, 1]} : vector<8x32xf32> to vector<2x32xf32>
    %944 = arith.truncf %943 : vector<2x32xf32> to vector<2x32xbf16>
    %c0_733 = arith.constant 0 : index
    %c448 = arith.constant 448 : index
    %945 = vector.load %arg21[%c0_733, %c448] : memref<2x512xbf16, #tpu.memory_space<vmem>>, vector<2x32xbf16>
    tpu.vector_store %arg21[%c0_733, %c448], %944 {strides = array<i32>} : memref<2x512xbf16, #tpu.memory_space<vmem>>, vector<2x32xbf16>,
    %946 = vector.extract_strided_slice %936 {offsets = [6, 0], sizes = [2, 32], strides = [1, 1]} : vector<8x32xf32> to vector<2x32xf32>
    %947 = arith.truncf %946 : vector<2x32xf32> to vector<2x32xbf16>
    %c0_734 = arith.constant 0 : index
    %c480 = arith.constant 480 : index
    %948 = vector.load %arg21[%c0_734, %c480] : memref<2x512xbf16, #tpu.memory_space<vmem>>, vector<2x32xbf16>
    tpu.vector_store %arg21[%c0_734, %c480], %947 {strides = array<i32>} : memref<2x512xbf16, #tpu.memory_space<vmem>>, vector<2x32xbf16>,
    %c0_735 = arith.constant 0 : index
    %c0_736 = arith.constant 0 : index
    %949 = vector.load %arg21[%c0_735, %c0_736] : memref<2x512xbf16, #tpu.memory_space<vmem>>, vector<2x512xbf16>
    %c0_737 = arith.constant 0 : index
    %c0_738 = arith.constant 0 : index
    %950 = vector.load %arg13[%c0_737, %c0_738] : memref<512x18xbf16, #tpu.memory_space<vmem>>, vector<512x18xbf16>
    %cst_739 = arith.constant dense<0.000000e+00> : vector<2x18xf32>
    %951 = tpu.matmul %949, %950, %cst_739 {dimension_numbers = #tpu.dot_dimension_numbers<[1], [0], [0], [1], [0, 0, 1, 1], [], []>} : vector<2x512xbf16>, vector<512x18xbf16>, vector<2x18xf32> -> vector<2x18xf32>
    %c0_740 = arith.constant 0 : index
    %c0_741 = arith.constant 0 : index
    %952 = vector.load %arg4[%c0_740, %c0_741] : memref<2x4xf32, #tpu.memory_space<vmem>>, vector<2x4xf32>
    %c0_742 = arith.constant 0 : index
    %c0_743 = arith.constant 0 : index
    %953 = vector.load %arg14[%c0_742, %c0_743] : memref<4x18xf32, #tpu.memory_space<vmem>>, vector<4x18xf32>
    %cst_744 = arith.constant dense<0.000000e+00> : vector<2x18xf32>
    %954 = tpu.matmul %952, %953, %cst_744 {dimension_numbers = #tpu.dot_dimension_numbers<[1], [0], [0], [1], [0, 0, 1, 1], [], []>} : vector<2x4xf32>, vector<4x18xf32>, vector<2x18xf32> -> vector<2x18xf32>
    %955 = arith.addf %951, %954 : vector<2x18xf32>
    %c0_745 = arith.constant 0 : index
    %c0_746 = arith.constant 0 : index
    %956 = vector.load %arg15[%c0_745, %c0_746] : memref<1x18xf32, #tpu.memory_space<vmem>>, vector<1x18xf32>
    %957 = vector.broadcast %956 : vector<1x18xf32> to vector<2x18xf32>
    %958 = arith.addf %955, %957 : vector<2x18xf32>
    %cst_747 = arith.constant 0.000000e+00 : f32
    %959 = vector.broadcast %cst_747 : f32 to vector<2x18xf32>
    %960 = arith.cmpf oge, %958, %959 : vector<2x18xf32>
    %cst_748 = arith.constant 2.000000e-01 : f32
    %961 = vector.broadcast %cst_748 : f32 to vector<2x18xf32>
    %962 = arith.mulf %961, %958 : vector<2x18xf32>
    %963 = arith.select %960, %958, %962 : vector<2x18xi1>, vector<2x18xf32>
    %c0_749 = arith.constant 0 : index
    %c0_750 = arith.constant 0 : index
    %964 = vector.load %arg16[%c0_749, %c0_750] : memref<18x1xf32, #tpu.memory_space<vmem>>, vector<18x1xf32>
    %cst_751 = arith.constant dense<0.000000e+00> : vector<2x1xf32>
    %965 = tpu.matmul %963, %964, %cst_751 {dimension_numbers = #tpu.dot_dimension_numbers<[1], [0], [0], [1], [0, 0, 1, 1], [], []>} : vector<2x18xf32>, vector<18x1xf32>, vector<2x1xf32> -> vector<2x1xf32>
    %c0_752 = arith.constant 0 : index
    %c0_753 = arith.constant 0 : index
    %966 = vector.load %arg17[%c0_752, %c0_753] : memref<1x1xf32, #tpu.memory_space<vmem>>, vector<1x1xf32>
    %967 = vector.broadcast %966 : vector<1x1xf32> to vector<2x1xf32>
    %968 = arith.addf %965, %967 : vector<2x1xf32>
    %c0_754 = arith.constant 0 : index
    %c0_755 = arith.constant 0 : index
    %969 = vector.load %arg18[%c0_754, %c0_755] : memref<2x1xf32, #tpu.memory_space<vmem>>, vector<2x1xf32>
    tpu.vector_store %arg18[%c0_754, %c0_755], %968 {strides = array<i32>} : memref<2x1xf32, #tpu.memory_space<vmem>>, vector<2x1xf32>,
    return
  }
  func.func @transform_0(%arg0: i32) -> (i32, i32, i32) {
    %c0_i32 = arith.constant 0 : i32
    %c0_i32_0 = arith.constant 0 : i32
    %c0_i32_1 = arith.constant 0 : i32
    %c0_i32_2 = arith.constant 0 : i32
    return %c0_i32, %c0_i32_0, %c0_i32_1 : i32, i32, i32
  }
  func.func @transform_1(%arg0: i32) -> (i32, i32) {
    %c0_i32 = arith.constant 0 : i32
    %c0_i32_0 = arith.constant 0 : i32
    %c0_i32_1 = arith.constant 0 : i32
    return %c0_i32, %c0_i32_0 : i32, i32
  }
  func.func @transform_2(%arg0: i32) -> (i32, i32) {
    %c0_i32 = arith.constant 0 : i32
    %c0_i32_0 = arith.constant 0 : i32
    %c0_i32_1 = arith.constant 0 : i32
    return %c0_i32, %c0_i32_0 : i32, i32
  }
  func.func @transform_3(%arg0: i32) -> (i32, i32) {
    %c0_i32 = arith.constant 0 : i32
    %c0_i32_0 = arith.constant 0 : i32
    %c0_i32_1 = arith.constant 0 : i32
    return %c0_i32, %c0_i32_0 : i32, i32
  }
  func.func @transform_4(%arg0: i32) -> (i32, i32, i32) {
    %c0_i32 = arith.constant 0 : i32
    %c0_i32_0 = arith.constant 0 : i32
    %c0_i32_1 = arith.constant 0 : i32
    %c0_i32_2 = arith.constant 0 : i32
    return %c0_i32, %c0_i32_0, %c0_i32_1 : i32, i32, i32
  }
  func.func @transform_5(%arg0: i32) -> (i32, i32) {
    %c0_i32 = arith.constant 0 : i32
    %c0_i32_0 = arith.constant 0 : i32
    %c0_i32_1 = arith.constant 0 : i32
    return %c0_i32, %c0_i32_0 : i32, i32
  }
  func.func @transform_6(%arg0: i32) -> (i32, i32, i32) {
    %c0_i32 = arith.constant 0 : i32
    %c0_i32_0 = arith.constant 0 : i32
    %c0_i32_1 = arith.constant 0 : i32
    %c0_i32_2 = arith.constant 0 : i32
    return %c0_i32, %c0_i32_0, %c0_i32_1 : i32, i32, i32
  }
  func.func @transform_7(%arg0: i32) -> (i32, i32) {
    %c0_i32 = arith.constant 0 : i32
    %c0_i32_0 = arith.constant 0 : i32
    %c0_i32_1 = arith.constant 0 : i32
    return %c0_i32, %c0_i32_0 : i32, i32
  }
  func.func @transform_8(%arg0: i32) -> (i32, i32) {
    %c0_i32 = arith.constant 0 : i32
    %c0_i32_0 = arith.constant 0 : i32
    %c0_i32_1 = arith.constant 0 : i32
    return %c0_i32, %c0_i32_0 : i32, i32
  }
  func.func @transform_9(%arg0: i32) -> (i32, i32, i32) {
    %c0_i32 = arith.constant 0 : i32
    %c0_i32_0 = arith.constant 0 : i32
    %c0_i32_1 = arith.constant 0 : i32
    %c0_i32_2 = arith.constant 0 : i32
    return %c0_i32, %c0_i32_0, %c0_i32_1 : i32, i32, i32
  }
  func.func @transform_10(%arg0: i32) -> (i32, i32) {
    %c0_i32 = arith.constant 0 : i32
    %c0_i32_0 = arith.constant 0 : i32
    %c0_i32_1 = arith.constant 0 : i32
    return %c0_i32, %c0_i32_0 : i32, i32
  }
  func.func @transform_11(%arg0: i32) -> (i32, i32) {
    %c0_i32 = arith.constant 0 : i32
    %c0_i32_0 = arith.constant 0 : i32
    %c0_i32_1 = arith.constant 0 : i32
    return %c0_i32, %c0_i32_0 : i32, i32
  }
  func.func @transform_12(%arg0: i32) -> (i32, i32) {
    %c0_i32 = arith.constant 0 : i32
    %c0_i32_0 = arith.constant 0 : i32
    %c0_i32_1 = arith.constant 0 : i32
    return %c0_i32, %c0_i32_0 : i32, i32
  }
  func.func @transform_13(%arg0: i32) -> (i32, i32) {
    %c0_i32 = arith.constant 0 : i32
    %c0_i32_0 = arith.constant 0 : i32
    %c0_i32_1 = arith.constant 0 : i32
    return %c0_i32, %c0_i32_0 : i32, i32
  }
  func.func @transform_14(%arg0: i32) -> (i32, i32) {
    %c0_i32 = arith.constant 0 : i32
    %c0_i32_0 = arith.constant 0 : i32
    %c0_i32_1 = arith.constant 0 : i32
    return %c0_i32, %c0_i32_0 : i32, i32
  }
  func.func @transform_15(%arg0: i32) -> (i32, i32) {
    %c0_i32 = arith.constant 0 : i32
    %c0_i32_0 = arith.constant 0 : i32
    %c0_i32_1 = arith.constant 0 : i32
    return %c0_i32, %c0_i32_0 : i32, i32
  }
  func.func @transform_16(%arg0: i32) -> (i32, i32) {
    %c0_i32 = arith.constant 0 : i32
    %c0_i32_0 = arith.constant 0 : i32
    %c0_i32_1 = arith.constant 0 : i32
    return %c0_i32, %c0_i32_0 : i32, i32
  }
  func.func @transform_17(%arg0: i32) -> (i32, i32) {
    %c0_i32 = arith.constant 0 : i32
    %c0_i32_0 = arith.constant 0 : i32
    %c0_i32_1 = arith.constant 0 : i32
    return %c0_i32, %c0_i32_0 : i32, i32
  }
}

</mosaic_0001>

<bundles_post_ra>
// kernel: tile.14
= control target key start
LH: loop header
LB: loop body
LE: loop exit
PB: predicated region body
PF: predicated region fallthrough
CT: control target
= control target key end

     0   :  { %vm27_vm0 = vcmask 31744   ;;  %s110_s0 = inlined_call_operand.vmem [shape: f32[6,2,4], index: 0, kind: input, shape index: {}]   ;;  %s111_s1 = inlined_call_operand.vmem [shape: f32[12,4], index: 1, kind: output, shape index: {}]  }
   0x1   :  { %v54_v0 = vld [vmem:[%s110_s0 + $0xa] sm:$0x3]  ;;  %v55_v1 = vld [vmem:[%s110_s0 + $0x8] sm:$0x3]  ;;  %v56_v2 = vld [vmem:[%s110_s0 + $0x6] sm:$0x3] }
   0x2   :  { %7 = vst [vmem:[#allocation0] sm:$0x3] %v54_v0  ;;  %v57_v3 = vld [vmem:[%s110_s0 + $0x4] sm:$0x3]  ;;  %v58_v4 = vld [vmem:[%s110_s0 + $0x2] sm:$0x3] }
   0x3   :  { %11 = vst [vmem:[#allocation0 + $0x18] sm:$0x3] %v55_v1  ;;  %v24_v5 = vld [vmem:[%s110_s0] sm:$0x3] }
   0x4   :  { %15 = vst [vmem:[#allocation0 + $0x20] sm:$0x3] %v56_v2 }
   0x5   :  { %19 = vst [vmem:[#allocation0 + $0x28] sm:$0x3] %v57_v3 }
   0x6   :  { %23 = vst [vmem:[#allocation0 + $0x10] sm:$0x3] %v58_v4 }
   0x7   :  { %25 = vst [vmem:[#allocation0 + $0x8] sm:$0x3] %v24_v5 }
   0x9   :  { %v50_v6 = vld [vmem:[#allocation0] sm:$0x3]  }
   0xa   :  { %v45_v7 = vld [vmem:[#allocation0 + $0x18] sm:$0x3]   ;;  %63 = vst.msk [vmem:[%s111_s1 + $0xa] sm:$0x3] %vm27_vm0, %v50_v6  }
   0xb   :  { %v40_v8 = vld [vmem:[#allocation0 + $0x20] sm:$0x3]   ;;  %62 = vst.msk [vmem:[%s111_s1 + $0x8] sm:$0x3] %vm27_vm0, %v45_v7  }
   0xc   :  { %v35_v9 = vld [vmem:[#allocation0 + $0x28] sm:$0x3]   ;;  %61 = vst.msk [vmem:[%s111_s1 + $0x6] sm:$0x3] %vm27_vm0, %v40_v8  }
   0xd   :  { %v30_v10 = vld [vmem:[#allocation0 + $0x10] sm:$0x3]   ;;  %60 = vst.msk [vmem:[%s111_s1 + $0x4] sm:$0x3] %vm27_vm0, %v35_v9  }
   0xe   :  { %v26_v11 = vld [vmem:[#allocation0 + $0x8] sm:$0x3]   ;;  %59 = vst.msk [vmem:[%s111_s1 + $0x2] sm:$0x3] %vm27_vm0, %v30_v10  }
   0xf   :  { %28 = vst.msk [vmem:[%s111_s1] sm:$0x3] %vm27_vm0, %v26_v11  }

// kernel: netD_forward.1
= control target key start
LH: loop header
LB: loop body
LE: loop exit
PB: predicated region body
PF: predicated region fallthrough
CT: control target
= control target key end

     0   :  { %vm74_vm0 = vcmask 1043456   ;;  %vm67_vm1 = vcmask 31744   ;;  %vm281_vm2 = vcmask 523264   ;;  %vm481_vm4 = vcmask 257024   ;;  %s15212_s23 = smov 64   ;;  %s15213_s18 = smov 96   ;;  %s19040_s7 = inlined_call_operand.vmem [shape: f32[4,64], index: 7, kind: input, shape index: {}]   ;;  %s19041_s10 = inlined_call_operand.vmem [shape: f32[4,32], index: 10, kind: input, shape index: {}]   ;;  %s19042_s4 = inlined_call_operand.vmem [shape: bf16[2,192,32], index: 4, kind: input, shape index: {}]   ;;  %s19043_s2 = inlined_call_operand.vmem [shape: f32[8,4], index: 2, kind: input, shape index: {}]   ;;  %s19044_s1 = inlined_call_operand.vmem [shape: f32[12,4], index: 1, kind: input, shape index: {}]   ;;  %s19045_s0 = inlined_call_operand.vmem [shape: bf16[15,28,192], index: 0, kind: input, shape index: {}]   ;;  %s19046_s11 = inlined_call_operand.vmem [shape: f32[1,32], index: 11, kind: input, shape index: {}]   ;;  %s19047_s8 = inlined_call_operand.vmem [shape: f32[1,64], index: 8, kind: input, shape index: {}]   ;;  %s19048_s5 = inlined_call_operand.vmem [shape: f32[1,32], index: 5, kind: input, shape index: {}]   ;;  %s19049_s6 = inlined_call_operand.vmem [shape: bf16[4,128,64], index: 6, kind: input, shape index: {}]   ;;  %s19050_s9 = inlined_call_operand.vmem [shape: bf16[3,192,32], index: 9, kind: input, shape index: {}]   ;;  %s19051_s13 = inlined_call_operand.vmem [shape: f32[4,18], index: 13, kind: input, shape index: {}]   ;;  %s19052_s12 = inlined_call_operand.vmem [shape: bf16[512,18], index: 12, kind: input, shape index: {}]   ;;  %s19053_s3 = inlined_call_operand.vmem [shape: f32[2,4], index: 3, kind: input, shape index: {}]   ;;  %s19054_s14 = inlined_call_operand.vmem [shape: f32[1,18], index: 14, kind: input, shape index: {}]   ;;  %s19055_s15 = inlined_call_operand.vmem [shape: f32[18,1], index: 15, kind: input, shape index: {}]   ;;  %s19056_s16 = inlined_call_operand.<no memory space> [shape: f32[1,1], index: 16, kind: input, shape index: {}]   ;;  %s19057_s17 = inlined_call_operand.vmem [shape: f32[2,1], index: 17, kind: output, shape index: {}]  }
   0x1   :  { %19058 = sst [smem:[#allocation6_spill]] %s19040_s7  ;;  %v14388_v2 = vld [vmem:[%s19042_s4 + $0x98] sm:$0xff]  ;;  %v14387_v6 = vld [vmem:[%s19042_s4 + $0x90] sm:$0xff]  ;;  %v101_v9 = vld [vmem:[%s19043_s2] sm:$0xff]  ;;  %vm511_vm5 = vcmask 1042432   ;;  %vm512_vm7 = vcmask 1046532  }
   0x2   :  { %19059 = sst [smem:[#allocation7_spill]] %s19041_s10  ;;  %v14392_v3 = vld [vmem:[%s19042_s4 + $0xb8] sm:$0xff]  ;;  %288 = vmatpush.bf16.msra.mxu2 %v14388_v2  ;;  %v14391_v7 = vld [vmem:[%s19042_s4 + $0xb0] sm:$0xff]  ;;  %v14386_v11 = vld [vmem:[%s19042_s4 + $0x88] sm:$0xff]  ;;  %vm483_vm8 = vcmask 254976   ;;  %vm490_vm11 = vcmask 1040384  }
   0x3   :  { %s19060_s26 = sld [smem:[#allocation6_spill]]  ;;  %v14372_v4 = vld [vmem:[%s19042_s4 + $0x38] sm:$0xff]  ;;  %311 = vmatpush.bf16.msra.mxu3 %v14392_v3  ;;  %v14371_v8 = vld [vmem:[%s19042_s4 + $0x30] sm:$0xff]  ;;  %v60_v12 = vld [vmem:[%s19044_s1] sm:$0xff]  ;;  %vm491_vm12 = vcmask 1044484  }
   0x4   :  { %s19061_s29 = sld [smem:[#allocation7_spill]]  ;;  %v14376_v5 = vld [vmem:[%s19042_s4 + $0x58] sm:$0xff]  ;;  %v14375_v10 = vld [vmem:[%s19042_s4 + $0x50] sm:$0xff]  ;;  %v14390_v13 = vld [vmem:[%s19042_s4 + $0xa8] sm:$0xff] }
   0x5   :  { %v14370_v14 = vld [vmem:[%s19042_s4 + $0x28] sm:$0xff]  ;;  %v14385_v16 = vld [vmem:[%s19042_s4 + $0x80] sm:$0xff]  ;;  %v14420_v24 = vld [vmem:[%s19042_s4 + $0x98] sm:$0xff] }
   0x6   :  { %289 = vmatpush.bf16.msra.mxu2 %v14387_v6  ;;  %v14374_v15 = vld [vmem:[%s19042_s4 + $0x48] sm:$0xff]  ;;  %v14389_v17 = vld [vmem:[%s19042_s4 + $0xa0] sm:$0xff]  ;;  %v14384_v26 = vld [vmem:[%s19042_s4 + $0x78] sm:$0xff] }
   0x7   :  { %312 = vmatpush.bf16.msra.mxu3 %v14391_v7  ;;  %v14369_v18 = vld [vmem:[%s19042_s4 + $0x20] sm:$0xff]  ;;  %v9997_v21 = vld [vmem:[%s19045_s0 + $0x28] sm:$0xf0]  ;;  %v61_v27 = vld [vmem:[%s19044_s1 + $0x8] sm:$0xf]  ;;  %s15214_s1 = smov 32  }
   0x8   :  { %v14373_v19 = vld [vmem:[%s19042_s4 + $0x40] sm:$0xff]  ;;  %v10063_v23 = vld [vmem:[%s19045_s0 + $0x8] sm:$0xf0]  ;;  %v14368_v29 = vld [vmem:[%s19042_s4 + $0x18] sm:$0xff] }
   0x9   :  { %v62_v0 = vld [vmem:[%s19060_s26] sm:$0xf]  ;;  %v14377_v20 = vld [vmem:[%s19045_s0 + $0x24] sm:$0xf]  ;;  %v14424_v30 = vld [vmem:[%s19042_s4 + $0xb8] sm:$0xff] }
   0xa   :  { %v102_v1 = vld [vmem:[%s19061_s29] sm:$0xf]  ;;  %9960 = vmatpush.msk.msra.mxu0 %vm74_vm0, %v62_v0  ;;  %290 = vmatpush.bf16.msra.mxu2 %v14386_v11  ;;  %v14361_v22 = vld [vmem:[%s19045_s0 + $0x4] sm:$0xf]  ;;  %v10000_v25 = vor.u32 %v14377_v20, %v9997_v21  ;;  %v14419_v31 = vld [vmem:[%s19042_s4 + $0x90] sm:$0xff] }
   0xb   :  { %9963 = vmatpush.msk.msra.mxu1 %vm74_vm0, %v102_v1  ;;  %9961 = vmatmul.msk.f32.vlgmr.msra.gmra.mxu0 %vm67_vm1, %v60_v12  ;;  %v10066_v28 = vor.u32 %v14361_v22, %v10063_v23  ;;  %v14423_v32 = vld [vmem:[%s19042_s4 + $0xb0] sm:$0xff]  ;;  %v14418_v35 = vld [vmem:[%s19042_s4 + $0x88] sm:$0xff]  ;;  %v14381_v39 = vld [vmem:[%s19042_s4 + $0x60] sm:$0xff] }
   0xc   :  { %422 = vmatpush.bf16.msrb.mxu0 %v14372_v4  ;;  %9964 = vmatmul.msk.f32.vlgmr.msra.gmra.mxu1 %vm67_vm1, %v101_v9  ;;  %v14383_v33 = vld [vmem:[%s19042_s4 + $0x70] sm:$0xff]  ;;  %v14422_v36 = vld [vmem:[%s19042_s4 + $0xa8] sm:$0xff]  ;;  %v14417_v40 = vld [vmem:[%s19042_s4 + $0x80] sm:$0xff] }
   0xd   :  { %445 = vmatpush.bf16.msrb.mxu1 %v14376_v5  ;;  %313 = vmatpush.bf16.msra.mxu3 %v14390_v13  ;;  %v14367_v34 = vld [vmem:[%s19042_s4 + $0x10] sm:$0xff]  ;;  %v14382_v37 = vld [vmem:[%s19042_s4 + $0x68] sm:$0xff]  ;;  %v9995_v41 = vld [vmem:[%s19045_s0 + $0x20] sm:$0xf] }
   0xe   :  { %291 = vmatpush.bf16.msra.mxu2 %v14385_v16  ;;  %v14366_v38 = vld [vmem:[%s19042_s4 + $0x8] sm:$0xff]  ;;  %v14365_v43 = vld [vmem:[%s19042_s4] sm:$0xff]  ;;  %v14379_v45 = vld [vmem:[%s19045_s0 + $0x34] sm:$0xf] }
   0xf   :  { %v14378_v42 = vld [vmem:[%s19045_s0 + $0x24] sm:$0xf0]  ;;  %v14421_v44 = vld [vmem:[%s19042_s4 + $0xa0] sm:$0xff]  ;;  %v10005_v46 = vld [vmem:[%s19045_s0 + $0x38] sm:$0x30] }
  0x10   :  { %423 = vmatpush.bf16.msrb.mxu0 %v14371_v8  ;;  %v10061_v47 = vld [vmem:[%s19045_s0] sm:$0xf]  ;;  %v14362_v48 = vld [vmem:[%s19045_s0 + $0x4] sm:$0xf0]  ;;  %v14363_v49 = vld [vmem:[%s19045_s0 + $0x14] sm:$0xf]  ;;  %v9996_v54 = vor.u32 %v14378_v42, %v9995_v41  ;;  %v10008_v55 = vor.u32 %v14379_v45, %v10005_v46 }
  0x11   :  { %446 = vmatpush.bf16.msrb.mxu1 %v14375_v10  ;;  %314 = vmatpush.bf16.msra.mxu3 %v14389_v17  ;;  %v14404_v50 = vld [vmem:[%s19042_s4 + $0x38] sm:$0xff]  ;;  %v10062_v56 = vor.u32 %v14362_v48, %v10061_v47  ;;  %v14403_v58 = vld [vmem:[%s19042_s4 + $0x30] sm:$0xff]  ;;  %v14402_v62 = vld [vmem:[%s19042_s4 + $0x28] sm:$0xff] }
  0x12   :  { %292 = vmatpush.bf16.msra.mxu2 %v14384_v26  ;;  %v10071_v51 = vld [vmem:[%s19045_s0 + $0x18] sm:$0x30]  ;;  %v14415_v59 = vld [vmem:[%s19042_s4 + $0x70] sm:$0xff]  ;;  %v14414_v63 = vld [vmem:[%s19042_s4 + $0x68] sm:$0xff] }
  0x13   :  { %9962 = vmatmul.msk.f32.gmra.mxu0 %vm67_vm1, %v61_v27  ;;  %v14416_v52 = vld [vmem:[%s19042_s4 + $0x78] sm:$0xff]  ;;  %v10074_v57 = vor.u32 %v14363_v49, %v10071_v51  ;;  %v14407_v60 = vld [vmem:[%s19042_s4 + $0x50] sm:$0xff]  ;;  %v14406_v0 = vld [vmem:[%s19042_s4 + $0x48] sm:$0xff] }
  0x14   :  { %424 = vmatpush.bf16.msrb.mxu0 %v14370_v14  ;;  %10057 = vmatmul.msk.bf16.vlgmr.msra.gmra.mxu3 %vm281_vm2, %v10000_v25  ;;  %v14408_v53 = vld [vmem:[%s19042_s4 + $0x58] sm:$0xff]  ;;  %v14455_v1 = vld [vmem:[%s19042_s4 + $0xb0] sm:$0xff]  ;;  %v14401_v2 = vld [vmem:[%s19042_s4 + $0x20] sm:$0xff] }
  0x15   :  { %447 = vmatpush.bf16.msrb.mxu1 %v14374_v15  ;;  %692 = vmatpush.bf16.msrb.mxu3 %v14420_v24  ;;  %v14456_v61 = vld [vmem:[%s19042_s4 + $0xb8] sm:$0xff]  ;;  %v14413_v3 = vld [vmem:[%s19042_s4 + $0x60] sm:$0xff]  ;;  %v10003_v4 = vld [vmem:[%s19045_s0 + $0x30] sm:$0xf] }
  0x16   :  { %293 = vmatpush.bf16.msra.mxu2 %v14383_v33  ;;  %v14405_v5 = vld [vmem:[%s19042_s4 + $0x40] sm:$0xff]  ;;  %v14380_v6 = vld [vmem:[%s19045_s0 + $0x34] sm:$0x30]  ;;  %v10069_v9 = vld [vmem:[%s19045_s0 + $0x10] sm:$0xf] }
  0x17   :  { %v14452_v7 = vld [vmem:[%s19042_s4 + $0x98] sm:$0xff]  ;;  %v14454_v11 = vld [vmem:[%s19042_s4 + $0xa8] sm:$0xff]  ;;  %v10161_v12 = vld [vmem:[%s19045_s0 + $0x40] sm:$0xf]  ;;  %v10004_v17 = vor.u32 %v14380_v6, %v10003_v4 }
  0x18   :  { %425 = vmatpush.bf16.msrb.mxu0 %v14369_v18  ;;  %v14440_v8 = vld [vmem:[%s19042_s4 + $0x58] sm:$0xff]  ;;  %v14410_v13 = vld [vmem:[%s19045_s0 + $0x44] sm:$0xf0]  ;;  %v14409_v15 = vld [vmem:[%s19045_s0 + $0x44] sm:$0xf] }
  0x19   :  { %448 = vmatpush.bf16.msrb.mxu1 %v14373_v19  ;;  %693 = vmatpush.bf16.msrb.mxu3 %v14419_v31  ;;  %v14364_v10 = vld [vmem:[%s19045_s0 + $0x14] sm:$0x30]  ;;  %v10163_v16 = vld [vmem:[%s19045_s0 + $0x48] sm:$0xf0]  ;;  %v14451_v18 = vld [vmem:[%s19042_s4 + $0x90] sm:$0xff]  ;;  %v10162_v20 = vor.u32 %v14410_v13, %v10161_v12 }
  0x1a   :  { %294 = vmatpush.bf16.msra.mxu2 %v14382_v37  ;;  %v14400_v14 = vld [vmem:[%s19042_s4 + $0x18] sm:$0xff]  ;;  %v10070_v19 = vor.u32 %v14364_v10, %v10069_v9  ;;  %v10166_v21 = vor.u32 %v14409_v15, %v10163_v16  ;;  %v14399_v22 = vld [vmem:[%s19042_s4 + $0x10] sm:$0xff]  ;;  %v14453_v23 = vld [vmem:[%s19042_s4 + $0xa0] sm:$0xff] }
  0x1b   :  { %v14450_v24 = vld [vmem:[%s19042_s4 + $0x88] sm:$0xff]  ;;  %v14439_v26 = vld [vmem:[%s19042_s4 + $0x50] sm:$0xff]  ;;  %v14449_v27 = vld [vmem:[%s19042_s4 + $0x80] sm:$0xff] }
  0x1c   :  { %10123 = vmatmul.msk.bf16.vlgmr.msrb.gmra.mxu1 %vm281_vm2, %v10066_v28  ;;  %426 = vmatpush.bf16.msrb.mxu0 %v14368_v29  ;;  %v14398_v25 = vld [vmem:[%s19042_s4 + $0x8] sm:$0xff]  ;;  %v14397_v29 = vld [vmem:[%s19042_s4] sm:$0xff]  ;;  %v14448_v31 = vld [vmem:[%s19042_s4 + $0x78] sm:$0xff] }
  0x1d   :  { %715 = vmatpush.bf16.msra.mxu1 %v14424_v30  ;;  %694 = vmatpush.bf16.msrb.mxu3 %v14418_v35  ;;  %v14438_v28 = vld [vmem:[%s19042_s4 + $0x48] sm:$0xff]  ;;  %v14436_v30 = vld [vmem:[%s19042_s4 + $0x38] sm:$0xff]  ;;  %v10169_v33 = vld [vmem:[%s19045_s0 + $0x50] sm:$0xf] }
  0x1e   :  { %295 = vmatpush.bf16.msra.mxu2 %v14381_v39  ;;  %v14394_v35 = vld [vmem:[%s19045_s0 + $0x24] sm:$0xf0]  ;;  %v14393_v37 = vld [vmem:[%s19045_s0 + $0x24] sm:$0xf]  ;;  %v14411_v39 = vld [vmem:[%s19045_s0 + $0x54] sm:$0xf] }
  0x1f   :  { %v14435_v41 = vld [vmem:[%s19042_s4 + $0x30] sm:$0xff]  ;;  %v14434_v47 = vld [vmem:[%s19042_s4 + $0x28] sm:$0xff]  ;;  %v14488_v49 = vld [vmem:[%s19042_s4 + $0xb8] sm:$0xff] }
  0x20   :  { %427 = vmatpush.bf16.msrb.mxu0 %v14367_v34  ;;  %v10227_v34 = vld [vmem:[%s19045_s0 + $0x20] sm:$0xf]  ;;  %v14446_v48 = vld [vmem:[%s19042_s4 + $0x68] sm:$0xff]  ;;  %v14487_v51 = vld [vmem:[%s19042_s4 + $0xb0] sm:$0xff] }
  0x21   :  { %716 = vmatpush.bf16.msra.mxu1 %v14423_v32  ;;  %695 = vmatpush.bf16.msrb.mxu3 %v14417_v40  ;;  %v14437_v32 = vld [vmem:[%s19042_s4 + $0x40] sm:$0xff]  ;;  %v10171_v40 = vld [vmem:[%s19045_s0 + $0x58] sm:$0x30]  ;;  %v10228_v42 = vor.u32 %v14394_v35, %v10227_v34  ;;  %v14430_v9 = vld [vmem:[%s19042_s4 + $0x8] sm:$0xff] }
  0x22   :  { %826 = vmatpush.bf16.msrb.mxu2 %v14404_v50  ;;  %v10174_v46 = vor.u32 %v14411_v39, %v10171_v40  ;;  %v14433_v50 = vld [vmem:[%s19042_s4 + $0x20] sm:$0xff]  ;;  %v14468_v13 = vld [vmem:[%s19042_s4 + $0x38] sm:$0xff]  ;;  %v10335_v16 = vld [vmem:[%s19045_s0 + $0x70] sm:$0xf] }
  0x23   :  { %296 = vmatmul.bf16.vlgmr.msra.gmra.mxu2 %v9996_v54  ;;  %v14484_v54 = vld [vmem:[%s19042_s4 + $0x98] sm:$0xff]  ;;  %v14481_v10 = vld [vmem:[%s19042_s4 + $0x80] sm:$0xff]  ;;  %v14518_v40 = vld [vmem:[%s19042_s4 + $0xa8] sm:$0xff] }
  0x24   :  { %428 = vmatpush.bf16.msrb.mxu0 %v14366_v38  ;;  %10058 = vmatmul.msk.bf16.gmra.mxu3 %vm281_vm2, %v10008_v55  ;;  %v10229_v38 = vld [vmem:[%s19045_s0 + $0x28] sm:$0xf0]  ;;  %v14432_v55 = vld [vmem:[%s19042_s4 + $0x18] sm:$0xff]  ;;  %v14429_v12 = vld [vmem:[%s19042_s4] sm:$0xff] }
  0x25   :  { %717 = vmatpush.bf16.msra.mxu1 %v14422_v36  ;;  %696 = vmatpush.bf16.msrb.mxu3 %v14416_v52  ;;  %v14412_v36 = vld [vmem:[%s19045_s0 + $0x54] sm:$0x30]  ;;  %v10232_v45 = vor.u32 %v14393_v37, %v10229_v38  ;;  %v14465_v34 = vld [vmem:[%s19042_s4 + $0x20] sm:$0xff]  ;;  %vm16110_vm9 = vmor %vm511_vm5, %vm512_vm7 }
  0x26   :  { %827 = vmatpush.bf16.msrb.mxu2 %v14403_v58  ;;  %v14472_v52 = vld [vmem:[%s19042_s4 + $0x58] sm:$0xff]  ;;  %v14477_v35 = vld [vmem:[%s19042_s4 + $0x60] sm:$0xff]  ;;  %vm16181_vm13 = vmor %vm490_vm11, %vm491_vm12 }
  0x27   :  { %v14396_v58 = vld [vmem:[%s19045_s0 + $0x34] sm:$0x30] }
  0x28   :  { %429 = vmatpush.bf16.msrb.mxu0 %v14365_v43  ;;  %v14447_v43 = vld [vmem:[%s19042_s4 + $0x70] sm:$0xff]  ;;  %v14480_v15 = vld [vmem:[%s19042_s4 + $0x78] sm:$0xff] }
  0x29   :  { %718 = vmatpush.bf16.msra.mxu1 %v14421_v44  ;;  %697 = vmatpush.bf16.msrb.mxu3 %v14415_v59  ;;  %v10170_v44 = vor.u32 %v14412_v36, %v10169_v33  ;;  %v14395_v59 = vld [vmem:[%s19045_s0 + $0x34] sm:$0xf]  ;;  %v14520_v33 = vld [vmem:[%s19042_s4 + $0xb8] sm:$0xff] }
  0x2a   :  { %828 = vmatpush.bf16.msrb.mxu2 %v14402_v62  ;;  %v10327_v62 = vld [vmem:[%s19045_s0 + $0x60] sm:$0xf]  ;;  %v14519_v36 = vld [vmem:[%s19042_s4 + $0xb0] sm:$0xff]  ;;  %v14504_v37 = vld [vmem:[%s19042_s4 + $0x58] sm:$0xff] }
  0x2b   :  { %430 = vmatmul.bf16.vlgmr.msrb.gmra.mxu0 %v10062_v56  ;;  %v14486_v56 = vld [vmem:[%s19042_s4 + $0xa8] sm:$0xff]  ;;  %v14516_v38 = vld [vmem:[%s19042_s4 + $0x98] sm:$0xff] }
  0x2c   :  { %849 = vmatpush.bf16.msra.mxu0 %v14408_v53  ;;  %10124 = vmatmul.msk.bf16.gmra.mxu1 %vm281_vm2, %v10074_v57  ;;  %v14445_v53 = vld [vmem:[%s19042_s4 + $0x60] sm:$0xff]  ;;  %v10235_v57 = vld [vmem:[%s19045_s0 + $0x30] sm:$0xf]  ;;  %v14464_v39 = vld [vmem:[%s19042_s4 + $0x18] sm:$0xff] }
  0x2d   :  { %1103 = vmatpush.bf16.msrb.mxu1 %v14456_v61  ;;  %698 = vmatpush.bf16.msrb.mxu3 %v14414_v63  ;;  %v14483_v61 = vld [vmem:[%s19042_s4 + $0x90] sm:$0xff]  ;;  %v14442_v63 = vld [vmem:[%s19045_s0 + $0x64] sm:$0xf0]  ;;  %v10236_v4 = vor.u32 %v14396_v58, %v10235_v57  ;;  %v14513_v58 = vld [vmem:[%s19042_s4 + $0x80] sm:$0xff] }
  0x2e   :  { %829 = vmatpush.bf16.msrb.mxu2 %v14401_v2  ;;  %v14431_v2 = vld [vmem:[%s19042_s4 + $0x10] sm:$0xff]  ;;  %v10328_v6 = vor.u32 %v14442_v63, %v10327_v62  ;;  %v14462_v57 = vld [vmem:[%s19042_s4 + $0x8] sm:$0xff]  ;;  %v14512_v62 = vld [vmem:[%s19042_s4 + $0x78] sm:$0xff] }
  0x2f   :  { %v14499_v63 = vld [vmem:[%s19042_s4 + $0x30] sm:$0xff] }
  0x30   :  { %850 = vmatpush.bf16.msra.mxu0 %v14407_v60  ;;  %v10237_v60 = vld [vmem:[%s19045_s0 + $0x38] sm:$0x30] }
  0x31   :  { %1104 = vmatpush.bf16.msrb.mxu1 %v14455_v1  ;;  %699 = vmatpush.bf16.msrb.mxu3 %v14413_v3  ;;  %v10329_v1 = vld [vmem:[%s19045_s0 + $0x68] sm:$0xf0]  ;;  %v14485_v3 = vld [vmem:[%s19042_s4 + $0xa0] sm:$0xff] }
  0x32   :  { %830 = vmatpush.bf16.msrb.mxu2 %v14400_v14  ;;  %v14470_v14 = vld [vmem:[%s19042_s4 + $0x48] sm:$0xff] }
  0x33   :  { %301 = vmatmul.bf16.gmra.mxu2 %v10004_v17  ;;  %v14467_v17 = vld [vmem:[%s19042_s4 + $0x30] sm:$0xff] }
  0x34   :  { %851 = vmatpush.bf16.msra.mxu0 %v14406_v0  ;;  %700 = vmatmul.bf16.vlgmr.msrb.gmra.mxu3 %v10162_v20  ;;  %v14441_v0 = vld [vmem:[%s19045_s0 + $0x64] sm:$0xf]  ;;  %v10393_v20 = vld [vmem:[%s19045_s0 + $0x40] sm:$0xf] }
  0x35   :  { %1080 = vmatpush.bf16.msra.mxu3 %v14452_v7  ;;  %1105 = vmatpush.bf16.msrb.mxu1 %v14454_v11  ;;  %v10332_v7 = vor.u32 %v14441_v0, %v10329_v1  ;;  %v14471_v11 = vld [vmem:[%s19042_s4 + $0x50] sm:$0xff]  ;;  %v14502_v0 = vld [vmem:[%s19042_s4 + $0x48] sm:$0xff] }
  0x36   :  { %831 = vmatpush.bf16.msrb.mxu2 %v14399_v22  ;;  %v14425_v22 = vld [vmem:[%s19045_s0 + $0x44] sm:$0xf]  ;;  %v14511_v1 = vld [vmem:[%s19042_s4 + $0x70] sm:$0xff] }
  0x38   :  { %852 = vmatpush.bf16.msra.mxu0 %v14405_v5  ;;  %v10240_v5 = vor.u32 %v14395_v59, %v10237_v60  ;;  %v14461_v59 = vld [vmem:[%s19042_s4] sm:$0xff]  ;;  %v14503_v60 = vld [vmem:[%s19042_s4 + $0x50] sm:$0xff] }
  0x39   :  { %1081 = vmatpush.bf16.msra.mxu3 %v14451_v18  ;;  %1106 = vmatpush.bf16.msrb.mxu1 %v14453_v23  ;;  %v14469_v18 = vld [vmem:[%s19042_s4 + $0x40] sm:$0xff]  ;;  %v10395_v23 = vld [vmem:[%s19045_s0 + $0x48] sm:$0xf0] }
  0x3a   :  { %832 = vmatpush.bf16.msrb.mxu2 %v14398_v25  ;;  %v14443_v25 = vld [vmem:[%s19045_s0 + $0x74] sm:$0xf] }
  0x3b   :  { %435 = vmatmul.bf16.gmra.mxu0 %v10070_v19  ;;  %v14444_v19 = vld [vmem:[%s19045_s0 + $0x74] sm:$0x30] }
  0x3c   :  { %1237 = vmatpush.bf16.msrb.mxu0 %v14440_v8  ;;  %10223 = vmatmul.msk.bf16.vlgmr.msra.gmra.mxu1 %vm281_vm2, %v10166_v21  ;;  %v14482_v8 = vld [vmem:[%s19042_s4 + $0x88] sm:$0xff] }
  0x3d   :  { %1082 = vmatpush.bf16.msra.mxu3 %v14450_v24  ;;  %1491 = vmatpush.bf16.msra.mxu1 %v14488_v49  ;;  %v14426_v21 = vld [vmem:[%s19045_s0 + $0x44] sm:$0xf0]  ;;  %v14479_v24 = vld [vmem:[%s19042_s4 + $0x70] sm:$0xff]  ;;  %v14473_v49 = vld [vmem:[%s19045_s0 + $0x84] sm:$0xf] }
  0x3e   :  { %833 = vmatpush.bf16.msrb.mxu2 %v14397_v29  ;;  %v10398_v29 = vor.u32 %v14425_v22, %v10395_v23  ;;  %v14547_v23 = vld [vmem:[%s19042_s4 + $0x90] sm:$0xff] }
  0x40   :  { %1238 = vmatpush.bf16.msrb.mxu0 %v14439_v26  ;;  %v10337_v26 = vld [vmem:[%s19045_s0 + $0x78] sm:$0x30] }
  0x41   :  { %1083 = vmatpush.bf16.msra.mxu3 %v14449_v27  ;;  %1492 = vmatpush.bf16.msra.mxu1 %v14487_v51  ;;  %v10394_v27 = vor.u32 %v14426_v21, %v10393_v20  ;;  %v14552_v20 = vld [vmem:[%s19042_s4 + $0xb8] sm:$0xff] }
  0x42   :  { %1214 = vmatpush.bf16.msra.mxu2 %v14436_v30  ;;  %v10340_v30 = vor.u32 %v14443_v25, %v10337_v26  ;;  %v14496_v21 = vld [vmem:[%s19042_s4 + $0x18] sm:$0xff]  ;;  %v14495_v25 = vld [vmem:[%s19042_s4 + $0x10] sm:$0xff] }
  0x43   :  { %834 = vmatmul.bf16.vlgmr.msrb.gmra.mxu2 %v10228_v42  ;;  %v14515_v42 = vld [vmem:[%s19042_s4 + $0x90] sm:$0xff] }
  0x44   :  { %1239 = vmatpush.bf16.msrb.mxu0 %v14438_v28  ;;  %705 = vmatmul.bf16.gmra.mxu3 %v10170_v44  ;;  %v10336_v28 = vor.u32 %v14444_v19, %v10335_v16  ;;  %v14427_v44 = vld [vmem:[%s19045_s0 + $0x54] sm:$0xf]  ;;  %v14548_v19 = vld [vmem:[%s19042_s4 + $0x98] sm:$0xff]  ;;  %v10567_v26 = vld [vmem:[%s19045_s0 + $0x70] sm:$0xf] }
  0x45   :  { %1084 = vmatpush.bf16.msra.mxu3 %v14448_v31  ;;  %1493 = vmatpush.bf16.msra.mxu1 %v14486_v56  ;;  %v14466_v31 = vld [vmem:[%s19042_s4 + $0x28] sm:$0xff] }
  0x46   :  { %1215 = vmatpush.bf16.msra.mxu2 %v14435_v41  ;;  %v10401_v41 = vld [vmem:[%s19045_s0 + $0x50] sm:$0xf] }
  0x48   :  { %1240 = vmatpush.bf16.msrb.mxu0 %v14437_v32  ;;  %v14478_v32 = vld [vmem:[%s19042_s4 + $0x68] sm:$0xff] }
  0x49   :  { %1085 = vmatpush.bf16.msra.mxu3 %v14447_v43  ;;  %1494 = vmatpush.bf16.msra.mxu1 %v14485_v3  ;;  %v14428_v43 = vld [vmem:[%s19045_s0 + $0x54] sm:$0x30]  ;;  %v10559_v3 = vld [vmem:[%s19045_s0 + $0x60] sm:$0xf] }
  0x4a   :  { %1216 = vmatpush.bf16.msra.mxu2 %v14434_v47  ;;  %v14474_v47 = vld [vmem:[%s19045_s0 + $0x84] sm:$0xf0]  ;;  %v10402_v51 = vor.u32 %v14428_v43, %v10401_v41 }
  0x4b   :  { %10289 = vmatmul.msk.bf16.vlgmr.msra.gmra.mxu0 %vm281_vm2, %v10232_v45  ;;  %v10403_v45 = vld [vmem:[%s19045_s0 + $0x58] sm:$0x30] }
  0x4c   :  { %10224 = vmatmul.msk.bf16.gmra.mxu1 %vm281_vm2, %v10174_v46  ;;  %1625 = vmatpush.bf16.msra.mxu0 %v14472_v52  ;;  %v10493_v46 = vld [vmem:[%s19045_s0 + $0x80] sm:$0xf]  ;;  %v14514_v52 = vld [vmem:[%s19042_s4 + $0x88] sm:$0xff] }
  0x4d   :  { %1086 = vmatpush.bf16.msra.mxu3 %v14446_v48  ;;  %v14463_v48 = vld [vmem:[%s19042_s4 + $0x10] sm:$0xff] }
  0x4e   :  { %1217 = vmatpush.bf16.msra.mxu2 %v14433_v50  ;;  %v10495_v50 = vld [vmem:[%s19045_s0 + $0x88] sm:$0xf0] }
  0x4f   :  { %v10498_v56 = vor.u32 %v14473_v49, %v10495_v50 }
  0x50   :  { %1626 = vmatpush.bf16.msra.mxu0 %v14471_v11 }
  0x51   :  { %1087 = vmatpush.bf16.msra.mxu3 %v14445_v53  ;;  %v10406_v53 = vor.u32 %v14427_v44, %v10403_v45  ;;  %v14545_v44 = vld [vmem:[%s19042_s4 + $0x80] sm:$0xff] }
  0x52   :  { %1218 = vmatpush.bf16.msra.mxu2 %v14432_v55  ;;  %v14517_v55 = vld [vmem:[%s19042_s4 + $0xa0] sm:$0xff] }
  0x53   :  { %839 = vmatmul.bf16.gmra.mxu2 %v10236_v4  ;;  %v14458_v4 = vld [vmem:[%s19045_s0 + $0x64] sm:$0xf0] }
  0x54   :  { %1088 = vmatmul.bf16.vlgmr.msra.gmra.mxu3 %v10328_v6  ;;  %1627 = vmatpush.bf16.msra.mxu0 %v14470_v14  ;;  %v14457_v6 = vld [vmem:[%s19045_s0 + $0x64] sm:$0xf]  ;;  %v10560_v11 = vor.u32 %v14458_v4, %v10559_v3 }
  0x55   :  { %1468 = vmatpush.bf16.msrb.mxu3 %v14484_v54  ;;  %v10494_v54 = vor.u32 %v14474_v47, %v10493_v46  ;;  %v14493_v46 = vld [vmem:[%s19042_s4] sm:$0xff]  ;;  %v14532_v47 = vld [vmem:[%s19042_s4 + $0x38] sm:$0xff] }
  0x56   :  { %1219 = vmatpush.bf16.msra.mxu2 %v14431_v2  ;;  %v10501_v2 = vld [vmem:[%s19045_s0 + $0x90] sm:$0xf] }
  0x58   :  { %1628 = vmatpush.bf16.msra.mxu0 %v14469_v18  ;;  %v14509_v18 = vld [vmem:[%s19042_s4 + $0x60] sm:$0xff] }
  0x59   :  { %1469 = vmatpush.bf16.msrb.mxu3 %v14483_v61  ;;  %v14500_v61 = vld [vmem:[%s19042_s4 + $0x38] sm:$0xff] }
  0x5a   :  { %1220 = vmatpush.bf16.msra.mxu2 %v14430_v9  ;;  %v10503_v9 = vld [vmem:[%s19045_s0 + $0x98] sm:$0x30] }
  0x5b   :  { %10290 = vmatmul.msk.bf16.gmra.mxu0 %vm281_vm2, %v10240_v5  ;;  %v14476_v5 = vld [vmem:[%s19045_s0 + $0x94] sm:$0x30] }
  0x5c   :  { %10389 = vmatmul.msk.bf16.vlgmr.msrb.gmra.mxu1 %vm281_vm2, %v10332_v7  ;;  %v10561_v7 = vld [vmem:[%s19045_s0 + $0x68] sm:$0xf0] }
  0x5d   :  { %1470 = vmatpush.bf16.msrb.mxu3 %v14482_v8  ;;  %1879 = vmatpush.bf16.msrb.mxu1 %v14520_v33  ;;  %v14475_v8 = vld [vmem:[%s19045_s0 + $0x94] sm:$0xf]  ;;  %v10564_v14 = vor.u32 %v14457_v6, %v10561_v7  ;;  %v10659_v33 = vld [vmem:[%s19045_s0 + $0xa0] sm:$0xf] }
  0x5e   :  { %1221 = vmatpush.bf16.msra.mxu2 %v14429_v12  ;;  %v14510_v12 = vld [vmem:[%s19042_s4 + $0x68] sm:$0xff]  ;;  %v10506_v16 = vor.u32 %v14475_v8, %v10503_v9  ;;  %v14533_v6 = vld [vmem:[%s19042_s4 + $0x40] sm:$0xff] }
  0x5f   :  { %v14529_v9 = vld [vmem:[%s19042_s4 + $0x20] sm:$0xff] }
  0x61   :  { %1471 = vmatpush.bf16.msrb.mxu3 %v14481_v10  ;;  %1880 = vmatpush.bf16.msrb.mxu1 %v14519_v36  ;;  %v14498_v10 = vld [vmem:[%s19042_s4 + $0x28] sm:$0xff] }
  0x62   :  { %1602 = vmatpush.bf16.msrb.mxu2 %v14468_v13  ;;  %v10502_v13 = vor.u32 %v14476_v5, %v10501_v2  ;;  %v10661_v36 = vld [vmem:[%s19045_s0 + $0xa8] sm:$0xf0] }
  0x63   :  { %1222 = vmatmul.bf16.vlgmr.msra.gmra.mxu2 %v10394_v27  ;;  %v14460_v27 = vld [vmem:[%s19045_s0 + $0x74] sm:$0x30] }
  0x64   :  { %1093 = vmatmul.bf16.gmra.mxu3 %v10336_v28  ;;  %v14459_v28 = vld [vmem:[%s19045_s0 + $0x74] sm:$0xf] }
  0x65   :  { %1472 = vmatpush.bf16.msrb.mxu3 %v14480_v15  ;;  %1881 = vmatpush.bf16.msrb.mxu1 %v14518_v40  ;;  %v14501_v15 = vld [vmem:[%s19042_s4 + $0x40] sm:$0xff] }
  0x66   :  { %1603 = vmatpush.bf16.msrb.mxu2 %v14467_v17  ;;  %v14497_v17 = vld [vmem:[%s19042_s4 + $0x20] sm:$0xff] }
  0x69   :  { %1473 = vmatpush.bf16.msrb.mxu3 %v14479_v24  ;;  %1882 = vmatpush.bf16.msrb.mxu1 %v14517_v55  ;;  %v14551_v24 = vld [vmem:[%s19042_s4 + $0xb0] sm:$0xff] }
  0x6a   :  { %1604 = vmatpush.bf16.msrb.mxu2 %v14466_v31  ;;  %v10667_v55 = vld [vmem:[%s19045_s0 + $0xb0] sm:$0xf] }
  0x6b   :  { %10455 = vmatmul.msk.bf16.vlgmr.msrb.gmra.mxu0 %vm281_vm2, %v10398_v29  ;;  %v14546_v29 = vld [vmem:[%s19042_s4 + $0x88] sm:$0xff] }
  0x6c   :  { %10390 = vmatmul.msk.bf16.gmra.mxu1 %vm281_vm2, %v10340_v30  ;;  %2013 = vmatpush.bf16.msrb.mxu0 %v14504_v37  ;;  %v14550_v30 = vld [vmem:[%s19042_s4 + $0xa8] sm:$0xff] }
  0x6d   :  { %1474 = vmatpush.bf16.msrb.mxu3 %v14478_v32  ;;  %v10569_v32 = vld [vmem:[%s19045_s0 + $0x78] sm:$0x30]  ;;  %v14494_v37 = vld [vmem:[%s19042_s4 + $0x8] sm:$0xff] }
  0x6e   :  { %1605 = vmatpush.bf16.msrb.mxu2 %v14465_v34  ;;  %v14506_v34 = vld [vmem:[%s19045_s0 + $0xa4] sm:$0xf0]  ;;  %v10572_v40 = vor.u32 %v14459_v28, %v10569_v32  ;;  %v14492_v28 = vld [vmem:[%s19045_s0 + $0x94] sm:$0x30]  ;;  %v10735_v32 = vld [vmem:[%s19045_s0 + $0x98] sm:$0x30] }
  0x6f   :  { %v10660_v41 = vor.u32 %v14506_v34, %v10659_v33  ;;  %v10825_v33 = vld [vmem:[%s19045_s0 + $0xc0] sm:$0xf]  ;;  %v14582_v34 = vld [vmem:[%s19042_s4 + $0xa8] sm:$0xff] }
  0x70   :  { %2014 = vmatpush.bf16.msrb.mxu0 %v14503_v60  ;;  %v14490_v60 = vld [vmem:[%s19045_s0 + $0x84] sm:$0xf0] }
  0x71   :  { %1475 = vmatpush.bf16.msrb.mxu3 %v14477_v35  ;;  %v14505_v35 = vld [vmem:[%s19045_s0 + $0xa4] sm:$0xf] }
  0x72   :  { %1606 = vmatpush.bf16.msrb.mxu2 %v14464_v39  ;;  %v14536_v39 = vld [vmem:[%s19042_s4 + $0x58] sm:$0xff]  ;;  %v10664_v43 = vor.u32 %v14505_v35, %v10661_v36  ;;  %v14538_v36 = vld [vmem:[%s19045_s0 + $0xc4] sm:$0xf0] }
  0x73   :  { %1227 = vmatmul.bf16.gmra.mxu2 %v10402_v51  ;;  %v14531_v51 = vld [vmem:[%s19042_s4 + $0x30] sm:$0xff] }
  0x74   :  { %1476 = vmatmul.bf16.vlgmr.msrb.gmra.mxu3 %v10494_v54  ;;  %2015 = vmatpush.bf16.msrb.mxu0 %v14502_v0  ;;  %v14507_v0 = vld [vmem:[%s19045_s0 + $0xb4] sm:$0xf] }
  0x75   :  { %1856 = vmatpush.bf16.msra.mxu3 %v14516_v38  ;;  %v10568_v38 = vor.u32 %v14460_v27, %v10567_v26  ;;  %v10733_v26 = vld [vmem:[%s19045_s0 + $0x90] sm:$0xf] }
  0x76   :  { %1607 = vmatpush.bf16.msrb.mxu2 %v14463_v48  ;;  %v14544_v48 = vld [vmem:[%s19042_s4 + $0x78] sm:$0xff] }
  0x78   :  { %2016 = vmatpush.bf16.msrb.mxu0 %v14501_v15 }
  0x79   :  { %1857 = vmatpush.bf16.msra.mxu3 %v14515_v42  ;;  %v14549_v42 = vld [vmem:[%s19042_s4 + $0xa0] sm:$0xff] }
  0x7a   :  { %1608 = vmatpush.bf16.msrb.mxu2 %v14462_v57  ;;  %v14534_v57 = vld [vmem:[%s19042_s4 + $0x48] sm:$0xff] }
  0x7b   :  { %10456 = vmatmul.msk.bf16.gmra.mxu0 %vm281_vm2, %v10406_v53  ;;  %v14543_v53 = vld [vmem:[%s19042_s4 + $0x70] sm:$0xff] }
  0x7c   :  { %10555 = vmatmul.msk.bf16.vlgmr.msra.gmra.mxu1 %vm281_vm2, %v10498_v56  ;;  %v14530_v56 = vld [vmem:[%s19042_s4 + $0x28] sm:$0xff] }
  0x7d   :  { %1858 = vmatpush.bf16.msra.mxu3 %v14514_v52  ;;  %2267 = vmatpush.bf16.msra.mxu1 %v14552_v20  ;;  %v14535_v52 = vld [vmem:[%s19042_s4 + $0x50] sm:$0xff] }
  0x7e   :  { %1609 = vmatpush.bf16.msrb.mxu2 %v14461_v59  ;;  %v10725_v59 = vld [vmem:[%s19045_s0 + $0x80] sm:$0xf] }
  0x7f   :  { %v10726_v3 = vor.u32 %v14490_v60, %v10725_v59  ;;  %v14581_v59 = vld [vmem:[%s19042_s4 + $0xa0] sm:$0xff] }
  0x81   :  { %1859 = vmatpush.bf16.msra.mxu3 %v14513_v58  ;;  %2268 = vmatpush.bf16.msra.mxu1 %v14551_v24  ;;  %v14508_v58 = vld [vmem:[%s19045_s0 + $0xb4] sm:$0x30]  ;;  %v14527_v24 = vld [vmem:[%s19042_s4 + $0x10] sm:$0xff] }
  0x82   :  { %1990 = vmatpush.bf16.msra.mxu2 %v14500_v61  ;;  %v14489_v61 = vld [vmem:[%s19045_s0 + $0x84] sm:$0xf]  ;;  %v10668_v4 = vor.u32 %v14508_v58, %v10667_v55  ;;  %v14564_v58 = vld [vmem:[%s19042_s4 + $0x38] sm:$0xff] }
  0x83   :  { %1610 = vmatmul.bf16.vlgmr.msrb.gmra.mxu2 %v10560_v11  ;;  %v14541_v11 = vld [vmem:[%s19042_s4 + $0x60] sm:$0xff] }
  0x84   :  { %1481 = vmatmul.bf16.gmra.mxu3 %v10502_v13  ;;  %v14528_v13 = vld [vmem:[%s19042_s4 + $0x18] sm:$0xff] }
  0x85   :  { %1860 = vmatpush.bf16.msra.mxu3 %v14512_v62  ;;  %2269 = vmatpush.bf16.msra.mxu1 %v14550_v30  ;;  %v10727_v62 = vld [vmem:[%s19045_s0 + $0x88] sm:$0xf0] }
  0x86   :  { %1991 = vmatpush.bf16.msra.mxu2 %v14499_v63  ;;  %v14542_v63 = vld [vmem:[%s19042_s4 + $0x68] sm:$0xff]  ;;  %v10730_v5 = vor.u32 %v14489_v61, %v10727_v62  ;;  %v14576_v61 = vld [vmem:[%s19042_s4 + $0x78] sm:$0xff] }
  0x87   :  { %v14578_v30 = vld [vmem:[%s19042_s4 + $0x88] sm:$0xff] }
  0x88   :  { %v15903_v31 = vpop.f32.mrf.mxu0 }
  0x89   :  { %1861 = vmatpush.bf16.msra.mxu3 %v14511_v1  ;;  %v15877_v22 = vpop.f32.mrf.mxu1  ;;  %2270 = vmatpush.bf16.msra.mxu1 %v14549_v42  ;;  %v10669_v1 = vld [vmem:[%s19045_s0 + $0xb8] sm:$0x30] }
  0x8a   :  { %1992 = vmatpush.bf16.msra.mxu2 %v14498_v10  ;;  %v10672_v8 = vor.u32 %v14507_v0, %v10669_v1 }
  0x8b   :  { %10621 = vmatmul.msk.bf16.vlgmr.msra.gmra.mxu0 %vm281_vm2, %v10564_v14  ;;  %v14584_v14 = vld [vmem:[%s19042_s4 + $0xb8] sm:$0xff] }
  0x8c   :  { %10556 = vmatmul.msk.bf16.gmra.mxu1 %vm281_vm2, %v10506_v16  ;;  %2401 = vmatpush.bf16.msra.mxu0 %v14536_v39 }
  0x8d   :  { %1862 = vmatpush.bf16.msra.mxu3 %v14510_v12  ;;  %v14580_v12 = vld [vmem:[%s19042_s4 + $0x98] sm:$0xff] }
  0x8e   :  { %1993 = vmatpush.bf16.msra.mxu2 %v14497_v17 }
  0x90   :  { %v15945_v50 = vpop.f32.mrf.mxu0  ;;  %2402 = vmatpush.bf16.msra.mxu0 %v14535_v52 }
  0x91   :  { %1863 = vmatpush.bf16.msra.mxu3 %v14509_v18  ;;  %v14579_v18 = vld [vmem:[%s19042_s4 + $0x90] sm:$0xff] }
  0x92   :  { %1994 = vmatpush.bf16.msra.mxu2 %v14496_v21  ;;  %v16024_v21 = vld [vmem:[%s19048_s5] ss:$0 sm:$0xff] }
  0x93   :  { %1615 = vmatmul.bf16.gmra.mxu2 %v10568_v38  ;;  %v14568_v38 = vld [vmem:[%s19042_s4 + $0x58] sm:$0xff] }
  0x94   :  { %1864 = vmatmul.bf16.vlgmr.msra.gmra.mxu3 %v10660_v41  ;;  %2403 = vmatpush.bf16.msra.mxu0 %v14534_v57  ;;  %v10827_v41 = vld [vmem:[%s19045_s0 + $0xc8] sm:$0xf0] }
  0x95   :  { %2244 = vmatpush.bf16.msrb.mxu3 %v14548_v19  ;;  %v14583_v19 = vld [vmem:[%s19042_s4 + $0xb0] sm:$0xff] }
  0x96   :  { %1995 = vmatpush.bf16.msra.mxu2 %v14495_v25 }
  0x97   :  { %v316_v49 = vpop.f32.mrf.mxu3 }
  0x98   :  { %2404 = vmatpush.bf16.msra.mxu0 %v14533_v6 }
  0x99   :  { %2245 = vmatpush.bf16.msrb.mxu3 %v14547_v23  ;;  %v15932_v45 = vpop.f32.mrf.mxu1 }
  0x9a   :  { %1996 = vmatpush.bf16.msra.mxu2 %v14494_v37  ;;  %v14526_v37 = vld [vmem:[%s19042_s4 + $0x8] sm:$0xff] }
  0x9b   :  { %10622 = vmatmul.msk.bf16.gmra.mxu0 %vm281_vm2, %v10572_v40  ;;  %v14537_v40 = vld [vmem:[%s19045_s0 + $0xc4] sm:$0xf] }
  0x9c   :  { %10721 = vmatmul.msk.bf16.vlgmr.msrb.gmra.mxu1 %vm281_vm2, %v10664_v43  ;;  %v10830_v52 = vor.u32 %v14537_v40, %v10827_v41  ;;  %v14565_v41 = vld [vmem:[%s19042_s4 + $0x40] sm:$0xff] }
  0x9d   :  { %2246 = vmatpush.bf16.msrb.mxu3 %v14546_v29  ;;  %2655 = vmatpush.bf16.msrb.mxu1 %v14584_v14  ;;  %v14491_v29 = vld [vmem:[%s19045_s0 + $0x94] sm:$0xf]  ;;  %v10833_v14 = vld [vmem:[%s19045_s0 + $0xd0] sm:$0xf] }
  0x9e   :  { %1997 = vmatpush.bf16.msra.mxu2 %v14493_v46  ;;  %v14577_v46 = vld [vmem:[%s19042_s4 + $0x80] sm:$0xff] }
  0x9f   :  { %v318_v2 = vpop.f32.mrf.mxu3 }
  0xa1   :  { %2247 = vmatpush.bf16.msrb.mxu3 %v14545_v44  ;;  %v15956_v54 = vpop.f32.mrf.mxu1  ;;  %2656 = vmatpush.bf16.msrb.mxu1 %v14583_v19  ;;  %v14522_v19 = vld [vmem:[%s19045_s0 + $0xa4] sm:$0xf0] }
  0xa2   :  { %2378 = vmatpush.bf16.msrb.mxu2 %v14532_v47  ;;  %v10738_v47 = vor.u32 %v14491_v29, %v10735_v32  ;;  %v10835_v32 = vld [vmem:[%s19045_s0 + $0xd8] sm:$0x30] }
  0xa3   :  { %1998 = vmatmul.bf16.vlgmr.msra.gmra.mxu2 %v10726_v3  ;;  %v14575_v3 = vld [vmem:[%s19042_s4 + $0x70] sm:$0xff] }
  0xa4   :  { %1869 = vmatmul.bf16.gmra.mxu3 %v10668_v4  ;;  %v14567_v4 = vld [vmem:[%s19042_s4 + $0x50] sm:$0xff] }
  0xa5   :  { %2248 = vmatpush.bf16.msrb.mxu3 %v14544_v48  ;;  %v10826_v48 = vor.u32 %v14538_v36, %v10825_v33  ;;  %2657 = vmatpush.bf16.msrb.mxu1 %v14582_v34  ;;  %v14561_v33 = vld [vmem:[%s19042_s4 + $0x20] sm:$0xff] }
  0xa6   :  { %2379 = vmatpush.bf16.msrb.mxu2 %v14531_v51  ;;  %v297_v15 = vpop.f32.mrf.mxu2 }
  0xa7   :  { %v317_v16 = vadd.f32 %v316_v49, %v297_v15  ;;  %v16013_v17 = vpop.f32.mrf.mxu3  ;;  %v10891_v15 = vld [vmem:[%s19045_s0 + $0xa0] sm:$0xf] }
  0xa8   :  { %v431_v7 = vpop.f32.mrf.mxu0  ;;  %v10892_v36 = vor.u32 %v14522_v19, %v10891_v15  ;;  %v10901_v15 = vld [vmem:[%s19045_s0 + $0xb8] sm:$0x30]  ;;  %v14614_v19 = vld [vmem:[%s19042_s4 + $0xa8] sm:$0xff] }
  0xa9   :  { %2249 = vmatpush.bf16.msrb.mxu3 %v14543_v53  ;;  %v15997_v10 = vpop.f32.mrf.mxu1  ;;  %v432_v20 = vadd.f32 %v431_v7, %v317_v16  ;;  %v14525_v53 = vld [vmem:[%s19042_s4] sm:$0xff]  ;;  %2658 = vmatpush.bf16.msrb.mxu1 %v14581_v59  ;;  %v14574_v16 = vld [vmem:[%s19042_s4 + $0x68] sm:$0xff] }
  0xaa   :  { %2380 = vmatpush.bf16.msrb.mxu2 %v14530_v56 }
  0xab   :  { %10787 = vmatmul.msk.bf16.vlgmr.msrb.gmra.mxu0 %vm281_vm2, %v10730_v5  ;;  %v451_v27 = vadd.f32 %v15932_v45, %v432_v20  ;;  %v10734_v45 = vor.u32 %v14492_v28, %v10733_v26  ;;  %v14540_v20 = vld [vmem:[%s19045_s0 + $0xd4] sm:$0x30] }
  0xac   :  { %10722 = vmatmul.msk.bf16.gmra.mxu1 %vm281_vm2, %v10672_v8  ;;  %2789 = vmatpush.bf16.msrb.mxu0 %v14568_v38  ;;  %v14573_v38 = vld [vmem:[%s19042_s4 + $0x60] sm:$0xff] }
  0xad   :  { %2250 = vmatpush.bf16.msrb.mxu3 %v14542_v63  ;;  %v463_v35 = vadd.f32 %v16024_v21, %v451_v27 }
  0xae   :  { %2381 = vmatpush.bf16.msrb.mxu2 %v14529_v9  ;;  %v299_v39 = vpop.f32.mrf.mxu2 }
  0xaf   :  { %v471_v42 = vmul.f32 0.2, %v463_v35  ;;  %v319_v43 = vadd.f32 %v318_v2, %v299_v39  ;;  %v16069_v44 = vpop.f32.mrf.mxu3  ;;  %vm467_vm3 = vcmp.ge.f32.partialorder %v463_v35, 0.0  ;;  %v10834_v39 = vor.u32 %v14540_v20, %v10833_v14  ;;  %v14523_v14 = vld [vmem:[%s19045_s0 + $0xb4] sm:$0xf] }
  0xb0   :  { %v433_v23 = vpop.f32.mrf.mxu0  ;;  %2790 = vmatpush.bf16.msrb.mxu0 %v14567_v4 }
  0xb1   :  { %2251 = vmatpush.bf16.msrb.mxu3 %v14541_v11  ;;  %v16029_v25 = vpop.f32.mrf.mxu1  ;;  %v434_v49 = vadd.f32 %v433_v23, %v319_v43  ;;  %v475_v55 = vsel %vm467_vm3, %v463_v35, %v471_v42  ;;  %v14521_v23 = vld [vmem:[%s19045_s0 + $0xa4] sm:$0xf]  ;;  %v15126_v11 = vld [vmem:[%s19050_s9 + $0xe8] sm:$0xff] }
  0xb2   :  { %2382 = vmatpush.bf16.msrb.mxu2 %v14528_v13  ;;  %v479_v57 = vpack.c.bf16 %v475_v55, %v475_v55 }
  0xb3   :  { %v453_v60 = vadd.f32 %v15956_v54, %v434_v49  ;;  %2003 = vmatmul.bf16.gmra.mxu2 %v10734_v45  ;;  %v14563_v54 = vld [vmem:[%s19042_s4 + $0x30] sm:$0xff]  ;;  %v14560_v49 = vld [vmem:[%s19042_s4 + $0x18] sm:$0xff] }
  0xb4   :  { %2252 = vmatmul.bf16.vlgmr.msrb.gmra.mxu3 %v10826_v48  ;;  %482 = vst.msk [vmem:[#allocation2] sm:$0xf] %vm481_vm4, %v479_v57  ;;  %v14612_v48 = vld [vmem:[%s19042_s4 + $0x98] sm:$0xff] }
  0xb5   :  { %2632 = vmatpush.bf16.msra.mxu3 %v14580_v12  ;;  %v464_v62 = vadd.f32 %v16024_v21, %v453_v60  ;;  %v14562_v12 = vld [vmem:[%s19042_s4 + $0x28] sm:$0xff]  ;;  %v14611_v60 = vld [vmem:[%s19042_s4 + $0x90] sm:$0xff] }
  0xb6   :  { %2383 = vmatpush.bf16.msrb.mxu2 %v14527_v24  ;;  %v302_v63 = vpop.f32.mrf.mxu2  ;;  %v10893_v24 = vld [vmem:[%s19045_s0 + $0xa8] sm:$0xf0] }
  0xb7   :  { %v472_v0 = vmul.f32 0.2, %v464_v62  ;;  %v322_v1 = vadd.f32 %v16013_v17, %v302_v63  ;;  %v16097_v2 = vpop.f32.mrf.mxu3  ;;  %vm468_vm6 = vcmp.ge.f32.partialorder %v464_v62, 0.0  ;;  %v14566_v17 = vld [vmem:[%s19042_s4 + $0x48] sm:$0xff]  ;;  %v10896_v40 = vor.u32 %v14521_v23, %v10893_v24  ;;  %v14569_v24 = vld [vmem:[%s19045_s0 + $0xe4] sm:$0xf] }
  0xb8   :  { %v436_v51 = vpop.f32.mrf.mxu0  ;;  %2791 = vmatpush.bf16.msrb.mxu0 %v14566_v17 }
  0xb9   :  { %2633 = vmatpush.bf16.msra.mxu3 %v14579_v18  ;;  %v16077_v56 = vpop.f32.mrf.mxu1  ;;  %v437_v5 = vadd.f32 %v436_v51, %v322_v1  ;;  %v476_v7 = vsel %vm468_vm6, %v464_v62, %v472_v0  ;;  %v10126_v18 = vrot.slane %v479_v57, 9  ;;  %v14615_v0 = vld [vmem:[%s19042_s4 + $0xb0] sm:$0xff] }
  0xba   :  { %2384 = vmatpush.bf16.msrb.mxu2 %v14526_v37  ;;  %v16107_v9 = vpack.c.bf16 %v476_v7, %v476_v7  ;;  %v721_v51 = vadd.f32 %v16077_v56, %v16097_v2  ;;  %v14524_v7 = vld [vmem:[%s19045_s0 + $0xb4] sm:$0x30] }
  0xbb   :  { %10788 = vmatmul.msk.bf16.gmra.mxu0 %vm281_vm2, %v10738_v47  ;;  %v456_v13 = vadd.f32 %v15997_v10, %v437_v5 }
  0xbc   :  { %10887 = vmatmul.msk.bf16.vlgmr.msra.gmra.mxu1 %vm281_vm2, %v10830_v52  ;;  %v516_v10 = vrot.slane %v16107_v9, 5  ;;  %484 = vst.msk [vmem:[#allocation2 + $0x4] sm:$0x3] %vm483_vm8, %v16107_v9  ;;  %2792 = vmatpush.bf16.msrb.mxu0 %v14565_v41  ;;  %v10125_v57 = vrot.slane %v16107_v9, 11  ;;  %v14610_v9 = vld [vmem:[%s19042_s4 + $0x88] sm:$0xff]  ;;  %v14596_v41 = vld [vmem:[%s19042_s4 + $0x38] sm:$0xff] }
  0xbd   :  { %2634 = vmatpush.bf16.msra.mxu3 %v14578_v30  ;;  %v465_v26 = vadd.f32 %v16024_v21, %v456_v13  ;;  %v14539_v30 = vld [vmem:[%s19045_s0 + $0xd4] sm:$0xf] }
  0xbe   :  { %2385 = vmatpush.bf16.msrb.mxu2 %v14525_v53  ;;  %v304_v27 = vpop.f32.mrf.mxu2  ;;  %v517_v28 = vsel %vm16110_vm9, %v10126_v18, %v516_v10  ;;  %v518_v29 = vrot.slane %v516_v10, 4  ;;  %v14570_v10 = vld [vmem:[%s19045_s0 + $0xe4] sm:$0xf0] }
  0xbf   :  { %v324_v34 = vadd.f32 %v16069_v44, %v304_v27  ;;  %v16158_v35 = vpop.f32.mrf.mxu3  ;;  %519 = vrot.lane.b32.xlu2 %v517_v28, %s15212_s23  ;;  %vm469_vm10 = vcmp.ge.f32.partialorder %v465_v26, 0.0  ;;  %v473_v37 = vmul.f32 0.2, %v465_v26  ;;  %v10838_v44 = vor.u32 %v14539_v30, %v10835_v32  ;;  %v14557_v30 = vld [vmem:[%s19042_s4] sm:$0xff] }
  0xc0   :  { %v438_v6 = vpop.f32.mrf.mxu0  ;;  %521 = vrot.lane.b32.xlu0 %v518_v29, %s15212_s23  ;;  %v10993_v29 = vld [vmem:[%s19045_s0 + $0xe8] sm:$0xf0] }
  0xc1   :  { %2635 = vmatpush.bf16.msra.mxu3 %v14577_v46  ;;  %v16105_v8 = vpop.f32.mrf.mxu1  ;;  %v439_v42 = vadd.f32 %v438_v6, %v324_v34  ;;  %v477_v45 = vsel %vm469_vm10, %v465_v26, %v473_v37  ;;  %v10899_v6 = vld [vmem:[%s19045_s0 + $0xb0] sm:$0xf]  ;;  %v14600_v26 = vld [vmem:[%s19042_s4 + $0x58] sm:$0xff] }
  0xc2   :  { %2766 = vmatpush.bf16.msra.mxu2 %v14564_v58  ;;  %v485_v47 = vpack.c.bf16 %v477_v45, %v477_v45  ;;  %v723_v20 = vadd.f32 %v16105_v8, %v16158_v35  ;;  %v14609_v8 = vld [vmem:[%s19042_s4 + $0x80] sm:$0xff]  ;;  %v10900_v34 = vor.u32 %v14524_v7, %v10899_v6 }
  0xc3   :  { %v458_v52 = vadd.f32 %v16029_v25, %v439_v42  ;;  %2386 = vmatmul.bf16.vlgmr.msrb.gmra.mxu2 %v10892_v36  ;;  %v14616_v25 = vld [vmem:[%s19042_s4 + $0xb8] sm:$0xff]  ;;  %v10904_v36 = vor.u32 %v14523_v14, %v10901_v15  ;;  %v14613_v45 = vld [vmem:[%s19042_s4 + $0xa0] sm:$0xff]  ;;  %v11059_v15 = vld [vmem:[%s19045_s0 + $0xc8] sm:$0xf0] }
  0xc4   :  { %2257 = vmatmul.bf16.gmra.mxu3 %v10834_v39  ;;  %v495_v55 = vrot.slane %v485_v47, 7  ;;  %529 = vrot.lane.b32.xlu1 %v485_v47, %s15213_s18  ;;  %v11057_v7 = vld [vmem:[%s19045_s0 + $0xc0] sm:$0xf] }
  0xc5   :  { %2636 = vmatpush.bf16.msra.mxu3 %v14576_v61  ;;  %v466_v58 = vadd.f32 %v16024_v21, %v458_v52  ;;  %v14559_v61 = vld [vmem:[%s19042_s4 + $0x10] sm:$0xff]  ;;  %3043 = vmatpush.bf16.msra.mxu1 %v14616_v25 }
  0xc6   :  { %2767 = vmatpush.bf16.msra.mxu2 %v14563_v54  ;;  %v835_v56 = vpop.f32.mrf.mxu2  ;;  %v496_v59 = vsel %vm16181_vm13, %v10125_v57, %v495_v55  ;;  %v497_v17 = vrot.slane %v495_v55, 4 }
  0xc7   :  { %v706_v62 = vpop.f32.mrf.mxu3  ;;  %v836_v63 = vadd.f32 %v835_v56, %v721_v51  ;;  %vm470_vm14 = vcmp.ge.f32.partialorder %v466_v58, 0.0  ;;  %v474_v54 = vmul.f32 0.2, %v466_v58  ;;  %v14595_v51 = vld [vmem:[%s19042_s4 + $0x30] sm:$0xff] }
  0xc8   :  { %v854_v43 = vpop.f32.mrf.mxu0  ;;  %500 = vrot.lane.b32.xlu0 %v496_v59, %s15214_s1  ;;  %v14599_v56 = vld [vmem:[%s19042_s4 + $0x50] sm:$0xff] }
  0xc9   :  { %2637 = vmatpush.bf16.msra.mxu3 %v14575_v3  ;;  %v16168_v46 = vpop.f32.mrf.mxu1  ;;  %v855_v1 = vadd.f32 %v854_v43, %v836_v63  ;;  %v478_v3 = vsel %vm470_vm14, %v466_v58, %v474_v54  ;;  %3044 = vmatpush.bf16.msra.mxu1 %v14615_v0  ;;  %v14606_v0 = vld [vmem:[%s19042_s4 + $0x68] sm:$0xff] }
  0xca   :  { %2768 = vmatpush.bf16.msra.mxu2 %v14562_v12  ;;  %v486_v5 = vpack.c.bf16 %v478_v3, %v478_v3  ;;  %v14558_v12 = vld [vmem:[%s19042_s4 + $0x8] sm:$0xff]  ;;  %v726_v47 = vadd.f32 %v16168_v46, %v706_v62  ;;  %v14607_v46 = vld [vmem:[%s19042_s4 + $0x70] sm:$0xff]  ;;  %v14572_v3 = vld [vmem:[%s19045_s0 + $0xf4] sm:$0x30] }
  0xcb   :  { %10953 = vmatmul.msk.bf16.vlgmr.msra.gmra.mxu0 %vm281_vm2, %v10896_v40  ;;  %v864_v13 = vadd.f32 %v16024_v21, %v855_v1  ;;  %v10996_v40 = vor.u32 %v14569_v24, %v10993_v29 }
  0xcc   :  { %10888 = vmatmul.msk.bf16.gmra.mxu1 %vm281_vm2, %v10838_v44  ;;  %v498_v18 = vrot.slane %v486_v5, 7  ;;  %531 = vrot.lane.b32.xlu2 %v486_v5, %s15213_s18  ;;  %v14608_v44 = vld [vmem:[%s19042_s4 + $0x78] sm:$0xff]  ;;  %v14598_v5 = vld [vmem:[%s19042_s4 + $0x48] sm:$0xff] }
  0xcd   :  { %2638 = vmatpush.bf16.msra.mxu3 %v14574_v16  ;;  %v10991_v16 = vld [vmem:[%s19045_s0 + $0xe0] sm:$0xf]  ;;  %vm868_vm15 = vcmp.ge.f32.partialorder %v864_v13, 0.0  ;;  %v872_v23 = vmul.f32 0.2, %v864_v13  ;;  %3177 = vmatpush.bf16.msra.mxu0 %v14600_v26  ;;  %v14644_v26 = vld [vmem:[%s19042_s4 + $0x98] sm:$0xff] }
  0xce   :  { %2769 = vmatpush.bf16.msra.mxu2 %v14561_v33  ;;  %v837_v27 = vpop.f32.mrf.mxu2  ;;  %v499_v28 = vsel %vm16181_vm13, %v497_v17, %v498_v18  ;;  %v10992_v37 = vor.u32 %v14570_v10, %v10991_v16  ;;  %3045 = vmatpush.bf16.msra.mxu1 %v14614_v19  ;;  %v14593_v16 = vld [vmem:[%s19042_s4 + $0x20] sm:$0xff]  ;;  %v14571_v18 = vld [vmem:[%s19045_s0 + $0xf4] sm:$0xf] }
  0xcf   :  { %v708_v32 = vpop.f32.mrf.mxu3  ;;  %v838_v33 = vadd.f32 %v837_v27, %v723_v20  ;;  %502 = vrot.lane.b32.xlu1 %v499_v28, %s15214_s1  ;;  %v876_v35 = vsel %vm868_vm15, %v864_v13, %v872_v23  ;;  %v14605_v10 = vld [vmem:[%s19042_s4 + $0x60] sm:$0xff] }
  0xd0   :  { %v856_v2 = vpop.f32.mrf.mxu0  ;;  %v880_v43 = vpack.c.bf16 %v876_v35, %v876_v35 }
  0xd1   :  { %2639 = vmatpush.bf16.msra.mxu3 %v14573_v38  ;;  %v16205_v4 = vpop.f32.mrf.mxu1  ;;  %v857_v38 = vadd.f32 %v856_v2, %v838_v33  ;;  %3178 = vmatpush.bf16.msra.mxu0 %v14599_v56  ;;  %v10999_v2 = vld [vmem:[%s19045_s0 + $0xf0] sm:$0xf] }
  0xd2   :  { %2770 = vmatpush.bf16.msra.mxu2 %v14560_v49  ;;  %3046 = vmatpush.bf16.msra.mxu1 %v14613_v45  ;;  %883 = vst.msk [vmem:[#allocation2 + $0x8] sm:$0xf] %vm481_vm4, %v880_v43  ;;  %v10292_v63 = vrot.slane %v880_v43, 9  ;;  %v728_v13 = vadd.f32 %v16205_v4, %v708_v32  ;;  %v11001_v4 = vld [vmem:[%s19045_s0 + $0xf8] sm:$0x30]  ;;  %v11000_v28 = vor.u32 %v14572_v3, %v10999_v2  ;;  %v14591_v45 = vld [vmem:[%s19042_s4 + $0x10] sm:$0xff] }
  0xd3   :  { %2391 = vmatmul.bf16.gmra.mxu2 %v10900_v34  ;;  %v11004_v32 = vor.u32 %v14571_v18, %v11001_v4  ;;  %v11067_v3 = vld [vmem:[%s19045_s0 + $0xd8] sm:$0x30] }
  0xd4   :  { %2640 = vmatmul.bf16.vlgmr.msra.gmra.mxu3 %v10992_v37 }
  0xd5   :  { %3020 = vmatpush.bf16.msrb.mxu3 %v14612_v48  ;;  %v865_v48 = vadd.f32 %v16024_v21, %v857_v38  ;;  %3179 = vmatpush.bf16.msra.mxu0 %v14598_v5  ;;  %v11157_v5 = vld [vmem:[%s19045_s0 + $0x100] sm:$0xf] }
  0xd6   :  { %2771 = vmatpush.bf16.msra.mxu2 %v14559_v61  ;;  %v840_v52 = vpop.f32.mrf.mxu2  ;;  %v14594_v61 = vld [vmem:[%s19042_s4 + $0x28] sm:$0xff] }
  0xd7   :  { %vm869_vm3 = vcmp.ge.f32.partialorder %v865_v48, 0.0  ;;  %v873_v49 = vmul.f32 0.2, %v865_v48  ;;  %v841_v57 = vadd.f32 %v840_v52, %v726_v47  ;;  %v1089_v58 = vpop.f32.mrf.mxu3  ;;  %v14648_v47 = vld [vmem:[%s19042_s4 + $0xb8] sm:$0xff]  ;;  %v14642_v52 = vld [vmem:[%s19042_s4 + $0x88] sm:$0xff] }
  0xd8   :  { %v859_v39 = vpop.f32.mrf.mxu0 }
  0xd9   :  { %3021 = vmatpush.bf16.msrb.mxu3 %v14611_v60  ;;  %v16259_v42 = vpop.f32.mrf.mxu1  ;;  %v877_v55 = vsel %vm869_vm3, %v865_v48, %v873_v49  ;;  %v860_v59 = vadd.f32 %v859_v39, %v841_v57 }
  0xda   :  { %2772 = vmatpush.bf16.msra.mxu2 %v14558_v12  ;;  %v16278_v25 = vpack.c.bf16 %v877_v55, %v877_v55  ;;  %v14553_v12 = vld [vmem:[%s19045_s0 + $0xc4] sm:$0xf]  ;;  %v1109_v37 = vadd.f32 %v16259_v42, %v1089_v58  ;;  %v14647_v55 = vld [vmem:[%s19042_s4 + $0xb0] sm:$0xff] }
  0xdb   :  { %10954 = vmatmul.msk.bf16.gmra.mxu0 %vm281_vm2, %v10904_v36  ;;  %v866_v1 = vadd.f32 %v16024_v21, %v860_v59  ;;  %v11062_v29 = vor.u32 %v14553_v12, %v11059_v15  ;;  %v14592_v36 = vld [vmem:[%s19042_s4 + $0x18] sm:$0xff]  ;;  %v14602_v12 = vld [vmem:[%s19045_s0 + $0x104] sm:$0xf0]  ;;  %v14601_v15 = vld [vmem:[%s19045_s0 + $0x104] sm:$0xf] }
  0xdc   :  { %11053 = vmatmul.msk.bf16.vlgmr.msrb.gmra.mxu1 %vm281_vm2, %v10996_v40  ;;  %v908_v54 = vrot.slane %v16278_v25, 5  ;;  %884 = vst.msk [vmem:[#allocation2 + $0xc] sm:$0x3] %vm483_vm8, %v16278_v25  ;;  %v10291_v35 = vrot.slane %v16278_v25, 11  ;;  %v14643_v40 = vld [vmem:[%s19042_s4 + $0x90] sm:$0xff] }
  0xdd   :  { %3022 = vmatpush.bf16.msrb.mxu3 %v14610_v9  ;;  %v14554_v9 = vld [vmem:[%s19045_s0 + $0xc4] sm:$0xf0]  ;;  %vm870_vm5 = vcmp.ge.f32.partialorder %v866_v1, 0.0  ;;  %v874_v14 = vmul.f32 0.2, %v866_v1  ;;  %3431 = vmatpush.bf16.msrb.mxu1 %v14648_v47 }
  0xde   :  { %2773 = vmatpush.bf16.msra.mxu2 %v14557_v30  ;;  %v909_v6 = vsel %vm16110_vm9, %v10292_v63, %v908_v54  ;;  %v842_v17 = vpop.f32.mrf.mxu2  ;;  %v11058_v24 = vor.u32 %v14554_v9, %v11057_v7  ;;  %v910_v39 = vrot.slane %v908_v54, 4  ;;  %v14556_v54 = vld [vmem:[%s19045_s0 + $0xd4] sm:$0x30]  ;;  %v14626_v47 = vld [vmem:[%s19042_s4 + $0x28] sm:$0xff] }
  0xdf   :  { %911 = vrot.lane.b32.xlu1 %v909_v6, %s15212_s23  ;;  %v843_v19 = vadd.f32 %v842_v17, %v728_v13  ;;  %v16332_v20 = vpop.f32.mrf.mxu3  ;;  %v878_v23 = vsel %vm870_vm5, %v866_v1, %v874_v14  ;;  %v14641_v1 = vld [vmem:[%s19042_s4 + $0x80] sm:$0xff]  ;;  %v14646_v6 = vld [vmem:[%s19042_s4 + $0xa8] sm:$0xff]  ;;  %v14632_v13 = vld [vmem:[%s19042_s4 + $0x58] sm:$0xff] }
  0xe0   :  { %v861_v60 = vpop.f32.mrf.mxu0  ;;  %v885_v27 = vpack.c.bf16 %v878_v23, %v878_v23  ;;  %v11158_v23 = vor.u32 %v14602_v12, %v11157_v5 }
  0xe1   :  { %3023 = vmatpush.bf16.msrb.mxu3 %v14609_v8  ;;  %v16286_v62 = vpop.f32.mrf.mxu1  ;;  %v862_v8 = vadd.f32 %v861_v60, %v843_v19  ;;  %v11065_v60 = vld [vmem:[%s19045_s0 + $0xd0] sm:$0xf]  ;;  %3432 = vmatpush.bf16.msrb.mxu1 %v14647_v55  ;;  %v14604_v55 = vld [vmem:[%s19045_s0 + $0x114] sm:$0x30] }
  0xe2   :  { %3154 = vmatpush.bf16.msrb.mxu2 %v14596_v41  ;;  %v892_v34 = vrot.slane %v885_v27, 7  ;;  %919 = vrot.lane.b32.xlu2 %v885_v27, %s15213_s18  ;;  %v14597_v41 = vld [vmem:[%s19042_s4 + $0x40] sm:$0xff]  ;;  %v1111_v7 = vadd.f32 %v16286_v62, %v16332_v20  ;;  %v11159_v62 = vld [vmem:[%s19045_s0 + $0x108] sm:$0xf0]  ;;  %v11066_v4 = vor.u32 %v14556_v54, %v11065_v60  ;;  %v14676_v54 = vld [vmem:[%s19042_s4 + $0x98] sm:$0xff] }
  0xe3   :  { %v867_v38 = vadd.f32 %v16024_v21, %v862_v8  ;;  %2774 = vmatmul.bf16.vlgmr.msra.gmra.mxu2 %v11058_v24  ;;  %3180 = vmatpush.bf16.msra.mxu0 %v14597_v41  ;;  %v11162_v27 = vor.u32 %v14601_v15, %v11159_v62  ;;  %v14638_v41 = vld [vmem:[%s19042_s4 + $0x68] sm:$0xff] }
  0xe4   :  { %2645 = vmatmul.bf16.gmra.mxu3 %v11000_v28  ;;  %v893_v43 = vsel %vm16181_vm13, %v10291_v35, %v892_v34  ;;  %v894_v59 = vrot.slane %v892_v34, 4  ;;  %v14628_v28 = vld [vmem:[%s19042_s4 + $0x38] sm:$0xff]  ;;  %v14639_v35 = vld [vmem:[%s19042_s4 + $0x70] sm:$0xff] }
  0xe5   :  { %3024 = vmatpush.bf16.msrb.mxu3 %v14608_v44  ;;  %vm871_vm6 = vcmp.ge.f32.partialorder %v867_v38, 0.0  ;;  %v875_v42 = vmul.f32 0.2, %v867_v38  ;;  %897 = vrot.lane.b32.xlu0 %v893_v43, %s15214_s1 }
  0xe6   :  { %3155 = vmatpush.bf16.msrb.mxu2 %v14595_v51  ;;  %v1223_v44 = vpop.f32.mrf.mxu2  ;;  %3433 = vmatpush.bf16.msrb.mxu1 %v14646_v6  ;;  %v11167_v6 = vld [vmem:[%s19045_s0 + $0x118] sm:$0x30] }
  0xe7   :  { %913 = vrot.lane.b32.xlu1 %v910_v39, %s15212_s23  ;;  %v1094_v48 = vpop.f32.mrf.mxu3  ;;  %v1224_v49 = vadd.f32 %v1223_v44, %v1109_v37  ;;  %v879_v51 = vsel %vm871_vm6, %v867_v38, %v875_v42  ;;  %v14631_v42 = vld [vmem:[%s19042_s4 + $0x50] sm:$0xff] }
  0xe8   :  { %v1242_v30 = vpop.f32.mrf.mxu0 }
  0xe9   :  { %3025 = vmatpush.bf16.msrb.mxu3 %v14607_v46  ;;  %v16337_v33 = vpop.f32.mrf.mxu1  ;;  %v886_v46 = vpack.c.bf16 %v879_v51, %v879_v51  ;;  %v1243_v57 = vadd.f32 %v1242_v30, %v1224_v49  ;;  %v14645_v30 = vld [vmem:[%s19042_s4 + $0xa0] sm:$0xff] }
  0xea   :  { %3156 = vmatpush.bf16.msrb.mxu2 %v14594_v61  ;;  %v14590_v61 = vld [vmem:[%s19042_s4 + $0x8] sm:$0xff]  ;;  %3434 = vmatpush.bf16.msrb.mxu1 %v14645_v30 }
  0xeb   :  { %11119 = vmatmul.msk.bf16.vlgmr.msrb.gmra.mxu0 %vm281_vm2, %v11062_v29  ;;  %v895_v56 = vrot.slane %v886_v46, 7  ;;  %921 = vrot.lane.b32.xlu2 %v886_v46, %s15213_s18  ;;  %v1252_v63 = vadd.f32 %v16024_v21, %v1243_v57  ;;  %v11165_v46 = vld [vmem:[%s19045_s0 + $0x110] sm:$0xf]  ;;  %v11223_v57 = vld [vmem:[%s19045_s0 + $0xe0] sm:$0xf] }
  0xec   :  { %11054 = vmatmul.msk.bf16.gmra.mxu1 %vm281_vm2, %v11004_v32  ;;  %3565 = vmatpush.bf16.msrb.mxu0 %v14632_v13  ;;  %v1114_v32 = vadd.f32 %v16337_v33, %v1094_v48  ;;  %v14627_v33 = vld [vmem:[%s19042_s4 + $0x30] sm:$0xff]  ;;  %v11166_v15 = vor.u32 %v14604_v55, %v11165_v46  ;;  %v11233_v46 = vld [vmem:[%s19045_s0 + $0xf8] sm:$0x30] }
  0xed   :  { %3026 = vmatpush.bf16.msrb.mxu3 %v14606_v0  ;;  %v14555_v0 = vld [vmem:[%s19045_s0 + $0xd4] sm:$0xf]  ;;  %v896_v2 = vsel %vm16181_vm13, %v894_v59, %v895_v56  ;;  %vm1256_vm7 = vcmp.ge.f32.partialorder %v1252_v63, 0.0  ;;  %v1260_v9 = vmul.f32 0.2, %v1252_v63  ;;  %v14630_v56 = vld [vmem:[%s19042_s4 + $0x48] sm:$0xff] }
  0xee   :  { %3157 = vmatpush.bf16.msrb.mxu2 %v14593_v16  ;;  %899 = vrot.lane.b32.xlu0 %v896_v2, %s15214_s1  ;;  %v1225_v14 = vpop.f32.mrf.mxu2  ;;  %v14589_v16 = vld [vmem:[%s19042_s4] sm:$0xff]  ;;  %v11070_v20 = vor.u32 %v14555_v0, %v11067_v3  ;;  %v11225_v2 = vld [vmem:[%s19045_s0 + $0xe8] sm:$0xf0] }
  0xef   :  { %v1096_v17 = vpop.f32.mrf.mxu3  ;;  %v1226_v18 = vadd.f32 %v1225_v14, %v1111_v7  ;;  %v1264_v19 = vsel %vm1256_vm7, %v1252_v63, %v1260_v9  ;;  %v14585_v63 = vld [vmem:[%s19045_s0 + $0xe4] sm:$0xf] }
  0xf0   :  { %v1244_v58 = vpop.f32.mrf.mxu0  ;;  %v1268_v8 = vpack.c.bf16 %v1264_v19, %v1264_v19  ;;  %3566 = vmatpush.bf16.msrb.mxu0 %v14631_v42  ;;  %v14625_v3 = vld [vmem:[%s19042_s4 + $0x20] sm:$0xff]  ;;  %v11228_v62 = vor.u32 %v14585_v63, %v11225_v2  ;;  %v14664_v63 = vld [vmem:[%s19042_s4 + $0x58] sm:$0xff] }
  0xf1   :  { %3027 = vmatpush.bf16.msrb.mxu3 %v14605_v10  ;;  %v16370_v25 = vpop.f32.mrf.mxu1  ;;  %v14640_v10 = vld [vmem:[%s19042_s4 + $0x78] sm:$0xff]  ;;  %v1245_v24 = vadd.f32 %v1244_v58, %v1226_v18  ;;  %v14637_v58 = vld [vmem:[%s19042_s4 + $0x60] sm:$0xff] }
  0xf2   :  { %3158 = vmatpush.bf16.msrb.mxu2 %v14592_v36  ;;  %1271 = vst.msk [vmem:[#allocation2 + $0x10] sm:$0xf] %vm481_vm4, %v1268_v8  ;;  %v10458_v49 = vrot.slane %v1268_v8, 9  ;;  %v1116_v0 = vadd.f32 %v16370_v25, %v1096_v17  ;;  %v14603_v25 = vld [vmem:[%s19045_s0 + $0x114] sm:$0xf]  ;;  %v14680_v8 = vld [vmem:[%s19042_s4 + $0xb8] sm:$0xff] }
  0xf3   :  { %v1253_v34 = vadd.f32 %v16024_v21, %v1245_v24  ;;  %2779 = vmatmul.bf16.gmra.mxu2 %v11066_v4  ;;  %v11170_v4 = vor.u32 %v14603_v25, %v11167_v6  ;;  %v14624_v24 = vld [vmem:[%s19042_s4 + $0x18] sm:$0xff] }
  0xf4   :  { %3028 = vmatmul.bf16.vlgmr.msrb.gmra.mxu3 %v11158_v23  ;;  %3567 = vmatpush.bf16.msrb.mxu0 %v14630_v56  ;;  %v14678_v56 = vld [vmem:[%s19042_s4 + $0xa8] sm:$0xff] }
  0xf5   :  { %3408 = vmatpush.bf16.msra.mxu3 %v14644_v26  ;;  %vm1257_vm10 = vcmp.ge.f32.partialorder %v1253_v34, 0.0  ;;  %v1261_v36 = vmul.f32 0.2, %v1253_v34 }
  0xf6   :  { %3159 = vmatpush.bf16.msrb.mxu2 %v14591_v45  ;;  %v1228_v37 = vpop.f32.mrf.mxu2 }
  0xf7   :  { %v1265_v38 = vsel %vm1257_vm10, %v1253_v34, %v1261_v36  ;;  %v1229_v39 = vadd.f32 %v1228_v37, %v1114_v32  ;;  %v14623_v34 = vld [vmem:[%s19042_s4 + $0x10] sm:$0xff]  ;;  %vm506_vm10 = vcmask 519424  }
  0xf8   :  { %v1247_v26 = vpop.f32.mrf.mxu0  ;;  %v16443_v43 = vpack.c.bf16 %v1265_v38, %v1265_v38  ;;  %v14679_v38 = vld [vmem:[%s19042_s4 + $0xb0] sm:$0xff] }
  0xf9   :  { %3409 = vmatpush.bf16.msra.mxu3 %v14643_v40  ;;  %v16424_v29 = vpop.f32.mrf.mxu1  ;;  %v1477_v40 = vpop.f32.mrf.mxu3  ;;  %v1248_v44 = vadd.f32 %v1247_v26, %v1229_v39 }
  0xfa   :  { %3160 = vmatpush.bf16.msrb.mxu2 %v14590_v61  ;;  %v1296_v51 = vrot.slane %v16443_v43, 5  ;;  %1272 = vst.msk [vmem:[#allocation2 + $0x14] sm:$0x3] %vm483_vm8, %v16443_v43  ;;  %v14586_v61 = vld [vmem:[%s19045_s0 + $0xe4] sm:$0xf0]  ;;  %v10457_v23 = vrot.slane %v16443_v43, 11  ;;  %v1497_v26 = vadd.f32 %v16424_v29, %v1477_v40 }
  0xfb   :  { %11120 = vmatmul.msk.bf16.gmra.mxu0 %vm281_vm2, %v11070_v20  ;;  %v11224_v13 = vor.u32 %v14586_v61, %v11223_v57  ;;  %v14674_v29 = vld [vmem:[%s19042_s4 + $0x88] sm:$0xff]  ;;  %v11323_v57 = vld [vmem:[%s19045_s0 + $0x120] sm:$0xf]  ;;  %v14672_v61 = vld [vmem:[%s19042_s4 + $0x78] sm:$0xff] }
  0xfc   :  { %11219 = vmatmul.msk.bf16.vlgmr.msra.gmra.mxu1 %vm281_vm2, %v11162_v27  ;;  %v1297_v59 = vsel %vm16110_vm9, %v10458_v49, %v1296_v51  ;;  %v1298_v60 = vrot.slane %v1296_v51, 4  ;;  %v14588_v51 = vld [vmem:[%s19045_s0 + $0xf4] sm:$0x30] }
  0xfd   :  { %3410 = vmatpush.bf16.msra.mxu3 %v14642_v52  ;;  %v1254_v52 = vadd.f32 %v16024_v21, %v1248_v44  ;;  %1299 = vrot.lane.b32.xlu2 %v1297_v59, %s15212_s23 }
  0xfe   :  { %3161 = vmatpush.bf16.msrb.mxu2 %v14589_v16  ;;  %v1230_v5 = vpop.f32.mrf.mxu2  ;;  %1301 = vrot.lane.b32.xlu0 %v1298_v60, %s15212_s23  ;;  %v14629_v16 = vld [vmem:[%s19042_s4 + $0x40] sm:$0xff] }
  0xff   :  { %vm1258_vm11 = vcmp.ge.f32.partialorder %v1254_v52, 0.0  ;;  %v1231_v7 = vadd.f32 %v1230_v5, %v1116_v0  ;;  %3568 = vmatpush.bf16.msrb.mxu0 %v14629_v16  ;;  %3819 = vmatpush.bf16.msra.mxu1 %v14680_v8  ;;  %v14633_v0 = vld [vmem:[%s19045_s0 + $0x124] sm:$0xf] }
 0x100   :  { %v1249_v45 = vpop.f32.mrf.mxu0 }
 0x101   :  { %3411 = vmatpush.bf16.msra.mxu3 %v14641_v1  ;;  %v16451_v48 = vpop.f32.mrf.mxu1  ;;  %v1262_v1 = vmul.f32 0.2, %v1254_v52  ;;  %v1479_v9 = vpop.f32.mrf.mxu3  ;;  %v1250_v17 = vadd.f32 %v1249_v45, %v1231_v7  ;;  %v11231_v45 = vld [vmem:[%s19045_s0 + $0xf0] sm:$0xf] }
 0x102   :  { %3542 = vmatpush.bf16.msra.mxu2 %v14628_v28  ;;  %v1499_v59 = vadd.f32 %v16451_v48, %v1479_v9  ;;  %v11325_v48 = vld [vmem:[%s19045_s0 + $0x128] sm:$0xf0]  ;;  %v11232_v5 = vor.u32 %v14588_v51, %v11231_v45  ;;  %v14677_v9 = vld [vmem:[%s19042_s4 + $0xa0] sm:$0xff]  ;;  %v14618_v45 = vld [vmem:[%s19045_s0 + $0x104] sm:$0xf0] }
 0x103   :  { %v1266_v12 = vsel %vm1258_vm11, %v1254_v52, %v1262_v1  ;;  %v1255_v27 = vadd.f32 %v16024_v21, %v1250_v17  ;;  %3162 = vmatmul.bf16.vlgmr.msrb.gmra.mxu2 %v11224_v13  ;;  %v14587_v52 = vld [vmem:[%s19045_s0 + $0xf4] sm:$0xf]  ;;  %3820 = vmatpush.bf16.msra.mxu1 %v14679_v38  ;;  %v14621_v1 = vld [vmem:[%s19042_s4] sm:$0xff]  ;;  %v14660_v17 = vld [vmem:[%s19042_s4 + $0x38] sm:$0xff]  ;;  %vm525_vm11 = vcmask 781824  }
 0x104   :  { %v1273_v14 = vpack.c.bf16 %v1266_v12, %v1266_v12  ;;  %3033 = vmatmul.bf16.gmra.mxu3 %v11166_v15  ;;  %v11236_v6 = vor.u32 %v14587_v52, %v11233_v46  ;;  %v14671_v15 = vld [vmem:[%s19042_s4 + $0x70] sm:$0xff]  ;;  %v11391_v52 = vld [vmem:[%s19045_s0 + $0x108] sm:$0xf0] }
 0x105   :  { %3412 = vmatpush.bf16.msra.mxu3 %v14640_v10  ;;  %v14675_v10 = vld [vmem:[%s19042_s4 + $0x90] sm:$0xff]  ;;  %vm1259_vm12 = vcmp.ge.f32.partialorder %v1255_v27, 0.0  ;;  %v1263_v30 = vmul.f32 0.2, %v1255_v27  ;;  %v14662_v46 = vld [vmem:[%s19042_s4 + $0x48] sm:$0xff] }
 0x106   :  { %3543 = vmatpush.bf16.msra.mxu2 %v14627_v33  ;;  %v1280_v20 = vrot.slane %v1273_v14, 7  ;;  %1307 = vrot.lane.b32.xlu1 %v1273_v14, %s15213_s18  ;;  %v1611_v32 = vpop.f32.mrf.mxu2  ;;  %v11328_v14 = vor.u32 %v14633_v0, %v11325_v48  ;;  %v11331_v38 = vld [vmem:[%s19045_s0 + $0x130] sm:$0xf] }
 0x107   :  { %v1612_v36 = vadd.f32 %v1611_v32, %v1497_v26  ;;  %v1267_v33 = vsel %vm1259_vm12, %v1255_v27, %v1263_v30  ;;  %3821 = vmatpush.bf16.msra.mxu1 %v14678_v56  ;;  %vm535_vm12 = vcmask 1044224  }
 0x108   :  { %v1630_v18 = vpop.f32.mrf.mxu0  ;;  %v1281_v28 = vsel %vm16181_vm13, %v10457_v23, %v1280_v20  ;;  %v1274_v37 = vpack.c.bf16 %v1267_v33, %v1267_v33  ;;  %v1282_v44 = vrot.slane %v1280_v20, 4  ;;  %v14670_v20 = vld [vmem:[%s19042_s4 + $0x68] sm:$0xff]  ;;  %v16621_v33 = vld [vmem:[%s19048_s5] ss:$0 sm:$0xff] }
 0x109   :  { %3413 = vmatpush.bf16.msra.mxu3 %v14639_v35  ;;  %v16504_v19 = vpop.f32.mrf.mxu1  ;;  %1285 = vrot.lane.b32.xlu0 %v1281_v28, %s15214_s1  ;;  %v1482_v35 = vpop.f32.mrf.mxu3  ;;  %v1631_v39 = vadd.f32 %v1630_v18, %v1612_v36  ;;  %v14663_v28 = vld [vmem:[%s19042_s4 + $0x50] sm:$0xff]  ;;  %v14708_v36 = vld [vmem:[%s19042_s4 + $0x98] sm:$0xff] }
 0x10a   :  { %3544 = vmatpush.bf16.msra.mxu2 %v14626_v47  ;;  %v1283_v42 = vrot.slane %v1274_v37, 7  ;;  %1309 = vrot.lane.b32.xlu2 %v1274_v37, %s15213_s18  ;;  %v14622_v47 = vld [vmem:[%s19042_s4 + $0x8] sm:$0xff]  ;;  %v1502_v18 = vadd.f32 %v16504_v19, %v1482_v35 }
 0x10b   :  { %11285 = vmatmul.msk.bf16.vlgmr.msra.gmra.mxu0 %vm281_vm2, %v11228_v62  ;;  %v1640_v49 = vadd.f32 %v16024_v21, %v1631_v39  ;;  %3822 = vmatpush.bf16.msra.mxu1 %v14677_v9  ;;  %v14636_v39 = vld [vmem:[%s19045_s0 + $0x134] sm:$0x30] }
 0x10c   :  { %11220 = vmatmul.msk.bf16.gmra.mxu1 %vm281_vm2, %v11170_v4  ;;  %v1284_v55 = vsel %vm16181_vm13, %v1282_v44, %v1283_v42  ;;  %3953 = vmatpush.bf16.msra.mxu0 %v14664_v63 }
 0x10d   :  { %3414 = vmatpush.bf16.msra.mxu3 %v14638_v41  ;;  %v14673_v41 = vld [vmem:[%s19042_s4 + $0x80] sm:$0xff]  ;;  %vm1644_vm14 = vcmp.ge.f32.partialorder %v1640_v49, 0.0  ;;  %v1648_v60 = vmul.f32 0.2, %v1640_v49 }
 0x10e   :  { %3545 = vmatpush.bf16.msra.mxu2 %v14625_v3  ;;  %1287 = vrot.lane.b32.xlu1 %v1284_v55, %s15214_s1 }
 0x10f   :  { %v1652_v25 = vsel %vm1644_vm14, %v1640_v49, %v1648_v60 }
 0x110   :  { %v1632_v40 = vpop.f32.mrf.mxu0  ;;  %v1656_v16 = vpack.c.bf16 %v1652_v25, %v1652_v25  ;;  %3954 = vmatpush.bf16.msra.mxu0 %v14663_v28 }
 0x111   :  { %3415 = vmatpush.bf16.msra.mxu3 %v14637_v58  ;;  %v16533_v43 = vpop.f32.mrf.mxu1  ;;  %v14634_v58 = vld [vmem:[%s19045_s0 + $0x124] sm:$0xf0]  ;;  %v1484_v2 = vpop.f32.mrf.mxu3 }
 0x112   :  { %3546 = vmatpush.bf16.msra.mxu2 %v14624_v24  ;;  %v11324_v7 = vor.u32 %v14634_v58, %v11323_v57  ;;  %1659 = vst.msk [vmem:[#allocation2 + $0x18] sm:$0xf] %vm481_vm4, %v1656_v16  ;;  %v1504_v49 = vadd.f32 %v16533_v43, %v1484_v2  ;;  %v14635_v43 = vld [vmem:[%s19045_s0 + $0x134] sm:$0xf]  ;;  %v11333_v57 = vld [vmem:[%s19045_s0 + $0x138] sm:$0x30] }
 0x113   :  { %3167 = vmatmul.bf16.gmra.mxu2 %v11232_v5  ;;  %v14707_v58 = vld [vmem:[%s19042_s4 + $0x90] sm:$0xff]  ;;  %v11336_v2 = vor.u32 %v14635_v43, %v11333_v57  ;;  %v14710_v57 = vld [vmem:[%s19042_s4 + $0xa8] sm:$0xff] }
 0x114   :  { %3416 = vmatmul.bf16.vlgmr.msra.gmra.mxu3 %v11324_v7  ;;  %3955 = vmatpush.bf16.msra.mxu0 %v14662_v46  ;;  %v14706_v7 = vld [vmem:[%s19042_s4 + $0x88] sm:$0xff] }
 0x115   :  { %3796 = vmatpush.bf16.msrb.mxu3 %v14676_v54  ;;  %v1613_v54 = vpop.f32.mrf.mxu2 }
 0x116   :  { %3547 = vmatpush.bf16.msra.mxu2 %v14623_v34  ;;  %v1614_v3 = vadd.f32 %v1613_v54, %v1499_v59  ;;  %v10624_v34 = vrot.slane %v1656_v16, 9  ;;  %v11332_v54 = vor.u32 %v14636_v39, %v11331_v38  ;;  %v11399_v38 = vld [vmem:[%s19045_s0 + $0x118] sm:$0x30]  ;;  %v11489_v39 = vld [vmem:[%s19045_s0 + $0x140] sm:$0xf] }
 0x118   :  { %v1633_v12 = vadd.f32 %v1632_v40, %v1614_v3  ;;  %v1635_v13 = vpop.f32.mrf.mxu0  ;;  %v11389_v40 = vld [vmem:[%s19045_s0 + $0x100] sm:$0xf] }
 0x119   :  { %3797 = vmatpush.bf16.msrb.mxu3 %v14675_v10  ;;  %v16586_v62 = vpop.f32.mrf.mxu1  ;;  %v1865_v26 = vpop.f32.mrf.mxu3  ;;  %v14657_v3 = vld [vmem:[%s19042_s4 + $0x20] sm:$0xff] }
 0x11a   :  { %3548 = vmatpush.bf16.msra.mxu2 %v14622_v47  ;;  %v1641_v4 = vadd.f32 %v16024_v21, %v1633_v12  ;;  %v14659_v21 = vld [vmem:[%s19042_s4 + $0x30] sm:$0xff]  ;;  %v14617_v47 = vld [vmem:[%s19045_s0 + $0x104] sm:$0xf]  ;;  %v1885_v9 = vadd.f32 %v16586_v62, %v1865_v26  ;;  %v14656_v62 = vld [vmem:[%s19042_s4 + $0x18] sm:$0xff] }
 0x11b   :  { %11286 = vmatmul.msk.bf16.gmra.mxu0 %vm281_vm2, %v11236_v6  ;;  %v11394_v0 = vor.u32 %v14617_v47, %v11391_v52 }
 0x11c   :  { %vm1645_vm15 = vcmp.ge.f32.partialorder %v1641_v4, 0.0  ;;  %v1649_v10 = vmul.f32 0.2, %v1641_v4  ;;  %11385 = vmatmul.msk.bf16.vlgmr.msrb.gmra.mxu1 %vm281_vm2, %v11328_v14 }
 0x11d   :  { %3798 = vmatpush.bf16.msrb.mxu3 %v14674_v29  ;;  %v1616_v23 = vpop.f32.mrf.mxu2  ;;  %v14669_v29 = vld [vmem:[%s19042_s4 + $0x60] sm:$0xff] }
 0x11e   :  { %3549 = vmatpush.bf16.msra.mxu2 %v14621_v1  ;;  %v1653_v19 = vsel %vm1645_vm15, %v1641_v4, %v1649_v10  ;;  %v1617_v24 = vadd.f32 %v1616_v23, %v1502_v18  ;;  %v14712_v23 = vld [vmem:[%s19042_s4 + $0xb8] sm:$0xff]  ;;  %vm508_vm15 = vcmask 517376  }
 0x11f   :  { %v16602_v27 = vpack.c.bf16 %v1653_v19, %v1653_v19  ;;  %4207 = vmatpush.bf16.msrb.mxu1 %v14712_v23 }
 0x120   :  { %v1636_v8 = vadd.f32 %v1635_v13, %v1617_v24  ;;  %v1637_v30 = vpop.f32.mrf.mxu0  ;;  %v14661_v13 = vld [vmem:[%s19042_s4 + $0x40] sm:$0xff]  ;;  %v14655_v24 = vld [vmem:[%s19042_s4 + $0x10] sm:$0xff] }
 0x121   :  { %3799 = vmatpush.bf16.msrb.mxu3 %v14673_v41  ;;  %v16610_v32 = vpop.f32.mrf.mxu1  ;;  %v1684_v35 = vrot.slane %v16602_v27, 5  ;;  %1660 = vst.msk [vmem:[#allocation2 + $0x1c] sm:$0x3] %vm483_vm8, %v16602_v27  ;;  %v14658_v41 = vld [vmem:[%s19042_s4 + $0x28] sm:$0xff]  ;;  %v1867_v59 = vpop.f32.mrf.mxu3  ;;  %v10623_v6 = vrot.slane %v16602_v27, 11  ;;  %3956 = vmatpush.bf16.msra.mxu0 %v14661_v13 }
 0x122   :  { %3930 = vmatpush.bf16.msrb.mxu2 %v14660_v17  ;;  %v1642_v37 = vadd.f32 %v16621_v33, %v1636_v8  ;;  %v14705_v17 = vld [vmem:[%s19042_s4 + $0x80] sm:$0xff]  ;;  %v11397_v8 = vld [vmem:[%s19045_s0 + $0x110] sm:$0xf] }
 0x123   :  { %v1685_v42 = vsel %vm16110_vm9, %v10624_v34, %v1684_v35  ;;  %v1686_v44 = vrot.slane %v1684_v35, 4  ;;  %v14620_v34 = vld [vmem:[%s19045_s0 + $0x114] sm:$0x30]  ;;  %v14619_v35 = vld [vmem:[%s19045_s0 + $0x114] sm:$0xf] }
 0x124   :  { %1687 = vrot.lane.b32.xlu2 %v1685_v42, %s15212_s23  ;;  %vm1646_vm3 = vcmp.ge.f32.partialorder %v1642_v37, 0.0  ;;  %v1650_v51 = vmul.f32 0.2, %v1642_v37  ;;  %3421 = vmatmul.bf16.gmra.mxu3 %v11332_v54  ;;  %v14653_v54 = vld [vmem:[%s19042_s4] sm:$0xff] }
 0x125   :  { %3800 = vmatpush.bf16.msrb.mxu3 %v14672_v61  ;;  %v1618_v55 = vpop.f32.mrf.mxu2  ;;  %1689 = vrot.lane.b32.xlu0 %v1686_v44, %s15212_s23  ;;  %v11390_v61 = vor.u32 %v14618_v45, %v11389_v40  ;;  %v14666_v40 = vld [vmem:[%s19045_s0 + $0x144] sm:$0xf0]  ;;  %v14696_v45 = vld [vmem:[%s19042_s4 + $0x58] sm:$0xff] }
 0x126   :  { %3931 = vmatpush.bf16.msrb.mxu2 %v14659_v21  ;;  %v1619_v56 = vadd.f32 %v1618_v55, %v1504_v49  ;;  %v1654_v60 = vsel %vm1646_vm3, %v1642_v37, %v1650_v51  ;;  %v14654_v44 = vld [vmem:[%s19042_s4 + $0x8] sm:$0xff]  ;;  %v14665_v49 = vld [vmem:[%s19045_s0 + $0x144] sm:$0xf]  ;;  %v14703_v51 = vld [vmem:[%s19042_s4 + $0x70] sm:$0xff]  ;;  %v11398_v55 = vor.u32 %v14620_v34, %v11397_v8  ;;  %v520_v8 = vpop.permute.xlu2 %519  ;;  %vm527_vm3 = vcmask 779776  }
 0x127   :  { %v1661_v63 = vpack.c.bf16 %v1654_v60, %v1654_v60  ;;  %3550 = vmatmul.bf16.vlgmr.msra.gmra.mxu2 %v11390_v61  ;;  %v14668_v34 = vld [vmem:[%s19045_s0 + $0x154] sm:$0x30] }
 0x128   :  { %v1638_v48 = vadd.f32 %v1637_v30, %v1619_v56  ;;  %v2018_v1 = vpop.f32.mrf.mxu0  ;;  %v14704_v30 = vld [vmem:[%s19042_s4 + $0x78] sm:$0xff]  ;;  %v11490_v56 = vor.u32 %v14666_v40, %v11489_v39  ;;  %v11557_v39 = vld [vmem:[%s19045_s0 + $0x128] sm:$0xf0] }
 0x129   :  { %3801 = vmatpush.bf16.msrb.mxu3 %v14671_v15  ;;  %v16665_v5 = vpop.f32.mrf.mxu1  ;;  %v1668_v25 = vrot.slane %v1661_v63, 7  ;;  %1695 = vrot.lane.b32.xlu1 %v1661_v63, %s15213_s18  ;;  %v1870_v18 = vpop.f32.mrf.mxu3  ;;  %v14694_v40 = vld [vmem:[%s19042_s4 + $0x48] sm:$0xff] }
 0x12a   :  { %3932 = vmatpush.bf16.msrb.mxu2 %v14658_v41  ;;  %v1643_v12 = vadd.f32 %v16621_v33, %v1638_v48  ;;  %v1887_v41 = vadd.f32 %v16610_v32, %v1867_v59  ;;  %v11491_v32 = vld [vmem:[%s19045_s0 + $0x148] sm:$0xf0] }
 0x12b   :  { %11451 = vmatmul.msk.bf16.vlgmr.msrb.gmra.mxu0 %vm281_vm2, %v11394_v0  ;;  %v1669_v14 = vsel %vm16181_vm13, %v10623_v6, %v1668_v25  ;;  %v1670_v28 = vrot.slane %v1668_v25, 4  ;;  %v11494_v63 = vor.u32 %v14665_v49, %v11491_v32  ;;  %v14709_v6 = vld [vmem:[%s19042_s4 + $0xa0] sm:$0xff] }
 0x12c   :  { %11386 = vmatmul.msk.bf16.gmra.mxu1 %vm281_vm2, %v11336_v2  ;;  %vm1647_vm5 = vcmp.ge.f32.partialorder %v1643_v12, 0.0  ;;  %v1651_v15 = vmul.f32 0.2, %v1643_v12  ;;  %4341 = vmatpush.bf16.msrb.mxu0 %v14696_v45  ;;  %v14692_v2 = vld [vmem:[%s19042_s4 + $0x38] sm:$0xff]  ;;  %v14667_v45 = vld [vmem:[%s19045_s0 + $0x154] sm:$0xf] }
 0x12d   :  { %3802 = vmatpush.bf16.msrb.mxu3 %v14670_v20  ;;  %v1999_v16 = vpop.f32.mrf.mxu2  ;;  %1673 = vrot.lane.b32.xlu0 %v1669_v14, %s15214_s1 }
 0x12e   :  { %3933 = vmatpush.bf16.msrb.mxu2 %v14657_v3  ;;  %v2000_v4 = vadd.f32 %v1999_v16, %v1885_v9  ;;  %v1655_v10 = vsel %vm1647_vm5, %v1643_v12, %v1651_v15  ;;  %v1890_v3 = vadd.f32 %v16665_v5, %v1870_v18  ;;  %v14701_v5 = vld [vmem:[%s19042_s4 + $0x60] sm:$0xff]  ;;  %v14691_v12 = vld [vmem:[%s19042_s4 + $0x30] sm:$0xff]  ;;  %vm537_vm5 = vcmask 1042176  }
 0x12f   :  { %v1662_v20 = vpack.c.bf16 %v1655_v10, %v1655_v10 }
 0x130   :  { %v2019_v21 = vadd.f32 %v2018_v1, %v2000_v4  ;;  %v2020_v19 = vpop.f32.mrf.mxu0  ;;  %v14702_v1 = vld [vmem:[%s19042_s4 + $0x68] sm:$0xff] }
 0x131   :  { %3803 = vmatpush.bf16.msrb.mxu3 %v14669_v29  ;;  %v16694_v26 = vpop.f32.mrf.mxu1  ;;  %v1671_v27 = vrot.slane %v1662_v20, 7  ;;  %1697 = vrot.lane.b32.xlu2 %v1662_v20, %s15213_s18  ;;  %v16741_v52 = vpop.f32.mrf.mxu3 }
 0x132   :  { %3934 = vmatpush.bf16.msrb.mxu2 %v14656_v62  ;;  %v2028_v29 = vadd.f32 %v16621_v33, %v2019_v21  ;;  %v16751_v48 = vpop.permute.xlu0 %521  ;;  %v14740_v62 = vld [vmem:[%s19042_s4 + $0x98] sm:$0xff] }
 0x133   :  { %v1672_v37 = vsel %vm16181_vm13, %v1670_v28, %v1671_v27  ;;  %v14690_v27 = vld [vmem:[%s19042_s4 + $0x28] sm:$0xff]  ;;  %v14695_v28 = vld [vmem:[%s19042_s4 + $0x50] sm:$0xff] }
 0x134   :  { %vm2032_vm6 = vcmp.ge.f32.partialorder %v2028_v29, 0.0  ;;  %v2036_v42 = vmul.f32 0.2, %v2028_v29  ;;  %1675 = vrot.lane.b32.xlu1 %v1672_v37, %s15214_s1  ;;  %3804 = vmatmul.bf16.vlgmr.msrb.gmra.mxu3 %v11490_v56 }
 0x135   :  { %4184 = vmatpush.bf16.msra.mxu3 %v14708_v36  ;;  %v14711_v36 = vld [vmem:[%s19042_s4 + $0xb0] sm:$0xff]  ;;  %v2001_v47 = vpop.f32.mrf.mxu2  ;;  %4342 = vmatpush.bf16.msrb.mxu0 %v14695_v28  ;;  %v14652_v28 = vld [vmem:[%s19045_s0 + $0x134] sm:$0x30] }
 0x136   :  { %3935 = vmatpush.bf16.msrb.mxu2 %v14655_v24  ;;  %v2002_v46 = vadd.f32 %v2001_v47, %v1887_v41  ;;  %v2040_v43 = vsel %vm2032_vm6, %v2028_v29, %v2036_v42  ;;  %4208 = vmatpush.bf16.msrb.mxu1 %v14711_v36  ;;  %v530_v18 = vpop.permute.xlu1 %529  ;;  %v14650_v24 = vld [vmem:[%s19045_s0 + $0x124] sm:$0xf0]  ;;  %v11497_v29 = vld [vmem:[%s19045_s0 + $0x150] sm:$0xf]  ;;  %v1892_v41 = vadd.f32 %v16694_v26, %v16741_v52  ;;  %v11499_v47 = vld [vmem:[%s19045_s0 + $0x158] sm:$0x30] }
 0x137   :  { %v2044_v59 = vpack.c.bf16 %v2040_v43, %v2040_v43  ;;  %3555 = vmatmul.bf16.gmra.mxu2 %v11398_v55  ;;  %v14739_v36 = vld [vmem:[%s19042_s4 + $0x90] sm:$0xff]  ;;  %v14689_v26 = vld [vmem:[%s19042_s4 + $0x20] sm:$0xff]  ;;  %v11498_v43 = vor.u32 %v14668_v34, %v11497_v29  ;;  %v11565_v34 = vld [vmem:[%s19045_s0 + $0x138] sm:$0x30] }
 0x138   :  { %v2021_v60 = vadd.f32 %v2020_v19, %v2002_v46  ;;  %v2023_v61 = vpop.f32.mrf.mxu0  ;;  %v11555_v19 = vld [vmem:[%s19045_s0 + $0x120] sm:$0xf]  ;;  %v14738_v46 = vld [vmem:[%s19042_s4 + $0x88] sm:$0xff] }
 0x139   :  { %4185 = vmatpush.bf16.msra.mxu3 %v14707_v58  ;;  %v11402_v58 = vor.u32 %v14619_v35, %v11399_v38  ;;  %v16749_v0 = vpop.f32.mrf.mxu1  ;;  %2047 = vst.msk [vmem:[#allocation2 + $0x20] sm:$0xf] %vm481_vm4, %v2044_v59  ;;  %v16773_v15 = vpop.f32.mrf.mxu3  ;;  %v10790_v23 = vrot.slane %v2044_v59, 9  ;;  %v14649_v35 = vld [vmem:[%s19045_s0 + $0x124] sm:$0xf]  ;;  %v11556_v52 = vor.u32 %v14650_v24, %v11555_v19  ;;  %4343 = vmatpush.bf16.msrb.mxu0 %v14694_v40  ;;  %v14686_v19 = vld [vmem:[%s19042_s4 + $0x8] sm:$0xff] }
 0x13a   :  { %3936 = vmatpush.bf16.msrb.mxu2 %v14654_v44  ;;  %v2029_v25 = vadd.f32 %v16621_v33, %v2021_v60  ;;  %4209 = vmatpush.bf16.msrb.mxu1 %v14710_v57  ;;  %v501_v20 = vpop.permute.xlu0 %500  ;;  %v11560_v57 = vor.u32 %v14649_v35, %v11557_v39  ;;  %v11502_v60 = vor.u32 %v14667_v45, %v11499_v47  ;;  %v14743_v24 = vld [vmem:[%s19042_s4 + $0xb0] sm:$0xff]  ;;  %v11655_v35 = vld [vmem:[%s19045_s0 + $0x160] sm:$0xf]  ;;  %v14728_v39 = vld [vmem:[%s19042_s4 + $0x58] sm:$0xff] }
 0x13b   :  { %11452 = vmatmul.msk.bf16.gmra.mxu0 %vm281_vm2, %v11402_v58  ;;  %507 = vst.msk [vmem:[#allocation2] sm:$0xf] %vm506_vm10, %v501_v20  ;;  %v14742_v40 = vld [vmem:[%s19042_s4 + $0xa8] sm:$0xff] }
 0x13c   :  { %vm2033_vm7 = vcmp.ge.f32.partialorder %v2029_v25, 0.0  ;;  %11551 = vmatmul.msk.bf16.vlgmr.msra.gmra.mxu1 %vm281_vm2, %v11494_v63  ;;  %526 = vst.msk [vmem:[#allocation2] sm:$0xf] %vm525_vm11, %v520_v8  ;;  %v14651_v8 = vld [vmem:[%s19045_s0 + $0x134] sm:$0xf] }
 0x13d   :  { %4186 = vmatpush.bf16.msra.mxu3 %v14706_v7  ;;  %v2037_v7 = vmul.f32 0.2, %v2029_v25  ;;  %v2004_v9 = vpop.f32.mrf.mxu2  ;;  %536 = vst.msk [vmem:[#allocation2] sm:$0xf] %vm535_vm12, %v530_v18 }
 0x13e   :  { %3937 = vmatpush.bf16.msrb.mxu2 %v14653_v54  ;;  %v2005_v14 = vadd.f32 %v2004_v9, %v1890_v3  ;;  %4210 = vmatpush.bf16.msrb.mxu1 %v14709_v6  ;;  %v532_v3 = vpop.permute.xlu2 %531 }
 0x13f   :  { %v2041_v13 = vsel %vm2033_vm7, %v2029_v25, %v2037_v7  ;;  %v2273_v25 = vadd.f32 %v16749_v0, %v16773_v15  ;;  %v14737_v7 = vld [vmem:[%s19042_s4 + $0x80] sm:$0xff] }
 0x140   :  { %v16778_v16 = vpack.c.bf16 %v2041_v13, %v2041_v13  ;;  %v2025_v4 = vpop.f32.mrf.mxu0 }
 0x141   :  { %4187 = vmatpush.bf16.msra.mxu3 %v14705_v17  ;;  %v2024_v17 = vadd.f32 %v2023_v61, %v2005_v14  ;;  %v16780_v10 = vpop.f32.mrf.mxu1  ;;  %v16834_v32 = vpop.f32.mrf.mxu3 }
 0x142   :  { %4318 = vmatpush.bf16.msra.mxu2 %v14692_v2  ;;  %v2072_v21 = vrot.slane %v16778_v16, 5  ;;  %2048 = vst.msk [vmem:[#allocation2 + $0x24] sm:$0x3] %vm483_vm8, %v16778_v16  ;;  %v503_v59 = vpop.permute.xlu1 %502  ;;  %v10789_v54 = vrot.slane %v16778_v16, 11  ;;  %v14693_v2 = vld [vmem:[%s19042_s4 + $0x40] sm:$0xff] }
 0x143   :  { %509 = vst.msk [vmem:[#allocation2 + $0x4] sm:$0x3] %vm508_vm15, %v503_v59  ;;  %4344 = vmatpush.bf16.msrb.mxu0 %v14693_v2  ;;  %v14741_v59 = vld [vmem:[%s19042_s4 + $0xa0] sm:$0xff] }
 0x144   :  { %v2073_v37 = vsel %vm16110_vm9, %v10790_v23, %v2072_v21  ;;  %v2074_v38 = vrot.slane %v2072_v21, 4  ;;  %528 = vst.msk [vmem:[#allocation2 + $0x4] sm:$0x3] %vm527_vm3, %v16751_v48  ;;  %3809 = vmatmul.bf16.gmra.mxu3 %v11498_v43  ;;  %v14744_v48 = vld [vmem:[%s19042_s4 + $0xb8] sm:$0xff]  ;;  %v11563_v21 = vld [vmem:[%s19045_s0 + $0x130] sm:$0xf] }
 0x145   :  { %4188 = vmatpush.bf16.msra.mxu3 %v14704_v30  ;;  %v2030_v30 = vadd.f32 %v16621_v33, %v2024_v17  ;;  %2075 = vrot.lane.b32.xlu2 %v2073_v37, %s15212_s23  ;;  %v2006_v44 = vpop.f32.mrf.mxu2  ;;  %538 = vst.msk [vmem:[#allocation2 + $0x4] sm:$0x3] %vm537_vm5, %v532_v3  ;;  %v2275_v37 = vadd.f32 %v16780_v10, %v16834_v32  ;;  %v11657_v10 = vld [vmem:[%s19045_s0 + $0x168] sm:$0xf0] }
 0x146   :  { %4319 = vmatpush.bf16.msra.mxu2 %v14691_v12  ;;  %2077 = vrot.lane.b32.xlu0 %v2074_v38, %s15212_s23  ;;  %v2007_v49 = vadd.f32 %v2006_v44, %v1892_v41  ;;  %v14687_v12 = vld [vmem:[%s19042_s4 + $0x10] sm:$0xff]  ;;  %v14685_v44 = vld [vmem:[%s19042_s4] sm:$0xff] }
 0x147   :  { %vm2034_vm14 = vcmp.ge.f32.partialorder %v2030_v30, 0.0  ;;  %v2038_v42 = vmul.f32 0.2, %v2030_v30  ;;  %3938 = vmatmul.bf16.vlgmr.msrb.gmra.mxu2 %v11556_v52  ;;  %4595 = vmatpush.bf16.msra.mxu1 %v14744_v48 }
 0x148   :  { %v2026_v58 = vadd.f32 %v2025_v4, %v2007_v49  ;;  %v2406_v56 = vpop.f32.mrf.mxu0  ;;  %v14734_v49 = vld [vmem:[%s19042_s4 + $0x68] sm:$0xff] }
 0x149   :  { %4189 = vmatpush.bf16.msra.mxu3 %v14703_v51  ;;  %v2042_v51 = vsel %vm2034_vm14, %v2030_v30, %v2038_v42  ;;  %v16839_v61 = vpop.f32.mrf.mxu1  ;;  %v2258_v13 = vpop.f32.mrf.mxu3  ;;  %v14735_v30 = vld [vmem:[%s19042_s4 + $0x70] sm:$0xff]  ;;  %v14697_v42 = vld [vmem:[%s19045_s0 + $0x164] sm:$0xf] }
 0x14a   :  { %4320 = vmatpush.bf16.msra.mxu2 %v14690_v27  ;;  %v2049_v55 = vpack.c.bf16 %v2042_v51, %v2042_v51  ;;  %v2031_v6 = vadd.f32 %v16621_v33, %v2026_v58  ;;  %v11568_v51 = vor.u32 %v14651_v8, %v11565_v34  ;;  %v14724_v58 = vld [vmem:[%s19042_s4 + $0x38] sm:$0xff] }
 0x14b   :  { %11617 = vmatmul.msk.bf16.vlgmr.msra.gmra.mxu0 %vm281_vm2, %v11560_v57  ;;  %4596 = vmatpush.bf16.msra.mxu1 %v14743_v24  ;;  %v11660_v57 = vor.u32 %v14697_v42, %v11657_v10  ;;  %v14682_v24 = vld [vmem:[%s19045_s0 + $0x144] sm:$0xf0] }
 0x14c   :  { %v2056_v63 = vrot.slane %v2049_v55, 7  ;;  %2083 = vrot.lane.b32.xlu1 %v2049_v55, %s15213_s18  ;;  %11552 = vmatmul.msk.bf16.gmra.mxu1 %vm281_vm2, %v11502_v60  ;;  %vm2035_vm6 = vcmp.ge.f32.partialorder %v2031_v6, 0.0  ;;  %v2039_v0 = vmul.f32 0.2, %v2031_v6  ;;  %v2278_v60 = vadd.f32 %v16839_v61, %v2258_v13  ;;  %v14723_v61 = vld [vmem:[%s19042_s4 + $0x30] sm:$0xff] }
 0x14d   :  { %4190 = vmatpush.bf16.msra.mxu3 %v14702_v1  ;;  %v14688_v1 = vld [vmem:[%s19042_s4 + $0x18] sm:$0xff]  ;;  %4729 = vmatpush.bf16.msra.mxu0 %v14728_v39 }
 0x14e   :  { %4321 = vmatpush.bf16.msra.mxu2 %v14689_v26  ;;  %v2057_v9 = vsel %vm16181_vm13, %v10789_v54, %v2056_v63  ;;  %v2043_v15 = vsel %vm2035_vm6, %v2031_v6, %v2039_v0  ;;  %v2058_v23 = vrot.slane %v2056_v63, 4  ;;  %v11564_v26 = vor.u32 %v14652_v28, %v11563_v21  ;;  %v14733_v54 = vld [vmem:[%s19042_s4 + $0x60] sm:$0xff]  ;;  %v920_v0 = vpop.permute.xlu2 %919  ;;  %v11663_v21 = vld [vmem:[%s19045_s0 + $0x170] sm:$0xf]  ;;  %v11665_v39 = vld [vmem:[%s19045_s0 + $0x178] sm:$0x30] }
 0x14f   :  { %2061 = vrot.lane.b32.xlu0 %v2057_v9, %s15214_s1  ;;  %v2050_v16 = vpack.c.bf16 %v2043_v15, %v2043_v15  ;;  %4597 = vmatpush.bf16.msra.mxu1 %v14742_v40  ;;  %v14722_v15 = vld [vmem:[%s19042_s4 + $0x28] sm:$0xff] }
 0x150   :  { %v2408_v18 = vpop.f32.mrf.mxu0 }
 0x151   :  { %4191 = vmatpush.bf16.msra.mxu3 %v14701_v5  ;;  %v2387_v5 = vpop.f32.mrf.mxu2  ;;  %v16873_v4 = vpop.f32.mrf.mxu1  ;;  %v2059_v20 = vrot.slane %v2050_v16, 7  ;;  %2085 = vrot.lane.b32.xlu2 %v2050_v16, %s15213_s18 }
 0x152   :  { %4322 = vmatpush.bf16.msra.mxu2 %v14688_v1  ;;  %v2388_v14 = vadd.f32 %v2387_v5, %v2273_v25  ;;  %v16924_v45 = vpop.f32.mrf.mxu3  ;;  %v14772_v1 = vld [vmem:[%s19042_s4 + $0x98] sm:$0xff]  ;;  %v912_v6 = vpop.permute.xlu1 %911 }
 0x153   :  { %v2060_v29 = vsel %vm16181_vm13, %v2058_v23, %v2059_v20  ;;  %4598 = vmatpush.bf16.msra.mxu1 %v14741_v59  ;;  %v14727_v20 = vld [vmem:[%s19042_s4 + $0x50] sm:$0xff]  ;;  %v2280_v34 = vadd.f32 %v16873_v4, %v16924_v45 }
 0x154   :  { %v2407_v17 = vadd.f32 %v2406_v56, %v2388_v14  ;;  %2063 = vrot.lane.b32.xlu1 %v2060_v29, %s15214_s1  ;;  %4730 = vmatpush.bf16.msra.mxu0 %v14727_v20  ;;  %v14726_v29 = vld [vmem:[%s19042_s4 + $0x48] sm:$0xff]  ;;  %v14699_v4 = vld [vmem:[%s19045_s0 + $0x174] sm:$0xf] }
 0x155   :  { %4572 = vmatpush.bf16.msrb.mxu3 %v14740_v62  ;;  %v14736_v62 = vld [vmem:[%s19042_s4 + $0x78] sm:$0xff]  ;;  %v14767_v20 = vld [vmem:[%s19042_s4 + $0x70] sm:$0xff] }
 0x156   :  { %4323 = vmatpush.bf16.msra.mxu2 %v14687_v12  ;;  %v2416_v27 = vadd.f32 %v16621_v33, %v2407_v17  ;;  %v14771_v12 = vld [vmem:[%s19042_s4 + $0x90] sm:$0xff] }
 0x157   :  { %3943 = vmatmul.bf16.gmra.mxu2 %v11564_v26  ;;  %v898_v5 = vpop.permute.xlu0 %897 }
 0x158   :  { %vm2420_vm7 = vcmp.ge.f32.partialorder %v2416_v27, 0.0  ;;  %v2424_v38 = vmul.f32 0.2, %v2416_v27  ;;  %v2411_v43 = vpop.f32.mrf.mxu0  ;;  %903 = vst.msk [vmem:[#allocation2 + $0x8] sm:$0xf] %vm506_vm10, %v898_v5  ;;  %4731 = vmatpush.bf16.msra.mxu0 %v14726_v29 }
 0x159   :  { %4573 = vmatpush.bf16.msrb.mxu3 %v14739_v36  ;;  %v14698_v36 = vld [vmem:[%s19045_s0 + $0x164] sm:$0xf0]  ;;  %v2389_v41 = vpop.f32.mrf.mxu2  ;;  %v16932_v56 = vpop.f32.mrf.mxu1  ;;  %917 = vst.msk [vmem:[#allocation2 + $0x8] sm:$0xf] %vm525_vm11, %v912_v6  ;;  %v14768_v6 = vld [vmem:[%s19042_s4 + $0x78] sm:$0xff] }
 0x15a   :  { %4324 = vmatpush.bf16.msra.mxu2 %v14686_v19  ;;  %v2390_v47 = vadd.f32 %v2389_v41, %v2275_v37  ;;  %v2428_v32 = vsel %vm2420_vm7, %v2416_v27, %v2424_v38  ;;  %v11656_v52 = vor.u32 %v14698_v36, %v11655_v35  ;;  %v16951_v9 = vpop.f32.mrf.mxu3  ;;  %v14700_v19 = vld [vmem:[%s19045_s0 + $0x174] sm:$0x30]  ;;  %v14681_v27 = vld [vmem:[%s19045_s0 + $0x144] sm:$0xf]  ;;  %925 = vst.msk [vmem:[#allocation2 + $0x8] sm:$0xf] %vm535_vm12, %v920_v0 }
 0x15b   :  { %11618 = vmatmul.msk.bf16.gmra.mxu0 %vm281_vm2, %v11568_v51  ;;  %v11723_v36 = vld [vmem:[%s19045_s0 + $0x148] sm:$0xf0]  ;;  %v14721_v37 = vld [vmem:[%s19042_s4 + $0x20] sm:$0xff] }
 0x15c   :  { %v2409_v55 = vadd.f32 %v2408_v18, %v2390_v47  ;;  %4192 = vmatmul.bf16.vlgmr.msra.gmra.mxu3 %v11656_v52  ;;  %11717 = vmatmul.msk.bf16.vlgmr.msrb.gmra.mxu1 %vm281_vm2, %v11660_v57  ;;  %v11721_v18 = vld [vmem:[%s19045_s0 + $0x140] sm:$0xf]  ;;  %v11664_v47 = vor.u32 %v14700_v19, %v11663_v21  ;;  %v11726_v26 = vor.u32 %v14681_v27, %v11723_v36  ;;  %v14684_v21 = vld [vmem:[%s19045_s0 + $0x154] sm:$0x30]  ;;  %v14683_v19 = vld [vmem:[%s19045_s0 + $0x154] sm:$0xf] }
 0x15d   :  { %4574 = vmatpush.bf16.msrb.mxu3 %v14738_v46  ;;  %v2432_v46 = vpack.c.bf16 %v2428_v32, %v2428_v32  ;;  %v11722_v10 = vor.u32 %v14682_v24, %v11721_v18  ;;  %v11668_v52 = vor.u32 %v14699_v4, %v11665_v39  ;;  %v11729_v18 = vld [vmem:[%s19045_s0 + $0x150] sm:$0xf]  ;;  %v11731_v24 = vld [vmem:[%s19045_s0 + $0x158] sm:$0x30]  ;;  %v14773_v36 = vld [vmem:[%s19042_s4 + $0xa0] sm:$0xff] }
 0x15e   :  { %4325 = vmatpush.bf16.msra.mxu2 %v14685_v44  ;;  %v2417_v63 = vadd.f32 %v16621_v33, %v2409_v55  ;;  %v14776_v55 = vld [vmem:[%s19042_s4 + $0xb8] sm:$0xff]  ;;  %v14766_v4 = vld [vmem:[%s19042_s4 + $0x68] sm:$0xff] }
 0x15f   :  { %2435 = vst.msk [vmem:[#allocation2 + $0x28] sm:$0xf] %vm481_vm4, %v2432_v46  ;;  %v10956_v16 = vrot.slane %v2432_v46, 9  ;;  %v14720_v46 = vld [vmem:[%s19042_s4 + $0x18] sm:$0xff]  ;;  %4983 = vmatpush.bf16.msrb.mxu1 %v14776_v55  ;;  %v14755_v55 = vld [vmem:[%s19042_s4 + $0x30] sm:$0xff] }
 0x160   :  { %vm2421_vm14 = vcmp.ge.f32.partialorder %v2417_v63, 0.0  ;;  %v2425_v2 = vmul.f32 0.2, %v2417_v63  ;;  %v2413_v14 = vpop.f32.mrf.mxu0  ;;  %v900_v44 = vpop.permute.xlu0 %899  ;;  %v14756_v39 = vld [vmem:[%s19042_s4 + $0x38] sm:$0xff] }
 0x161   :  { %4575 = vmatpush.bf16.msrb.mxu3 %v14737_v7  ;;  %v2392_v3 = vpop.f32.mrf.mxu2  ;;  %904 = vst.msk [vmem:[#allocation2 + $0xc] sm:$0x3] %vm508_vm15, %v900_v44 }
 0x162   :  { %4706 = vmatpush.bf16.msrb.mxu2 %v14724_v58  ;;  %v2429_v25 = vsel %vm2421_vm14, %v2417_v63, %v2425_v2  ;;  %v2393_v7 = vadd.f32 %v2392_v3, %v2278_v60  ;;  %v17012_v41 = vpop.f32.mrf.mxu3  ;;  %v14769_v60 = vld [vmem:[%s19042_s4 + $0x80] sm:$0xff]  ;;  %v2661_v63 = vadd.f32 %v16932_v56, %v16951_v9  ;;  %v14775_v3 = vld [vmem:[%s19042_s4 + $0xb0] sm:$0xff] }
 0x163   :  { %v16953_v48 = vpack.c.bf16 %v2429_v25, %v2429_v25  ;;  %4984 = vmatpush.bf16.msrb.mxu1 %v14775_v3  ;;  %v14803_v3 = vld [vmem:[%s19042_s4 + $0x90] sm:$0xff] }
 0x164   :  { %v2412_v13 = vadd.f32 %v2411_v43, %v2393_v7  ;;  %v922_v43 = vpop.permute.xlu2 %921 }
 0x165   :  { %4576 = vmatpush.bf16.msrb.mxu3 %v14736_v62  ;;  %2436 = vst.msk [vmem:[#allocation2 + $0x2c] sm:$0x3] %vm483_vm8, %v16953_v48  ;;  %v16964_v62 = vpop.f32.mrf.mxu1  ;;  %v2460_v17 = vrot.slane %v16953_v48, 5  ;;  %v10955_v59 = vrot.slane %v16953_v48, 11 }
 0x166   :  { %4707 = vmatpush.bf16.msrb.mxu2 %v14723_v61  ;;  %v2418_v23 = vadd.f32 %v16621_v33, %v2412_v13  ;;  %v14719_v61 = vld [vmem:[%s19042_s4 + $0x10] sm:$0xff]  ;;  %v14718_v13 = vld [vmem:[%s19042_s4 + $0x8] sm:$0xff]  ;;  %v2663_v29 = vadd.f32 %v16964_v62, %v17012_v41 }
 0x167   :  { %v2461_v28 = vsel %vm16110_vm9, %v10956_v16, %v2460_v17  ;;  %v2462_v8 = vrot.slane %v2460_v17, 4  ;;  %4326 = vmatmul.bf16.vlgmr.msra.gmra.mxu2 %v11722_v10  ;;  %v11823_v62 = vld [vmem:[%s19045_s0 + $0x188] sm:$0xf0] }
 0x168   :  { %2463 = vrot.lane.b32.xlu2 %v2461_v28, %s15212_s23  ;;  %vm2422_vm6 = vcmp.ge.f32.partialorder %v2418_v23, 0.0  ;;  %v2426_v35 = vmul.f32 0.2, %v2418_v23  ;;  %v2794_v51 = vpop.f32.mrf.mxu0  ;;  %v11821_v28 = vld [vmem:[%s19045_s0 + $0x180] sm:$0xf] }
 0x169   :  { %4577 = vmatpush.bf16.msrb.mxu3 %v14735_v30  ;;  %v14770_v30 = vld [vmem:[%s19042_s4 + $0x88] sm:$0xff]  ;;  %v2394_v38 = vpop.f32.mrf.mxu2  ;;  %2465 = vrot.lane.b32.xlu0 %v2462_v8, %s15212_s23 }
 0x16a   :  { %4708 = vmatpush.bf16.msrb.mxu2 %v14722_v15  ;;  %v2395_v40 = vadd.f32 %v2394_v38, %v2280_v34  ;;  %v2430_v42 = vsel %vm2422_vm6, %v2418_v23, %v2426_v35  ;;  %v2646_v7 = vpop.f32.mrf.mxu3  ;;  %v14730_v8 = vld [vmem:[%s19045_s0 + $0x184] sm:$0xf0]  ;;  %v14717_v35 = vld [vmem:[%s19042_s4] sm:$0xff] }
 0x16b   :  { %v2437_v45 = vpack.c.bf16 %v2430_v42, %v2430_v42  ;;  %11783 = vmatmul.msk.bf16.vlgmr.msrb.gmra.mxu0 %vm281_vm2, %v11726_v26  ;;  %v11730_v42 = vor.u32 %v14684_v21, %v11729_v18  ;;  %v14714_v21 = vld [vmem:[%s19045_s0 + $0x164] sm:$0xf0] }
 0x16c   :  { %v2414_v32 = vadd.f32 %v2413_v14, %v2395_v40  ;;  %4197 = vmatmul.bf16.gmra.mxu3 %v11664_v47  ;;  %11718 = vmatmul.msk.bf16.gmra.mxu1 %vm281_vm2, %v11668_v52  ;;  %v14774_v14 = vld [vmem:[%s19042_s4 + $0xa8] sm:$0xff]  ;;  %v11822_v47 = vor.u32 %v14730_v8, %v11821_v28  ;;  %v14713_v28 = vld [vmem:[%s19045_s0 + $0x164] sm:$0xf] }
 0x16d   :  { %4578 = vmatpush.bf16.msrb.mxu3 %v14734_v49  ;;  %v914_v49 = vpop.permute.xlu1 %913  ;;  %v17022_v57 = vpop.f32.mrf.mxu1  ;;  %v2444_v58 = vrot.slane %v2437_v45, 7  ;;  %2471 = vrot.lane.b32.xlu1 %v2437_v45, %s15213_s18  ;;  %v11734_v45 = vor.u32 %v14683_v19, %v11731_v24  ;;  %v14802_v19 = vld [vmem:[%s19042_s4 + $0x88] sm:$0xff] }
 0x16e   :  { %4709 = vmatpush.bf16.msrb.mxu2 %v14721_v37  ;;  %918 = vst.msk [vmem:[#allocation2 + $0xc] sm:$0x3] %vm527_vm3, %v914_v49  ;;  %4985 = vmatpush.bf16.msrb.mxu1 %v14774_v14  ;;  %v14760_v37 = vld [vmem:[%s19042_s4 + $0x58] sm:$0xff]  ;;  %v11887_v14 = vld [vmem:[%s19045_s0 + $0x160] sm:$0xf]  ;;  %v14758_v8 = vld [vmem:[%s19042_s4 + $0x48] sm:$0xff] }
 0x16f   :  { %926 = vst.msk [vmem:[#allocation2 + $0xc] sm:$0x3] %vm537_vm5, %v922_v43  ;;  %v2445_v2 = vsel %vm16181_vm13, %v10955_v59, %v2444_v58  ;;  %v2446_v17 = vrot.slane %v2444_v58, 4  ;;  %v2666_v43 = vadd.f32 %v17022_v57, %v2646_v7  ;;  %v14804_v59 = vld [vmem:[%s19042_s4 + $0x98] sm:$0xff]  ;;  %v14754_v57 = vld [vmem:[%s19042_s4 + $0x28] sm:$0xff] }
 0x170   :  { %v17109_v44 = vpop.permute.xlu0 %1301 }
 0x171   :  { %4579 = vmatpush.bf16.msrb.mxu3 %v14733_v54  ;;  %v2419_v54 = vadd.f32 %v16621_v33, %v2414_v32  ;;  %v2775_v25 = vpop.f32.mrf.mxu2  ;;  %2449 = vrot.lane.b32.xlu0 %v2445_v2, %s15214_s1 }
 0x172   :  { %4710 = vmatpush.bf16.msrb.mxu2 %v14720_v46  ;;  %v2776_v9 = vadd.f32 %v2775_v25, %v2661_v63  ;;  %v17107_v40 = vpop.f32.mrf.mxu3  ;;  %4986 = vmatpush.bf16.msrb.mxu1 %v14773_v36  ;;  %v14765_v46 = vld [vmem:[%s19042_s4 + $0x60] sm:$0xff]  ;;  %v14807_v25 = vld [vmem:[%s19042_s4 + $0xb0] sm:$0xff] }
 0x173   :  { %vm2423_vm7 = vcmp.ge.f32.partialorder %v2419_v54, 0.0  ;;  %v2427_v56 = vmul.f32 0.2, %v2419_v54  ;;  %v14731_v36 = vld [vmem:[%s19045_s0 + $0x194] sm:$0xf] }
 0x174   :  { %v2795_v5 = vadd.f32 %v2794_v51, %v2776_v9  ;;  %v1300_v9 = vpop.permute.xlu2 %1299 }
 0x175   :  { %4960 = vmatpush.bf16.msra.mxu3 %v14772_v1  ;;  %v14725_v1 = vld [vmem:[%s19042_s4 + $0x40] sm:$0xff]  ;;  %v2431_v0 = vsel %vm2423_vm7, %v2419_v54, %v2427_v56  ;;  %v17056_v15 = vpop.f32.mrf.mxu1 }
 0x176   :  { %4732 = vmatpush.bf16.msra.mxu0 %v14725_v1  ;;  %v2438_v48 = vpack.c.bf16 %v2431_v0, %v2431_v0  ;;  %4711 = vmatpush.bf16.msrb.mxu2 %v14719_v61  ;;  %v2804_v23 = vadd.f32 %v16621_v33, %v2795_v5 }
 0x177   :  { %4331 = vmatmul.bf16.gmra.mxu2 %v11730_v42 }
 0x178   :  { %v2447_v16 = vrot.slane %v2438_v48, 7  ;;  %2473 = vrot.lane.b32.xlu2 %v2438_v48, %s15213_s18  ;;  %vm2808_vm14 = vcmp.ge.f32.partialorder %v2804_v23, 0.0  ;;  %v2812_v34 = vmul.f32 0.2, %v2804_v23  ;;  %v1308_v2 = vpop.permute.xlu1 %1307 }
 0x179   :  { %4961 = vmatpush.bf16.msra.mxu3 %v14771_v12  ;;  %v2796_v12 = vpop.f32.mrf.mxu0  ;;  %v2777_v38 = vpop.f32.mrf.mxu2 }
 0x17a   :  { %v2448_v27 = vsel %vm16181_vm13, %v2446_v17, %v2447_v16  ;;  %4712 = vmatpush.bf16.msrb.mxu2 %v14718_v13  ;;  %v2778_v41 = vadd.f32 %v2777_v38, %v2663_v29  ;;  %v2816_v10 = vsel %vm2808_vm14, %v2804_v23, %v2812_v34  ;;  %5117 = vmatpush.bf16.msrb.mxu0 %v14760_v37  ;;  %v17133_v61 = vpop.f32.mrf.mxu3  ;;  %v14753_v16 = vld [vmem:[%s19042_s4 + $0x20] sm:$0xff]  ;;  %v14759_v17 = vld [vmem:[%s19042_s4 + $0x50] sm:$0xff]  ;;  %v14732_v23 = vld [vmem:[%s19045_s0 + $0x194] sm:$0x30] }
 0x17b   :  { %2451 = vrot.lane.b32.xlu1 %v2448_v27, %s15214_s1  ;;  %v2820_v26 = vpack.c.bf16 %v2816_v10, %v2816_v10  ;;  %11784 = vmatmul.msk.bf16.gmra.mxu0 %vm281_vm2, %v11734_v45  ;;  %v1286_v7 = vpop.permute.xlu0 %1285  ;;  %v11889_v34 = vld [vmem:[%s19045_s0 + $0x168] sm:$0xf0]  ;;  %v11831_v37 = vld [vmem:[%s19045_s0 + $0x198] sm:$0x30] }
 0x17c   :  { %v2797_v49 = vadd.f32 %v2796_v12, %v2778_v41  ;;  %4580 = vmatmul.bf16.vlgmr.msrb.gmra.mxu3 %v11822_v47  ;;  %1291 = vst.msk [vmem:[#allocation2 + $0x10] sm:$0xf] %vm506_vm10, %v1286_v7  ;;  %v14801_v41 = vld [vmem:[%s19042_s4 + $0x80] sm:$0xff]  ;;  %v11892_v45 = vor.u32 %v14713_v28, %v11889_v34  ;;  %v1310_v47 = vpop.permute.xlu2 %1309  ;;  %v11989_v34 = vld [vmem:[%s19045_s0 + $0x1a8] sm:$0xf0] }
 0x17d   :  { %4962 = vmatpush.bf16.msra.mxu3 %v14770_v30  ;;  %v14729_v30 = vld [vmem:[%s19045_s0 + $0x184] sm:$0xf]  ;;  %v17111_v52 = vpop.f32.mrf.mxu1  ;;  %2823 = vst.msk [vmem:[#allocation2 + $0x30] sm:$0xf] %vm481_vm4, %v2820_v26  ;;  %v11122_v12 = vrot.slane %v2820_v26, 9 }
 0x17e   :  { %v11826_v51 = vor.u32 %v14729_v30, %v11823_v62  ;;  %4713 = vmatpush.bf16.msrb.mxu2 %v14717_v35  ;;  %v2805_v58 = vadd.f32 %v16621_v33, %v2797_v49  ;;  %1305 = vst.msk [vmem:[#allocation2 + $0x10] sm:$0xf] %vm525_vm11, %v1300_v9  ;;  %5118 = vmatpush.bf16.msrb.mxu0 %v14759_v17 }
 0x17f   :  { %1313 = vst.msk [vmem:[#allocation2 + $0x10] sm:$0xf] %vm535_vm12, %v1308_v2  ;;  %v2668_v30 = vadd.f32 %v17056_v15, %v17107_v40  ;;  %v14752_v15 = vld [vmem:[%s19042_s4 + $0x18] sm:$0xff]  ;;  %v11888_v40 = vor.u32 %v14714_v21, %v11887_v14  ;;  %v14750_v2 = vld [vmem:[%s19042_s4 + $0x8] sm:$0xff] }
 0x180   :  { %vm2809_vm6 = vcmp.ge.f32.partialorder %v2805_v58, 0.0  ;;  %v2813_v63 = vmul.f32 0.2, %v2805_v58  ;;  %11883 = vmatmul.msk.bf16.vlgmr.msra.gmra.mxu1 %vm281_vm2, %v11826_v51  ;;  %v14716_v14 = vld [vmem:[%s19045_s0 + $0x174] sm:$0x30] }
 0x181   :  { %4963 = vmatpush.bf16.msra.mxu3 %v14769_v60  ;;  %v2799_v32 = vpop.f32.mrf.mxu0  ;;  %v14808_v60 = vld [vmem:[%s19042_s4 + $0xb8] sm:$0xff]  ;;  %v2780_v54 = vpop.f32.mrf.mxu2 }
 0x182   :  { %5094 = vmatpush.bf16.msra.mxu2 %v14756_v39  ;;  %v2817_v1 = vsel %vm2809_vm6, %v2805_v58, %v2813_v63  ;;  %v2781_v56 = vadd.f32 %v2780_v54, %v2666_v43  ;;  %5371 = vmatpush.bf16.msra.mxu1 %v14808_v60  ;;  %v17200_v62 = vpop.f32.mrf.mxu3  ;;  %v14751_v43 = vld [vmem:[%s19042_s4 + $0x10] sm:$0xff]  ;;  %v3049_v58 = vadd.f32 %v17111_v52, %v17133_v61  ;;  %v14800_v63 = vld [vmem:[%s19042_s4 + $0x78] sm:$0xff]  ;;  %v14805_v54 = vld [vmem:[%s19042_s4 + $0xa0] sm:$0xff] }
 0x183   :  { %5119 = vmatpush.bf16.msrb.mxu0 %v14758_v8  ;;  %v14762_v8 = vld [vmem:[%s19045_s0 + $0x1a4] sm:$0xf0] }
 0x184   :  { %v2800_v0 = vadd.f32 %v2799_v32, %v2781_v56  ;;  %v11834_v32 = vor.u32 %v14731_v36, %v11831_v37  ;;  %v14797_v37 = vld [vmem:[%s19042_s4 + $0x60] sm:$0xff] }
 0x185   :  { %4964 = vmatpush.bf16.msra.mxu3 %v14768_v6  ;;  %v17141_v6 = vpack.c.bf16 %v2817_v1, %v2817_v1  ;;  %v17146_v5 = vpop.f32.mrf.mxu1 }
 0x186   :  { %5095 = vmatpush.bf16.msra.mxu2 %v14755_v55  ;;  %v2806_v18 = vadd.f32 %v16621_v33, %v2800_v0  ;;  %5372 = vmatpush.bf16.msra.mxu1 %v14807_v25  ;;  %v14806_v33 = vld [vmem:[%s19042_s4 + $0xa8] sm:$0xff]  ;;  %v14799_v25 = vld [vmem:[%s19042_s4 + $0x70] sm:$0xff] }
 0x187   :  { %2824 = vst.msk [vmem:[#allocation2 + $0x34] sm:$0x3] %vm483_vm8, %v17141_v6  ;;  %v2848_v13 = vrot.slane %v17141_v6, 5  ;;  %v11121_v55 = vrot.slane %v17141_v6, 11  ;;  %4714 = vmatmul.bf16.vlgmr.msrb.gmra.mxu2 %v11888_v40  ;;  %v14791_v40 = vld [vmem:[%s19042_s4 + $0x50] sm:$0xff] }
 0x188   :  { %vm2810_vm7 = vcmp.ge.f32.partialorder %v2806_v18, 0.0  ;;  %v2814_v29 = vmul.f32 0.2, %v2806_v18 }
 0x189   :  { %4965 = vmatpush.bf16.msra.mxu3 %v14767_v20  ;;  %v2801_v48 = vpop.f32.mrf.mxu0  ;;  %v11829_v20 = vld [vmem:[%s19045_s0 + $0x190] sm:$0xf]  ;;  %v2849_v24 = vsel %vm16110_vm9, %v11122_v12, %v2848_v13  ;;  %v2850_v27 = vrot.slane %v2848_v13, 4  ;;  %v2782_v35 = vpop.f32.mrf.mxu2 }
 0x18a   :  { %5096 = vmatpush.bf16.msra.mxu2 %v14754_v57  ;;  %2851 = vrot.lane.b32.xlu2 %v2849_v24, %s15212_s23  ;;  %v2783_v38 = vadd.f32 %v2782_v35, %v2668_v30  ;;  %v2818_v39 = vsel %vm2810_vm7, %v2806_v18, %v2814_v29  ;;  %v11830_v10 = vor.u32 %v14732_v23, %v11829_v20  ;;  %v3034_v56 = vpop.f32.mrf.mxu3  ;;  %v11895_v13 = vld [vmem:[%s19045_s0 + $0x170] sm:$0xf]  ;;  %v14715_v18 = vld [vmem:[%s19045_s0 + $0x174] sm:$0xf]  ;;  %v14798_v20 = vld [vmem:[%s19042_s4 + $0x68] sm:$0xff] }
 0x18b   :  { %2853 = vrot.lane.b32.xlu0 %v2850_v27, %s15212_s23  ;;  %5373 = vmatpush.bf16.msra.mxu1 %v14806_v33  ;;  %v2825_v42 = vpack.c.bf16 %v2818_v39, %v2818_v39  ;;  %v14788_v23 = vld [vmem:[%s19042_s4 + $0x38] sm:$0xff]  ;;  %v11987_v33 = vld [vmem:[%s19045_s0 + $0x1a0] sm:$0xf]  ;;  %v3051_v27 = vadd.f32 %v17146_v5, %v17200_v62  ;;  %v14761_v29 = vld [vmem:[%s19045_s0 + $0x1a4] sm:$0xf]  ;;  %v11896_v36 = vor.u32 %v14716_v14, %v11895_v13 }
 0x18c   :  { %v2802_v26 = vadd.f32 %v2801_v48, %v2783_v38  ;;  %4585 = vmatmul.bf16.gmra.mxu3 %v11830_v10  ;;  %11949 = vmatmul.msk.bf16.vlgmr.msra.gmra.mxu0 %vm281_vm2, %v11892_v45  ;;  %v14792_v24 = vld [vmem:[%s19042_s4 + $0x58] sm:$0xff]  ;;  %v11992_v10 = vor.u32 %v14761_v29, %v11989_v34  ;;  %v14787_v45 = vld [vmem:[%s19042_s4 + $0x30] sm:$0xff]  ;;  %v14824_v13 = vld [vmem:[%s19049_s6 + $0x68] sm:$0xff] }
 0x18d   :  { %4966 = vmatpush.bf16.msra.mxu3 %v14766_v4  ;;  %v1288_v4 = vpop.permute.xlu1 %1287  ;;  %v17209_v51 = vpop.f32.mrf.mxu1  ;;  %2859 = vrot.lane.b32.xlu1 %v2825_v42, %s15213_s18  ;;  %v14814_v29 = vld [vmem:[%s19049_s6 + $0x20] sm:$0xff] }
 0x18e   :  { %5097 = vmatpush.bf16.msra.mxu2 %v14753_v16  ;;  %1292 = vst.msk [vmem:[#allocation2 + $0x14] sm:$0x3] %vm508_vm15, %v1288_v4  ;;  %v14749_v16 = vld [vmem:[%s19042_s4] sm:$0xff]  ;;  %v11988_v4 = vor.u32 %v14762_v8, %v11987_v33 }
 0x18f   :  { %1306 = vst.msk [vmem:[#allocation2 + $0x14] sm:$0x3] %vm527_vm3, %v17109_v44  ;;  %v14757_v44 = vld [vmem:[%s19042_s4 + $0x40] sm:$0xff]  ;;  %5374 = vmatpush.bf16.msra.mxu1 %v14805_v54 }
 0x190   :  { %1314 = vst.msk [vmem:[#allocation2 + $0x14] sm:$0x3] %vm537_vm5, %v1310_v47  ;;  %11884 = vmatmul.msk.bf16.gmra.mxu1 %vm281_vm2, %v11834_v32  ;;  %5120 = vmatpush.bf16.msrb.mxu0 %v14757_v44  ;;  %v3054_v32 = vadd.f32 %v17209_v51, %v3034_v56  ;;  %v14786_v51 = vld [vmem:[%s19042_s4 + $0x28] sm:$0xff]  ;;  %v14789_v56 = vld [vmem:[%s19042_s4 + $0x40] sm:$0xff] }
 0x191   :  { %4967 = vmatpush.bf16.msra.mxu3 %v14765_v46  ;;  %v3182_v49 = vpop.f32.mrf.mxu0  ;;  %v2832_v46 = vrot.slane %v2825_v42, 7  ;;  %v3163_v1 = vpop.f32.mrf.mxu2 }
 0x192   :  { %5098 = vmatpush.bf16.msra.mxu2 %v14752_v15  ;;  %v3164_v61 = vadd.f32 %v3163_v1, %v3049_v58  ;;  %v17289_v5 = vpop.f32.mrf.mxu3  ;;  %v14816_v58 = vld [vmem:[%s19049_s6 + $0x30] sm:$0xff] }
 0x193   :  { %v2833_v52 = vsel %vm16181_vm13, %v11121_v55, %v2832_v46  ;;  %v2834_v12 = vrot.slane %v2832_v46, 4  ;;  %v14790_v55 = vld [vmem:[%s19042_s4 + $0x48] sm:$0xff] }
 0x194   :  { %2837 = vrot.lane.b32.xlu0 %v2833_v52, %s15214_s1  ;;  %v3183_v7 = vadd.f32 %v3182_v49, %v3164_v61  ;;  %5505 = vmatpush.bf16.msra.mxu0 %v14792_v24  ;;  %v14826_v49 = vld [vmem:[%s19049_s6 + $0x78] sm:$0xff]  ;;  %v1688_v61 = vpop.permute.xlu2 %1687 }
 0x195   :  { %5348 = vmatpush.bf16.msrb.mxu3 %v14804_v59  ;;  %v17224_v59 = vld [vmem:[%s19048_s5] ss:$0 sm:$0xff]  ;;  %v17244_v0 = vpop.f32.mrf.mxu1 }
 0x196   :  { %v2807_v60 = vadd.f32 %v17224_v59, %v2802_v26  ;;  %5099 = vmatpush.bf16.msra.mxu2 %v14751_v43  ;;  %v3192_v17 = vadd.f32 %v17224_v59, %v3183_v7  ;;  %v14817_v26 = vld [vmem:[%s19049_s6 + $0x38] sm:$0xff]  ;;  %v3056_v33 = vadd.f32 %v17244_v0, %v17289_v5  ;;  %v14763_v0 = vld [vmem:[%s19045_s0 + $0x1b4] sm:$0xf] }
 0x197   :  { %v17295_v38 = vpop.permute.xlu0 %1689  ;;  %4719 = vmatmul.bf16.gmra.mxu2 %v11896_v36 }
 0x198   :  { %vm2811_vm14 = vcmp.ge.f32.partialorder %v2807_v60, 0.0  ;;  %v2815_v57 = vmul.f32 0.2, %v2807_v60  ;;  %vm3196_vm6 = vcmp.ge.f32.partialorder %v3192_v17, 0.0  ;;  %v3200_v28 = vmul.f32 0.2, %v3192_v17  ;;  %5506 = vmatpush.bf16.msra.mxu0 %v14791_v40 }
 0x199   :  { %5349 = vmatpush.bf16.msrb.mxu3 %v14803_v3  ;;  %v3184_v9 = vpop.f32.mrf.mxu0  ;;  %v3165_v30 = vpop.f32.mrf.mxu2 }
 0x19a   :  { %v2819_v3 = vsel %vm2811_vm14, %v2807_v60, %v2815_v57  ;;  %5100 = vmatpush.bf16.msra.mxu2 %v14750_v2  ;;  %v3166_v35 = vadd.f32 %v3165_v30, %v3051_v27  ;;  %v3204_v15 = vsel %vm3196_vm6, %v3192_v17, %v3200_v28  ;;  %v14825_v60 = vld [vmem:[%s19049_s6 + $0x70] sm:$0xff]  ;;  %v17328_v57 = vpop.f32.mrf.mxu3  ;;  %v14764_v17 = vld [vmem:[%s19045_s0 + $0x1b4] sm:$0x30]  ;;  %v12055_v27 = vld [vmem:[%s19045_s0 + $0x188] sm:$0xf0] }
 0x19b   :  { %v2826_v6 = vpack.c.bf16 %v2819_v3, %v2819_v3  ;;  %v3208_v39 = vpack.c.bf16 %v3204_v15, %v3204_v15  ;;  %v1696_v54 = vpop.permute.xlu1 %1695  ;;  %v14784_v28 = vld [vmem:[%s19042_s4 + $0x18] sm:$0xff]  ;;  %v14823_v15 = vld [vmem:[%s19049_s6 + $0x60] sm:$0xff] }
 0x19c   :  { %4968 = vmatmul.bf16.vlgmr.msra.gmra.mxu3 %v11988_v4  ;;  %5507 = vmatpush.bf16.msra.mxu0 %v14790_v55  ;;  %v11997_v30 = vld [vmem:[%s19045_s0 + $0x1b8] sm:$0x30]  ;;  %v1698_v40 = vpop.permute.xlu2 %1697 }
 0x19d   :  { %5350 = vmatpush.bf16.msrb.mxu3 %v14802_v19  ;;  %v2835_v48 = vrot.slane %v2826_v6, 7  ;;  %2861 = vrot.lane.b32.xlu2 %v2826_v6, %s15213_s18  ;;  %v11897_v19 = vld [vmem:[%s19045_s0 + $0x178] sm:$0x30]  ;;  %v17303_v47 = vpop.f32.mrf.mxu1  ;;  %3211 = vst.msk [vmem:[#allocation2 + $0x38] sm:$0xf] %vm481_vm4, %v3208_v39  ;;  %v14785_v6 = vld [vmem:[%s19042_s4 + $0x20] sm:$0xff] }
 0x19e   :  { %5101 = vmatpush.bf16.msra.mxu2 %v14749_v16  ;;  %v11900_v62 = vor.u32 %v14715_v18, %v11897_v19  ;;  %v11995_v16 = vld [vmem:[%s19045_s0 + $0x1b0] sm:$0xf]  ;;  %v12053_v18 = vld [vmem:[%s19045_s0 + $0x180] sm:$0xf]  ;;  %v14745_v19 = vld [vmem:[%s19045_s0 + $0x184] sm:$0xf] }
 0x19f   :  { %v2836_v21 = vsel %vm16181_vm13, %v2834_v12, %v2835_v48  ;;  %v1674_v2 = vpop.permute.xlu0 %1673  ;;  %v14815_v12 = vld [vmem:[%s19049_s6 + $0x28] sm:$0xff]  ;;  %v11996_v4 = vor.u32 %v14764_v17, %v11995_v16  ;;  %v14835_v16 = vld [vmem:[%s19049_s6 + $0xb8] sm:$0xff] }
 0x1a0   :  { %2839 = vrot.lane.b32.xlu1 %v2836_v21, %s15214_s1  ;;  %11950 = vmatmul.msk.bf16.gmra.mxu0 %vm281_vm2, %v11900_v62  ;;  %1679 = vst.msk [vmem:[#allocation2 + $0x18] sm:$0xf] %vm506_vm10, %v1674_v2  ;;  %v14843_v2 = vld [vmem:[%s19049_s6 + $0xf0] sm:$0xff] }
 0x1a1   :  { %5351 = vmatpush.bf16.msrb.mxu3 %v14801_v41  ;;  %v3185_v41 = vadd.f32 %v3184_v9, %v3166_v35  ;;  %v3187_v42 = vpop.f32.mrf.mxu0  ;;  %12049 = vmatmul.msk.bf16.vlgmr.msrb.gmra.mxu1 %vm281_vm2, %v11992_v10  ;;  %v3168_v44 = vpop.f32.mrf.mxu2  ;;  %v11288_v9 = vrot.slane %v3208_v39, 9  ;;  %1693 = vst.msk [vmem:[#allocation2 + $0x18] sm:$0xf] %vm525_vm11, %v1688_v61  ;;  %v12058_v39 = vor.u32 %v14745_v19, %v12055_v27  ;;  %v12063_v19 = vld [vmem:[%s19045_s0 + $0x198] sm:$0x30] }
 0x1a2   :  { %5482 = vmatpush.bf16.msrb.mxu2 %v14788_v23  ;;  %5742 = vmatpush.bf16.msrb.mxu1 %v14817_v26  ;;  %v3169_v52 = vadd.f32 %v3168_v44, %v3054_v32  ;;  %1701 = vst.msk [vmem:[#allocation2 + $0x18] sm:$0xf] %vm535_vm12, %v1696_v54  ;;  %v17389_v5 = vpop.f32.mrf.mxu3  ;;  %v12000_v10 = vor.u32 %v14763_v0, %v11997_v30  ;;  %v12155_v30 = vld [vmem:[%s19045_s0 + $0x1c8] sm:$0xf0] }
 0x1a3   :  { %v3193_v46 = vadd.f32 %v17224_v59, %v3185_v41  ;;  %5508 = vmatpush.bf16.msra.mxu0 %v14789_v56 }
 0x1a4   :  { %v3188_v3 = vadd.f32 %v3187_v42, %v3169_v52 }
 0x1a5   :  { %5352 = vmatpush.bf16.msrb.mxu3 %v14800_v63  ;;  %vm3197_vm7 = vcmp.ge.f32.partialorder %v3193_v46, 0.0  ;;  %v3201_v43 = vmul.f32 0.2, %v3193_v46  ;;  %v17341_v7 = vpop.f32.mrf.mxu1 }
 0x1a6   :  { %5483 = vmatpush.bf16.msrb.mxu2 %v14787_v45  ;;  %5743 = vmatpush.bf16.msrb.mxu1 %v14816_v58  ;;  %v3194_v14 = vadd.f32 %v17224_v59, %v3188_v3  ;;  %v1676_v35 = vpop.permute.xlu1 %1675  ;;  %v14783_v45 = vld [vmem:[%s19042_s4 + $0x10] sm:$0xff]  ;;  %v14782_v58 = vld [vmem:[%s19042_s4 + $0x8] sm:$0xff]  ;;  %v3439_v27 = vadd.f32 %v17341_v7, %v17389_v5  ;;  %v14810_v7 = vld [vmem:[%s19049_s6] sm:$0xff] }
 0x1a7   :  { %v3205_v63 = vsel %vm3197_vm7, %v3193_v46, %v3201_v43  ;;  %1680 = vst.msk [vmem:[#allocation2 + $0x1c] sm:$0x3] %vm508_vm15, %v1676_v35  ;;  %v3437_v46 = vadd.f32 %v17303_v47, %v17328_v57  ;;  %v14822_v43 = vld [vmem:[%s19049_s6 + $0x58] sm:$0xff] }
 0x1a8   :  { %v17330_v1 = vpack.c.bf16 %v3205_v63, %v3205_v63  ;;  %vm3198_vm14 = vcmp.ge.f32.partialorder %v3194_v14, 0.0  ;;  %v3202_v24 = vmul.f32 0.2, %v3194_v14  ;;  %1694 = vst.msk [vmem:[#allocation2 + $0x1c] sm:$0x3] %vm527_vm3, %v17295_v38  ;;  %v14813_v38 = vld [vmem:[%s19049_s6 + $0x18] sm:$0xff] }
 0x1a9   :  { %5353 = vmatpush.bf16.msrb.mxu3 %v14799_v25  ;;  %v3189_v25 = vpop.f32.mrf.mxu0  ;;  %v3170_v8 = vpop.f32.mrf.mxu2  ;;  %1702 = vst.msk [vmem:[#allocation2 + $0x1c] sm:$0x3] %vm537_vm5, %v1698_v40  ;;  %v14812_v63 = vld [vmem:[%s19049_s6 + $0x10] sm:$0xff] }
 0x1aa   :  { %5484 = vmatpush.bf16.msrb.mxu2 %v14786_v51  ;;  %3212 = vst.msk [vmem:[#allocation2 + $0x3c] sm:$0x3] %vm483_vm8, %v17330_v1  ;;  %v3236_v48 = vrot.slane %v17330_v1, 5  ;;  %5744 = vmatpush.bf16.msrb.mxu1 %v14815_v12  ;;  %v3171_v34 = vadd.f32 %v3170_v8, %v3056_v33  ;;  %v3206_v36 = vsel %vm3198_vm14, %v3194_v14, %v3202_v24  ;;  %v11287_v32 = vrot.slane %v17330_v1, 11  ;;  %v14844_v51 = vld [vmem:[%s19049_s6 + $0xf8] sm:$0xff]  ;;  %v17428_v54 = vpop.f32.mrf.mxu3  ;;  %v14821_v1 = vld [vmem:[%s19049_s6 + $0x50] sm:$0xff] }
 0x1ab   :  { %v3213_v62 = vpack.c.bf16 %v3206_v36, %v3206_v36  ;;  %v12061_v14 = vld [vmem:[%s19045_s0 + $0x190] sm:$0xf]  ;;  %v12153_v33 = vld [vmem:[%s19045_s0 + $0x1c0] sm:$0xf]  ;;  %v14794_v24 = vld [vmem:[%s19045_s0 + $0x1c4] sm:$0xf0] }
 0x1ac   :  { %v3237_v23 = vsel %vm16110_vm9, %v11288_v9, %v3236_v48  ;;  %v3238_v21 = vrot.slane %v3236_v48, 4  ;;  %v3190_v41 = vadd.f32 %v3189_v25, %v3171_v34  ;;  %4973 = vmatmul.bf16.gmra.mxu3 %v11996_v4  ;;  %v14811_v25 = vld [vmem:[%s19049_s6 + $0x8] sm:$0xff]  ;;  %v14793_v8 = vld [vmem:[%s19045_s0 + $0x1c4] sm:$0xf]  ;;  %v12154_v4 = vor.u32 %v14794_v24, %v12153_v33 }
 0x1ad   :  { %5354 = vmatpush.bf16.msrb.mxu3 %v14798_v20  ;;  %v14746_v20 = vld [vmem:[%s19045_s0 + $0x184] sm:$0xf0]  ;;  %3239 = vrot.lane.b32.xlu2 %v3237_v23, %s15212_s23  ;;  %v17401_v26 = vpop.f32.mrf.mxu1  ;;  %v14819_v36 = vld [vmem:[%s19049_s6 + $0x40] sm:$0xff] }
 0x1ae   :  { %5485 = vmatpush.bf16.msrb.mxu2 %v14785_v6  ;;  %3241 = vrot.lane.b32.xlu0 %v3238_v21, %s15212_s23  ;;  %v3195_v55 = vadd.f32 %v17224_v59, %v3190_v41  ;;  %v14781_v6 = vld [vmem:[%s19042_s4] sm:$0xff]  ;;  %v14842_v23 = vld [vmem:[%s19049_s6 + $0xe8] sm:$0xff] }
 0x1af   :  { %3247 = vrot.lane.b32.xlu1 %v3213_v62, %s15213_s18  ;;  %5745 = vmatpush.bf16.msrb.mxu1 %v14814_v29  ;;  %v14834_v29 = vld [vmem:[%s19049_s6 + $0xb0] sm:$0xff]  ;;  %v14777_v33 = vld [vmem:[%s19045_s0 + $0x1a4] sm:$0xf] }
 0x1b0   :  { %12115 = vmatmul.msk.bf16.vlgmr.msrb.gmra.mxu0 %vm281_vm2, %v12058_v39  ;;  %vm3199_vm6 = vcmp.ge.f32.partialorder %v3195_v55, 0.0  ;;  %v3203_v47 = vmul.f32 0.2, %v3195_v55 }
 0x1b1   :  { %5355 = vmatpush.bf16.msrb.mxu3 %v14797_v37  ;;  %v12054_v37 = vor.u32 %v14746_v20, %v12053_v18  ;;  %v3570_v42 = vpop.f32.mrf.mxu0  ;;  %12050 = vmatmul.msk.bf16.gmra.mxu1 %vm281_vm2, %v12000_v10  ;;  %v14748_v18 = vld [vmem:[%s19045_s0 + $0x194] sm:$0x30]  ;;  %v14747_v20 = vld [vmem:[%s19045_s0 + $0x194] sm:$0xf] }
 0x1b2   :  { %5486 = vmatpush.bf16.msrb.mxu2 %v14784_v28  ;;  %v3207_v57 = vsel %vm3199_vm6, %v3195_v55, %v3203_v47  ;;  %5918 = vmatpush.bf16.msrb.mxu0 %v14844_v51  ;;  %v17490_v34 = vpop.f32.mrf.mxu3  ;;  %v12062_v35 = vor.u32 %v14748_v18, %v12061_v14  ;;  %v14862_v10 = vld [vmem:[%s19049_s6 + $0x78] sm:$0xff]  ;;  %v14841_v55 = vld [vmem:[%s19049_s6 + $0xe0] sm:$0xff]  ;;  %v14778_v18 = vld [vmem:[%s19045_s0 + $0x1a4] sm:$0xf0] }
 0x1b3   :  { %5102 = vmatmul.bf16.vlgmr.msra.gmra.mxu2 %v12054_v37  ;;  %5746 = vmatpush.bf16.msrb.mxu1 %v14813_v38  ;;  %v3214_v56 = vpack.c.bf16 %v3207_v57, %v3207_v57  ;;  %v3442_v38 = vadd.f32 %v17401_v26, %v17428_v54  ;;  %v14861_v26 = vld [vmem:[%s19049_s6 + $0x70] sm:$0xff]  ;;  %v14832_v47 = vld [vmem:[%s19049_s6 + $0xa0] sm:$0xff] }
 0x1b5   :  { %5674 = vmatpush.bf16.msra.mxu3 %v14826_v49  ;;  %v3220_v49 = vrot.slane %v3213_v62, 7  ;;  %v17442_v9 = vpop.f32.mrf.mxu1  ;;  %v3223_v48 = vrot.slane %v3214_v56, 7  ;;  %3249 = vrot.lane.b32.xlu2 %v3214_v56, %s15213_s18  ;;  %v12066_v62 = vor.u32 %v14747_v20, %v12063_v19  ;;  %v14831_v20 = vld [vmem:[%s19049_s6 + $0x98] sm:$0xff] }
 0x1b6   :  { %5487 = vmatpush.bf16.msrb.mxu2 %v14783_v45  ;;  %5919 = vmatpush.bf16.msrb.mxu0 %v14843_v2  ;;  %v2076_v2 = vpop.permute.xlu2 %2075  ;;  %v3444_v24 = vadd.f32 %v17442_v9, %v17490_v34  ;;  %v14850_v9 = vld [vmem:[%s19049_s6 + $0x20] sm:$0xff] }
 0x1b7   :  { %v3221_v44 = vsel %vm16181_vm13, %v11287_v32, %v3220_v49  ;;  %5747 = vmatpush.bf16.msrb.mxu1 %v14812_v63  ;;  %v3222_v12 = vrot.slane %v3220_v49, 4  ;;  %v14853_v49 = vld [vmem:[%s19049_s6 + $0x38] sm:$0xff]  ;;  %v14833_v32 = vld [vmem:[%s19049_s6 + $0xa8] sm:$0xff] }
 0x1b8   :  { %3225 = vrot.lane.b32.xlu0 %v3221_v44, %s15214_s1  ;;  %v14852_v44 = vld [vmem:[%s19049_s6 + $0x30] sm:$0xff] }
 0x1b9   :  { %5675 = vmatpush.bf16.msra.mxu3 %v14825_v60  ;;  %v3551_v60 = vpop.f32.mrf.mxu2  ;;  %v3572_v3 = vpop.f32.mrf.mxu0  ;;  %v3224_v21 = vsel %vm16181_vm13, %v3222_v12, %v3223_v48 }
 0x1ba   :  { %v3552_v52 = vadd.f32 %v3551_v60, %v3437_v46  ;;  %5488 = vmatpush.bf16.msrb.mxu2 %v14782_v58  ;;  %3227 = vrot.lane.b32.xlu1 %v3224_v21, %s15214_s1  ;;  %v17527_v54 = vpop.f32.mrf.mxu3 }
 0x1bb   :  { %5748 = vmatpush.bf16.msrb.mxu1 %v14811_v25  ;;  %5920 = vmatpush.bf16.msrb.mxu0 %v14842_v23  ;;  %v14860_v25 = vld [vmem:[%s19049_s6 + $0x68] sm:$0xff]  ;;  %v14839_v23 = vld [vmem:[%s19049_s6 + $0xd0] sm:$0xff] }
 0x1bc   :  { %v3571_v61 = vadd.f32 %v3570_v42, %v3552_v52  ;;  %v12158_v42 = vor.u32 %v14793_v8, %v12155_v30  ;;  %5356 = vmatmul.bf16.vlgmr.msrb.gmra.mxu3 %v12154_v4  ;;  %v14840_v52 = vld [vmem:[%s19049_s6 + $0xd8] sm:$0xff]  ;;  %v14859_v8 = vld [vmem:[%s19049_s6 + $0x60] sm:$0xff]  ;;  %v14795_v30 = vld [vmem:[%s19045_s0 + $0x1d4] sm:$0xf] }
 0x1bd   :  { %5676 = vmatpush.bf16.msra.mxu3 %v14824_v13  ;;  %v14820_v13 = vld [vmem:[%s19049_s6 + $0x48] sm:$0xff]  ;;  %v17501_v45 = vpop.f32.mrf.mxu1 }
 0x1be   :  { %v3580_v17 = vadd.f32 %v17224_v59, %v3571_v61  ;;  %5489 = vmatpush.bf16.msrb.mxu2 %v14781_v6  ;;  %v2084_v60 = vpop.permute.xlu1 %2083 }
 0x1bf   :  { %5749 = vmatpush.bf16.msrb.mxu1 %v14810_v7  ;;  %5921 = vmatpush.bf16.msrb.mxu0 %v14841_v55  ;;  %v12163_v7 = vld [vmem:[%s19045_s0 + $0x1d8] sm:$0x30]  ;;  %v3825_v55 = vadd.f32 %v17501_v45, %v17527_v54 }
 0x1c0   :  { %vm3584_vm7 = vcmp.ge.f32.partialorder %v3580_v17, 0.0  ;;  %v3588_v28 = vmul.f32 0.2, %v3580_v17  ;;  %12116 = vmatmul.msk.bf16.gmra.mxu0 %vm281_vm2, %v12066_v62  ;;  %v14880_v45 = vld [vmem:[%s19049_s6 + $0xf8] sm:$0xff] }
 0x1c1   :  { %5677 = vmatpush.bf16.msra.mxu3 %v14823_v15  ;;  %v3553_v0 = vpop.f32.mrf.mxu2  ;;  %v17496_v15 = vpop.permute.xlu0 %2077  ;;  %12215 = vmatmul.msk.bf16.vlgmr.msra.gmra.mxu1 %vm281_vm2, %v12158_v42 }
 0x1c2   :  { %5829 = vmatpush.bf16.msra.mxu2 %v14835_v16  ;;  %v3554_v5 = vadd.f32 %v3553_v0, %v3439_v27  ;;  %v3592_v37 = vsel %vm3584_vm7, %v3580_v17, %v3588_v28  ;;  %v3575_v41 = vpop.f32.mrf.mxu0  ;;  %v12161_v16 = vld [vmem:[%s19045_s0 + $0x1d0] sm:$0xf]  ;;  %v14796_v17 = vld [vmem:[%s19045_s0 + $0x1d4] sm:$0x30]  ;;  %v12221_v28 = vld [vmem:[%s19045_s0 + $0x1a8] sm:$0xf0]  ;;  %v17591_v34 = vpop.f32.mrf.mxu3 }
 0x1c3   :  { %v3596_v39 = vpack.c.bf16 %v3592_v37, %v3592_v37  ;;  %5107 = vmatmul.bf16.gmra.mxu2 %v12062_v35  ;;  %6124 = vmatpush.bf16.msra.mxu1 %v14853_v49  ;;  %v14838_v37 = vld [vmem:[%s19049_s6 + $0xc8] sm:$0xff]  ;;  %v12162_v4 = vor.u32 %v14796_v17, %v12161_v16  ;;  %v14830_v49 = vld [vmem:[%s19049_s6 + $0x90] sm:$0xff]  ;;  %v14871_v16 = vld [vmem:[%s19049_s6 + $0xb8] sm:$0xff] }
 0x1c4   :  { %v3573_v40 = vadd.f32 %v3572_v3, %v3554_v5  ;;  %v14851_v3 = vld [vmem:[%s19049_s6 + $0x28] sm:$0xff]  ;;  %5922 = vmatpush.bf16.msrb.mxu0 %v14840_v52 }
 0x1c5   :  { %5678 = vmatpush.bf16.msra.mxu3 %v14822_v43  ;;  %3599 = vst.msk [vmem:[#allocation2 + $0x40] sm:$0xf] %vm481_vm4, %v3596_v39  ;;  %v17543_v6 = vpop.f32.mrf.mxu1  ;;  %v11454_v48 = vrot.slane %v3596_v39, 9  ;;  %v12224_v39 = vor.u32 %v14777_v33, %v12221_v28  ;;  %v14878_v33 = vld [vmem:[%s19049_s6 + $0xe8] sm:$0xff]  ;;  %v12229_v28 = vld [vmem:[%s19045_s0 + $0x1b8] sm:$0x30] }
 0x1c6   :  { %5830 = vmatpush.bf16.msra.mxu2 %v14834_v29  ;;  %v3581_v46 = vadd.f32 %v17224_v59, %v3573_v40  ;;  %v2064_v5 = vpop.permute.xlu1 %2063  ;;  %v2086_v40 = vpop.permute.xlu2 %2085 }
 0x1c7   :  { %6125 = vmatpush.bf16.msra.mxu1 %v14852_v44  ;;  %2068 = vst.msk [vmem:[#allocation2 + $0x24] sm:$0x3] %vm508_vm15, %v2064_v5 }
 0x1c8   :  { %vm3585_vm14 = vcmp.ge.f32.partialorder %v3581_v46, 0.0  ;;  %v3589_v43 = vmul.f32 0.2, %v3581_v46  ;;  %5923 = vmatpush.bf16.msrb.mxu0 %v14839_v23  ;;  %2082 = vst.msk [vmem:[#allocation2 + $0x24] sm:$0x3] %vm527_vm3, %v17496_v15 }
 0x1c9   :  { %5679 = vmatpush.bf16.msra.mxu3 %v14821_v1  ;;  %v3556_v51 = vpop.f32.mrf.mxu2  ;;  %v2062_v1 = vpop.permute.xlu0 %2061  ;;  %2090 = vst.msk [vmem:[#allocation2 + $0x24] sm:$0x3] %vm537_vm5, %v2086_v40  ;;  %v12303_v40 = vld [vmem:[#allocation2 + $0x8] sm:$0xf] }
 0x1ca   :  { %5831 = vmatpush.bf16.msra.mxu2 %v14833_v32  ;;  %v3593_v58 = vsel %vm3585_vm14, %v3581_v46, %v3589_v43  ;;  %v3557_v63 = vadd.f32 %v3556_v51, %v3442_v38  ;;  %v3577_v61 = vpop.f32.mrf.mxu0  ;;  %2067 = vst.msk [vmem:[#allocation2 + $0x20] sm:$0xf] %vm506_vm10, %v2062_v1  ;;  %v14849_v46 = vld [vmem:[%s19049_s6 + $0x18] sm:$0xff]  ;;  %v14837_v51 = vld [vmem:[%s19049_s6 + $0xc0] sm:$0xff]  ;;  %v17633_v54 = vpop.f32.mrf.mxu3  ;;  %v14857_v1 = vld [vmem:[%s19049_s6 + $0x50] sm:$0xff] }
 0x1cb   :  { %v17532_v57 = vpack.c.bf16 %v3593_v58, %v3593_v58  ;;  %2081 = vst.msk [vmem:[#allocation2 + $0x20] sm:$0xf] %vm525_vm11, %v2076_v2  ;;  %6126 = vmatpush.bf16.msra.mxu1 %v14851_v3  ;;  %v14829_v58 = vld [vmem:[%s19049_s6 + $0x88] sm:$0xff] }
 0x1cc   :  { %v3576_v56 = vadd.f32 %v3575_v41, %v3557_v63  ;;  %2089 = vst.msk [vmem:[#allocation2 + $0x20] sm:$0xf] %vm535_vm12, %v2084_v60  ;;  %5924 = vmatpush.bf16.msrb.mxu0 %v14838_v37  ;;  %5361 = vmatmul.bf16.gmra.mxu3 %v12162_v4  ;;  %v14848_v63 = vld [vmem:[%s19049_s6 + $0x10] sm:$0xff]  ;;  %v14809_v37 = vld [vmem:[#allocation2] sm:$0x30] }
 0x1cd   :  { %5680 = vmatpush.bf16.msra.mxu3 %v14820_v13  ;;  %3600 = vst.msk [vmem:[#allocation2 + $0x44] sm:$0x3] %vm483_vm8, %v17532_v57  ;;  %v3624_v12 = vrot.slane %v17532_v57, 5  ;;  %v12219_v13 = vld [vmem:[%s19045_s0 + $0x1a0] sm:$0xf]  ;;  %v17603_v32 = vpop.f32.mrf.mxu1  ;;  %v11453_v15 = vrot.slane %v17532_v57, 11 }
 0x1ce   :  { %5832 = vmatpush.bf16.msra.mxu2 %v14832_v47  ;;  %v3582_v14 = vadd.f32 %v17224_v59, %v3576_v56  ;;  %v14879_v56 = vld [vmem:[%s19049_s6 + $0xf0] sm:$0xff] }
 0x1cf   :  { %v3625_v21 = vsel %vm16110_vm9, %v11454_v48, %v3624_v12  ;;  %v3626_v19 = vrot.slane %v3624_v12, 4  ;;  %6127 = vmatpush.bf16.msra.mxu1 %v14850_v9 }
 0x1d0   :  { %3627 = vrot.lane.b32.xlu2 %v3625_v21, %s15212_s23  ;;  %vm3586_vm6 = vcmp.ge.f32.partialorder %v3582_v14, 0.0  ;;  %v3590_v27 = vmul.f32 0.2, %v3582_v14  ;;  %12281 = vmatmul.msk.bf16.vlgmr.msra.gmra.mxu0 %vm281_vm2, %v12224_v39  ;;  %v14780_v21 = vld [vmem:[%s19045_s0 + $0x1b4] sm:$0x30] }
 0x1d1   :  { %5681 = vmatpush.bf16.msra.mxu3 %v14819_v36  ;;  %v3558_v0 = vpop.f32.mrf.mxu2  ;;  %3629 = vrot.lane.b32.xlu0 %v3626_v19, %s15212_s23  ;;  %v12220_v36 = vor.u32 %v14778_v18, %v12219_v13  ;;  %v14856_v18 = vld [vmem:[%s19049_s6 + $0x48] sm:$0xff]  ;;  %v14779_v19 = vld [vmem:[%s19045_s0 + $0x1b4] sm:$0xf] }
 0x1d2   :  { %v3559_v29 = vadd.f32 %v3558_v0, %v3444_v24  ;;  %v3594_v35 = vsel %vm3586_vm6, %v3582_v14, %v3590_v27  ;;  %5833 = vmatpush.bf16.msra.mxu2 %v14831_v20  ;;  %v3958_v42 = vpop.f32.mrf.mxu0  ;;  %5925 = vmatpush.bf16.msrb.mxu0 %v14837_v51  ;;  %v14847_v14 = vld [vmem:[%s19049_s6 + $0x8] sm:$0xff]  ;;  %v12227_v20 = vld [vmem:[%s19045_s0 + $0x1b0] sm:$0xf]  ;;  %v3827_v24 = vadd.f32 %v17543_v6, %v17591_v34  ;;  %v14846_v0 = vld [vmem:[%s19049_s6] sm:$0xff]  ;;  %v17683_v9 = vpop.f32.mrf.mxu3 }
 0x1d3   :  { %v3601_v62 = vpack.c.bf16 %v3594_v35, %v3594_v35  ;;  %5490 = vmatmul.bf16.vlgmr.msrb.gmra.mxu2 %v12220_v36  ;;  %6128 = vmatpush.bf16.msra.mxu1 %v14849_v46  ;;  %v14870_v6 = vld [vmem:[%s19049_s6 + $0xb0] sm:$0xff]  ;;  %v14855_v34 = vld [vmem:[%s19049_s6 + $0x40] sm:$0xff]  ;;  %v12232_v36 = vor.u32 %v14779_v19, %v12229_v28  ;;  %v14869_v46 = vld [vmem:[%s19049_s6 + $0xa8] sm:$0xff] }
 0x1d4   :  { %v3578_v41 = vadd.f32 %v3577_v61, %v3559_v29  ;;  %v14818_v29 = vld [vmem:[#allocation2 + $0x8] sm:$0x30]  ;;  %v14895_v19 = vld [vmem:[%s19049_s6 + $0x60] sm:$0xff]  ;;  %v12391_v28 = vld [vmem:[#allocation2 + $0x10] sm:$0xf] }
 0x1d5   :  { %6056 = vmatpush.bf16.msrb.mxu3 %v14862_v10  ;;  %v12166_v10 = vor.u32 %v14795_v30, %v12163_v7  ;;  %v3608_v38 = vrot.slane %v3601_v62, 7  ;;  %3635 = vrot.lane.b32.xlu1 %v3601_v62, %s15213_s18  ;;  %v17644_v48 = vpop.f32.mrf.mxu1  ;;  %v12228_v7 = vor.u32 %v14780_v21, %v12227_v20 }
 0x1d6   :  { %v3583_v43 = vadd.f32 %v17224_v59, %v3578_v41  ;;  %5834 = vmatpush.bf16.msra.mxu2 %v14830_v49  ;;  %6298 = vmatpush.bf16.msra.mxu0 %v14880_v45  ;;  %v14898_v41 = vld [vmem:[%s19049_s6 + $0x78] sm:$0xff]  ;;  %v12339_v49 = vld [vmem:[#allocation2] sm:$0xf]  ;;  %v14888_v45 = vld [vmem:[%s19049_s6 + $0x30] sm:$0xff]  ;;  %v3832_v21 = vadd.f32 %v17644_v48, %v17683_v9 }
 0x1d7   :  { %v3609_v44 = vsel %vm16181_vm13, %v11453_v15, %v3608_v38  ;;  %12216 = vmatmul.msk.bf16.gmra.mxu1 %vm281_vm2, %v12166_v10  ;;  %v3610_v13 = vrot.slane %v3608_v38, 4  ;;  %v12304_v10 = vor.u32 %v14818_v29, %v12303_v40  ;;  %v14889_v38 = vld [vmem:[%s19049_s6 + $0x38] sm:$0xff]  ;;  %v3830_v15 = vadd.f32 %v17603_v32, %v17633_v54  ;;  %v14897_v32 = vld [vmem:[%s19049_s6 + $0x70] sm:$0xff]  ;;  %v14874_v29 = vld [vmem:[%s19049_s6 + $0xc8] sm:$0xff] }
 0x1d8   :  { %vm3587_vm7 = vcmp.ge.f32.partialorder %v3583_v43, 0.0  ;;  %v3591_v47 = vmul.f32 0.2, %v3583_v43  ;;  %6129 = vmatpush.bf16.msra.mxu1 %v14848_v63 }
 0x1d9   :  { %6057 = vmatpush.bf16.msrb.mxu3 %v14861_v26  ;;  %v14858_v26 = vld [vmem:[%s19049_s6 + $0x58] sm:$0xff]  ;;  %v3939_v60 = vpop.f32.mrf.mxu2  ;;  %3613 = vrot.lane.b32.xlu0 %v3609_v44, %s15214_s1 }
 0x1da   :  { %v3940_v52 = vadd.f32 %v3939_v60, %v3825_v55  ;;  %v3595_v57 = vsel %vm3587_vm7, %v3583_v43, %v3591_v47  ;;  %v3960_v3 = vpop.f32.mrf.mxu0  ;;  %5835 = vmatpush.bf16.msra.mxu2 %v14829_v58  ;;  %6299 = vmatpush.bf16.msra.mxu0 %v14879_v56  ;;  %v12340_v43 = vor.u32 %v14809_v37, %v12339_v49  ;;  %v14868_v47 = vld [vmem:[%s19049_s6 + $0xa0] sm:$0xff]  ;;  %v14845_v37 = vld [vmem:[#allocation2 + $0x10] sm:$0x30] }
 0x1db   :  { %v3602_v2 = vpack.c.bf16 %v3595_v57, %v3595_v57  ;;  %v17689_v35 = vpop.permute.xlu0 %2465 }
 0x1dc   :  { %v3959_v61 = vadd.f32 %v3958_v42, %v3940_v52  ;;  %6130 = vmatpush.bf16.msra.mxu1 %v14847_v14  ;;  %5682 = vmatmul.bf16.vlgmr.msra.gmra.mxu3 %v12304_v10  ;;  %v14876_v52 = vld [vmem:[%s19049_s6 + $0xd8] sm:$0xff]  ;;  %v14866_v10 = vld [vmem:[%s19049_s6 + $0x90] sm:$0xff] }
 0x1dd   :  { %6058 = vmatpush.bf16.msrb.mxu3 %v14860_v25  ;;  %v14828_v25 = vld [vmem:[%s19049_s6 + $0x80] sm:$0xff]  ;;  %v3611_v12 = vrot.slane %v3602_v2, 7  ;;  %3637 = vrot.lane.b32.xlu2 %v3602_v2, %s15213_s18  ;;  %v17694_v42 = vpop.f32.mrf.mxu1  ;;  %v2464_v2 = vpop.permute.xlu2 %2463 }
 0x1de   :  { %v3968_v17 = vadd.f32 %v17224_v59, %v3959_v61  ;;  %5836 = vmatpush.bf16.msra.mxu2 %v14828_v25  ;;  %6300 = vmatpush.bf16.msra.mxu0 %v14878_v33 }
 0x1df   :  { %v3612_v23 = vsel %vm16181_vm13, %v3610_v13, %v3611_v12  ;;  %v2472_v60 = vpop.permute.xlu1 %2471  ;;  %v17719_v54 = vpop.f32.mrf.mxu3  ;;  %v14887_v12 = vld [vmem:[%s19049_s6 + $0x28] sm:$0xff] }
 0x1e0   :  { %vm3972_vm14 = vcmp.ge.f32.partialorder %v3968_v17, 0.0  ;;  %v3976_v27 = vmul.f32 0.2, %v3968_v17  ;;  %3615 = vrot.lane.b32.xlu1 %v3612_v23, %s15214_s1  ;;  %6131 = vmatpush.bf16.msra.mxu1 %v14846_v0 }
 0x1e1   :  { %6059 = vmatpush.bf16.msrb.mxu3 %v14859_v8  ;;  %v3941_v8 = vpop.f32.mrf.mxu2  ;;  %12282 = vmatmul.msk.bf16.gmra.mxu0 %vm281_vm2, %v12232_v36  ;;  %v12533_v36 = vld [vmem:[#allocation2 + $0x10] sm:$0xf] }
 0x1e2   :  { %6210 = vmatpush.bf16.msrb.mxu2 %v14871_v16  ;;  %v3942_v30 = vadd.f32 %v3941_v8, %v3827_v24  ;;  %v3980_v5 = vsel %vm3972_vm14, %v3968_v17, %v3976_v27  ;;  %v3963_v39 = vpop.f32.mrf.mxu0  ;;  %v14867_v17 = vld [vmem:[%s19049_s6 + $0x98] sm:$0xff]  ;;  %v14886_v27 = vld [vmem:[%s19049_s6 + $0x20] sm:$0xff] }
 0x1e3   :  { %v3984_v62 = vpack.c.bf16 %v3980_v5, %v3980_v5  ;;  %5495 = vmatmul.bf16.gmra.mxu2 %v12228_v7  ;;  %v14827_v8 = vld [vmem:[#allocation2 + $0x10] sm:$0x30]  ;;  %v14854_v7 = vld [vmem:[#allocation2 + $0x18] sm:$0x30]  ;;  %v12443_v5 = vld [vmem:[#allocation2 + $0x18] sm:$0xf] }
 0x1e4   :  { %v3961_v4 = vadd.f32 %v3960_v3, %v3942_v30  ;;  %v14896_v3 = vld [vmem:[%s19049_s6 + $0x68] sm:$0xff]  ;;  %v14836_v30 = vld [vmem:[#allocation2 + $0x18] sm:$0x30]  ;;  %v12392_v40 = vor.u32 %v14827_v8, %v12391_v28 }
 0x1e5   :  { %6060 = vmatpush.bf16.msrb.mxu3 %v14858_v26  ;;  %3987 = vst.msk [vmem:[#allocation2 + $0x48] sm:$0xf] %vm481_vm4, %v3984_v62  ;;  %v14877_v26 = vld [vmem:[%s19049_s6 + $0xe0] sm:$0xff]  ;;  %v17732_v25 = vpop.f32.mrf.mxu1  ;;  %v11620_v13 = vrot.slane %v3984_v62, 9  ;;  %v2474_v62 = vpop.permute.xlu2 %2473 }
 0x1e6   :  { %6211 = vmatpush.bf16.msrb.mxu2 %v14870_v6  ;;  %v3969_v55 = vadd.f32 %v17224_v59, %v3961_v4  ;;  %6301 = vmatpush.bf16.msra.mxu0 %v14877_v26  ;;  %v4213_v26 = vadd.f32 %v17694_v42, %v17719_v54  ;;  %v14865_v42 = vld [vmem:[%s19049_s6 + $0x88] sm:$0xff]  ;;  %v14891_v28 = vld [vmem:[%s19049_s6 + $0x40] sm:$0xff] }
 0x1e7   :  { %5750 = vmatmul.bf16.vlgmr.msrb.gmra.mxu1 %v12340_v43  ;;  %v17759_v0 = vpop.f32.mrf.mxu3 }
 0x1e8   :  { %vm3973_vm6 = vcmp.ge.f32.partialorder %v3969_v55, 0.0  ;;  %v3977_v51 = vmul.f32 0.2, %v3969_v55  ;;  %6500 = vmatpush.bf16.msrb.mxu1 %v14889_v38 }
 0x1e9   :  { %6061 = vmatpush.bf16.msrb.mxu3 %v14857_v1  ;;  %v3944_v44 = vpop.f32.mrf.mxu2  ;;  %v2450_v1 = vpop.permute.xlu0 %2449 }
 0x1ea   :  { %6212 = vmatpush.bf16.msrb.mxu2 %v14869_v46  ;;  %v3981_v58 = vsel %vm3973_vm6, %v3969_v55, %v3977_v51  ;;  %v3945_v63 = vadd.f32 %v3944_v44, %v3830_v15  ;;  %v3965_v61 = vpop.f32.mrf.mxu0  ;;  %2455 = vst.msk [vmem:[#allocation2 + $0x28] sm:$0xf] %vm506_vm10, %v2450_v1  ;;  %6302 = vmatpush.bf16.msra.mxu0 %v14876_v52  ;;  %v14894_v55 = vld [vmem:[%s19049_s6 + $0x58] sm:$0xff]  ;;  %v14873_v44 = vld [vmem:[%s19049_s6 + $0xc0] sm:$0xff] }
 0x1eb   :  { %v17724_v57 = vpack.c.bf16 %v3981_v58, %v3981_v58  ;;  %2469 = vst.msk [vmem:[#allocation2 + $0x28] sm:$0xf] %vm525_vm11, %v2464_v2  ;;  %v12444_v46 = vor.u32 %v14836_v30, %v12443_v5  ;;  %v14884_v58 = vld [vmem:[%s19049_s6 + $0x10] sm:$0xff]  ;;  %v14916_v30 = vld [vmem:[%s19049_s6 + $0xf8] sm:$0xff] }
 0x1ec   :  { %v3964_v56 = vadd.f32 %v3963_v39, %v3945_v63  ;;  %6501 = vmatpush.bf16.msrb.mxu1 %v14888_v45  ;;  %2477 = vst.msk [vmem:[#allocation2 + $0x28] sm:$0xf] %vm535_vm12, %v2472_v60  ;;  %v14893_v60 = vld [vmem:[%s19049_s6 + $0x50] sm:$0xff] }
 0x1ed   :  { %6062 = vmatpush.bf16.msrb.mxu3 %v14856_v18  ;;  %3988 = vst.msk [vmem:[#allocation2 + $0x4c] sm:$0x3] %vm483_vm8, %v17724_v57  ;;  %v4012_v14 = vrot.slane %v17724_v57, 5  ;;  %v14875_v18 = vld [vmem:[%s19049_s6 + $0xd0] sm:$0xff]  ;;  %v2452_v6 = vpop.permute.xlu1 %2451  ;;  %v17771_v49 = vpop.f32.mrf.mxu1  ;;  %v11619_v43 = vrot.slane %v17724_v57, 11 }
 0x1ee   :  { %6213 = vmatpush.bf16.msrb.mxu2 %v14868_v47  ;;  %v3970_v16 = vadd.f32 %v17224_v59, %v3964_v56  ;;  %6303 = vmatpush.bf16.msra.mxu0 %v14875_v18  ;;  %2456 = vst.msk [vmem:[#allocation2 + $0x2c] sm:$0x3] %vm508_vm15, %v2452_v6  ;;  %v14864_v56 = vld [vmem:[%s19049_s6 + $0x80] sm:$0xff]  ;;  %v14907_v18 = vld [vmem:[%s19049_s6 + $0xb8] sm:$0xff] }
 0x1ef   :  { %v4013_v20 = vsel %vm16110_vm9, %v11620_v13, %v4012_v14  ;;  %v4014_v23 = vrot.slane %v4012_v14, 4  ;;  %2470 = vst.msk [vmem:[#allocation2 + $0x2c] sm:$0x3] %vm527_vm3, %v17689_v35  ;;  %v14885_v35 = vld [vmem:[%s19049_s6 + $0x18] sm:$0xff]  ;;  %v4198_v63 = vpop.f32.mrf.mxu3  ;;  %v14892_v13 = vld [vmem:[%s19049_s6 + $0x48] sm:$0xff] }
 0x1f0   :  { %4015 = vrot.lane.b32.xlu2 %v4013_v20, %s15212_s23  ;;  %vm3974_vm7 = vcmp.ge.f32.partialorder %v3970_v16, 0.0  ;;  %v3978_v33 = vmul.f32 0.2, %v3970_v16  ;;  %6502 = vmatpush.bf16.msrb.mxu1 %v14887_v12  ;;  %2478 = vst.msk [vmem:[#allocation2 + $0x2c] sm:$0x3] %vm537_vm5, %v2474_v62  ;;  %v14883_v12 = vld [vmem:[%s19049_s6 + $0x8] sm:$0xff] }
 0x1f1   :  { %6063 = vmatpush.bf16.msrb.mxu3 %v14855_v34  ;;  %v3946_v24 = vpop.f32.mrf.mxu2  ;;  %4017 = vrot.lane.b32.xlu0 %v4014_v23, %s15212_s23  ;;  %v4215_v23 = vadd.f32 %v17732_v25, %v17759_v0  ;;  %v14925_v25 = vld [vmem:[%s19049_s6 + $0x38] sm:$0xff]  ;;  %v14906_v0 = vld [vmem:[%s19049_s6 + $0xb0] sm:$0xff] }
 0x1f2   :  { %v3947_v48 = vadd.f32 %v3946_v24, %v3832_v21  ;;  %6214 = vmatpush.bf16.msrb.mxu2 %v14867_v17  ;;  %v3982_v9 = vsel %vm3974_vm7, %v3970_v16, %v3978_v33  ;;  %v4346_v39 = vpop.f32.mrf.mxu0  ;;  %6304 = vmatpush.bf16.msra.mxu0 %v14874_v29  ;;  %v17813_v16 = vld [vmem:[%s19048_s5] ss:$0 sm:$0xff]  ;;  %v14881_v33 = vld [vmem:[#allocation2 + $0x20] sm:$0x30] }
 0x1f3   :  { %v3989_v34 = vpack.c.bf16 %v3982_v9, %v3982_v9  ;;  %5837 = vmatmul.bf16.vlgmr.msra.gmra.mxu2 %v12392_v40  ;;  %5926 = vmatmul.bf16.vlgmr.msrb.gmra.mxu0 %v12444_v46  ;;  %v12637_v62 = vld [vmem:[#allocation2 + $0x28] sm:$0xf]  ;;  %v14934_v46 = vld [vmem:[%s19049_s6 + $0x78] sm:$0xff] }
 0x1f4   :  { %v3966_v4 = vadd.f32 %v3965_v61, %v3947_v48  ;;  %6503 = vmatpush.bf16.msrb.mxu1 %v14886_v27  ;;  %v14882_v27 = vld [vmem:[%s19049_s6] sm:$0xff] }
 0x1f5   :  { %6432 = vmatpush.bf16.msra.mxu3 %v14898_v41  ;;  %v12497_v41 = vld [vmem:[#allocation2 + $0x18] sm:$0xf]  ;;  %v3996_v38 = vrot.slane %v3989_v34, 7  ;;  %4023 = vrot.lane.b32.xlu1 %v3989_v34, %s15213_s18  ;;  %v17802_v61 = vpop.f32.mrf.mxu1 }
 0x1f6   :  { %v12498_v15 = vor.u32 %v14854_v7, %v12497_v41  ;;  %v3971_v51 = vadd.f32 %v17224_v59, %v3966_v4  ;;  %6215 = vmatpush.bf16.msrb.mxu2 %v14866_v10  ;;  %6305 = vmatpush.bf16.msra.mxu0 %v14873_v44  ;;  %v12727_v4 = vld [vmem:[#allocation2 + $0x20] sm:$0xf]  ;;  %v12691_v10 = vld [vmem:[#allocation2 + $0x28] sm:$0xf] }
 0x1f7   :  { %v3997_v45 = vsel %vm16181_vm13, %v11619_v43, %v3996_v38  ;;  %v3998_v14 = vrot.slane %v3996_v38, 4  ;;  %v17834_v8 = vpop.f32.mrf.mxu3  ;;  %v14872_v6 = vld [vmem:[#allocation2 + $0x28] sm:$0x30]  ;;  %v12728_v38 = vor.u32 %v14881_v33, %v12727_v4 }
 0x1f8   :  { %6064 = vmatmul.bf16.vlgmr.msrb.gmra.mxu3 %v12498_v15  ;;  %vm3975_vm14 = vcmp.ge.f32.partialorder %v3971_v51, 0.0  ;;  %v3979_v59 = vmul.f32 0.2, %v3971_v51  ;;  %6504 = vmatpush.bf16.msrb.mxu1 %v14885_v35  ;;  %v14890_v29 = vld [vmem:[#allocation2 + $0x28] sm:$0x30]  ;;  %v12638_v41 = vor.u32 %v14872_v6, %v12637_v62  ;;  %v4218_v15 = vadd.f32 %v17771_v49, %v4198_v63  ;;  %v14930_v62 = vld [vmem:[%s19049_s6 + $0x58] sm:$0xff] }
 0x1f9   :  { %6433 = vmatpush.bf16.msra.mxu3 %v14897_v32  ;;  %v12534_v32 = vor.u32 %v14845_v37, %v12533_v36  ;;  %v4327_v47 = vpop.f32.mrf.mxu2  ;;  %4001 = vrot.lane.b32.xlu0 %v3997_v45, %s15214_s1  ;;  %v12585_v37 = vld [vmem:[#allocation2 + $0x20] sm:$0xf]  ;;  %v14924_v43 = vld [vmem:[%s19049_s6 + $0x30] sm:$0xff] }
 0x1fa   :  { %v4328_v54 = vadd.f32 %v4327_v47, %v4213_v26  ;;  %v3983_v52 = vsel %vm3975_vm14, %v3971_v51, %v3979_v59  ;;  %v4348_v2 = vpop.f32.mrf.mxu0  ;;  %6216 = vmatpush.bf16.msrb.mxu2 %v14865_v42  ;;  %6674 = vmatpush.bf16.msrb.mxu0 %v14916_v30  ;;  %v14905_v26 = vld [vmem:[%s19049_s6 + $0xa8] sm:$0xff]  ;;  %v14933_v44 = vld [vmem:[%s19049_s6 + $0x70] sm:$0xff] }
 0x1fb   :  { %6132 = vmatmul.bf16.vlgmr.msra.gmra.mxu1 %v12534_v32  ;;  %v3990_v57 = vpack.c.bf16 %v3983_v52, %v3983_v52  ;;  %v14915_v32 = vld [vmem:[%s19049_s6 + $0xf0] sm:$0xff]  ;;  %v2852_v52 = vpop.permute.xlu2 %2851 }
 0x1fc   :  { %v4347_v1 = vadd.f32 %v4346_v39, %v4328_v54  ;;  %6505 = vmatpush.bf16.msrb.mxu1 %v14884_v58  ;;  %v14923_v58 = vld [vmem:[%s19049_s6 + $0x28] sm:$0xff] }
 0x1fd   :  { %6434 = vmatpush.bf16.msra.mxu3 %v14896_v3  ;;  %v3999_v3 = vrot.slane %v3990_v57, 7  ;;  %4025 = vrot.lane.b32.xlu2 %v3990_v57, %s15213_s18  ;;  %v17843_v7 = vpop.permute.xlu0 %2853  ;;  %v17847_v39 = vpop.f32.mrf.mxu1 }
 0x1fe   :  { %v4356_v17 = vadd.f32 %v17813_v16, %v4347_v1  ;;  %6217 = vmatpush.bf16.msrb.mxu2 %v14864_v56  ;;  %6675 = vmatpush.bf16.msrb.mxu0 %v14915_v32  ;;  %v14910_v32 = vld [vmem:[%s19049_s6 + $0xc8] sm:$0xff] }
 0x1ff   :  { %v4000_v20 = vsel %vm16181_vm13, %v3998_v14, %v3999_v3  ;;  %v2860_v42 = vpop.permute.xlu1 %2859  ;;  %v4581_v47 = vpop.f32.mrf.mxu3 }
 0x200   :  { %vm4360_vm6 = vcmp.ge.f32.partialorder %v4356_v17, 0.0  ;;  %v4364_v21 = vmul.f32 0.2, %v4356_v17  ;;  %4003 = vrot.lane.b32.xlu1 %v4000_v20, %s15214_s1  ;;  %6506 = vmatpush.bf16.msrb.mxu1 %v14883_v12  ;;  %v14914_v12 = vld [vmem:[%s19049_s6 + $0xe8] sm:$0xff]  ;;  %v4601_v4 = vadd.f32 %v17847_v39, %v4581_v47  ;;  %v14911_v39 = vld [vmem:[%s19049_s6 + $0xd0] sm:$0xff] }
 0x201   :  { %6435 = vmatpush.bf16.msra.mxu3 %v14895_v19  ;;  %v14863_v19 = vld [vmem:[#allocation2 + $0x20] sm:$0x30]  ;;  %v4329_v24 = vpop.f32.mrf.mxu2 }
 0x202   :  { %6586 = vmatpush.bf16.msra.mxu2 %v14907_v18  ;;  %v4330_v48 = vadd.f32 %v4329_v24, %v4215_v23  ;;  %v4368_v9 = vsel %vm4360_vm6, %v4356_v17, %v4364_v21  ;;  %v4351_v36 = vpop.f32.mrf.mxu0  ;;  %v12586_v40 = vor.u32 %v14863_v19, %v12585_v37  ;;  %v14922_v17 = vld [vmem:[%s19049_s6 + $0x20] sm:$0xff]  ;;  %v14903_v18 = vld [vmem:[%s19049_s6 + $0x98] sm:$0xff]  ;;  %6676 = vmatpush.bf16.msrb.mxu0 %v14914_v12 }
 0x203   :  { %v17845_v34 = vpack.c.bf16 %v4368_v9, %v4368_v9  ;;  %6306 = vmatmul.bf16.vlgmr.msra.gmra.mxu0 %v12638_v41  ;;  %v14913_v21 = vld [vmem:[%s19049_s6 + $0xe0] sm:$0xff]  ;;  %v4220_v19 = vadd.f32 %v17802_v61, %v17834_v8  ;;  %v14921_v61 = vld [vmem:[%s19049_s6 + $0x18] sm:$0xff]  ;;  %v14902_v8 = vld [vmem:[%s19049_s6 + $0x90] sm:$0xff]  ;;  %v2862_v30 = vpop.permute.xlu2 %2861 }
 0x204   :  { %v4349_v5 = vadd.f32 %v4348_v2, %v4330_v48  ;;  %6507 = vmatpush.bf16.msrb.mxu1 %v14882_v27  ;;  %6218 = vmatmul.bf16.vlgmr.msrb.gmra.mxu2 %v12586_v40  ;;  %v14931_v27 = vld [vmem:[%s19049_s6 + $0x60] sm:$0xff]  ;;  %v14912_v9 = vld [vmem:[%s19049_s6 + $0xd8] sm:$0xff]  ;;  %v14901_v41 = vld [vmem:[%s19049_s6 + $0x88] sm:$0xff] }
 0x205   :  { %6436 = vmatpush.bf16.msra.mxu3 %v14894_v55  ;;  %4375 = vst.msk [vmem:[#allocation2 + $0x50] sm:$0xf] %vm481_vm4, %v17845_v34  ;;  %v12692_v55 = vor.u32 %v14890_v29, %v12691_v10  ;;  %v17879_v2 = vpop.f32.mrf.mxu1  ;;  %v11786_v56 = vrot.slane %v17845_v34, 9 }
 0x206   :  { %v4357_v35 = vadd.f32 %v17813_v16, %v4349_v5  ;;  %6587 = vmatpush.bf16.msra.mxu2 %v14906_v0  ;;  %v2838_v54 = vpop.permute.xlu0 %2837  ;;  %6677 = vmatpush.bf16.msrb.mxu0 %v14913_v21 }
 0x207   :  { %2843 = vst.msk [vmem:[#allocation2 + $0x30] sm:$0xf] %vm506_vm10, %v2838_v54  ;;  %v14928_v54 = vld [vmem:[%s19049_s6 + $0x48] sm:$0xff] }
 0x208   :  { %6876 = vmatpush.bf16.msra.mxu1 %v14925_v25  ;;  %vm4361_vm7 = vcmp.ge.f32.partialorder %v4357_v35, 0.0  ;;  %v4365_v51 = vmul.f32 0.2, %v4357_v35  ;;  %2857 = vst.msk [vmem:[#allocation2 + $0x30] sm:$0xf] %vm525_vm11, %v2852_v52  ;;  %v17910_v25 = vpop.f32.mrf.mxu3 }
 0x209   :  { %6437 = vmatpush.bf16.msra.mxu3 %v14893_v60  ;;  %v4332_v49 = vpop.f32.mrf.mxu2  ;;  %v14904_v60 = vld [vmem:[%s19049_s6 + $0xa0] sm:$0xff]  ;;  %2865 = vst.msk [vmem:[#allocation2 + $0x30] sm:$0xf] %vm535_vm12, %v2860_v42 }
 0x20a   :  { %v4369_v45 = vsel %vm4361_vm7, %v4357_v35, %v4365_v51  ;;  %6588 = vmatpush.bf16.msra.mxu2 %v14905_v26  ;;  %v4333_v59 = vadd.f32 %v4332_v49, %v4218_v15  ;;  %v4353_v1 = vpop.f32.mrf.mxu0  ;;  %6678 = vmatpush.bf16.msrb.mxu0 %v14912_v9  ;;  %v14929_v15 = vld [vmem:[%s19049_s6 + $0x50] sm:$0xff]  ;;  %v14900_v26 = vld [vmem:[%s19049_s6 + $0x80] sm:$0xff] }
 0x20b   :  { %6508 = vmatmul.bf16.vlgmr.msrb.gmra.mxu1 %v12728_v38  ;;  %v17874_v63 = vpack.c.bf16 %v4369_v45, %v4369_v45  ;;  %v14942_v9 = vld [vmem:[%s19049_s6 + $0xb0] sm:$0xff] }
 0x20c   :  { %6877 = vmatpush.bf16.msra.mxu1 %v14924_v43  ;;  %v4352_v57 = vadd.f32 %v4351_v36, %v4333_v59  ;;  %v14919_v43 = vld [vmem:[%s19049_s6 + $0x8] sm:$0xff] }
 0x20d   :  { %6438 = vmatpush.bf16.msra.mxu3 %v14892_v13  ;;  %4376 = vst.msk [vmem:[#allocation2 + $0x54] sm:$0x3] %vm483_vm8, %v17874_v63  ;;  %v4400_v3 = vrot.slane %v17874_v63, 5  ;;  %v14932_v13 = vld [vmem:[%s19049_s6 + $0x68] sm:$0xff]  ;;  %v17925_v5 = vpop.f32.mrf.mxu1  ;;  %v11785_v37 = vrot.slane %v17874_v63, 11 }
 0x20e   :  { %v4358_v14 = vadd.f32 %v17813_v16, %v4352_v57  ;;  %6589 = vmatpush.bf16.msra.mxu2 %v14904_v60  ;;  %6679 = vmatpush.bf16.msrb.mxu0 %v14911_v39  ;;  %v14918_v57 = vld [vmem:[%s19049_s6] sm:$0xff] }
 0x20f   :  { %v4401_v20 = vsel %vm16110_vm9, %v11786_v56, %v4400_v3  ;;  %v4402_v23 = vrot.slane %v4400_v3, 4  ;;  %v4603_v3 = vadd.f32 %v17879_v2, %v17910_v25  ;;  %v14961_v2 = vld [vmem:[%s19049_s6 + $0x38] sm:$0xff] }
 0x210   :  { %6878 = vmatpush.bf16.msra.mxu1 %v14923_v58  ;;  %4403 = vrot.lane.b32.xlu2 %v4401_v20, %s15212_s23  ;;  %vm4362_vm14 = vcmp.ge.f32.partialorder %v4358_v14, 0.0  ;;  %v4366_v33 = vmul.f32 0.2, %v4358_v14  ;;  %v4586_v35 = vpop.f32.mrf.mxu3  ;;  %v12779_v42 = vld [vmem:[#allocation2 + $0x30] sm:$0xf] }
 0x211   :  { %6439 = vmatpush.bf16.msra.mxu3 %v14891_v28  ;;  %v4334_v24 = vpop.f32.mrf.mxu2  ;;  %4405 = vrot.lane.b32.xlu0 %v4402_v23, %s15212_s23  ;;  %v12921_v21 = vld [vmem:[#allocation2 + $0x30] sm:$0xf] }
 0x212   :  { %6590 = vmatpush.bf16.msra.mxu2 %v14903_v18  ;;  %v4335_v28 = vadd.f32 %v4334_v24, %v4220_v19  ;;  %v2840_v48 = vpop.permute.xlu1 %2839  ;;  %v4370_v0 = vsel %vm4362_vm14, %v4358_v14, %v4366_v33  ;;  %v4734_v34 = vpop.f32.mrf.mxu0  ;;  %6680 = vmatpush.bf16.msrb.mxu0 %v14910_v32  ;;  %v14943_v14 = vld [vmem:[%s19049_s6 + $0xb8] sm:$0xff]  ;;  %v14927_v18 = vld [vmem:[%s19049_s6 + $0x40] sm:$0xff] }
 0x213   :  { %2844 = vst.msk [vmem:[#allocation2 + $0x34] sm:$0x3] %vm508_vm15, %v2840_v48  ;;  %v4377_v6 = vpack.c.bf16 %v4370_v0, %v4370_v0 }
 0x214   :  { %6440 = vmatmul.bf16.vlgmr.msra.gmra.mxu3 %v12692_v55  ;;  %6879 = vmatpush.bf16.msra.mxu1 %v14922_v17  ;;  %v4354_v29 = vadd.f32 %v4353_v1, %v4335_v28  ;;  %2858 = vst.msk [vmem:[#allocation2 + $0x34] sm:$0x3] %vm527_vm3, %v17843_v7  ;;  %v14920_v7 = vld [vmem:[%s19049_s6 + $0x10] sm:$0xff] }
 0x215   :  { %6808 = vmatpush.bf16.msrb.mxu3 %v14934_v46  ;;  %2866 = vst.msk [vmem:[#allocation2 + $0x34] sm:$0x3] %vm537_vm5, %v2862_v30  ;;  %v4384_v36 = vrot.slane %v4377_v6, 7  ;;  %4411 = vrot.lane.b32.xlu1 %v4377_v6, %s15213_s18  ;;  %v17958_v47 = vpop.f32.mrf.mxu1  ;;  %v14960_v30 = vld [vmem:[%s19049_s6 + $0x30] sm:$0xff] }
 0x216   :  { %v4359_v40 = vadd.f32 %v17813_v16, %v4354_v29  ;;  %6591 = vmatpush.bf16.msra.mxu2 %v14902_v8 }
 0x217   :  { %v4385_v10 = vsel %vm16181_vm13, %v11785_v37, %v4384_v36  ;;  %v4386_v63 = vrot.slane %v4384_v36, 4 }
 0x218   :  { %6880 = vmatpush.bf16.msra.mxu1 %v14921_v61  ;;  %vm4363_vm6 = vcmp.ge.f32.partialorder %v4359_v40, 0.0  ;;  %v4367_v38 = vmul.f32 0.2, %v4359_v40  ;;  %v4588_v20 = vpop.f32.mrf.mxu3  ;;  %v4606_v61 = vadd.f32 %v17925_v5, %v4586_v35  ;;  %v3240_v5 = vpop.permute.xlu2 %3239 }
 0x219   :  { %6809 = vmatpush.bf16.msrb.mxu3 %v14933_v44  ;;  %v4715_v46 = vpop.f32.mrf.mxu2  ;;  %4389 = vrot.lane.b32.xlu0 %v4385_v10, %s15214_s1 }
 0x21a   :  { %6592 = vmatpush.bf16.msra.mxu2 %v14901_v41  ;;  %v4716_v55 = vadd.f32 %v4715_v46, %v4601_v4  ;;  %v4371_v51 = vsel %vm4363_vm6, %v4359_v40, %v4367_v38  ;;  %v4736_v45 = vpop.f32.mrf.mxu0  ;;  %v14941_v38 = vld [vmem:[%s19049_s6 + $0xa8] sm:$0xff] }
 0x21b   :  { %v4378_v49 = vpack.c.bf16 %v4371_v51, %v4371_v51  ;;  %v14959_v46 = vld [vmem:[%s19049_s6 + $0x28] sm:$0xff]  ;;  %v4608_v51 = vadd.f32 %v17958_v47, %v4588_v20  ;;  %v14939_v47 = vld [vmem:[%s19049_s6 + $0x98] sm:$0xff] }
 0x21c   :  { %6881 = vmatpush.bf16.msra.mxu1 %v14920_v7  ;;  %v4735_v44 = vadd.f32 %v4734_v34, %v4716_v55  ;;  %v14899_v59 = vld [vmem:[#allocation2 + $0x30] sm:$0x30] }
 0x21d   :  { %6810 = vmatpush.bf16.msrb.mxu3 %v14932_v13  ;;  %v4387_v58 = vrot.slane %v4378_v49, 7  ;;  %4413 = vrot.lane.b32.xlu2 %v4378_v49, %s15213_s18  ;;  %v12780_v60 = vor.u32 %v14899_v59, %v12779_v42  ;;  %v14917_v56 = vld [vmem:[#allocation2 + $0x30] sm:$0x30]  ;;  %v14909_v13 = vld [vmem:[%s19049_s6 + $0xc0] sm:$0xff] }
 0x21e   :  { %v4744_v52 = vadd.f32 %v17813_v16, %v4735_v44  ;;  %6593 = vmatpush.bf16.msra.mxu2 %v14900_v26  ;;  %v12922_v33 = vor.u32 %v14917_v56, %v12921_v21  ;;  %6681 = vmatpush.bf16.msrb.mxu0 %v14909_v13  ;;  %v4988_v48 = vpop.f32.mrf.mxu1  ;;  %v14958_v26 = vld [vmem:[%s19049_s6 + $0x20] sm:$0xff] }
 0x21f   :  { %v4388_v1 = vsel %vm16181_vm13, %v4386_v63, %v4387_v58 }
 0x220   :  { %6882 = vmatpush.bf16.msra.mxu1 %v14919_v43  ;;  %vm4748_vm7 = vcmp.ge.f32.partialorder %v4744_v52, 0.0  ;;  %v4752_v12 = vmul.f32 0.2, %v4744_v52  ;;  %4391 = vrot.lane.b32.xlu1 %v4388_v1, %s15214_s1  ;;  %v3242_v24 = vpop.permute.xlu0 %3241  ;;  %v4969_v37 = vpop.f32.mrf.mxu3  ;;  %v14940_v43 = vld [vmem:[%s19049_s6 + $0xa0] sm:$0xff] }
 0x221   :  { %6811 = vmatpush.bf16.msrb.mxu3 %v14931_v27  ;;  %6594 = vmatmul.bf16.vlgmr.msra.gmra.mxu2 %v12780_v60  ;;  %v4717_v17 = vpop.f32.mrf.mxu2  ;;  %v3248_v34 = vpop.permute.xlu1 %3247  ;;  %v14957_v60 = vld [vmem:[%s19049_s6 + $0x18] sm:$0xff] }
 0x222   :  { %v4718_v23 = vadd.f32 %v4717_v17, %v4603_v3  ;;  %v4756_v19 = vsel %vm4748_vm7, %v4744_v52, %v4752_v12  ;;  %6962 = vmatpush.bf16.msrb.mxu2 %v14943_v14  ;;  %v4739_v25 = vpop.f32.mrf.mxu0  ;;  %v3250_v63 = vpop.permute.xlu2 %3249  ;;  %v4989_v3 = vadd.f32 %v4988_v48, %v4969_v37  ;;  %v14938_v14 = vld [vmem:[%s19049_s6 + $0x90] sm:$0xff] }
 0x223   :  { %v4760_v27 = vpack.c.bf16 %v4756_v19, %v4756_v19  ;;  %v14956_v17 = vld [vmem:[%s19049_s6 + $0x10] sm:$0xff] }
 0x224   :  { %6883 = vmatpush.bf16.msra.mxu1 %v14918_v57  ;;  %v4737_v28 = vadd.f32 %v4736_v45, %v4718_v23 }
 0x225   :  { %6812 = vmatpush.bf16.msrb.mxu3 %v14930_v62  ;;  %4763 = vst.msk [vmem:[#allocation2 + $0x58] sm:$0xf] %vm481_vm4, %v4760_v27  ;;  %v11952_v10 = vrot.slane %v4760_v27, 9 }
 0x226   :  { %v4745_v8 = vadd.f32 %v17813_v16, %v4737_v28  ;;  %6963 = vmatpush.bf16.msrb.mxu2 %v14942_v9  ;;  %v17996_v41 = vpop.f32.mrf.mxu1 }
 0x227   :  { %6884 = vmatmul.bf16.vlgmr.msra.gmra.mxu1 %v12922_v33 }
 0x228   :  { %7252 = vmatpush.bf16.msrb.mxu1 %v14961_v2  ;;  %vm4749_vm14 = vcmp.ge.f32.partialorder %v4745_v8, 0.0  ;;  %v4753_v0 = vmul.f32 0.2, %v4745_v8  ;;  %v4971_v45 = vpop.f32.mrf.mxu3 }
 0x229   :  { %6813 = vmatpush.bf16.msrb.mxu3 %v14929_v15  ;;  %v4720_v6 = vpop.f32.mrf.mxu2  ;;  %v4991_v37 = vadd.f32 %v17996_v41, %v4971_v45  ;;  %v14970_v41 = vld [vmem:[%s19049_s6 + $0x78] sm:$0xff]  ;;  %v14969_v45 = vld [vmem:[%s19049_s6 + $0x70] sm:$0xff] }
 0x22a   :  { %v4757_v29 = vsel %vm4749_vm14, %v4745_v8, %v4753_v0  ;;  %v4721_v36 = vadd.f32 %v4720_v6, %v4606_v61  ;;  %v3226_v4 = vpop.permute.xlu0 %3225  ;;  %v4741_v7 = vpop.f32.mrf.mxu0  ;;  %6964 = vmatpush.bf16.msrb.mxu2 %v14941_v38  ;;  %v14937_v61 = vld [vmem:[%s19049_s6 + $0x88] sm:$0xff] }
 0x22b   :  { %v4761_v62 = vpack.c.bf16 %v4757_v29, %v4757_v29  ;;  %3231 = vst.msk [vmem:[#allocation2 + $0x38] sm:$0xf] %vm506_vm10, %v3226_v4  ;;  %v14936_v4 = vld [vmem:[%s19049_s6 + $0x80] sm:$0xff] }
 0x22c   :  { %7253 = vmatpush.bf16.msrb.mxu1 %v14960_v30  ;;  %v4740_v40 = vadd.f32 %v4739_v25, %v4721_v36  ;;  %3245 = vst.msk [vmem:[#allocation2 + $0x38] sm:$0xf] %vm525_vm11, %v3240_v5  ;;  %v3228_v42 = vpop.permute.xlu1 %3227  ;;  %v14955_v30 = vld [vmem:[%s19049_s6 + $0x8] sm:$0xff]  ;;  %v14952_v5 = vld [vmem:[%s19049_s6 + $0xf8] sm:$0xff] }
 0x22d   :  { %6814 = vmatpush.bf16.msrb.mxu3 %v14928_v54  ;;  %4764 = vst.msk [vmem:[#allocation2 + $0x5c] sm:$0x3] %vm483_vm8, %v4761_v62  ;;  %v4788_v39 = vrot.slane %v4761_v62, 5  ;;  %v11951_v56 = vrot.slane %v4761_v62, 11  ;;  %7050 = vmatpush.bf16.msra.mxu0 %v14952_v5 }
 0x22e   :  { %v4746_v15 = vadd.f32 %v17813_v16, %v4740_v40  ;;  %3253 = vst.msk [vmem:[#allocation2 + $0x38] sm:$0xf] %vm535_vm12, %v3248_v34  ;;  %6965 = vmatpush.bf16.msrb.mxu2 %v14940_v43  ;;  %v4993_v57 = vpop.f32.mrf.mxu1 }
 0x22f   :  { %v4789_v35 = vsel %vm16110_vm9, %v11952_v10, %v4788_v39  ;;  %v4790_v55 = vrot.slane %v4788_v39, 4  ;;  %3232 = vst.msk [vmem:[#allocation2 + $0x3c] sm:$0x3] %vm508_vm15, %v3228_v42 }
 0x230   :  { %7254 = vmatpush.bf16.msrb.mxu1 %v14959_v46  ;;  %4791 = vrot.lane.b32.xlu2 %v4789_v35, %s15212_s23  ;;  %vm4750_vm6 = vcmp.ge.f32.partialorder %v4746_v15, 0.0  ;;  %v4754_v49 = vmul.f32 0.2, %v4746_v15  ;;  %3246 = vst.msk [vmem:[#allocation2 + $0x3c] sm:$0x3] %vm527_vm3, %v3242_v24  ;;  %v4974_v20 = vpop.f32.mrf.mxu3 }
 0x231   :  { %6815 = vmatpush.bf16.msrb.mxu3 %v14927_v18  ;;  %v4722_v32 = vpop.f32.mrf.mxu2  ;;  %4793 = vrot.lane.b32.xlu0 %v4790_v55, %s15212_s23  ;;  %3254 = vst.msk [vmem:[#allocation2 + $0x3c] sm:$0x3] %vm537_vm5, %v3250_v63  ;;  %v4994_v43 = vadd.f32 %v4993_v57, %v4974_v20  ;;  %v14949_v20 = vld [vmem:[%s19049_s6 + $0xe0] sm:$0xff] }
 0x232   :  { %v4723_v44 = vadd.f32 %v4722_v32, %v4608_v51  ;;  %v4758_v59 = vsel %vm4750_vm6, %v4746_v15, %v4754_v49  ;;  %v5122_v52 = vpop.f32.mrf.mxu0  ;;  %6966 = vmatpush.bf16.msrb.mxu2 %v14939_v47 }
 0x233   :  { %v4765_v58 = vpack.c.bf16 %v4758_v59, %v4758_v59 }
 0x234   :  { %7255 = vmatpush.bf16.msrb.mxu1 %v14958_v26  ;;  %v4742_v54 = vadd.f32 %v4741_v7, %v4723_v44  ;;  %v14954_v7 = vld [vmem:[%s19049_s6] sm:$0xff]  ;;  %v14951_v44 = vld [vmem:[%s19049_s6 + $0xf0] sm:$0xff] }
 0x235   :  { %v4772_v1 = vrot.slane %v4765_v58, 7  ;;  %4799 = vrot.lane.b32.xlu1 %v4765_v58, %s15213_s18  ;;  %v12831_v33 = vld [vmem:[#allocation2 + $0x38] sm:$0xf]  ;;  %7184 = vmatpush.bf16.msra.mxu3 %v14970_v41 }
 0x236   :  { %v4747_v12 = vadd.f32 %v17813_v16, %v4742_v54  ;;  %v12885_v24 = vld [vmem:[#allocation2 + $0x38] sm:$0xf]  ;;  %6967 = vmatpush.bf16.msrb.mxu2 %v14938_v14  ;;  %v4995_v34 = vpop.f32.mrf.mxu1  ;;  %7051 = vmatpush.bf16.msra.mxu0 %v14951_v44  ;;  %v14964_v44 = vld [vmem:[%s19049_s6 + $0x48] sm:$0xff] }
 0x237   :  { %v4773_v13 = vsel %vm16181_vm13, %v11951_v56, %v4772_v1  ;;  %v4774_v9 = vrot.slane %v4772_v1, 4 }
 0x238   :  { %7256 = vmatpush.bf16.msrb.mxu1 %v14957_v60  ;;  %vm4751_vm7 = vcmp.ge.f32.partialorder %v4747_v12, 0.0  ;;  %v4755_v18 = vmul.f32 0.2, %v4747_v12  ;;  %v14908_v25 = vld [vmem:[#allocation2 + $0x38] sm:$0x30]  ;;  %v4976_v10 = vpop.f32.mrf.mxu3  ;;  %v3628_v60 = vpop.permute.xlu2 %3627 }
 0x239   :  { %v5103_v2 = vpop.f32.mrf.mxu2  ;;  %4777 = vrot.lane.b32.xlu0 %v4773_v13, %s15214_s1  ;;  %v14926_v48 = vld [vmem:[#allocation2 + $0x38] sm:$0x30]  ;;  %v12832_v0 = vor.u32 %v14908_v25, %v12831_v33  ;;  %7185 = vmatpush.bf16.msra.mxu3 %v14969_v45 }
 0x23a   :  { %v5104_v23 = vadd.f32 %v5103_v2, %v4989_v3  ;;  %v4759_v21 = vsel %vm4751_vm7, %v4747_v12, %v4755_v18  ;;  %v5124_v28 = vpop.f32.mrf.mxu0  ;;  %v12886_v6 = vor.u32 %v14926_v48, %v12885_v24  ;;  %6968 = vmatpush.bf16.msrb.mxu2 %v14937_v61  ;;  %v14950_v3 = vld [vmem:[%s19049_s6 + $0xe8] sm:$0xff]  ;;  %v4996_v18 = vadd.f32 %v4995_v34, %v4976_v10  ;;  %v14948_v48 = vld [vmem:[%s19049_s6 + $0xd8] sm:$0xff] }
 0x23b   :  { %v4766_v19 = vpack.c.bf16 %v4759_v21, %v4759_v21  ;;  %6682 = vmatmul.bf16.vlgmr.msrb.gmra.mxu0 %v12832_v0  ;;  %v14968_v12 = vld [vmem:[%s19049_s6 + $0x68] sm:$0xff]  ;;  %v14966_v61 = vld [vmem:[%s19049_s6 + $0x58] sm:$0xff] }
 0x23c   :  { %7257 = vmatpush.bf16.msrb.mxu1 %v14956_v17  ;;  %v5123_v27 = vadd.f32 %v5122_v52, %v5104_v23  ;;  %6816 = vmatmul.bf16.vlgmr.msrb.gmra.mxu3 %v12886_v6  ;;  %v14967_v23 = vld [vmem:[%s19049_s6 + $0x60] sm:$0xff] }
 0x23d   :  { %v4775_v8 = vrot.slane %v4766_v19, 7  ;;  %4801 = vrot.lane.b32.xlu2 %v4766_v19, %s15213_s18  ;;  %7052 = vmatpush.bf16.msra.mxu0 %v14950_v3 }
 0x23e   :  { %v5132_v29 = vadd.f32 %v17813_v16, %v5123_v27  ;;  %6969 = vmatpush.bf16.msrb.mxu2 %v14936_v4  ;;  %v5376_v49 = vpop.f32.mrf.mxu1  ;;  %7186 = vmatpush.bf16.msra.mxu3 %v14968_v12 }
 0x23f   :  { %v4776_v36 = vsel %vm16181_vm13, %v4774_v9, %v4775_v8 }
 0x240   :  { %vm5136_vm14 = vcmp.ge.f32.partialorder %v5132_v29, 0.0  ;;  %v5140_v62 = vmul.f32 0.2, %v5132_v29  ;;  %4779 = vrot.lane.b32.xlu1 %v4776_v36, %s15214_s1  ;;  %7258 = vmatpush.bf16.msrb.mxu1 %v14955_v30  ;;  %v5357_v47 = vpop.f32.mrf.mxu3 }
 0x241   :  { %v5105_v40 = vpop.f32.mrf.mxu2  ;;  %7053 = vmatpush.bf16.msra.mxu0 %v14949_v20 }
 0x242   :  { %v5106_v39 = vadd.f32 %v5105_v40, %v4991_v37  ;;  %v5144_v38 = vsel %vm5136_vm14, %v5132_v29, %v5140_v62  ;;  %v5127_v55 = vpop.f32.mrf.mxu0  ;;  %7187 = vmatpush.bf16.msra.mxu3 %v14967_v23  ;;  %v5377_v29 = vadd.f32 %v5376_v49, %v5357_v47  ;;  %v14947_v37 = vld [vmem:[%s19049_s6 + $0xd0] sm:$0xff] }
 0x243   :  { %v3630_v46 = vpop.permute.xlu0 %3629  ;;  %v5148_v15 = vpack.c.bf16 %v5144_v38, %v5144_v38  ;;  %v14965_v62 = vld [vmem:[%s19049_s6 + $0x50] sm:$0xff] }
 0x244   :  { %v5125_v35 = vadd.f32 %v5124_v28, %v5106_v39  ;;  %7259 = vmatpush.bf16.msrb.mxu1 %v14954_v7  ;;  %v3638_v28 = vpop.permute.xlu2 %3637 }
 0x245   :  { %5151 = vst.msk [vmem:[#allocation2 + $0x60] sm:$0xf] %vm481_vm4, %v5148_v15  ;;  %v12118_v1 = vrot.slane %v5148_v15, 9  ;;  %7054 = vmatpush.bf16.msra.mxu0 %v14948_v48 }
 0x246   :  { %v5133_v26 = vadd.f32 %v17813_v16, %v5125_v35  ;;  %v5378_v8 = vpop.f32.mrf.mxu1  ;;  %7188 = vmatpush.bf16.msra.mxu3 %v14966_v61  ;;  %v14977_v61 = vld [vmem:[%s19049_s6 + $0xa8] sm:$0xff] }
 0x247   :  { %v3636_v59 = vpop.permute.xlu1 %3635 }
 0x248   :  { %vm5137_vm6 = vcmp.ge.f32.partialorder %v5133_v26, 0.0  ;;  %v5141_v51 = vmul.f32 0.2, %v5133_v26  ;;  %v5359_v33 = vpop.f32.mrf.mxu3 }
 0x249   :  { %v5108_v32 = vpop.f32.mrf.mxu2  ;;  %7055 = vmatpush.bf16.msra.mxu0 %v14947_v37 }
 0x24a   :  { %v5145_v42 = vsel %vm5137_vm6, %v5133_v26, %v5141_v51  ;;  %v5109_v58 = vadd.f32 %v5108_v32, %v4994_v43  ;;  %v5129_v57 = vpop.f32.mrf.mxu0  ;;  %7189 = vmatpush.bf16.msra.mxu3 %v14965_v62  ;;  %v14946_v43 = vld [vmem:[%s19049_s6 + $0xc8] sm:$0xff] }
 0x24b   :  { %v5149_v63 = vpack.c.bf16 %v5145_v42, %v5145_v42  ;;  %v3614_v54 = vpop.permute.xlu0 %3613 }
 0x24c   :  { %v5128_v52 = vadd.f32 %v5127_v55, %v5109_v58  ;;  %3619 = vst.msk [vmem:[#allocation2 + $0x40] sm:$0xf] %vm506_vm10, %v3614_v54  ;;  %v5379_v58 = vadd.f32 %v5378_v8, %v5359_v33  ;;  %v14963_v54 = vld [vmem:[%s19049_s6 + $0x40] sm:$0xff]  ;;  %v14995_v8 = vld [vmem:[%s19049_s6 + $0x28] sm:$0xff] }
 0x24d   :  { %5152 = vst.msk [vmem:[#allocation2 + $0x64] sm:$0x3] %vm483_vm8, %v5149_v63  ;;  %v5176_v56 = vrot.slane %v5149_v63, 5  ;;  %v12117_v30 = vrot.slane %v5149_v63, 11  ;;  %7056 = vmatpush.bf16.msra.mxu0 %v14946_v43  ;;  %v14945_v63 = vld [vmem:[%s19049_s6 + $0xc0] sm:$0xff] }
 0x24e   :  { %v5134_v13 = vadd.f32 %v17813_v16, %v5128_v52  ;;  %3633 = vst.msk [vmem:[#allocation2 + $0x40] sm:$0xf] %vm525_vm11, %v3628_v60  ;;  %7190 = vmatpush.bf16.msra.mxu3 %v14964_v44 }
 0x24f   :  { %3641 = vst.msk [vmem:[#allocation2 + $0x40] sm:$0xf] %vm535_vm12, %v3636_v59  ;;  %v5177_v14 = vsel %vm16110_vm9, %v12118_v1, %v5176_v56  ;;  %v5178_v17 = vrot.slane %v5176_v56, 4 }
 0x250   :  { %5179 = vrot.lane.b32.xlu2 %v5177_v14, %s15212_s23  ;;  %vm5138_vm7 = vcmp.ge.f32.partialorder %v5134_v13, 0.0  ;;  %v5142_v2 = vmul.f32 0.2, %v5134_v13  ;;  %v5362_v38 = vpop.f32.mrf.mxu3  ;;  %v14997_v14 = vld [vmem:[%s19049_s6 + $0x38] sm:$0xff] }
 0x251   :  { %v5110_v21 = vpop.f32.mrf.mxu2  ;;  %5181 = vrot.lane.b32.xlu0 %v5178_v17, %s15212_s23  ;;  %7057 = vmatpush.bf16.msra.mxu0 %v14945_v63 }
 0x252   :  { %v5111_v19 = vadd.f32 %v5110_v21, %v4996_v18  ;;  %v3616_v24 = vpop.permute.xlu1 %3615  ;;  %v5146_v27 = vsel %vm5138_vm7, %v5134_v13, %v5142_v2  ;;  %v5510_v6 = vpop.f32.mrf.mxu0  ;;  %7191 = vmatpush.bf16.msra.mxu3 %v14963_v54  ;;  %v14979_v13 = vld [vmem:[%s19049_s6 + $0xb8] sm:$0xff]  ;;  %7628 = vmatpush.bf16.msra.mxu1 %v14997_v14  ;;  %v14978_v21 = vld [vmem:[%s19049_s6 + $0xb0] sm:$0xff] }
 0x253   :  { %3620 = vst.msk [vmem:[#allocation2 + $0x44] sm:$0x3] %vm508_vm15, %v3616_v24  ;;  %v5153_v25 = vpack.c.bf16 %v5146_v27, %v5146_v27  ;;  %7338 = vmatpush.bf16.msra.mxu2 %v14979_v13 }
 0x254   :  { %v5130_v0 = vadd.f32 %v5129_v57, %v5111_v19  ;;  %3634 = vst.msk [vmem:[#allocation2 + $0x44] sm:$0x3] %vm527_vm3, %v3630_v46  ;;  %v5381_v45 = vpop.f32.mrf.mxu1  ;;  %v14996_v19 = vld [vmem:[%s19049_s6 + $0x30] sm:$0xff] }
 0x255   :  { %3642 = vst.msk [vmem:[#allocation2 + $0x44] sm:$0x3] %vm537_vm5, %v3638_v28  ;;  %v5160_v9 = vrot.slane %v5153_v25, 7  ;;  %5187 = vrot.lane.b32.xlu1 %v5153_v25, %s15213_s18  ;;  %v5382_v17 = vadd.f32 %v5381_v45, %v5362_v38  ;;  %v4016_v25 = vpop.permute.xlu2 %4015  ;;  %v15205_v45 = vld [vmem:[%s19047_s8] ss:$0 sm:$0xff] }
 0x256   :  { %v5135_v34 = vadd.f32 %v17813_v16, %v5130_v0  ;;  %v12973_v10 = vld [vmem:[#allocation2 + $0x40] sm:$0xf]  ;;  %7629 = vmatpush.bf16.msra.mxu1 %v14996_v19 }
 0x257   :  { %v5161_v36 = vsel %vm16181_vm13, %v12117_v30, %v5160_v9  ;;  %v13115_v39 = vld [vmem:[#allocation2 + $0x40] sm:$0xf]  ;;  %v5162_v32 = vrot.slane %v5160_v9, 4  ;;  %7339 = vmatpush.bf16.msra.mxu2 %v14978_v21 }
 0x258   :  { %vm5139_vm14 = vcmp.ge.f32.partialorder %v5135_v34, 0.0  ;;  %v5143_v4 = vmul.f32 0.2, %v5135_v34  ;;  %v5364_v18 = vpop.f32.mrf.mxu3 }
 0x259   :  { %v5491_v5 = vpop.f32.mrf.mxu2  ;;  %5165 = vrot.lane.b32.xlu0 %v5161_v36, %s15214_s1 }
 0x25a   :  { %v5492_v40 = vadd.f32 %v5491_v5, %v5377_v29  ;;  %v5147_v7 = vsel %vm5139_vm14, %v5135_v34, %v5143_v4  ;;  %v5512_v15 = vpop.f32.mrf.mxu0  ;;  %7630 = vmatpush.bf16.msra.mxu1 %v14995_v8 }
 0x25b   :  { %v5154_v41 = vpack.c.bf16 %v5147_v7, %v5147_v7  ;;  %7340 = vmatpush.bf16.msra.mxu2 %v14977_v61  ;;  %v14994_v7 = vld [vmem:[%s19049_s6 + $0x20] sm:$0xff] }
 0x25c   :  { %v5511_v46 = vadd.f32 %v5510_v6, %v5492_v40  ;;  %v14935_v35 = vld [vmem:[#allocation2 + $0x40] sm:$0x30]  ;;  %v5383_v20 = vpop.f32.mrf.mxu1  ;;  %v14976_v40 = vld [vmem:[%s19049_s6 + $0xa0] sm:$0xff] }
 0x25d   :  { %v14953_v55 = vld [vmem:[#allocation2 + $0x40] sm:$0x30]  ;;  %v5163_v26 = vrot.slane %v5154_v41, 7  ;;  %5189 = vrot.lane.b32.xlu2 %v5154_v41, %s15213_s18  ;;  %v12974_v51 = vor.u32 %v14935_v35, %v12973_v10  ;;  %v5384_v37 = vadd.f32 %v5383_v20, %v5364_v18  ;;  %v14990_v61 = vld [vmem:[%s19049_s6] sm:$0xff] }
 0x25e   :  { %v13116_v49 = vor.u32 %v14953_v55, %v13115_v39  ;;  %v5520_v42 = vadd.f32 %v17813_v16, %v5511_v46  ;;  %7631 = vmatpush.bf16.msra.mxu1 %v14994_v7 }
 0x25f   :  { %6970 = vmatmul.bf16.vlgmr.msrb.gmra.mxu2 %v12974_v51  ;;  %v5164_v59 = vsel %vm16181_vm13, %v5162_v32, %v5163_v26  ;;  %v14975_v51 = vld [vmem:[%s19049_s6 + $0x98] sm:$0xff] }
 0x260   :  { %7260 = vmatmul.bf16.vlgmr.msrb.gmra.mxu1 %v13116_v49  ;;  %vm5524_vm6 = vcmp.ge.f32.partialorder %v5520_v42, 0.0  ;;  %v5528_v47 = vmul.f32 0.2, %v5520_v42  ;;  %5167 = vrot.lane.b32.xlu1 %v5164_v59, %s15214_s1  ;;  %v5683_v4 = vpop.f32.mrf.mxu3  ;;  %v14993_v49 = vld [vmem:[%s19049_s6 + $0x18] sm:$0xff] }
 0x261   :  { %v5493_v60 = vpop.f32.mrf.mxu2  ;;  %7341 = vmatpush.bf16.msra.mxu2 %v14976_v40 }
 0x262   :  { %v5494_v52 = vadd.f32 %v5493_v60, %v5379_v58  ;;  %v5532_v57 = vsel %vm5524_vm6, %v5520_v42, %v5528_v47  ;;  %v5515_v12 = vpop.f32.mrf.mxu0  ;;  %7632 = vmatpush.bf16.msra.mxu1 %v14993_v49  ;;  %v14974_v47 = vld [vmem:[%s19049_s6 + $0x90] sm:$0xff] }
 0x263   :  { %v4018_v1 = vpop.permute.xlu0 %4017  ;;  %v5536_v56 = vpack.c.bf16 %v5532_v57, %v5532_v57 }
 0x264   :  { %v5513_v3 = vadd.f32 %v5512_v15, %v5494_v52  ;;  %v5751_v41 = vpop.f32.mrf.mxu1  ;;  %v4026_v15 = vpop.permute.xlu2 %4025 }
 0x265   :  { %5539 = vst.msk [vmem:[#allocation2 + $0x68] sm:$0xf] %vm481_vm4, %v5536_v56  ;;  %v12284_v30 = vrot.slane %v5536_v56, 9  ;;  %7342 = vmatpush.bf16.msra.mxu2 %v14975_v51  ;;  %v5752_v42 = vadd.f32 %v5751_v41, %v5683_v4  ;;  %v15150_v51 = vld [vmem:[%s19050_s9 + $0x88] sm:$0xff] }
 0x266   :  { %v5521_v2 = vadd.f32 %v17813_v16, %v5513_v3 }
 0x267   :  { %v4024_v27 = vpop.permute.xlu1 %4023 }
 0x268   :  { %vm5525_vm7 = vcmp.ge.f32.partialorder %v5521_v2, 0.0  ;;  %v5529_v23 = vmul.f32 0.2, %v5521_v2  ;;  %v5685_v60 = vpop.f32.mrf.mxu3 }
 0x269   :  { %v5496_v33 = vpop.f32.mrf.mxu2  ;;  %7343 = vmatpush.bf16.msra.mxu2 %v14974_v47 }
 0x26a   :  { %v5533_v24 = vsel %vm5525_vm7, %v5521_v2, %v5529_v23  ;;  %v5497_v28 = vadd.f32 %v5496_v33, %v5382_v17  ;;  %v5517_v6 = vpop.f32.mrf.mxu0  ;;  %v14973_v23 = vld [vmem:[%s19049_s6 + $0x88] sm:$0xff]  ;;  %vm5957_vm7 = vcmask 1041408  }
 0x26b   :  { %v18142_v48 = vpack.c.bf16 %v5533_v24, %v5533_v24  ;;  %v4002_v9 = vpop.permute.xlu0 %4001 }
 0x26c   :  { %v5516_v0 = vadd.f32 %v5515_v12, %v5497_v28  ;;  %4007 = vst.msk [vmem:[#allocation2 + $0x48] sm:$0xf] %vm506_vm10, %v4002_v9  ;;  %v5753_v56 = vpop.f32.mrf.mxu1 }
 0x26d   :  { %5540 = vst.msk [vmem:[#allocation2 + $0x6c] sm:$0x3] %vm483_vm8, %v18142_v48  ;;  %v5564_v29 = vrot.slane %v18142_v48, 5  ;;  %v12283_v43 = vrot.slane %v18142_v48, 11  ;;  %7344 = vmatpush.bf16.msra.mxu2 %v14973_v23  ;;  %v14972_v48 = vld [vmem:[%s19049_s6 + $0x80] sm:$0xff]  ;;  %v14983_v23 = vld [vmem:[%s19049_s6 + $0xd0] sm:$0xff] }
 0x26e   :  { %v5522_v34 = vadd.f32 %v17813_v16, %v5516_v0  ;;  %4021 = vst.msk [vmem:[#allocation2 + $0x48] sm:$0xf] %vm525_vm11, %v4016_v25  ;;  %v14988_v0 = vld [vmem:[%s19049_s6 + $0xf8] sm:$0xff] }
 0x26f   :  { %v5565_v36 = vsel %vm16110_vm9, %v12284_v30, %v5564_v29  ;;  %4029 = vst.msk [vmem:[#allocation2 + $0x48] sm:$0xf] %vm535_vm12, %v4024_v27  ;;  %v5566_v19 = vrot.slane %v5564_v29, 4  ;;  %v5754_v27 = vadd.f32 %v5753_v56, %v5685_v60  ;;  %v18226_v29 = vadd.f32 %v15205_v45, %v15945_v50  ;;  %7426 = vmatpush.bf16.msrb.mxu0 %v14988_v0  ;;  %v15002_v56 = vld [vmem:[%s19049_s6 + $0x58] sm:$0xff] }
 0x270   :  { %vm5526_vm4 = vcmp.ge.f32.partialorder %v5522_v34, 0.0  ;;  %v5530_v62 = vmul.f32 0.2, %v5522_v34  ;;  %5567 = vrot.lane.b32.xlu2 %v5565_v36, %s15212_s23 }
 0x271   :  { %v5498_v5 = vpop.f32.mrf.mxu2  ;;  %7345 = vmatpush.bf16.msra.mxu2 %v14972_v48 }
 0x272   :  { %v5499_v10 = vadd.f32 %v5498_v5, %v5384_v37  ;;  %v4004_v39 = vpop.permute.xlu1 %4003  ;;  %v5534_v38 = vsel %vm5526_vm4, %v5522_v34, %v5530_v62  ;;  %v5927_v55 = vpop.f32.mrf.mxu0  ;;  %v14987_v37 = vld [vmem:[%s19049_s6 + $0xf0] sm:$0xff]  ;;  %vm5958_vm4 = vcmask 1045508  }
 0x273   :  { %4008 = vst.msk [vmem:[#allocation2 + $0x4c] sm:$0x3] %vm508_vm15, %v4004_v39  ;;  %v18169_v46 = vpack.c.bf16 %v5534_v38, %v5534_v38  ;;  %v15005_v62 = vld [vmem:[%s19049_s6 + $0x70] sm:$0xff]  ;;  %7427 = vmatpush.bf16.msrb.mxu0 %v14987_v37  ;;  %v14986_v38 = vld [vmem:[%s19049_s6 + $0xe8] sm:$0xff] }
 0x274   :  { %v5518_v35 = vadd.f32 %v5517_v6, %v5499_v10  ;;  %4022 = vst.msk [vmem:[#allocation2 + $0x4c] sm:$0x3] %vm527_vm3, %v4018_v1  ;;  %v18195_v1 = vadd.f32 %v15205_v45, %v15903_v31  ;;  %v14991_v31 = vld [vmem:[%s19049_s6 + $0x8] sm:$0xff]  ;;  %v15006_v6 = vld [vmem:[%s19049_s6 + $0x78] sm:$0xff] }
 0x275   :  { %4030 = vst.msk [vmem:[#allocation2 + $0x4c] sm:$0x3] %vm537_vm5, %v4026_v15  ;;  %v5548_v26 = vrot.slane %v18169_v46, 7  ;;  %7560 = vmatpush.bf16.msrb.mxu3 %v15006_v6  ;;  %v15004_v15 = vld [vmem:[%s19049_s6 + $0x68] sm:$0xff] }
 0x276   :  { %v5523_v32 = vadd.f32 %v17813_v16, %v5518_v35  ;;  %v14992_v16 = vld [vmem:[%s19049_s6 + $0x10] sm:$0xff] }
 0x277   :  { %v5549_v44 = vsel %vm16181_vm13, %v12283_v43, %v5548_v26  ;;  %v13025_v57 = vld [vmem:[#allocation2 + $0x48] sm:$0xf]  ;;  %7633 = vmatpush.bf16.msra.mxu1 %v14992_v16  ;;  %v5550_v20 = vrot.slane %v5548_v26, 4  ;;  %v4404_v43 = vpop.permute.xlu2 %4403  ;;  %7428 = vmatpush.bf16.msrb.mxu0 %v14986_v38  ;;  %v15012_v38 = vld [vmem:[%s19049_s6 + $0xa0] sm:$0xff] }
 0x278   :  { %5553 = vrot.lane.b32.xlu0 %v5549_v44, %s15214_s1  ;;  %vm5527_vm8 = vcmp.ge.f32.partialorder %v5523_v32, 0.0  ;;  %v5531_v59 = vmul.f32 0.2, %v5523_v32  ;;  %v13079_v13 = vld [vmem:[#allocation2 + $0x48] sm:$0xf]  ;;  %v6133_v4 = vpop.f32.mrf.mxu1 }
 0x279   :  { %v5838_v58 = vpop.f32.mrf.mxu2  ;;  %7561 = vmatpush.bf16.msrb.mxu3 %v15005_v62  ;;  %v14981_v62 = vld [vmem:[%s19049_s6 + $0xc0] sm:$0xff] }
 0x27a   :  { %v5843_v63 = vadd.f32 %v5838_v58, %v5752_v42  ;;  %v5535_v54 = vsel %vm5527_vm8, %v5523_v32, %v5531_v59  ;;  %v5929_v33 = vpop.f32.mrf.mxu0  ;;  %vm18246_vm8 = vmor %vm5957_vm7, %vm5958_vm4  ;;  %v14985_v59 = vld [vmem:[%s19049_s6 + $0xe0] sm:$0xff] }
 0x27b   :  { %v5542_v52 = vpack.c.bf16 %v5535_v54, %v5535_v54  ;;  %7634 = vmatpush.bf16.msra.mxu1 %v14991_v31  ;;  %v6065_v34 = vpop.f32.mrf.mxu3  ;;  %v15003_v58 = vld [vmem:[%s19049_s6 + $0x60] sm:$0xff]  ;;  %7429 = vmatpush.bf16.msrb.mxu0 %v14985_v59  ;;  %v14984_v54 = vld [vmem:[%s19049_s6 + $0xd8] sm:$0xff]  ;;  %v15001_v31 = vld [vmem:[%s19049_s6 + $0x50] sm:$0xff] }
 0x27c   :  { %v5932_v3 = vadd.f32 %v5927_v55, %v5843_v63  ;;  %v14944_v12 = vld [vmem:[#allocation2 + $0x48] sm:$0x30]  ;;  %v6134_v40 = vadd.f32 %v6133_v4, %v6065_v34  ;;  %v14999_v4 = vld [vmem:[%s19049_s6 + $0x40] sm:$0xff] }
 0x27d   :  { %v14962_v14 = vld [vmem:[#allocation2 + $0x48] sm:$0x30]  ;;  %v5551_v17 = vrot.slane %v5542_v52, 7  ;;  %5577 = vrot.lane.b32.xlu2 %v5542_v52, %s15213_s18  ;;  %v13026_v18 = vor.u32 %v14944_v12, %v13025_v57  ;;  %7562 = vmatpush.bf16.msrb.mxu3 %v15004_v15 }
 0x27e   :  { %v13080_v2 = vor.u32 %v14962_v14, %v13079_v13  ;;  %v5934_v21 = vadd.f32 %v5932_v3, %v18195_v1 }
 0x27f   :  { %7058 = vmatmul.bf16.vlgmr.msra.gmra.mxu0 %v13026_v18  ;;  %v5552_v24 = vsel %vm16181_vm13, %v5550_v20, %v5551_v17  ;;  %vm5943_vm13 = vcmask 519168   ;;  %7635 = vmatpush.bf16.msra.mxu1 %v14990_v61  ;;  %v4414_v17 = vpop.permute.xlu2 %4413 }
 0x280   :  { %7192 = vmatmul.bf16.vlgmr.msra.gmra.mxu3 %v13080_v2  ;;  %vm5936_vm14 = vcmp.ge.f32.partialorder %v5934_v21, 0.0  ;;  %v5938_v28 = vmul.f32 0.2, %v5934_v21  ;;  %5555 = vrot.lane.b32.xlu1 %v5552_v24, %s15214_s1  ;;  %v6135_v63 = vpop.f32.mrf.mxu1  ;;  %v15000_v24 = vld [vmem:[%s19049_s6 + $0x48] sm:$0xff] }
 0x281   :  { %5569 = vrot.lane.b32.xlu0 %v5566_v19, %s15212_s23  ;;  %v5840_v25 = vpop.f32.mrf.mxu2  ;;  %7563 = vmatpush.bf16.msrb.mxu3 %v15003_v58  ;;  %v14982_v19 = vld [vmem:[%s19049_s6 + $0xc8] sm:$0xff] }
 0x282   :  { %v5940_v53 = vsel %vm5936_vm14, %v5934_v21, %v5938_v28  ;;  %v5844_v8 = vadd.f32 %v5840_v25, %v5754_v27  ;;  %v6307_v7 = vpop.f32.mrf.mxu0  ;;  %7430 = vmatpush.bf16.msrb.mxu0 %v14984_v54 }
 0x283   :  { %v5942_v9 = vpack.c.bf16 %v5940_v53, %v5940_v53  ;;  %v18223_v30 = vpop.permute.xlu0 %4405  ;;  %v6067_v42 = vpop.f32.mrf.mxu3 }
 0x284   :  { %v5933_v36 = vadd.f32 %v5929_v33, %v5844_v8  ;;  %v6136_v52 = vadd.f32 %v6135_v63, %v6067_v42 }
 0x285   :  { %5944 = vst.msk [vmem:[#allocation3] sm:$0xf] %vm5943_vm13, %v5942_v9  ;;  %v12478_v26 = vrot.slane %v5942_v9, 10  ;;  %v12477_v32 = vrot.slane %v5942_v9, 9  ;;  %7564 = vmatpush.bf16.msrb.mxu3 %v15002_v56 }
 0x286   :  { %v5935_v50 = vadd.f32 %v5933_v36, %v18226_v29  ;;  %7431 = vmatpush.bf16.msrb.mxu0 %v14983_v23 }
 0x287   :  { %v4412_v41 = vpop.permute.xlu1 %4411 }
 0x288   :  { %vm5937_vm6 = vcmp.ge.f32.partialorder %v5935_v50, 0.0  ;;  %v5939_v5 = vmul.f32 0.2, %v5935_v50  ;;  %5575 = vrot.lane.b32.xlu1 %v18169_v46, %s15213_s18 }
 0x289   :  { %v6219_v10 = vpop.f32.mrf.mxu2  ;;  %7565 = vmatpush.bf16.msrb.mxu3 %v15001_v31  ;;  %v15024_v31 = vld [vmem:[%s19049_s6 + $0xf8] sm:$0xff] }
 0x28a   :  { %v5941_v39 = vsel %vm5937_vm6, %v5935_v50, %v5939_v5  ;;  %v6224_v35 = vadd.f32 %v6219_v10, %v6134_v40  ;;  %v6309_v2 = vpop.f32.mrf.mxu0  ;;  %7432 = vmatpush.bf16.msrb.mxu0 %v14982_v19  ;;  %v15015_v5 = vld [vmem:[%s19049_s6 + $0xb8] sm:$0xff]  ;;  %v15014_v40 = vld [vmem:[%s19049_s6 + $0xb0] sm:$0xff]  ;;  %v4792_v10 = vpop.permute.xlu2 %4791 }
 0x28b   :  { %v4390_v55 = vpop.permute.xlu0 %4389  ;;  %v5945_v46 = vpack.c.bf16 %v5941_v39, %v5941_v39  ;;  %7714 = vmatpush.bf16.msrb.mxu2 %v15015_v5  ;;  %v15013_v39 = vld [vmem:[%s19049_s6 + $0xa8] sm:$0xff]  ;;  %v15020_v5 = vld [vmem:[%s19049_s6 + $0xd8] sm:$0xff] }
 0x28c   :  { %4395 = vst.msk [vmem:[#allocation2 + $0x50] sm:$0xf] %vm506_vm10, %v4390_v55  ;;  %v6312_v49 = vadd.f32 %v6307_v7, %v6224_v35  ;;  %v15011_v35 = vld [vmem:[%s19049_s6 + $0x98] sm:$0xff] }
 0x28d   :  { %4409 = vst.msk [vmem:[#allocation2 + $0x50] sm:$0xf] %vm525_vm11, %v4404_v43  ;;  %v5950_v44 = vrot.slane %v5945_v46, 5  ;;  %v5962_v45 = vrot.slane %v5945_v46, 6  ;;  %7566 = vmatpush.bf16.msrb.mxu3 %v15000_v24  ;;  %v6509_v43 = vpop.f32.mrf.mxu1 }
 0x28e   :  { %4417 = vst.msk [vmem:[#allocation2 + $0x50] sm:$0xf] %vm535_vm12, %v4412_v41  ;;  %v6314_v47 = vadd.f32 %v6312_v49, %v18195_v1  ;;  %7433 = vmatpush.bf16.msrb.mxu0 %v14981_v62  ;;  %v15010_v49 = vld [vmem:[%s19049_s6 + $0x90] sm:$0xff] }
 0x28f   :  { %v5951_v16 = vsel %vm16110_vm9, %v12477_v32, %v5950_v44  ;;  %v5963_v60 = vsel %vm18246_vm8, %v12478_v26, %v5962_v45  ;;  %7715 = vmatpush.bf16.msrb.mxu2 %v15014_v40  ;;  %v15030_v40 = vld [vmem:[%s19050_s9 + $0x28] sm:$0xff] }
 0x290   :  { %5965 = vst.msk [vmem:[#allocation3 + $0x4] sm:$0xf] %vm5943_vm13, %v5963_v60  ;;  %5952 = vrot.lane.b32.xlu1 %v5951_v16, %s15212_s23  ;;  %vm6316_vm14 = vcmp.ge.f32.partialorder %v6314_v47, 0.0  ;;  %v6318_v57 = vmul.f32 0.2, %v6314_v47  ;;  %v15009_v16 = vld [vmem:[%s19049_s6 + $0x88] sm:$0xff] }
 0x291   :  { %v6221_v3 = vpop.f32.mrf.mxu2  ;;  %7567 = vmatpush.bf16.msrb.mxu3 %v14999_v4  ;;  %v15021_v4 = vld [vmem:[%s19049_s6 + $0xe0] sm:$0xff] }
 0x292   :  { %v4392_v12 = vpop.permute.xlu1 %4391  ;;  %v6320_v13 = vsel %vm6316_vm14, %v6314_v47, %v6318_v57  ;;  %v6225_v14 = vadd.f32 %v6221_v3, %v6136_v52  ;;  %7802 = vmatpush.bf16.msra.mxu0 %v15024_v31 }
 0x293   :  { %4396 = vst.msk [vmem:[#allocation2 + $0x54] sm:$0x3] %vm508_vm15, %v4392_v12  ;;  %v6322_v18 = vpack.c.bf16 %v6320_v13, %v6320_v13  ;;  %7716 = vmatpush.bf16.msrb.mxu2 %v15013_v39  ;;  %v15008_v12 = vld [vmem:[%s19049_s6 + $0x80] sm:$0xff] }
 0x294   :  { %4410 = vst.msk [vmem:[#allocation2 + $0x54] sm:$0x3] %vm527_vm3, %v18223_v30  ;;  %v6313_v20 = vadd.f32 %v6309_v2, %v6225_v14 }
 0x295   :  { %4418 = vst.msk [vmem:[#allocation2 + $0x54] sm:$0x3] %vm537_vm5, %v4414_v17  ;;  %v13167_v27 = vld [vmem:[#allocation2 + $0x50] sm:$0xf]  ;;  %v12672_v6 = vrot.slane %v6322_v18, 10  ;;  %v12671_v9 = vrot.slane %v6322_v18, 9  ;;  %v6511_v56 = vpop.f32.mrf.mxu1 }
 0x296   :  { %6324 = vst.msk [vmem:[#allocation3 + $0x8] sm:$0xf] %vm5943_vm13, %v6322_v18  ;;  %v6315_v21 = vadd.f32 %v6313_v20, %v18226_v29  ;;  %v13309_v48 = vld [vmem:[#allocation2 + $0x50] sm:$0xf] }
 0x297   :  { %7717 = vmatpush.bf16.msrb.mxu2 %v15012_v38  ;;  %v6441_v55 = vpop.f32.mrf.mxu3  ;;  %v4802_v46 = vpop.permute.xlu2 %4801  ;;  %v15029_v38 = vld [vmem:[%s19050_s9 + $0x20] sm:$0xff] }
 0x298   :  { %vm6317_vm6 = vcmp.ge.f32.partialorder %v6315_v21, 0.0  ;;  %v6319_v33 = vmul.f32 0.2, %v6315_v21  ;;  %v6510_v32 = vadd.f32 %v6509_v43, %v6441_v55  ;;  %v15028_v55 = vld [vmem:[%s19050_s9 + $0x18] sm:$0xff]  ;;  %v15043_v43 = vld [vmem:[%s19050_s9 + $0x90] sm:$0xff] }
 0x29a   :  { %v6321_v28 = vsel %vm6317_vm6, %v6315_v21, %v6319_v33 }
 0x29b   :  { %v6325_v53 = vpack.c.bf16 %v6321_v28, %v6321_v28  ;;  %7718 = vmatpush.bf16.msrb.mxu2 %v15011_v35  ;;  %v15044_v35 = vld [vmem:[%s19050_s9 + $0x98] sm:$0xff] }
 0x29c   :  { %v14971_v25 = vld [vmem:[#allocation2 + $0x50] sm:$0x30]  ;;  %7978 = vmatpush.bf16.msra.mxu3 %v15044_v35  ;;  %v15053_v35 = vld [vmem:[%s19050_s9 + $0xe0] sm:$0xff] }
 0x29d   :  { %v14989_v61 = vld [vmem:[#allocation2 + $0x50] sm:$0x30]  ;;  %v13168_v8 = vor.u32 %v14971_v25, %v13167_v27  ;;  %v6330_v30 = vrot.slane %v6325_v53, 5  ;;  %v6338_v34 = vrot.slane %v6325_v53, 6 }
 0x29e   :  { %v13310_v0 = vor.u32 %v14989_v61, %v13309_v48  ;;  %v15023_v61 = vld [vmem:[%s19049_s6 + $0xf0] sm:$0xff]  ;;  %v15032_v53 = vld [vmem:[%s19050_s9 + $0x38] sm:$0xff] }
 0x29f   :  { %7346 = vmatmul.bf16.vlgmr.msra.gmra.mxu2 %v13168_v8  ;;  %v6331_v36 = vsel %vm16110_vm9, %v12671_v9, %v6330_v30  ;;  %v6339_v37 = vsel %vm18246_vm8, %v12672_v6, %v6338_v34  ;;  %v6443_v52 = vpop.f32.mrf.mxu3  ;;  %7803 = vmatpush.bf16.msra.mxu0 %v15023_v61  ;;  %v15022_v30 = vld [vmem:[%s19049_s6 + $0xe8] sm:$0xff] }
 0x2a0   :  { %7636 = vmatmul.bf16.vlgmr.msra.gmra.mxu1 %v13310_v0  ;;  %6341 = vst.msk [vmem:[#allocation3 + $0xc] sm:$0xf] %vm5943_vm13, %v6339_v37  ;;  %6332 = vrot.lane.b32.xlu0 %v6331_v36, %s15212_s23  ;;  %v6512_v13 = vadd.f32 %v6511_v56, %v6443_v52  ;;  %v15040_v52 = vld [vmem:[%s19050_s9 + $0x78] sm:$0xff] }
 0x2a1   :  { %7719 = vmatpush.bf16.msrb.mxu2 %v15010_v49  ;;  %7979 = vmatpush.bf16.msra.mxu3 %v15043_v43  ;;  %v15078_v43 = vld [vmem:[%s19050_s9 + $0x88] sm:$0xff] }
 0x2a3   :  { %v4794_v50 = vpop.permute.xlu0 %4793  ;;  %7804 = vmatpush.bf16.msra.mxu0 %v15022_v30 }
 0x2a4   :  { %v6595_v26 = vpop.f32.mrf.mxu2 }
 0x2a5   :  { %v6600_v44 = vadd.f32 %v6595_v26, %v6510_v32  ;;  %7720 = vmatpush.bf16.msrb.mxu2 %v15009_v16  ;;  %v15027_v26 = vld [vmem:[%s19050_s9 + $0x10] sm:$0xff]  ;;  %v15025_v16 = vld [vmem:[%s19050_s9] sm:$0xff] }
 0x2a7   :  { %v4800_v7 = vpop.permute.xlu1 %4799  ;;  %7805 = vmatpush.bf16.msra.mxu0 %v15021_v4 }
 0x2a9   :  { %7721 = vmatpush.bf16.msrb.mxu2 %v15008_v12  ;;  %v15033_v12 = vld [vmem:[%s19050_s9 + $0x40] sm:$0xff] }
 0x2aa   :  { %v5180_v25 = vpop.permute.xlu2 %5179 }
 0x2ab   :  { %v4778_v41 = vpop.permute.xlu0 %4777  ;;  %7806 = vmatpush.bf16.msra.mxu0 %v15020_v5 }
 0x2ac   :  { %4783 = vst.msk [vmem:[#allocation2 + $0x58] sm:$0xf] %vm506_vm10, %v4778_v41  ;;  %v6597_v3 = vpop.f32.mrf.mxu2 }
 0x2ad   :  { %4797 = vst.msk [vmem:[#allocation2 + $0x58] sm:$0xf] %vm525_vm11, %v4792_v10  ;;  %v6601_v17 = vadd.f32 %v6597_v3, %v6512_v13  ;;  %8085 = vmatpush.bf16.msra.mxu2 %v15032_v53  ;;  %v6885_v13 = vpop.f32.mrf.mxu1 }
 0x2ae   :  { %4805 = vst.msk [vmem:[#allocation2 + $0x58] sm:$0xf] %vm535_vm12, %v4800_v7  ;;  %v15019_v7 = vld [vmem:[%s19049_s6 + $0xd0] sm:$0xff] }
 0x2af   :  { %7807 = vmatpush.bf16.msra.mxu0 %v15019_v7  ;;  %v15054_v7 = vld [vmem:[%s19050_s9 + $0xe8] sm:$0xff] }
 0x2b2   :  { %v4780_v15 = vpop.permute.xlu1 %4779 }
 0x2b3   :  { %4784 = vst.msk [vmem:[#allocation2 + $0x5c] sm:$0x3] %vm508_vm15, %v4780_v15  ;;  %v15018_v15 = vld [vmem:[%s19049_s6 + $0xc8] sm:$0xff] }
 0x2b4   :  { %4798 = vst.msk [vmem:[#allocation2 + $0x5c] sm:$0x3] %vm527_vm3, %v4794_v50  ;;  %v15031_v50 = vld [vmem:[%s19050_s9 + $0x30] sm:$0xff]  ;;  %7808 = vmatpush.bf16.msra.mxu0 %v15018_v15  ;;  %v15058_v15 = vld [vmem:[%s19050_s9 + $0x108] sm:$0xff] }
 0x2b5   :  { %4806 = vst.msk [vmem:[#allocation2 + $0x5c] sm:$0x3] %vm537_vm5, %v4802_v46  ;;  %v13219_v45 = vld [vmem:[#allocation2 + $0x58] sm:$0xf]  ;;  %8086 = vmatpush.bf16.msra.mxu2 %v15031_v50  ;;  %v6887_v61 = vpop.f32.mrf.mxu1  ;;  %v15059_v50 = vld [vmem:[%s19050_s9 + $0x110] sm:$0xff] }
 0x2b6   :  { %v13273_v42 = vld [vmem:[#allocation2 + $0x58] sm:$0xf] }
 0x2b7   :  { %v5190_v62 = vpop.permute.xlu2 %5189  ;;  %v15017_v46 = vld [vmem:[%s19049_s6 + $0xc0] sm:$0xff] }
 0x2b8   :  { %v6683_v59 = vpop.f32.mrf.mxu0  ;;  %7809 = vmatpush.bf16.msra.mxu0 %v15017_v46 }
 0x2b9   :  { %v6688_v60 = vadd.f32 %v6683_v59, %v6600_v44  ;;  %8087 = vmatpush.bf16.msra.mxu2 %v15030_v40  ;;  %v15036_v44 = vld [vmem:[%s19050_s9 + $0x58] sm:$0xff]  ;;  %v15035_v59 = vld [vmem:[%s19050_s9 + $0x50] sm:$0xff] }
 0x2bb   :  { %v6690_v57 = vadd.f32 %v6688_v60, %v18195_v1  ;;  %v15034_v60 = vld [vmem:[%s19050_s9 + $0x48] sm:$0xff] }
 0x2bc   :  { %v14980_v58 = vld [vmem:[#allocation2 + $0x58] sm:$0x30] }
 0x2bd   :  { %v14998_v47 = vld [vmem:[#allocation2 + $0x58] sm:$0x30]  ;;  %v13220_v63 = vor.u32 %v14980_v58, %v13219_v45  ;;  %vm6692_vm4 = vcmp.ge.f32.partialorder %v6690_v57, 0.0  ;;  %v6694_v14 = vmul.f32 0.2, %v6690_v57  ;;  %8088 = vmatpush.bf16.msra.mxu2 %v15029_v38  ;;  %v15042_v45 = vld [vmem:[%s19050_s9 + $0x88] sm:$0xff] }
 0x2be   :  { %v13274_v54 = vor.u32 %v14998_v47, %v13273_v42  ;;  %v15026_v42 = vld [vmem:[%s19050_s9 + $0x8] sm:$0xff]  ;;  %7980 = vmatpush.bf16.msra.mxu3 %v15042_v45  ;;  %v15041_v58 = vld [vmem:[%s19050_s9 + $0x80] sm:$0xff]  ;;  %v15048_v47 = vld [vmem:[%s19050_s9 + $0xb8] sm:$0xff] }
 0x2bf   :  { %7434 = vmatmul.bf16.vlgmr.msrb.gmra.mxu0 %v13220_v63  ;;  %v6696_v18 = vsel %vm6692_vm4, %v6690_v57, %v6694_v14  ;;  %7995 = vmatpush.bf16.msrb.mxu1 %v15048_v47  ;;  %v15047_v57 = vld [vmem:[%s19050_s9 + $0xb0] sm:$0xff]  ;;  %v6817_v56 = vpop.f32.mrf.mxu3  ;;  %v15052_v45 = vld [vmem:[%s19050_s9 + $0xd8] sm:$0xff]  ;;  %vm8269_vm4 = vcmask 778752  }
 0x2c0   :  { %7568 = vmatmul.bf16.vlgmr.msrb.gmra.mxu3 %v13274_v54  ;;  %v6698_v20 = vpack.c.bf16 %v6696_v18, %v6696_v18  ;;  %v6685_v23 = vpop.f32.mrf.mxu0  ;;  %8102 = vmatpush.bf16.msrb.mxu0 %v15036_v44  ;;  %v15046_v18 = vld [vmem:[%s19050_s9 + $0xa8] sm:$0xff] }
 0x2c1   :  { %v6689_v21 = vadd.f32 %v6685_v23, %v6601_v17  ;;  %8089 = vmatpush.bf16.msra.mxu2 %v15028_v55  ;;  %v15039_v17 = vld [vmem:[%s19050_s9 + $0x70] sm:$0xff]  ;;  %v15038_v23 = vld [vmem:[%s19050_s9 + $0x68] sm:$0xff] }
 0x2c2   :  { %6700 = vst.msk [vmem:[#allocation3 + $0x10] sm:$0xf] %vm5943_vm13, %v6698_v20  ;;  %v12866_v8 = vrot.slane %v6698_v20, 10  ;;  %v12865_v6 = vrot.slane %v6698_v20, 9  ;;  %7981 = vmatpush.bf16.msra.mxu3 %v15041_v58 }
 0x2c3   :  { %v5182_v2 = vpop.permute.xlu0 %5181  ;;  %v6691_v19 = vadd.f32 %v6689_v21, %v18226_v29  ;;  %7996 = vmatpush.bf16.msrb.mxu1 %v15047_v57  ;;  %v15045_v21 = vld [vmem:[%s19050_s9 + $0xa0] sm:$0xff] }
 0x2c4   :  { %8103 = vmatpush.bf16.msrb.mxu0 %v15035_v59 }
 0x2c5   :  { %vm6693_vm14 = vcmp.ge.f32.partialorder %v6691_v19, 0.0  ;;  %v6695_v33 = vmul.f32 0.2, %v6691_v19  ;;  %8090 = vmatpush.bf16.msra.mxu2 %v15027_v26 }
 0x2c6   :  { %7982 = vmatpush.bf16.msra.mxu3 %v15040_v52 }
 0x2c7   :  { %v5188_v24 = vpop.permute.xlu1 %5187  ;;  %v6697_v27 = vsel %vm6693_vm14, %v6691_v19, %v6695_v33  ;;  %7997 = vmatpush.bf16.msrb.mxu1 %v15046_v18  ;;  %v15056_v33 = vld [vmem:[%s19050_s9 + $0xf8] sm:$0xff]  ;;  %v15050_v18 = vld [vmem:[%s19050_s9 + $0xc8] sm:$0xff]  ;;  %vm8278_vm14 = vcmask 1041152  }
 0x2c8   :  { %v6701_v48 = vpack.c.bf16 %v6697_v27, %v6697_v27  ;;  %8104 = vmatpush.bf16.msrb.mxu0 %v15034_v60  ;;  %v6819_v27 = vpop.f32.mrf.mxu3 }
 0x2c9   :  { %8091 = vmatpush.bf16.msra.mxu2 %v15026_v42  ;;  %v15083_v42 = vld [vmem:[%s19050_s9 + $0xb0] sm:$0xff] }
 0x2ca   :  { %v6714_v0 = vrot.slane %v6701_v48, 6  ;;  %v6706_v9 = vrot.slane %v6701_v48, 5  ;;  %v5568_v32 = vpop.permute.xlu2 %5567  ;;  %7983 = vmatpush.bf16.msra.mxu3 %v15039_v17  ;;  %v15060_v48 = vld [vmem:[%s19050_s9 + $0x118] sm:$0xff] }
 0x2cb   :  { %v5166_v28 = vpop.permute.xlu0 %5165  ;;  %7998 = vmatpush.bf16.msrb.mxu1 %v15045_v21 }
 0x2cc   :  { %5171 = vst.msk [vmem:[#allocation2 + $0x60] sm:$0xf] %vm506_vm10, %v5166_v28  ;;  %v6715_v34 = vsel %vm18246_vm8, %v12866_v8, %v6714_v0  ;;  %v6707_v36 = vsel %vm16110_vm9, %v12865_v6, %v6706_v9  ;;  %8105 = vmatpush.bf16.msrb.mxu0 %v15033_v12  ;;  %v15037_v28 = vld [vmem:[%s19050_s9 + $0x60] sm:$0xff]  ;;  %v15055_v8 = vld [vmem:[%s19050_s9 + $0xf0] sm:$0xff]  ;;  %v6888_v0 = vadd.f32 %v6887_v61, %v6819_v27  ;;  %v15076_v12 = vld [vmem:[%s19050_s9 + $0x78] sm:$0xff] }
 0x2cd   :  { %5185 = vst.msk [vmem:[#allocation2 + $0x60] sm:$0xf] %vm525_vm11, %v5180_v25  ;;  %6708 = vrot.lane.b32.xlu2 %v6707_v36, %s15212_s23  ;;  %8092 = vmatpush.bf16.msra.mxu2 %v15025_v16  ;;  %v15080_v36 = vld [vmem:[%s19050_s9 + $0x98] sm:$0xff]  ;;  %v15071_v61 = vld [vmem:[%s19050_s9 + $0x50] sm:$0xff] }
 0x2ce   :  { %5193 = vst.msk [vmem:[#allocation2 + $0x60] sm:$0xf] %vm535_vm12, %v5188_v24  ;;  %7984 = vmatpush.bf16.msra.mxu3 %v15038_v23  ;;  %v15074_v23 = vld [vmem:[%s19050_s9 + $0x68] sm:$0xff] }
 0x2cf   :  { %6717 = vst.msk [vmem:[#allocation3 + $0x14] sm:$0xf] %vm5943_vm13, %v6715_v34  ;;  %8218 = vmatpush.bf16.msra.mxu1 %v15056_v33  ;;  %v15068_v33 = vld [vmem:[%s19050_s9 + $0x38] sm:$0xff] }
 0x2d2   :  { %v5168_v37 = vpop.permute.xlu1 %5167  ;;  %7985 = vmatpush.bf16.msra.mxu3 %v15037_v28 }
 0x2d3   :  { %5172 = vst.msk [vmem:[#allocation2 + $0x64] sm:$0x3] %vm508_vm15, %v5168_v37  ;;  %8219 = vmatpush.bf16.msra.mxu1 %v15055_v8  ;;  %v15070_v8 = vld [vmem:[%s19050_s9 + $0x48] sm:$0xff] }
 0x2d4   :  { %5186 = vst.msk [vmem:[#allocation2 + $0x64] sm:$0x3] %vm527_vm3, %v5182_v2  ;;  %v6886_v2 = vadd.f32 %v6885_v13, %v6817_v56  ;;  %v15081_v13 = vld [vmem:[%s19050_s9 + $0xa0] sm:$0xff] }
 0x2d5   :  { %5194 = vst.msk [vmem:[#allocation2 + $0x64] sm:$0x3] %vm537_vm5, %v5190_v62  ;;  %v13361_v41 = vld [vmem:[#allocation2 + $0x60] sm:$0xf] }
 0x2d6   :  { %8235 = vmatpush.bf16.msrb.mxu3 %v15060_v48  ;;  %v15067_v48 = vld [vmem:[%s19050_s9 + $0x30] sm:$0xff] }
 0x2d7   :  { %v5578_v3 = vpop.permute.xlu2 %5577  ;;  %8220 = vmatpush.bf16.msra.mxu1 %v15054_v7 }
 0x2da   :  { %8236 = vmatpush.bf16.msrb.mxu3 %v15059_v50 }
 0x2db   :  { %8221 = vmatpush.bf16.msra.mxu1 %v15053_v35 }
 0x2dc   :  { %v15007_v10 = vld [vmem:[#allocation2 + $0x60] sm:$0x30] }
 0x2dd   :  { %v13362_v39 = vor.u32 %v15007_v10, %v13361_v41  ;;  %v15079_v10 = vld [vmem:[%s19050_s9 + $0x90] sm:$0xff]  ;;  %v7261_v50 = vpop.f32.mrf.mxu1 }
 0x2de   :  { %8237 = vmatpush.bf16.msrb.mxu3 %v15058_v15 }
 0x2df   :  { %7722 = vmatmul.bf16.vlgmr.msrb.gmra.mxu2 %v13362_v39  ;;  %v15084_v39 = vld [vmem:[%s19050_s9 + $0xb8] sm:$0xff]  ;;  %8222 = vmatpush.bf16.msra.mxu1 %v15052_v45 }
 0x2e0   :  { %8428 = vmatpush.bf16.msrb.mxu2 %v15084_v39  ;;  %v15061_v39 = vld [vmem:[%s19050_s9] sm:$0xff] }
 0x2e2   :  { %v6971_v14 = vpop.f32.mrf.mxu2 }
 0x2e3   :  { %v6976_v31 = vadd.f32 %v6971_v14, %v6886_v2  ;;  %v15075_v2 = vld [vmem:[%s19050_s9 + $0x70] sm:$0xff] }
 0x2e4   :  { %8429 = vmatpush.bf16.msrb.mxu2 %v15083_v42 }
 0x2ea   :  { %v5554_v49 = vpop.permute.xlu0 %5553  ;;  %v6973_v53 = vpop.f32.mrf.mxu2 }
 0x2eb   :  { %5559 = vst.msk [vmem:[#allocation2 + $0x68] sm:$0xf] %vm506_vm10, %v5554_v49  ;;  %vm5955_vm10 = vcmask 1043968   ;;  %v6977_v37 = vadd.f32 %v6973_v53, %v6888_v0  ;;  %v15066_v53 = vld [vmem:[%s19050_s9 + $0x28] sm:$0xff]  ;;  %v15065_v0 = vld [vmem:[%s19050_s9 + $0x20] sm:$0xff] }
 0x2ec   :  { %5573 = vst.msk [vmem:[#allocation2 + $0x68] sm:$0xf] %vm525_vm11, %v5568_v32  ;;  %v15057_v32 = vld [vmem:[%s19050_s9 + $0x100] sm:$0xff] }
 0x2ed   :  { %8238 = vmatpush.bf16.msrb.mxu3 %v15057_v32 }
 0x2f2   :  { %v5556_v63 = vpop.permute.xlu1 %5555 }
 0x2f3   :  { %v5570_v54 = vpop.permute.xlu0 %5569  ;;  %5560 = vst.msk [vmem:[#allocation2 + $0x6c] sm:$0x3] %vm508_vm15, %v5556_v63  ;;  %v15077_v63 = vld [vmem:[%s19050_s9 + $0x80] sm:$0xff] }
 0x2f4   :  { %5574 = vst.msk [vmem:[#allocation2 + $0x6c] sm:$0x3] %vm527_vm3, %v5570_v54  ;;  %v15082_v54 = vld [vmem:[%s19050_s9 + $0xa8] sm:$0xff] }
 0x2f5   :  { %5582 = vst.msk [vmem:[#allocation2 + $0x6c] sm:$0x3] %vm537_vm5, %v5578_v3  ;;  %v15051_v3 = vld [vmem:[%s19050_s9 + $0xd0] sm:$0xff]  ;;  %8430 = vmatpush.bf16.msrb.mxu2 %v15082_v54  ;;  %v15116_v54 = vld [vmem:[%s19050_s9 + $0x98] sm:$0xff] }
 0x2f6   :  { %8223 = vmatpush.bf16.msra.mxu1 %v15051_v3 }
 0x2f9   :  { %8431 = vmatpush.bf16.msrb.mxu2 %v15081_v13 }
 0x2fa   :  { %v5576_v20 = vpop.permute.xlu1 %5575  ;;  %8224 = vmatpush.bf16.msra.mxu1 %v15050_v18  ;;  %v15095_v18 = vld [vmem:[%s19050_s9 + $0x110] sm:$0xff] }
 0x2fb   :  { %5581 = vst.msk [vmem:[#allocation2 + $0x68] sm:$0xf] %vm535_vm12, %v5576_v20  ;;  %v15049_v20 = vld [vmem:[%s19050_s9 + $0xc0] sm:$0xff] }
 0x2fc   :  { %v7059_v19 = vpop.f32.mrf.mxu0  ;;  %v15016_v34 = vld [vmem:[#allocation2 + $0x68] sm:$0x30] }
 0x2fd   :  { %v7064_v24 = vadd.f32 %v7059_v19, %v6976_v31 }
 0x2fe   :  { %8225 = vmatpush.bf16.msra.mxu1 %v15049_v20 }
 0x2ff   :  { %v7066_v25 = vadd.f32 %v7064_v24, %v18195_v1  ;;  %v15072_v24 = vld [vmem:[%s19050_s9 + $0x58] sm:$0xff] }
 0x301   :  { %vm7068_vm11 = vcmp.ge.f32.partialorder %v7066_v25, 0.0  ;;  %v7070_v6 = vmul.f32 0.2, %v7066_v25 }
 0x302   :  { %v5953_v9 = vpop.permute.xlu1 %5952  ;;  %v13413_v30 = vld [vmem:[#allocation2 + $0x68] sm:$0xf] }
 0x303   :  { %v7072_v62 = vsel %vm7068_vm11, %v7066_v25, %v7070_v6  ;;  %5956 = vst.msk [vmem:[#allocation3] sm:$0xf] %vm5955_vm10, %v5953_v9  ;;  %v13414_v4 = vor.u32 %v15016_v34, %v13413_v30  ;;  %v15073_v25 = vld [vmem:[%s19050_s9 + $0x60] sm:$0xff]  ;;  %v15064_v30 = vld [vmem:[%s19050_s9 + $0x18] sm:$0xff]  ;;  %v15063_v34 = vld [vmem:[%s19050_s9 + $0x10] sm:$0xff] }
 0x304   :  { %v7074_v5 = vpack.c.bf16 %v7072_v62, %v7072_v62  ;;  %v7061_v40 = vpop.f32.mrf.mxu0  ;;  %v15069_v6 = vld [vmem:[%s19050_s9 + $0x40] sm:$0xff] }
 0x305   :  { %v7065_v41 = vadd.f32 %v7061_v40, %v6977_v37  ;;  %7810 = vmatmul.bf16.vlgmr.msra.gmra.mxu0 %v13414_v4  ;;  %v7193_v37 = vpop.f32.mrf.mxu3 }
 0x306   :  { %7076 = vst.msk [vmem:[#allocation3 + $0x18] sm:$0xf] %vm5943_vm13, %v7074_v5  ;;  %8411 = vmatpush.bf16.msra.mxu0 %v15080_v36  ;;  %v13060_v58 = vrot.slane %v7074_v5, 10  ;;  %v13059_v16 = vrot.slane %v7074_v5, 9 }
 0x307   :  { %v7067_v38 = vadd.f32 %v7065_v41, %v18226_v29  ;;  %v15062_v41 = vld [vmem:[%s19050_s9 + $0x8] sm:$0xff] }
 0x309   :  { %vm7069_vm12 = vcmp.ge.f32.partialorder %v7067_v38, 0.0  ;;  %v7071_v55 = vmul.f32 0.2, %v7067_v38 }
 0x30a   :  { %v7846_v46 = vld [vmem:[#allocation3] sm:$0xff]  ;;  %8412 = vmatpush.bf16.msra.mxu0 %v15079_v10  ;;  %v7262_v10 = vadd.f32 %v7261_v50, %v7193_v37  ;;  %v15109_v37 = vld [vmem:[%s19050_s9 + $0x60] sm:$0xff] }
 0x30b   :  { %v7073_v26 = vsel %vm7069_vm12, %v7067_v38, %v7071_v55  ;;  %v8005_v49 = vunpack.c.l.b16 %v7846_v46  ;;  %v8006_v52 = vunpack.c.h.b16 %v7846_v46  ;;  %v15100_v50 = vld [vmem:[%s19050_s9 + $0x18] sm:$0xff] }
 0x30c   :  { %v7077_v44 = vpack.c.bf16 %v7073_v26, %v7073_v26 }
 0x30d   :  { %v8007_v59 = vpack.c.b16 %v8005_v49, %v8005_v49  ;;  %v8008_v14 = vpack.c.b16 %v8006_v52, %v8006_v52  ;;  %v7195_v55 = vpop.f32.mrf.mxu3  ;;  %v15096_v52 = vld [vmem:[%s19050_s9 + $0x118] sm:$0xff] }
 0x30e   :  { %v7090_v47 = vrot.slane %v7077_v44, 6  ;;  %v7082_v60 = vrot.slane %v7077_v44, 5  ;;  %8413 = vmatpush.bf16.msra.mxu0 %v15078_v43  ;;  %v7263_v43 = vpop.f32.mrf.mxu1 }
 0x30f   :  { %8093 = vmatmul.bf16.vlgmr.msra.gmra.mxu2 %v8007_v59  ;;  %v7264_v49 = vadd.f32 %v7263_v43, %v7195_v55  ;;  %v15098_v55 = vld [vmem:[%s19050_s9 + $0x8] sm:$0xff]  ;;  %v15105_v43 = vld [vmem:[%s19050_s9 + $0x40] sm:$0xff] }
 0x310   :  { %v7091_v57 = vsel %vm18246_vm8, %v13060_v58, %v7090_v47  ;;  %v7083_v56 = vsel %vm16110_vm9, %v13059_v16, %v7082_v60 }
 0x311   :  { %7093 = vst.msk [vmem:[#allocation3 + $0x1c] sm:$0xf] %vm5943_vm13, %v7091_v57  ;;  %7084 = vrot.lane.b32.xlu0 %v7083_v56, %s15212_s23  ;;  %v15091_v56 = vld [vmem:[%s19050_s9 + $0xf0] sm:$0xff] }
 0x312   :  { %8414 = vmatpush.bf16.msra.mxu0 %v15077_v63  ;;  %v6333_v17 = vpop.permute.xlu0 %6332  ;;  %v15092_v63 = vld [vmem:[%s19050_s9 + $0xf8] sm:$0xff] }
 0x313   :  { %6335 = vst.msk [vmem:[#allocation3 + $0x8] sm:$0xf] %vm5955_vm10, %v6333_v17  ;;  %8650 = vmatpush.bf16.msra.mxu2 %v15092_v63  ;;  %v15115_v17 = vld [vmem:[%s19050_s9 + $0x90] sm:$0xff] }
 0x315   :  { %13570 = vmatmul.msk.bf16.vlgmr.msrb.gmra.mxu0 %vm281_vm2, %v8008_v14 }
 0x316   :  { %8415 = vmatpush.bf16.msra.mxu0 %v15076_v12 }
 0x317   :  { %8651 = vmatpush.bf16.msra.mxu2 %v15091_v56 }
 0x31a   :  { %8416 = vmatpush.bf16.msra.mxu0 %v15075_v2  ;;  %v7871_v31 = vld [vmem:[#allocation3 + $0x8] sm:$0xff]  ;;  %v15120_v2 = vld [vmem:[%s19050_s9 + $0xb8] sm:$0xff] }
 0x31b   :  { %v7898_v21 = vunpack.c.l.b16 %v7871_v31  ;;  %v7899_v19 = vunpack.c.h.b16 %v7871_v31  ;;  %v15090_v31 = vld [vmem:[%s19050_s9 + $0xe8] sm:$0xff] }
 0x31c   :  { %8652 = vmatpush.bf16.msra.mxu2 %v15090_v31 }
 0x31d   :  { %v7900_v27 = vpack.c.b16 %v7898_v21, %v7898_v21  ;;  %v7901_v28 = vpack.c.b16 %v7899_v19, %v7899_v19  ;;  %v15114_v21 = vld [vmem:[%s19050_s9 + $0x88] sm:$0xff] }
 0x31e   :  { %8417 = vmatpush.bf16.msra.mxu0 %v15074_v23  ;;  %v15094_v19 = vld [vmem:[%s19050_s9 + $0x108] sm:$0xff] }
 0x31f   :  { %7986 = vmatmul.bf16.vlgmr.msra.gmra.mxu3 %v7900_v27  ;;  %13521 = vmatmul.msk.bf16.vlgmr.msrb.gmra.mxu1 %vm281_vm2, %v7901_v28 }
 0x320   :  { %8518 = vmatpush.bf16.msra.mxu3 %v15068_v33  ;;  %8535 = vmatpush.bf16.msrb.mxu1 %v15072_v24  ;;  %v15089_v33 = vld [vmem:[%s19050_s9 + $0xe0] sm:$0xff] }
 0x321   :  { %v15113_v24 = vld [vmem:[%s19050_s9 + $0x80] sm:$0xff]  ;;  %8653 = vmatpush.bf16.msra.mxu2 %v15089_v33 }
 0x322   :  { %8418 = vmatpush.bf16.msra.mxu0 %v15073_v25  ;;  %v7347_v5 = vpop.f32.mrf.mxu2  ;;  %v15088_v25 = vld [vmem:[%s19050_s9 + $0xd8] sm:$0xff] }
 0x323   :  { %v7352_v38 = vadd.f32 %v7347_v5, %v7262_v10  ;;  %v15108_v5 = vld [vmem:[%s19050_s9 + $0x58] sm:$0xff]  ;;  %v15099_v10 = vld [vmem:[%s19050_s9 + $0x10] sm:$0xff] }
 0x324   :  { %8519 = vmatpush.bf16.msra.mxu3 %v15067_v48  ;;  %8536 = vmatpush.bf16.msrb.mxu1 %v15071_v61  ;;  %v15112_v48 = vld [vmem:[%s19050_s9 + $0x78] sm:$0xff]  ;;  %v15087_v61 = vld [vmem:[%s19050_s9 + $0xd0] sm:$0xff] }
 0x325   :  { %8654 = vmatpush.bf16.msra.mxu2 %v15088_v25 }
 0x326   :  { %8667 = vmatpush.bf16.msrb.mxu0 %v15096_v52 }
 0x327   :  { %v6709_v9 = vpop.permute.xlu2 %6708 }
 0x328   :  { %8520 = vmatpush.bf16.msra.mxu3 %v15066_v53  ;;  %8537 = vmatpush.bf16.msrb.mxu1 %v15070_v8  ;;  %6711 = vst.msk [vmem:[#allocation3 + $0x10] sm:$0xf] %vm5955_vm10, %v6709_v9  ;;  %v15111_v53 = vld [vmem:[%s19050_s9 + $0x70] sm:$0xff]  ;;  %v15110_v9 = vld [vmem:[%s19050_s9 + $0x68] sm:$0xff] }
 0x329   :  { %v15119_v8 = vld [vmem:[%s19050_s9 + $0xb0] sm:$0xff]  ;;  %8655 = vmatpush.bf16.msra.mxu2 %v15087_v61 }
 0x32a   :  { %v7349_v26 = vpop.f32.mrf.mxu2  ;;  %8668 = vmatpush.bf16.msrb.mxu0 %v15095_v18  ;;  %v15127_v61 = vld [vmem:[%s19050_s9 + $0xf0] sm:$0xff] }
 0x32b   :  { %v7353_v44 = vadd.f32 %v7349_v26, %v7264_v49  ;;  %v15097_v49 = vld [vmem:[%s19050_s9] sm:$0xff] }
 0x32c   :  { %8521 = vmatpush.bf16.msra.mxu3 %v15065_v0  ;;  %8538 = vmatpush.bf16.msrb.mxu1 %v15069_v6  ;;  %v15103_v0 = vld [vmem:[%s19050_s9 + $0x30] sm:$0xff]  ;;  %v15086_v6 = vld [vmem:[%s19050_s9 + $0xc8] sm:$0xff] }
 0x32d   :  { %8656 = vmatpush.bf16.msra.mxu2 %v15086_v6 }
 0x32e   :  { %8669 = vmatpush.bf16.msrb.mxu0 %v15094_v19 }
 0x32f   :  { %v8111_v36 = vld [vmem:[#allocation3 + $0x10] sm:$0xff] }
 0x330   :  { %8522 = vmatpush.bf16.msra.mxu3 %v15064_v30  ;;  %v8138_v62 = vunpack.c.l.b16 %v8111_v36  ;;  %v8139_v4 = vunpack.c.h.b16 %v8111_v36  ;;  %v15118_v30 = vld [vmem:[%s19050_s9 + $0xa8] sm:$0xff]  ;;  %v15085_v36 = vld [vmem:[%s19050_s9 + $0xc0] sm:$0xff] }
 0x331   :  { %8657 = vmatpush.bf16.msra.mxu2 %v15085_v36  ;;  %v15149_v36 = vld [vmem:[%s19050_s9 + $0x80] sm:$0xff] }
 0x332   :  { %v18564_v40 = vpack.c.b16 %v8138_v62, %v8138_v62  ;;  %v18566_v7 = vpack.c.b16 %v8139_v4, %v8139_v4  ;;  %v15117_v62 = vld [vmem:[%s19050_s9 + $0xa0] sm:$0xff] }
 0x333   :  { %v15101_v4 = vld [vmem:[%s19050_s9 + $0x20] sm:$0xff] }
 0x334   :  { %8523 = vmatpush.bf16.msra.mxu3 %v15063_v34  ;;  %8226 = vmatmul.bf16.vlgmr.msra.gmra.mxu1 %v18564_v40  ;;  %v15102_v34 = vld [vmem:[%s19050_s9 + $0x28] sm:$0xff] }
 0x335   :  { %13643 = vmatmul.msk.bf16.vlgmr.msrb.gmra.mxu3 %vm281_vm2, %v18566_v7  ;;  %8419 = vmatmul.bf16.vlgmr.msra.gmra.mxu0 %v18564_v40 }
 0x336   :  { %13716 = vmatmul.msk.bf16.vlgmr.msrb.gmra.mxu2 %vm281_vm2, %v18566_v7  ;;  %8839 = vmatpush.bf16.msra.mxu1 %v15116_v54 }
 0x337   :  { %8963 = vmatpush.bf16.msrb.mxu2 %v15108_v5  ;;  %v15140_v5 = vld [vmem:[%s19050_s9 + $0x38] sm:$0xff] }
 0x338   :  { %8524 = vmatpush.bf16.msra.mxu3 %v15062_v41  ;;  %v15107_v41 = vld [vmem:[%s19050_s9 + $0x50] sm:$0xff] }
 0x33a   :  { %8840 = vmatpush.bf16.msra.mxu1 %v15115_v17 }
 0x33b   :  { %8964 = vmatpush.bf16.msrb.mxu2 %v15107_v41  ;;  %v15123_v41 = vld [vmem:[%s19050_s9 + $0xd0] sm:$0xff] }
 0x33c   :  { %v7435_v15 = vpop.f32.mrf.mxu0  ;;  %8525 = vmatpush.bf16.msra.mxu3 %v15061_v39 }
 0x33d   :  { %v7440_v35 = vadd.f32 %v7435_v15, %v7352_v38  ;;  %v7637_v38 = vpop.f32.mrf.mxu1 }
 0x33e   :  { %8841 = vmatpush.bf16.msra.mxu1 %v15114_v21 }
 0x33f   :  { %v7442_v46 = vadd.f32 %v7440_v35, %v18195_v1  ;;  %v15106_v35 = vld [vmem:[%s19050_s9 + $0x48] sm:$0xff] }
 0x340   :  { %8856 = vmatpush.bf16.msrb.mxu3 %v15120_v2  ;;  %8965 = vmatpush.bf16.msrb.mxu2 %v15106_v35  ;;  %v15122_v35 = vld [vmem:[%s19050_s9 + $0xc8] sm:$0xff] }
 0x341   :  { %vm7444_vm15 = vcmp.ge.f32.partialorder %v7442_v46, 0.0  ;;  %v7446_v32 = vmul.f32 0.2, %v7442_v46 }
 0x342   :  { %8842 = vmatpush.bf16.msra.mxu1 %v15113_v24 }
 0x343   :  { %v7448_v45 = vsel %vm7444_vm15, %v7442_v46, %v7446_v32  ;;  %v7569_v39 = vpop.f32.mrf.mxu3 }
 0x344   :  { %v7450_v42 = vpack.c.bf16 %v7448_v45, %v7448_v45  ;;  %v7437_v59 = vpop.f32.mrf.mxu0  ;;  %13765 = vmatmul.msk.bf16.vlgmr.msrb.gmra.mxu1 %vm281_vm2, %v7901_v28  ;;  %v15104_v28 = vld [vmem:[%s19050_s9 + $0x38] sm:$0xff]  ;;  %8857 = vmatpush.bf16.msrb.mxu3 %v15119_v8  ;;  %v7638_v46 = vadd.f32 %v7637_v38, %v7569_v39  ;;  %v15131_v8 = vld [vmem:[%s19050_s9 + $0x110] sm:$0xff] }
 0x345   :  { %v7441_v58 = vadd.f32 %v7437_v59, %v7353_v44  ;;  %8526 = vmatmul.bf16.vlgmr.msra.gmra.mxu3 %v7900_v27  ;;  %v15093_v27 = vld [vmem:[%s19050_s9 + $0x100] sm:$0xff]  ;;  %8966 = vmatpush.bf16.msrb.mxu2 %v15105_v43  ;;  %v15155_v39 = vld [vmem:[%s19050_s9 + $0xb0] sm:$0xff]  ;;  %v15138_v43 = vld [vmem:[%s19050_s9 + $0x28] sm:$0xff] }
 0x346   :  { %7452 = vst.msk [vmem:[#allocation3 + $0x20] sm:$0xf] %vm5943_vm13, %v7450_v42  ;;  %v13254_v3 = vrot.slane %v7450_v42, 10  ;;  %v13253_v13 = vrot.slane %v7450_v42, 9  ;;  %8670 = vmatpush.bf16.msrb.mxu0 %v15093_v27  ;;  %8843 = vmatpush.bf16.msra.mxu1 %v15112_v48 }
 0x347   :  { %v7443_v47 = vadd.f32 %v7441_v58, %v18226_v29  ;;  %v7639_v58 = vpop.f32.mrf.mxu1 }
 0x348   :  { %8858 = vmatpush.bf16.msrb.mxu3 %v15118_v30  ;;  %v15130_v30 = vld [vmem:[%s19050_s9 + $0x108] sm:$0xff] }
 0x349   :  { %vm7445_vm3 = vcmp.ge.f32.partialorder %v7443_v47, 0.0  ;;  %v7447_v16 = vmul.f32 0.2, %v7443_v47 }
 0x34a   :  { %8946 = vmatpush.bf16.msra.mxu0 %v15104_v28  ;;  %8844 = vmatpush.bf16.msra.mxu1 %v15111_v53  ;;  %v15151_v53 = vld [vmem:[%s19050_s9 + $0x90] sm:$0xff] }
 0x34b   :  { %v7449_v60 = vsel %vm7445_vm3, %v7443_v47, %v7447_v16  ;;  %v7571_v42 = vpop.f32.mrf.mxu3 }
 0x34c   :  { %v7453_v57 = vpack.c.bf16 %v7449_v60, %v7449_v60  ;;  %8859 = vmatpush.bf16.msrb.mxu3 %v15117_v62  ;;  %v7640_v16 = vadd.f32 %v7639_v58, %v7571_v42  ;;  %v15124_v62 = vld [vmem:[%s19050_s9 + $0xd8] sm:$0xff] }
 0x34d   :  { %v15136_v58 = vld [vmem:[%s19050_s9 + $0x18] sm:$0xff] }
 0x34e   :  { %v7466_v12 = vrot.slane %v7453_v57, 6  ;;  %v7458_v14 = vrot.slane %v7453_v57, 5  ;;  %8947 = vmatpush.bf16.msra.mxu0 %v15103_v0  ;;  %8845 = vmatpush.bf16.msra.mxu1 %v15110_v9 }
 0x350   :  { %v7467_v20 = vsel %vm18246_vm8, %v13254_v3, %v7466_v12  ;;  %v7459_v23 = vsel %vm16110_vm9, %v13253_v13, %v7458_v14  ;;  %v15128_v12 = vld [vmem:[%s19050_s9 + $0xf8] sm:$0xff] }
 0x351   :  { %7469 = vst.msk [vmem:[#allocation3 + $0x24] sm:$0xf] %vm5943_vm13, %v7467_v20  ;;  %7460 = vrot.lane.b32.xlu1 %v7459_v23, %s15212_s23  ;;  %v15132_v14 = vld [vmem:[%s19050_s9 + $0x118] sm:$0xff]  ;;  %9078 = vmatpush.bf16.msra.mxu3 %v15128_v12 }
 0x352   :  { %8948 = vmatpush.bf16.msra.mxu0 %v15102_v34  ;;  %8846 = vmatpush.bf16.msra.mxu1 %v15109_v37  ;;  %v15152_v20 = vld [vmem:[%s19050_s9 + $0x98] sm:$0xff]  ;;  %v15125_v34 = vld [vmem:[%s19050_s9 + $0xe0] sm:$0xff] }
 0x355   :  { %9079 = vmatpush.bf16.msra.mxu3 %v15127_v61 }
 0x356   :  { %8949 = vmatpush.bf16.msra.mxu0 %v15101_v4  ;;  %9095 = vmatpush.bf16.msrb.mxu1 %v15132_v14  ;;  %v15148_v4 = vld [vmem:[%s19050_s9 + $0x78] sm:$0xff] }
 0x359   :  { %9080 = vmatpush.bf16.msra.mxu3 %v15126_v11  ;;  %v15161_v11 = vld [vmem:[%s19050_s9 + $0xe0] sm:$0xff] }
 0x35a   :  { %8950 = vmatpush.bf16.msra.mxu0 %v15100_v50  ;;  %9096 = vmatpush.bf16.msrb.mxu1 %v15131_v8  ;;  %v15156_v50 = vld [vmem:[%s19050_s9 + $0xb8] sm:$0xff] }
 0x35d   :  { %9081 = vmatpush.bf16.msra.mxu3 %v15125_v34 }
 0x35e   :  { %8951 = vmatpush.bf16.msra.mxu0 %v15099_v10  ;;  %9097 = vmatpush.bf16.msrb.mxu1 %v15130_v30  ;;  %v15147_v10 = vld [vmem:[%s19050_s9 + $0x70] sm:$0xff] }
 0x361   :  { %9082 = vmatpush.bf16.msra.mxu3 %v15124_v62 }
 0x362   :  { %v7723_v15 = vpop.f32.mrf.mxu2  ;;  %8952 = vmatpush.bf16.msra.mxu0 %v15098_v55  ;;  %v15146_v55 = vld [vmem:[%s19050_s9 + $0x68] sm:$0xff] }
 0x363   :  { %v7728_v26 = vadd.f32 %v7723_v15, %v7638_v46  ;;  %v15139_v15 = vld [vmem:[%s19050_s9 + $0x30] sm:$0xff]  ;;  %v15154_v46 = vld [vmem:[%s19050_s9 + $0xa8] sm:$0xff] }
 0x365   :  { %9083 = vmatpush.bf16.msra.mxu3 %v15123_v41  ;;  %v15166_v41 = vld [vmem:[%s19050_s9 + $0x108] sm:$0xff] }
 0x366   :  { %8953 = vmatpush.bf16.msra.mxu0 %v15097_v49  ;;  %v15145_v49 = vld [vmem:[%s19050_s9 + $0x60] sm:$0xff] }
 0x369   :  { %9084 = vmatpush.bf16.msra.mxu3 %v15122_v35 }
 0x36a   :  { %v7725_v47 = vpop.f32.mrf.mxu2 }
 0x36b   :  { %v7729_v63 = vadd.f32 %v7725_v47, %v7640_v16  ;;  %v15144_v47 = vld [vmem:[%s19050_s9 + $0x58] sm:$0xff] }
 0x382   :  { %v7811_v32 = vpop.f32.mrf.mxu0 }
 0x383   :  { %v7816_v44 = vadd.f32 %v7811_v32, %v7728_v26  ;;  %v7085_v45 = vpop.permute.xlu0 %7084  ;;  %v15121_v26 = vld [vmem:[%s19050_s9 + $0xc0] sm:$0xff] }
 0x384   :  { %7087 = vst.msk [vmem:[#allocation3 + $0x18] sm:$0xf] %vm5955_vm10, %v7085_v45  ;;  %v15153_v32 = vld [vmem:[%s19050_s9 + $0xa0] sm:$0xff]  ;;  %9085 = vmatpush.bf16.msra.mxu3 %v15121_v26 }
 0x385   :  { %v7818_v59 = vadd.f32 %v7816_v44, %v18195_v1  ;;  %v15137_v44 = vld [vmem:[%s19050_s9 + $0x20] sm:$0xff] }
 0x387   :  { %vm7820_vm5 = vcmp.ge.f32.partialorder %v7818_v59, 0.0  ;;  %v7822_v60 = vmul.f32 0.2, %v7818_v59 }
 0x389   :  { %v7824_v54 = vsel %vm7820_vm5, %v7818_v59, %v7822_v60  ;;  %v15143_v60 = vld [vmem:[%s19050_s9 + $0x50] sm:$0xff] }
 0x38a   :  { %v7826_v52 = vpack.c.bf16 %v7824_v54, %v7824_v54  ;;  %v7813_v57 = vpop.f32.mrf.mxu0  ;;  %v15164_v54 = vld [vmem:[%s19050_s9 + $0xf8] sm:$0xff] }
 0x38b   :  { %v7817_v56 = vadd.f32 %v7813_v57, %v7729_v63  ;;  %v8544_v3 = vld [vmem:[#allocation3 + $0x18] sm:$0xff] }
 0x38c   :  { %7828 = vst.msk [vmem:[#allocation3 + $0x28] sm:$0xf] %vm5943_vm13, %v7826_v52  ;;  %v8570_v13 = vunpack.c.l.b16 %v8544_v3  ;;  %v8571_v1 = vunpack.c.h.b16 %v8544_v3  ;;  %v13448_v33 = vrot.slane %v7826_v52, 10  ;;  %v13447_v27 = vrot.slane %v7826_v52, 9  ;;  %v15135_v63 = vld [vmem:[%s19050_s9 + $0x10] sm:$0xff] }
 0x38d   :  { %v7819_v17 = vadd.f32 %v7817_v56, %v18226_v29  ;;  %v15204_v52 = vld [vmem:[%s19046_s11] ss:$0 sm:$0xff] }
 0x38e   :  { %v18708_v18 = vpack.c.b16 %v8570_v13, %v8570_v13  ;;  %v18710_v2 = vpack.c.b16 %v8571_v1, %v8571_v1  ;;  %v15142_v13 = vld [vmem:[%s19050_s9 + $0x48] sm:$0xff] }
 0x38f   :  { %vm7821_vm6 = vcmp.ge.f32.partialorder %v7819_v17, 0.0  ;;  %v7823_v23 = vmul.f32 0.2, %v7819_v17 }
 0x390   :  { %8658 = vmatmul.bf16.vlgmr.msra.gmra.mxu2 %v18708_v18  ;;  %13838 = vmatmul.msk.bf16.vlgmr.msrb.gmra.mxu0 %vm281_vm2, %v18710_v2 }
 0x391   :  { %v7825_v31 = vsel %vm7821_vm6, %v7819_v17, %v7823_v23  ;;  %8847 = vmatmul.bf16.vlgmr.msra.gmra.mxu1 %v18708_v18  ;;  %13911 = vmatmul.msk.bf16.vlgmr.msrb.gmra.mxu3 %vm281_vm2, %v18710_v2  ;;  %v15134_v17 = vld [vmem:[%s19050_s9 + $0x8] sm:$0xff] }
 0x392   :  { %v7829_v29 = vpack.c.bf16 %v7825_v31, %v7825_v31  ;;  %v18721_v21 = vpop.f32.mrf.mxu2  ;;  %v18723_v19 = vpop.f32.mrf.mxu0  ;;  %9267 = vmatpush.bf16.msra.mxu2 %v15152_v20  ;;  %9284 = vmatpush.bf16.msrb.mxu0 %v15156_v50  ;;  %v18836_v20 = vadd.f32 %v15204_v52, %v15877_v22  ;;  %v15168_v22 = vld [vmem:[%s19050_s9 + $0x118] sm:$0xff]  ;;  %v15159_v50 = vld [vmem:[%s19050_s9 + $0xd0] sm:$0xff] }
 0x393   :  { %9391 = vmatpush.bf16.msrb.mxu3 %v15144_v47 }
 0x394   :  { %v7842_v24 = vrot.slane %v7829_v29, 6  ;;  %v7834_v28 = vrot.slane %v7829_v29, 5 }
 0x396   :  { %v7843_v25 = vsel %vm18246_vm8, %v13448_v33, %v7842_v24  ;;  %v7835_v48 = vsel %vm16110_vm9, %v13447_v27, %v7834_v28  ;;  %9268 = vmatpush.bf16.msra.mxu2 %v15151_v53  ;;  %9285 = vmatpush.bf16.msrb.mxu0 %v15155_v39  ;;  %v15133_v33 = vld [vmem:[%s19050_s9] sm:$0xff]  ;;  %v15162_v27 = vld [vmem:[%s19050_s9 + $0xe8] sm:$0xff] }
 0x397   :  { %7845 = vst.msk [vmem:[#allocation3 + $0x2c] sm:$0xf] %vm5943_vm13, %v7843_v25  ;;  %7836 = vrot.lane.b32.xlu2 %v7835_v48, %s15212_s23  ;;  %9392 = vmatpush.bf16.msrb.mxu3 %v15143_v60  ;;  %vm8250_vm13 = vcmask 253952  }
 0x39a   :  { %v8096_v0 = vpop.f32.mrf.mxu2  ;;  %v8109_v6 = vpop.f32.mrf.mxu0  ;;  %9269 = vmatpush.bf16.msra.mxu2 %v15150_v51  ;;  %9286 = vmatpush.bf16.msrb.mxu0 %v15154_v46  ;;  %v15160_v51 = vld [vmem:[%s19050_s9 + $0xd8] sm:$0xff] }
 0x39b   :  { %9393 = vmatpush.bf16.msrb.mxu3 %v15142_v13 }
 0x39c   :  { %v8000_v9 = vpop.f32.mrf.mxu1 }
 0x39e   :  { %9270 = vmatpush.bf16.msra.mxu2 %v15149_v36  ;;  %9287 = vmatpush.bf16.msrb.mxu0 %v15153_v32 }
 0x3a0   :  { %8954 = vmatmul.bf16.vlgmr.msra.gmra.mxu0 %v18564_v40  ;;  %13960 = vmatmul.msk.bf16.vlgmr.msrb.gmra.mxu2 %vm281_vm2, %v18566_v7  ;;  %v15129_v7 = vld [vmem:[%s19050_s9 + $0x100] sm:$0xff] }
 0x3a1   :  { %9098 = vmatpush.bf16.msrb.mxu1 %v15129_v7 }
 0x3a2   :  { %v7987_v37 = vpop.f32.mrf.mxu3  ;;  %9271 = vmatpush.bf16.msra.mxu2 %v15148_v4  ;;  %9506 = vmatpush.bf16.msra.mxu0 %v15164_v54  ;;  %v15167_v4 = vld [vmem:[%s19050_s9 + $0x110] sm:$0xff] }
 0x3a3   :  { %v8001_v45 = vadd.f32 %v8000_v9, %v7987_v37 }
 0x3a4   :  { %v8002_v40 = vpop.f32.mrf.mxu1 }
 0x3a5   :  { %9374 = vmatpush.bf16.msra.mxu1 %v15140_v5  ;;  %v8095_v16 = vadd.f32 %v18721_v21, %v8001_v45  ;;  %v15141_v21 = vld [vmem:[%s19050_s9 + $0x40] sm:$0xff] }
 0x3a6   :  { %9272 = vmatpush.bf16.msra.mxu2 %v15147_v10  ;;  %9394 = vmatpush.bf16.msrb.mxu3 %v15141_v21  ;;  %v15158_v10 = vld [vmem:[%s19050_s9 + $0xc8] sm:$0xff] }
 0x3a7   :  { %v8108_v56 = vadd.f32 %v18723_v19, %v8095_v16  ;;  %v15163_v19 = vld [vmem:[%s19050_s9 + $0xf0] sm:$0xff] }
 0x3a8   :  { %9507 = vmatpush.bf16.msra.mxu0 %v15163_v19 }
 0x3a9   :  { %9375 = vmatpush.bf16.msra.mxu1 %v15139_v15  ;;  %v15157_v15 = vld [vmem:[%s19050_s9 + $0xc0] sm:$0xff] }
 0x3aa   :  { %v7989_v38 = vpop.f32.mrf.mxu3  ;;  %9273 = vmatpush.bf16.msra.mxu2 %v15146_v55 }
 0x3ab   :  { %v15165_v38 = vld [vmem:[%s19050_s9 + $0x100] sm:$0xff] }
 0x3ac   :  { %9508 = vmatpush.bf16.msra.mxu0 %v15162_v27 }
 0x3ad   :  { %9376 = vmatpush.bf16.msra.mxu1 %v15138_v43 }
 0x3ae   :  { %9274 = vmatpush.bf16.msra.mxu2 %v15145_v49 }
 0x3b0   :  { %9509 = vmatpush.bf16.msra.mxu0 %v15161_v11 }
 0x3b1   :  { %v8227_v42 = vpop.f32.mrf.mxu1  ;;  %9377 = vmatpush.bf16.msra.mxu1 %v15137_v44 }
 0x3b2   :  { %v8420_v59 = vpop.f32.mrf.mxu0  ;;  %9523 = vmatpush.bf16.msrb.mxu2 %v15168_v22 }
 0x3b4   :  { %9510 = vmatpush.bf16.msra.mxu0 %v15160_v51 }
 0x3b5   :  { %9378 = vmatpush.bf16.msra.mxu1 %v15136_v58 }
 0x3b6   :  { %9524 = vmatpush.bf16.msrb.mxu2 %v15167_v4 }
 0x3b8   :  { %v8240_v57 = vpop.f32.mrf.mxu3  ;;  %9511 = vmatpush.bf16.msra.mxu0 %v15159_v50 }
 0x3b9   :  { %v8241_v3 = vadd.f32 %v8240_v57, %v8227_v42  ;;  %v8433_v12 = vpop.f32.mrf.mxu2  ;;  %v8229_v14 = vpop.f32.mrf.mxu1  ;;  %9379 = vmatpush.bf16.msra.mxu1 %v15135_v63 }
 0x3ba   :  { %v8434_v1 = vadd.f32 %v8433_v12, %v8420_v59  ;;  %v8422_v31 = vpop.f32.mrf.mxu0  ;;  %9525 = vmatpush.bf16.msrb.mxu2 %v15166_v41 }
 0x3bb   :  { %v8244_v23 = vadd.f32 %v8241_v3, %v8108_v56 }
 0x3bc   :  { %9512 = vmatpush.bf16.msra.mxu0 %v15158_v10 }
 0x3bd   :  { %v8245_v29 = vadd.f32 %v8244_v23, %v18836_v20  ;;  %9380 = vmatpush.bf16.msra.mxu1 %v15134_v17 }
 0x3be   :  { %9526 = vmatpush.bf16.msrb.mxu2 %v15165_v38 }
 0x3bf   :  { %vm8246_vm9 = vcmp.ge.f32.partialorder %v8245_v29, 0.0  ;;  %v8247_v24 = vmul.f32 0.2, %v8245_v29 }
 0x3c0   :  { %v8242_v28 = vpop.f32.mrf.mxu3  ;;  %9513 = vmatpush.bf16.msra.mxu0 %v15157_v15 }
 0x3c1   :  { %v8248_v48 = vsel %vm8246_vm9, %v8245_v29, %v8247_v24  ;;  %v8435_v61 = vpop.f32.mrf.mxu2  ;;  %v8540_v8 = vpop.f32.mrf.mxu1  ;;  %9381 = vmatpush.bf16.msra.mxu1 %v15133_v33 }
 0x3c2   :  { %v8249_v53 = vpack.c.bf16 %v8248_v48, %v8248_v48 }
 0x3c3   :  { %v7461_v25 = vpop.permute.xlu1 %7460 }
 0x3c4   :  { %7463 = vst.msk [vmem:[#allocation3 + $0x20] sm:$0xf] %vm5955_vm10, %v7461_v25 }
 0x3c5   :  { %8253 = vst [vmem:[#allocation1] sm:$0xff] %v8249_v53 }
 0x3c6   :  { %8251 = vst.msk [vmem:[#allocation4] sm:$0x1] %vm8250_vm13, %v8249_v53 }
 0x3c8   :  { %v8527_v0 = vpop.f32.mrf.mxu3 }
 0x3c9   :  { %v8528_v9 = vadd.f32 %v8527_v0, %v8434_v1  ;;  %v8542_v36 = vpop.f32.mrf.mxu1 }
 0x3cb   :  { %v8972_v6 = vld [vmem:[#allocation3 + $0x20] sm:$0xff]  ;;  %v8541_v40 = vadd.f32 %v8540_v8, %v8528_v9 }
 0x3cc   :  { %v8998_v30 = vunpack.c.l.b16 %v8972_v6  ;;  %v8999_v34 = vunpack.c.h.b16 %v8972_v6  ;;  %v8255_v37 = vld [vmem:[#allocation1 + $0x1] ss:$4 sm:$0xff] }
 0x3cd   :  { %8262 = vst [vmem:[#allocation1] sm:$0xff] %v8249_v53  ;;  %8257 = vrot.lane.b32.xlu0 %v8255_v37, %s15214_s1 }
 0x3ce   :  { %v9000_v7 = vpack.c.b16 %v8998_v30, %v8998_v30  ;;  %v9001_v62 = vpack.c.b16 %v8999_v34, %v8999_v34 }
 0x3d0   :  { %9086 = vmatmul.bf16.vlgmr.msra.gmra.mxu3 %v9000_v7  ;;  %14033 = vmatmul.msk.bf16.vlgmr.msrb.gmra.mxu1 %vm281_vm2, %v9001_v62  ;;  %v8529_v5 = vpop.f32.mrf.mxu3 }
 0x3d1   :  { %9275 = vmatmul.bf16.vlgmr.msra.gmra.mxu2 %v9000_v7  ;;  %14106 = vmatmul.msk.bf16.vlgmr.msrb.gmra.mxu0 %vm281_vm2, %v9001_v62 }
 0x3d4   :  { %v8264_v39 = vld [vmem:[#allocation1 + $0x2] ss:$4 sm:$0xff] }
 0x3d5   :  { %8271 = vst [vmem:[#allocation1] sm:$0xff] %v8249_v53  ;;  %8266 = vrot.lane.b32.xlu1 %v8264_v39, %s15212_s23 }
 0x3dc   :  { %v8273_v35 = vld [vmem:[#allocation1 + $0x3] ss:$4 sm:$0xff] }
 0x3dd   :  { %8275 = vrot.lane.b32.xlu2 %v8273_v35, %s15213_s18 }
 0x3e0   :  { %9382 = vmatmul.bf16.vlgmr.msra.gmra.mxu1 %v18708_v18  ;;  %14155 = vmatmul.msk.bf16.vlgmr.msrb.gmra.mxu3 %vm281_vm2, %v18710_v2 }
 0x3f1   :  { %v7837_v55 = vpop.permute.xlu2 %7836 }
 0x3f2   :  { %7839 = vst.msk [vmem:[#allocation3 + $0x28] sm:$0xf] %vm5955_vm10, %v7837_v55 }
 0x3f9   :  { %v9400_v46 = vld [vmem:[#allocation3 + $0x28] sm:$0xff] }
 0x3fa   :  { %v9426_v43 = vunpack.c.l.b16 %v9400_v46  ;;  %v9427_v26 = vunpack.c.h.b16 %v9400_v46 }
 0x3fc   :  { %v9428_v49 = vpack.c.b16 %v9426_v43, %v9426_v43  ;;  %v9429_v32 = vpack.c.b16 %v9427_v26, %v9427_v26 }
 0x3fe   :  { %9514 = vmatmul.bf16.vlgmr.msra.gmra.mxu0 %v9428_v49  ;;  %14228 = vmatmul.msk.bf16.vlgmr.msrb.gmra.mxu2 %vm281_vm2, %v9429_v32  ;;  %vm8260_vm2 = vcmask 516352  }
 0x40d   :  { %v8672_v44 = vpop.f32.mrf.mxu0 }
 0x40e   :  { %v8848_v45 = vpop.f32.mrf.mxu1 }
 0x413   :  { %v8659_v42 = vpop.f32.mrf.mxu2 }
 0x414   :  { %v8673_v59 = vadd.f32 %v8672_v44, %v8659_v42  ;;  %v8861_v58 = vpop.f32.mrf.mxu3 }
 0x415   :  { %v8674_v18 = vpop.f32.mrf.mxu0  ;;  %v8862_v19 = vadd.f32 %v8861_v58, %v8848_v45  ;;  %v9630_v58 = vld [vmem:[%s19051_s13] sm:$0xf] }
 0x416   :  { %v8676_v47 = vadd.f32 %v8673_v59, %v8541_v40  ;;  %v8850_v16 = vpop.f32.mrf.mxu1  ;;  %v15176_v18 = vld [vmem:[%s19052_s12 + $0x38] sm:$0xff]  ;;  %14229 = vmatpush.msk.msra.mxu3 %vm74_vm0, %v9630_v58 }
 0x417   :  { %v15192_v16 = vld [vmem:[%s19052_s12 + $0xb8] sm:$0xff]  ;;  %9859 = vmatpush.bf16.msrb.mxu1 %v15176_v18 }
 0x418   :  { %v8677_v2 = vadd.f32 %v8676_v47, %v18836_v20  ;;  %v15184_v47 = vld [vmem:[%s19052_s12 + $0x78] sm:$0xff]  ;;  %9885 = vmatpush.bf16.msrb.mxu3 %v15192_v16 }
 0x419   :  { %9872 = vmatpush.bf16.msra.mxu2 %v15184_v47 }
 0x41a   :  { %vm8678_vm8 = vcmp.ge.f32.partialorder %v8677_v2, 0.0  ;;  %v8679_v60 = vmul.f32 0.2, %v8677_v2 }
 0x41b   :  { %v8661_v63 = vpop.f32.mrf.mxu2 }
 0x41c   :  { %v8680_v54 = vsel %vm8678_vm8, %v8677_v2, %v8679_v60  ;;  %v8863_v52 = vpop.f32.mrf.mxu3  ;;  %v15200_v2 = vld [vmem:[%s19052_s12 + $0xf8] sm:$0xff]  ;;  %v15175_v60 = vld [vmem:[%s19052_s12 + $0x30] sm:$0xff] }
 0x41d   :  { %v8681_v57 = vpack.c.bf16 %v8680_v54, %v8680_v54  ;;  %v8955_v56 = vpop.f32.mrf.mxu0  ;;  %v15183_v63 = vld [vmem:[%s19052_s12 + $0x70] sm:$0xff]  ;;  %9898 = vmatpush.bf16.msrb.mxu0 %v15200_v2  ;;  %9860 = vmatpush.bf16.msrb.mxu1 %v15175_v60 }
 0x41e   :  { %v8956_v33 = vadd.f32 %v8955_v56, %v8862_v19  ;;  %v15191_v54 = vld [vmem:[%s19052_s12 + $0xb0] sm:$0xff]  ;;  %9873 = vmatpush.bf16.msra.mxu2 %v15183_v63  ;;  %v15182_v56 = vld [vmem:[%s19052_s12 + $0x68] sm:$0xff] }
 0x41f   :  { %8684 = vst [vmem:[#allocation1] sm:$0xff] %v8681_v57  ;;  %v15199_v52 = vld [vmem:[%s19052_s12 + $0xf0] sm:$0xff]  ;;  %9886 = vmatpush.bf16.msrb.mxu3 %v15191_v54 }
 0x420   :  { %8682 = vst.msk [vmem:[#allocation4 + $0x1] sm:$0x1] %vm8250_vm13, %v8681_v57  ;;  %v15171_v19 = vld [vmem:[%s19052_s12 + $0x10] sm:$0xff] }
 0x421   :  { %9899 = vmatpush.bf16.msrb.mxu0 %v15199_v52 }
 0x422   :  { %9874 = vmatpush.bf16.msra.mxu2 %v15182_v56 }
 0x423   :  { %v8968_v3 = vpop.f32.mrf.mxu2 }
 0x424   :  { %v8969_v24 = vadd.f32 %v8968_v3, %v8956_v33  ;;  %v15190_v3 = vld [vmem:[%s19052_s12 + $0xa8] sm:$0xff]  ;;  %v15179_v33 = vld [vmem:[%s19052_s12 + $0x50] sm:$0xff] }
 0x425   :  { %v8957_v12 = vpop.f32.mrf.mxu0  ;;  %9887 = vmatpush.bf16.msrb.mxu3 %v15190_v3 }
 0x426   :  { %v8686_v13 = vld [vmem:[#allocation1 + $0x1] ss:$4 sm:$0xff] }
 0x427   :  { %8688 = vrot.lane.b32.xlu1 %v8686_v13, %s15214_s1  ;;  %8692 = vst [vmem:[#allocation1] sm:$0xff] %v8681_v57  ;;  %v15198_v12 = vld [vmem:[%s19052_s12 + $0xe8] sm:$0xff]  ;;  %v15173_v13 = vld [vmem:[%s19052_s12 + $0x20] sm:$0xff] }
 0x428   :  { %9900 = vmatpush.bf16.msrb.mxu0 %v15198_v12 }
 0x42b   :  { %v8970_v1 = vpop.f32.mrf.mxu2 }
 0x42c   :  { %v15181_v1 = vld [vmem:[%s19052_s12 + $0x60] sm:$0xff] }
 0x42d   :  { %9875 = vmatpush.bf16.msra.mxu2 %v15181_v1 }
 0x42e   :  { %v8694_v14 = vld [vmem:[#allocation1 + $0x2] ss:$4 sm:$0xff] }
 0x42f   :  { %8696 = vrot.lane.b32.xlu2 %v8694_v14, %s15212_s23  ;;  %8700 = vst [vmem:[#allocation1] sm:$0xff] %v8681_v57  ;;  %v15174_v57 = vld [vmem:[%s19052_s12 + $0x28] sm:$0xff]  ;;  %v15189_v14 = vld [vmem:[%s19052_s12 + $0xa0] sm:$0xff] }
 0x430   :  { %9861 = vmatpush.bf16.msrb.mxu1 %v15174_v57  ;;  %9888 = vmatpush.bf16.msrb.mxu3 %v15189_v14 }
 0x434   :  { %9862 = vmatpush.bf16.msrb.mxu1 %v15173_v13 }
 0x436   :  { %v8702_v30 = vld [vmem:[#allocation1 + $0x3] ss:$4 sm:$0xff] }
 0x437   :  { %v8276_v31 = vpop.permute.xlu2 %8275 }
 0x43f   :  { %v8258_v17 = vpop.permute.xlu0 %8257 }
 0x440   :  { %8261 = vst.msk [vmem:[#allocation4] sm:$0x1] %vm8260_vm2, %v8258_v17  ;;  %v15197_v17 = vld [vmem:[%s19052_s12 + $0xe0] sm:$0xff] }
 0x441   :  { %9901 = vmatpush.bf16.msrb.mxu0 %v15197_v17 }
 0x447   :  { %v8267_v23 = vpop.permute.xlu1 %8266 }
 0x448   :  { %8270 = vst.msk [vmem:[#allocation4] sm:$0x1] %vm8269_vm4, %v8267_v23  ;;  %v15172_v23 = vld [vmem:[%s19052_s12 + $0x18] sm:$0xff] }
 0x449   :  { %8279 = vst.msk [vmem:[#allocation4] sm:$0x1] %vm8278_vm14, %v8276_v31  ;;  %v15180_v31 = vld [vmem:[%s19052_s12 + $0x58] sm:$0xff]  ;;  %9863 = vmatpush.bf16.msrb.mxu1 %v15172_v23 }
 0x44a   :  { %9876 = vmatpush.bf16.msra.mxu2 %v15180_v31 }
 0x44d   :  { %v9100_v29 = vpop.f32.mrf.mxu1  ;;  %9864 = vmatpush.bf16.msrb.mxu1 %v15171_v19 }
 0x44e   :  { %v9289_v21 = vpop.f32.mrf.mxu0  ;;  %9877 = vmatpush.bf16.msra.mxu2 %v15179_v33 }
 0x453   :  { %v9087_v22 = vpop.f32.mrf.mxu3 }
 0x454   :  { %v9101_v27 = vadd.f32 %v9100_v29, %v9087_v22  ;;  %v9276_v28 = vpop.f32.mrf.mxu2  ;;  %v15188_v29 = vld [vmem:[%s19052_s12 + $0x98] sm:$0xff]  ;;  %v15187_v22 = vld [vmem:[%s19052_s12 + $0x90] sm:$0xff] }
 0x455   :  { %v9102_v25 = vpop.f32.mrf.mxu1  ;;  %v9290_v4 = vadd.f32 %v9289_v21, %v9276_v28  ;;  %v15196_v21 = vld [vmem:[%s19052_s12 + $0xd8] sm:$0xff]  ;;  %9889 = vmatpush.bf16.msrb.mxu3 %v15188_v29  ;;  %v15170_v28 = vld [vmem:[%s19052_s12 + $0x8] sm:$0xff] }
 0x456   :  { %v9104_v48 = vadd.f32 %v9101_v27, %v8969_v24  ;;  %v9291_v61 = vpop.f32.mrf.mxu0  ;;  %9902 = vmatpush.bf16.msrb.mxu0 %v15196_v21  ;;  %v15195_v24 = vld [vmem:[%s19052_s12 + $0xd0] sm:$0xff]  ;;  %v9629_v27 = vld [vmem:[%s19053_s3] sm:$0x3]  ;;  %v15178_v25 = vld [vmem:[%s19052_s12 + $0x48] sm:$0xff]  ;;  %9865 = vmatpush.bf16.msrb.mxu1 %v15170_v28 }
 0x457   :  { %14230 = vmatmul.msk.f32.vlgmr.msra.gmra.mxu3 %vm67_vm1, %v9629_v27  ;;  %v15194_v61 = vld [vmem:[%s19052_s12 + $0xc8] sm:$0xff]  ;;  %9878 = vmatpush.bf16.msra.mxu2 %v15178_v25  ;;  %vm9926_vm1 = vcmask 146432  }
 0x458   :  { %v9105_v53 = vadd.f32 %v9104_v48, %v18836_v20  ;;  %v15186_v48 = vld [vmem:[%s19052_s12 + $0x88] sm:$0xff] }
 0x459   :  { %9890 = vmatpush.bf16.msrb.mxu3 %v15187_v22 }
 0x45a   :  { %vm9106_vm10 = vcmp.ge.f32.partialorder %v9105_v53, 0.0  ;;  %v9107_v8 = vmul.f32 0.2, %v9105_v53  ;;  %9903 = vmatpush.bf16.msrb.mxu0 %v15195_v24 }
 0x45b   :  { %v9089_v11 = vpop.f32.mrf.mxu3 }
 0x45c   :  { %v9108_v51 = vsel %vm9106_vm10, %v9105_v53, %v9107_v8  ;;  %v9278_v0 = vpop.f32.mrf.mxu2  ;;  %v15169_v8 = vld [vmem:[%s19052_s12] sm:$0xff] }
 0x45d   :  { %v9109_v6 = vpack.c.bf16 %v9108_v51, %v9108_v51  ;;  %v9383_v9 = vpop.f32.mrf.mxu1  ;;  %v15177_v11 = vld [vmem:[%s19052_s12 + $0x40] sm:$0xff]  ;;  %9891 = vmatpush.bf16.msrb.mxu3 %v15186_v48  ;;  %9866 = vmatpush.bf16.msrb.mxu1 %v15169_v8 }
 0x45e   :  { %v9384_v50 = vadd.f32 %v9383_v9, %v9290_v4  ;;  %9904 = vmatpush.bf16.msrb.mxu0 %v15194_v61  ;;  %v15185_v51 = vld [vmem:[%s19052_s12 + $0x80] sm:$0xff]  ;;  %9879 = vmatpush.bf16.msra.mxu2 %v15177_v11  ;;  %v9921_v4 = vld [vmem:[%s19055_s15 + $0x10] sm:$0x3] }
 0x45f   :  { %9112 = vst [vmem:[#allocation1] sm:$0xff] %v9109_v6  ;;  %v15193_v0 = vld [vmem:[%s19052_s12 + $0xc0] sm:$0xff] }
 0x460   :  { %9110 = vst.msk [vmem:[#allocation4 + $0x2] sm:$0x1] %vm8250_vm13, %v9109_v6 }
 0x461   :  { %9892 = vmatpush.bf16.msrb.mxu3 %v15185_v51  ;;  %14359 = vmatpush.msk.msra.mxu1 %vm5957_vm7, %v9921_v4  ;;  %vm9954_vm7 = vcmask 1024  }
 0x462   :  { %9905 = vmatpush.bf16.msrb.mxu0 %v15193_v0 }
 0x463   :  { %v9396_v34 = vpop.f32.mrf.mxu3 }
 0x464   :  { %v9397_v41 = vadd.f32 %v9396_v34, %v9384_v50  ;;  %v9920_v50 = vld [vmem:[%s19055_s15 + $0x8] sm:$0xff] }
 0x465   :  { %v9385_v36 = vpop.f32.mrf.mxu1  ;;  %9948 = vmatpush.msra.mxu1 %v9920_v50 }
 0x466   :  { %v9114_v37 = vld [vmem:[#allocation1 + $0x1] ss:$4 sm:$0xff] }
 0x467   :  { %9116 = vrot.lane.b32.xlu2 %v9114_v37, %s15214_s1  ;;  %9120 = vst [vmem:[#allocation1] sm:$0xff] %v9109_v6 }
 0x46b   :  { %v9398_v40 = vpop.f32.mrf.mxu3 }
 0x46e   :  { %v9122_v7 = vld [vmem:[#allocation1 + $0x2] ss:$4 sm:$0xff] }
 0x46f   :  { %9124 = vrot.lane.b32.xlu0 %v9122_v7, %s15212_s23  ;;  %9128 = vst [vmem:[#allocation1] sm:$0xff] %v9109_v6 }
 0x476   :  { %v9130_v26 = vld [vmem:[#allocation1 + $0x3] ss:$4 sm:$0xff] }
 0x47b   :  { %v9515_v62 = vpop.f32.mrf.mxu0 }
 0x481   :  { %v9528_v5 = vpop.f32.mrf.mxu2 }
 0x482   :  { %v9529_v10 = vadd.f32 %v9528_v5, %v9515_v62  ;;  %v9919_v5 = vld [vmem:[%s19055_s15] sm:$0xff] }
 0x483   :  { %v9517_v39 = vpop.f32.mrf.mxu0  ;;  %9949 = vmatpush.msra.mxu1 %v9919_v5 }
 0x484   :  { %v9532_v38 = vadd.f32 %v9529_v10, %v9397_v41  ;;  %v22_v41 = vstv %s19056_s16 }
 0x485   :  { %23 = vst [vmem:[#allocation5] sm:$0x1] %v22_v41 }
 0x486   :  { %v9533_v15 = vadd.f32 %v9532_v38, %v18836_v20 }
 0x488   :  { %vm9534_vm11 = vcmp.ge.f32.partialorder %v9533_v15, 0.0  ;;  %v9535_v35 = vmul.f32 0.2, %v9533_v15 }
 0x489   :  { %v9530_v55 = vpop.f32.mrf.mxu2  ;;  %v8697_v44 = vpop.permute.xlu2 %8696 }
 0x48a   :  { %v9536_v46 = vsel %vm9534_vm11, %v9533_v15, %v9535_v35 }
 0x48b   :  { %v9537_v43 = vpack.c.bf16 %v9536_v46, %v9536_v46 }
 0x48c   :  { %v15208_v18 = vld [vmem:[#allocation5] ss:$0 sm:$0xff] }
 0x48d   :  { %9538 = vst.msk [vmem:[#allocation4 + $0x3] sm:$0x1] %vm8250_vm13, %v9537_v43 }
 0x48e   :  { %9540 = vst [vmem:[#allocation1] sm:$0xff] %v9537_v43 }
 0x495   :  { %v9542_v49 = vld [vmem:[#allocation1 + $0x1] ss:$4 sm:$0xff] }
 0x496   :  { %9544 = vrot.lane.b32.xlu0 %v9542_v49, %s15214_s1  ;;  %9548 = vst [vmem:[#allocation1] sm:$0xff] %v9537_v43  ;;  %v15207_v49 = vld [vmem:[%s19054_s14] ss:$0 sm:$0xff] }
 0x499   :  { %v8689_v32 = vpop.permute.xlu1 %8688 }
 0x49a   :  { %8691 = vst.msk [vmem:[#allocation4 + $0x1] sm:$0x1] %vm8260_vm2, %v8689_v32 }
 0x49b   :  { %8699 = vst.msk [vmem:[#allocation4 + $0x1] sm:$0x1] %vm8269_vm4, %v8697_v44 }
 0x49d   :  { %v9550_v20 = vld [vmem:[#allocation1 + $0x2] ss:$4 sm:$0xff] }
 0x49e   :  { %8704 = vrot.lane.b32.xlu0 %v8702_v30, %s15213_s18  ;;  %9552 = vrot.lane.b32.xlu1 %v9550_v20, %s15212_s23  ;;  %9556 = vst [vmem:[#allocation1] sm:$0xff] %v9537_v43 }
 0x4a5   :  { %v9558_v45 = vld [vmem:[#allocation1 + $0x3] ss:$4 sm:$0xff] }
 0x4a6   :  { %9132 = vrot.lane.b32.xlu1 %v9130_v26, %s15213_s18  ;;  %9560 = vrot.lane.b32.xlu2 %v9558_v45, %s15213_s18 }
 0x4c1   :  { %v9117_v42 = vpop.permute.xlu2 %9116 }
 0x4c2   :  { %9119 = vst.msk [vmem:[#allocation4 + $0x2] sm:$0x1] %vm8260_vm2, %v9117_v42 }
 0x4da   :  { %v9654_v10 = vpop.f32.mrf.mxu3 }
 0x4e1   :  { %v9125_v59 = vpop.permute.xlu0 %9124 }
 0x4e2   :  { %9127 = vst.msk [vmem:[#allocation4 + $0x2] sm:$0x1] %vm8269_vm4, %v9125_v59 }
 0x500   :  { %v9561_v30 = vpop.permute.xlu2 %9560 }
 0x508   :  { %v9545_v53 = vpop.permute.xlu0 %9544 }
 0x509   :  { %9547 = vst.msk [vmem:[#allocation4 + $0x3] sm:$0x1] %vm8260_vm2, %v9545_v53 }
 0x510   :  { %v8705_v6 = vpop.permute.xlu0 %8704  ;;  %v9553_v9 = vpop.permute.xlu1 %9552 }
 0x511   :  { %8707 = vst.msk [vmem:[#allocation4 + $0x1] sm:$0x1] %vm8278_vm14, %v8705_v6 }
 0x512   :  { %9555 = vst.msk [vmem:[#allocation4 + $0x3] sm:$0x1] %vm8269_vm4, %v9553_v9 }
 0x513   :  { %9563 = vst.msk [vmem:[#allocation4 + $0x3] sm:$0x1] %vm8278_vm14, %v9561_v30 }
 0x518   :  { %v9133_v34 = vpop.permute.xlu1 %9132 }
 0x519   :  { %9135 = vst.msk [vmem:[#allocation4 + $0x2] sm:$0x1] %vm8278_vm14, %v9133_v34 }
 0x520   :  { %v9564_v36 = vld [vmem:[#allocation4] sm:$0xf] }
 0x521   :  { %9658 = vst [vmem:[#allocation1] ss:$9 sm:$0xff] %v9564_v36 }
 0x528   :  { %v9659_v37 = vld [vmem:[#allocation1] sm:$0xff]  ;;  %v9660_v40 = vld [vmem:[#allocation1 + $0x9] sm:$0xff]  ;;  %v9661_v7 = vld [vmem:[#allocation1 + $0x12] sm:$0xff] }
 0x529   :  { %9867 = vmatmul.bf16.vlgmr.msrb.gmra.mxu1 %v9659_v37  ;;  %9880 = vmatmul.bf16.vlgmr.msra.gmra.mxu2 %v9660_v40  ;;  %v9662_v62 = vld [vmem:[#allocation1 + $0x1b] sm:$0xff] }
 0x52a   :  { %9893 = vmatmul.bf16.vlgmr.msrb.gmra.mxu3 %v9661_v7  ;;  %9906 = vmatmul.bf16.vlgmr.msrb.gmra.mxu0 %v9662_v62 }
 0x5a6   :  { %v9868_v39 = vpop.f32.mrf.mxu1 }
 0x5a7   :  { %v9907_v38 = vpop.f32.mrf.mxu0  ;;  %v9869_v15 = vadd.f32 %v9868_v39, %v9654_v10 }
 0x5ac   :  { %v9881_v35 = vpop.f32.mrf.mxu2 }
 0x5ad   :  { %v9882_v55 = vadd.f32 %v9881_v35, %v9869_v15  ;;  %v9894_v46 = vpop.f32.mrf.mxu3 }
 0x5ae   :  { %v9870_v43 = vpop.f32.mrf.mxu1 }
 0x5af   :  { %v9895_v26 = vadd.f32 %v9894_v46, %v9882_v55  ;;  %v9909_v32 = vpop.f32.mrf.mxu0 }
 0x5b1   :  { %v9908_v44 = vadd.f32 %v9907_v38, %v9895_v26 }
 0x5b3   :  { %v9915_v20 = vadd.f32 %v15207_v49, %v9908_v44 }
 0x5b4   :  { %v9883_v45 = vpop.f32.mrf.mxu2 }
 0x5b5   :  { %vm9916_vm0 = vcmp.ge.f32.partialorder %v9915_v20, 0.0  ;;  %v9917_v42 = vmul.f32 0.2, %v9915_v20  ;;  %v9896_v59 = vpop.f32.mrf.mxu3 }
 0x5b7   :  { %v9918_v58 = vsel %vm9916_vm0, %v9915_v20, %v9917_v42 }
 0x5b8   :  { %14360 = vmatmul.msk.f32.vlgmr.msra.gmra.mxu1 %vm9926_vm1, %v9918_v58 }
 0x635   :  { %v9951_v47 = vpop.f32.mrf.mxu1 }
 0x636   :  { %v9952_v16 = vadd.f32 %v15208_v18, %v9951_v47 }
 0x638   :  { %9955 = vst.msk [vmem:[%s19057_s17] sm:$0x3] %vm9954_vm7, %v9952_v16 }

</bundles_post_ra>
